<compile_context>
chip_gen: v7x
topology: tpu7x:2x2x1
jax: 0.10.0
libtpu: 0.0.40
codegen_flags: <defaults>
</compile_context>

<pallas_src>
import jax
import jax.numpy as jnp
from jax import lax
from jax.experimental import pallas as pl
from jax.experimental.pallas import tpu as pltpu

CPAD = 128          # every conv output / activation channel dim padded to 128 lanes
BN_EPS = 1e-5
TM_CAP = 256        # row-chunk cap (32 vregs of f32 per chunk)


# ----------------------------- Pallas kernels -----------------------------

def _foreach_chunk(n_chunks, body):
    """Run body(c) for c in [0, n_chunks).  Rolled fori_loop bounds live
    ranges (one chunk's values live at a time); single-chunk case is inlined."""
    if n_chunks == 1:
        body(0)
        return

    def wrapped(c, carry):
        body(c)
        return carry

    lax.fori_loop(0, n_chunks, wrapped, 0)


def _make_conv_kernel(n_chunks, tm, mode, inv_m, emit_raw):
    """Fused conv kernel.

    phase 1: per row chunk  z = patches @ W + b (+ residual / + 1x1 shortcut)
             (MXU, f32 accumulation); store z (bf16) into the inter-phase
             buffer (the raw output if emitted, else VMEM scratch); accumulate
             per-channel sum / sum-of-squares.
    phase 2: training-mode BN scale/shift of the *consuming* layer from the
             one-pass batch statistics.
    phase 3: act = relu(z * scale + shift), stored bf16, lane-dense.

    mode: None | 'add' (identity residual) | 'matmul' (fused 1x1 shortcut).
    """

    def kernel(*refs):
        it = iter(refs)
        p_ref = next(it)                 # (M, K)  bf16 im2col patches
        w_ref = next(it)                 # (K, 128) bf16
        b_ref = next(it)                 # (1, 128) f32
        res_ref = rin_ref = wsc_ref = bsc_ref = None
        if mode == 'add':
            res_ref = next(it)           # (M, 128) bf16 identity residual
        elif mode == 'matmul':
            rin_ref = next(it)           # (M, 128) bf16 subsampled raw input
            wsc_ref = next(it)           # (128, 128) bf16 1x1 shortcut weight
            bsc_ref = next(it)           # (1, 128) f32
        g_ref = next(it)                 # (1, 128) f32 gamma of consuming BN
        beta_ref = next(it)              # (1, 128) f32 beta  of consuming BN
        if emit_raw:
            raw_ref = next(it)           # (M, 128) bf16 output (pre-BN)
            act_ref = next(it)           # (M, 128) bf16 output (relu(bn(.)))
        else:
            act_ref = next(it)
        s_scr = next(it)                 # (1, 128) f32 scratch: sum
        ss_scr = next(it)                # (1, 128) f32 scratch: sum of squares
        zbuf = raw_ref if emit_raw else next(it)   # inter-phase buffer

        w = w_ref[...]
        bias = b_ref[...]
        wsc = wsc_ref[...] if mode == 'matmul' else None
        bsc = bsc_ref[...] if mode == 'matmul' else None

        s_scr[...] = jnp.zeros((1, CPAD), jnp.float32)
        ss_scr[...] = jnp.zeros((1, CPAD), jnp.float32)

        def rows_of(c):
            if isinstance(c, int):
                return pl.ds(c * tm, tm)
            return pl.ds(pl.multiple_of(c * tm, tm), tm)

        # phase 1: conv (+ fused residual / shortcut), raw store, one-pass stats
        def conv_chunk(c):
            rows = rows_of(c)
            z = jnp.dot(p_ref[rows, :], w,
                        preferred_element_type=jnp.float32) + bias
            if mode == 'add':
                z = z + res_ref[rows, :].astype(jnp.float32)
            elif mode == 'matmul':
                z = z + (jnp.dot(rin_ref[rows, :], wsc,
                                 preferred_element_type=jnp.float32) + bsc)
            zbuf[rows, :] = z.astype(zbuf.dtype)
            s_scr[...] = s_scr[...] + jnp.sum(z, axis=0, keepdims=True)
            ss_scr[...] = ss_scr[...] + jnp.sum(z * z, axis=0, keepdims=True)

        _foreach_chunk(n_chunks, conv_chunk)

        # phase 2: training-mode BN scale/shift from one-pass statistics.
        mean = s_scr[...] * inv_m
        var = jnp.maximum(ss_scr[...] * inv_m - mean * mean, 0.0)  # biased var
        scale = g_ref[...] * lax.rsqrt(var + BN_EPS)
        shift = beta_ref[...] - mean * scale

        # phase 3: act = relu(bn(z)); zbuf chunks are VMEM resident.
        def bn_chunk(c):
            rows = rows_of(c)
            zc = zbuf[rows, :].astype(jnp.float32)
            act_ref[rows, :] = jnp.maximum(zc * scale + shift,
                                           0.0).astype(act_ref.dtype)

        _foreach_chunk(n_chunks, bn_chunk)

    return kernel


def _head_kernel(a_ref, w_ref, b_ref, o_ref):
    """Fused global average pool (over the spatial axis) + Linear."""
    inv = 1.0 / a_ref.shape[1]
    pooled = jnp.sum(a_ref[...].astype(jnp.float32), axis=1) * inv   # (N, 128)
    o_ref[...] = (jnp.dot(pooled.astype(jnp.bfloat16), w_ref[...],
                          preferred_element_type=jnp.float32) + b_ref[...])


# ------------------------------ XLA glue ------------------------------

def _pick_tm(m, cap=TM_CAP):
    if m <= cap:
        return m
    for tm in range(cap, 7, -8):
        if m % tm == 0:
            return tm
    return m   # fallback (not hit for CIFAR-style shapes)


def _im2col(x_nhwc, c_true, ksize, stride, padding):
    """Build bf16 im2col patches from the first `c_true` channels."""
    N, H, W, _ = x_nhwc.shape
    x = x_nhwc[..., :c_true].astype(jnp.bfloat16)
    Hout = (H + 2 * padding - ksize) // stride + 1
    Wout = (W + 2 * padding - ksize) // stride + 1
    if padding:
        x = jnp.pad(x, ((0, 0), (padding, padding), (padding, padding), (0, 0)))
    cols = []
    for kh in range(ksize):
        for kw in range(ksize):
            cols.append(x[:, kh:kh + stride * (Hout - 1) + 1:stride,
                          kw:kw + stride * (Wout - 1) + 1:stride, :])
    patches = cols[0] if len(cols) == 1 else jnp.concatenate(cols, axis=-1)
    return patches.reshape(N * Hout * Wout, ksize * ksize * c_true), Hout, Wout


def fused_conv(act_nhwc, c_true, w_mat, bias, gamma_next, beta_next, *,
               ksize=3, stride=1, padding=1,
               residual=None, shortcut=None, emit_raw=False):
    """conv + bias (+ identity residual | + fused 1x1 shortcut conv)
    followed by relu(batchnorm(.)) of the next (consuming) layer.

    Returns act (and raw if emit_raw) as NHWC bf16 arrays with 128 channels."""
    N, H, W, _ = act_nhwc.shape
    patches, Hout, Wout = _im2col(act_nhwc, c_true, ksize, stride, padding)
    M = N * Hout * Wout
    tm = _pick_tm(M)
    n_chunks = M // tm
    mode = None
    if residual is not None:
        mode = 'add'
    elif shortcut is not None:
        mode = 'matmul'
    kernel = _make_conv_kernel(n_chunks, tm, mode, 1.0 / float(M), emit_raw)

    args = [patches, w_mat, bias]
    flops = 2.0 * M * patches.shape[1] * CPAD
    if mode == 'add':
        args.append(residual)
    elif mode == 'matmul':
        rin, wsc, bsc = shortcut
        args += [rin, wsc, bsc]
        flops += 2.0 * M * CPAD * CPAD
    args += [gamma_next, beta_next]

    act_sd = jax.ShapeDtypeStruct((M, CPAD), jnp.bfloat16)
    scratch = [pltpu.VMEM((1, CPAD), jnp.float32),
               pltpu.VMEM((1, CPAD), jnp.float32)]
    if emit_raw:
        out_shape = (jax.ShapeDtypeStruct((M, CPAD), jnp.bfloat16), act_sd)
    else:
        out_shape = act_sd
        scratch.append(pltpu.VMEM((M, CPAD), jnp.bfloat16))

    bytes_in = sum(int(a.size) * a.dtype.itemsize for a in args)
    bytes_out = M * CPAD * 2 * (2 if emit_raw else 1)
    cost = pl.CostEstimate(flops=int(flops), transcendentals=0,
                           bytes_accessed=int(bytes_in + bytes_out))

    out = pl.pallas_call(kernel, out_shape=out_shape,
                         scratch_shapes=scratch, cost_estimate=cost)(*args)
    if emit_raw:
        raw, act = out
        return (raw.reshape(N, Hout, Wout, CPAD),
                act.reshape(N, Hout, Wout, CPAD))
    return out.reshape(N, Hout, Wout, CPAD)


def head(act_nhwc, lin_w, lin_b, num_classes):
    N, H, W, C = act_nhwc.shape
    a3 = act_nhwc.reshape(N, H * W, C)
    cost = pl.CostEstimate(flops=int(2 * N * CPAD * CPAD), transcendentals=0,
                           bytes_accessed=int(a3.size * 2 + CPAD * CPAD * 2
                                              + N * CPAD * 4))
    out = pl.pallas_call(
        _head_kernel,
        out_shape=jax.ShapeDtypeStruct((N, CPAD), jnp.float32),
        cost_estimate=cost,
    )(a3, lin_w, lin_b)
    return out[:, :num_classes]


# ------------------------------ forward pass ------------------------------

def wideresnet_forward(x_nchw, pp):
    x = jnp.transpose(x_nchw, (0, 2, 3, 1))        # NCHW -> NHWC (3 channels)
    blocks = pp['blocks']
    # Stem conv; epilogue applies block 0's bn1 + relu.  raw feeds block 0's
    # identity shortcut, so it is emitted.
    raw, act = fused_conv(x, 3, pp['conv1_w'], pp['conv1_b'],
                          blocks[0]['bn1_g'], blocks[0]['bn1_b'], emit_raw=True)
    for bi, blk in enumerate(blocks):
        # conv1 (3x3, stride 1); epilogue applies this block's bn2 + relu.
        # Its raw output has no consumer -> not emitted (VMEM scratch only).
        a1 = fused_conv(act, blk['cin'], blk['conv1_w'], blk['conv1_b'],
                        blk['bn2_g'], blk['bn2_b'])
        last = (bi + 1 == len(blocks))
        if last:
            g_next, b_next = pp['bn_g'], pp['bn_b']
        else:
            g_next, b_next = blocks[bi + 1]['bn1_g'], blocks[bi + 1]['bn1_b']
        s = blk['stride']
        # conv2 (3x3, stride s) with the shortcut fused in; epilogue applies
        # the next block's bn1 + relu (or the network-level bn for the last).
        if 'sc_w' in blk:
            # 1x1 stride-s shortcut on the *raw* block input: the spatial
            # subsample is a cheap XLA strided slice, the matmul is fused.
            rin = raw[:, ::s, ::s, :].reshape(-1, CPAD)
            out = fused_conv(a1, blk['planes'], blk['conv2_w'], blk['conv2_b'],
                             g_next, b_next, stride=s,
                             shortcut=(rin, blk['sc_w'], blk['sc_b']),
                             emit_raw=not last)
        else:
            out = fused_conv(a1, blk['planes'], blk['conv2_w'], blk['conv2_b'],
                             g_next, b_next, stride=s,
                             residual=raw.reshape(-1, CPAD),
                             emit_raw=not last)
        if last:
            act = out
        else:
            raw, act = out
    # Head: avg_pool2d(., 8) on the 8x8 map (global mean) fused with Linear.
    return head(act, pp['lin_w'], pp['lin_b'], pp['num_classes'])


# ------------------------------ parameter prep ------------------------------

def _pad_cout(mat):
    pad = CPAD - mat.shape[-1]
    if pad:
        mat = jnp.pad(mat, [(0, 0)] * (mat.ndim - 1) + [(0, pad)])
    return mat


def _prep_conv(w, b):
    cout, cin, kh, kw = w.shape
    wm = jnp.transpose(w, (2, 3, 1, 0)).reshape(kh * kw * cin, cout)
    wm = _pad_cout(wm).astype(jnp.bfloat16)
    bb = _pad_cout(b.reshape(1, cout)).astype(jnp.float32)
    return wm, bb


def _prep_sc(w, b):
    """1x1 shortcut conv weight, padded on BOTH dims (input rows are the
    128-channel padded raw activations)."""
    cout, cin = w.shape[0], w.shape[1]
    wm = jnp.pad(w.reshape(cout, cin).T,
                 ((0, CPAD - cin), (0, CPAD - cout))).astype(jnp.bfloat16)
    bb = _pad_cout(b.reshape(1, cout)).astype(jnp.float32)
    return wm, bb


def _prep_bn(g, b):
    c = g.shape[0]
    return (_pad_cout(g.reshape(1, c)).astype(jnp.float32),
            _pad_cout(b.reshape(1, c)).astype(jnp.float32))


def prepare_params(params, num_classes=10):
    """Hoisted weight-layout transforms: im2col weight matrices, channel
    padding to 128, bf16 casts, linear transpose -- once, outside the forward."""
    pp = {'num_classes': num_classes}
    pp['conv1_w'], pp['conv1_b'] = _prep_conv(params['conv1_w'], params['conv1_b'])
    blocks = []
    for blk in params['blocks']:
        nb = {'stride': blk['stride'],
              'cin': int(blk['conv1_w'].shape[1]),
              'planes': int(blk['conv1_w'].shape[0])}
        nb['bn1_g'], nb['bn1_b'] = _prep_bn(blk['bn1_g'], blk['bn1_b'])
        nb['conv1_w'], nb['conv1_b'] = _prep_conv(blk['conv1_w'], blk['conv1_b'])
        nb['bn2_g'], nb['bn2_b'] = _prep_bn(blk['bn2_g'], blk['bn2_b'])
        nb['conv2_w'], nb['conv2_b'] = _prep_conv(blk['conv2_w'], blk['conv2_b'])
        if 'sc_w' in blk:
            nb['sc_w'], nb['sc_b'] = _prep_sc(blk['sc_w'], blk['sc_b'])
        blocks.append(nb)
    pp['blocks'] = blocks
    pp['bn_g'], pp['bn_b'] = _prep_bn(params['bn_g'], params['bn_b'])
    lw = params['lin_w']                       # (num_classes, feat)
    feat = lw.shape[1]
    lwT = jnp.pad(lw.T, ((0, CPAD - feat), (0, CPAD - num_classes)))
    pp['lin_w'] = lwT.astype(jnp.bfloat16)
    pp['lin_b'] = jnp.pad(params['lin_b'].reshape(1, -1),
                          ((0, 0), (0, CPAD - num_classes))).astype(jnp.float32)
    return pp


# ------------------------------ parameter init ------------------------------

def init_params(key, depth=10, widen_factor=1, num_classes=10):
    assert (depth - 4) % 6 == 0, 'Wide-resnet depth should be 6n+4'
    n = (depth - 4) // 6
    k = widen_factor
    nstages = [16, 16 * k, 32 * k, 64 * k]
    keys = iter(jax.random.split(key, 512))

    def conv(cout, cin, kh, kw):
        w = 0.1 * jax.random.normal(next(keys), (cout, cin, kh, kw), jnp.float32)
        b = 0.01 * jax.random.normal(next(keys), (cout,), jnp.float32)
        return w, b

    def bn(c):
        g = 1.0 + 0.05 * jax.random.normal(next(keys), (c,), jnp.float32)
        b = 0.05 * jax.random.normal(next(keys), (c,), jnp.float32)
        return g, b

    params = {}
    params['conv1_w'], params['conv1_b'] = conv(nstages[0], 3, 3, 3)

    blocks = []
    in_planes = nstages[0]
    for stage_idx, stride0 in ((1, 1), (2, 2), (3, 2)):
        planes = nstages[stage_idx]
        strides = [stride0] + [1] * (n - 1)
        for s in strides:
            blk = {'stride': s}
            blk['bn1_g'], blk['bn1_b'] = bn(in_planes)
            blk['conv1_w'], blk['conv1_b'] = conv(planes, in_planes, 3, 3)
            blk['bn2_g'], blk['bn2_b'] = bn(planes)
            blk['conv2_w'], blk['conv2_b'] = conv(planes, planes, 3, 3)
            if s != 1 or in_planes != planes:
                blk['sc_w'], blk['sc_b'] = conv(planes, in_planes, 1, 1)
            blocks.append(blk)
            in_planes = planes
    params['blocks'] = blocks

    params['bn_g'], params['bn_b'] = bn(nstages[3])
    params['lin_w'] = 0.1 * jax.random.normal(next(keys), (num_classes, nstages[3]),
                                              jnp.float32)
    params['lin_b'] = 0.01 * jax.random.normal(next(keys), (num_classes,), jnp.float32)
    return params


if __name__ == "__main__":
    key = jax.random.PRNGKey(0)
    k_x, k_p = jax.random.split(key)
    # depth=10 (n=1), widen_factor=1, CIFAR-style 32x32 input so that
    # avg_pool2d(out, 8) sees an 8x8 feature map.
    x = jax.random.normal(k_x, (2, 3, 32, 32), jnp.float32)      # NCHW like PyTorch
    params = init_params(k_p, depth=10, widen_factor=1, num_classes=10)
    pp = prepare_params(params, num_classes=10)

    fwd = jax.jit(lambda inp: wideresnet_forward(inp, pp))
    logits = fwd(x)
    jax.block_until_ready(logits)
    assert logits.shape == (2, 10)
    assert bool(jnp.all(jnp.isfinite(logits)))
    print("KERNEL_OK")
</pallas_src>

<mosaic_0001>
module attributes {stable_mosaic.version = 11 : i64} {
  func.func @kernel(%arg0: memref<2048x27xbf16, #tpu.memory_space<vmem>>, %arg1: memref<27x128xbf16, #tpu.memory_space<vmem>>, %arg2: memref<1x128xf32, #tpu.memory_space<vmem>>, %arg3: memref<1x128xf32, #tpu.memory_space<vmem>>, %arg4: memref<1x128xf32, #tpu.memory_space<vmem>>, %arg5: memref<2048x128xbf16, #tpu.memory_space<vmem>>, %arg6: memref<2048x128xbf16, #tpu.memory_space<vmem>>, %arg7: memref<1x128xf32, #tpu.memory_space<vmem>>, %arg8: memref<1x128xf32, #tpu.memory_space<vmem>>) attributes {dimension_semantics = [], scalar_prefetch = 0 : i64, scratch_operands = 2 : i64, tpu.core_type = #tpu.core_type<tc>} {
    %c0 = arith.constant 0 : index
    %c0_0 = arith.constant 0 : index
    %0 = vector.load %arg1[%c0, %c0_0] : memref<27x128xbf16, #tpu.memory_space<vmem>>, vector<27x128xbf16>
    %c0_1 = arith.constant 0 : index
    %c0_2 = arith.constant 0 : index
    %1 = vector.load %arg2[%c0_1, %c0_2] : memref<1x128xf32, #tpu.memory_space<vmem>>, vector<1x128xf32>
    %cst = arith.constant 0.000000e+00 : f32
    %2 = vector.broadcast %cst : f32 to vector<1x128xf32>
    %c0_3 = arith.constant 0 : index
    %c0_4 = arith.constant 0 : index
    %3 = vector.load %arg7[%c0_3, %c0_4] : memref<1x128xf32, #tpu.memory_space<vmem>>, vector<1x128xf32>
    tpu.vector_store %arg7[%c0_3, %c0_4], %2 {strides = array<i32>} : memref<1x128xf32, #tpu.memory_space<vmem>>, vector<1x128xf32>,
    %cst_5 = arith.constant 0.000000e+00 : f32
    %4 = vector.broadcast %cst_5 : f32 to vector<1x128xf32>
    %c0_6 = arith.constant 0 : index
    %c0_7 = arith.constant 0 : index
    %5 = vector.load %arg8[%c0_6, %c0_7] : memref<1x128xf32, #tpu.memory_space<vmem>>, vector<1x128xf32>
    tpu.vector_store %arg8[%c0_6, %c0_7], %4 {strides = array<i32>} : memref<1x128xf32, #tpu.memory_space<vmem>>, vector<1x128xf32>,
    %c0_i32 = arith.constant 0 : i32
    %c8_i32 = arith.constant 8 : i32
    %6 = arith.addi %c0_i32, %c8_i32 : i32
    %c1_i32 = arith.constant 1 : i32
    scf.for %arg9 = %c0_i32 to %6 step %c1_i32  : i32 {
      %c256_i32 = arith.constant 256 : i32
      %26 = arith.muli %arg9, %c256_i32 : i32
      %27 = tpu.assume_multiple %26, 256 : i32
      %28 = arith.index_cast %27 : i32 to index
      %c0_25 = arith.constant 0 : index
      %29 = vector.load %arg0[%28, %c0_25] : memref<2048x27xbf16, #tpu.memory_space<vmem>>, vector<256x27xbf16>
      %cst_26 = arith.constant dense<0.000000e+00> : vector<256x128xf32>
      %30 = tpu.matmul %29, %0, %cst_26 {dimension_numbers = #tpu.dot_dimension_numbers<[1], [0], [0], [1], [0, 0, 1, 1], [], []>} : vector<256x27xbf16>, vector<27x128xbf16>, vector<256x128xf32> -> vector<256x128xf32>
      %31 = vector.broadcast %1 : vector<1x128xf32> to vector<256x128xf32>
      %32 = arith.addf %30, %31 : vector<256x128xf32>
      %33 = arith.truncf %32 : vector<256x128xf32> to vector<256x128xbf16>
      %34 = arith.index_cast %27 : i32 to index
      %c0_27 = arith.constant 0 : index
      %35 = vector.load %arg5[%34, %c0_27] : memref<2048x128xbf16, #tpu.memory_space<vmem>>, vector<256x128xbf16>
      tpu.vector_store %arg5[%34, %c0_27], %33 {strides = array<i32>} : memref<2048x128xbf16, #tpu.memory_space<vmem>>, vector<256x128xbf16>,
      %c0_28 = arith.constant 0 : index
      %c0_29 = arith.constant 0 : index
      %36 = vector.load %arg7[%c0_28, %c0_29] : memref<1x128xf32, #tpu.memory_space<vmem>>, vector<1x128xf32>
      %cst_30 = arith.constant dense<0.000000e+00> : vector<128xf32>
      %37 = vector.multi_reduction <add>, %32, %cst_30 [0] : vector<256x128xf32> to vector<128xf32>
      %38 = vector.shape_cast %37 : vector<128xf32> to vector<1x128xf32>
      %39 = arith.addf %36, %38 : vector<1x128xf32>
      %c0_31 = arith.constant 0 : index
      %c0_32 = arith.constant 0 : index
      %40 = vector.load %arg7[%c0_31, %c0_32] : memref<1x128xf32, #tpu.memory_space<vmem>>, vector<1x128xf32>
      tpu.vector_store %arg7[%c0_31, %c0_32], %39 {strides = array<i32>} : memref<1x128xf32, #tpu.memory_space<vmem>>, vector<1x128xf32>,
      %c0_33 = arith.constant 0 : index
      %c0_34 = arith.constant 0 : index
      %41 = vector.load %arg8[%c0_33, %c0_34] : memref<1x128xf32, #tpu.memory_space<vmem>>, vector<1x128xf32>
      %42 = arith.mulf %32, %32 : vector<256x128xf32>
      %cst_35 = arith.constant dense<0.000000e+00> : vector<128xf32>
      %43 = vector.multi_reduction <add>, %42, %cst_35 [0] : vector<256x128xf32> to vector<128xf32>
      %44 = vector.shape_cast %43 : vector<128xf32> to vector<1x128xf32>
      %45 = arith.addf %41, %44 : vector<1x128xf32>
      %c0_36 = arith.constant 0 : index
      %c0_37 = arith.constant 0 : index
      %46 = vector.load %arg8[%c0_36, %c0_37] : memref<1x128xf32, #tpu.memory_space<vmem>>, vector<1x128xf32>
      tpu.vector_store %arg8[%c0_36, %c0_37], %45 {strides = array<i32>} : memref<1x128xf32, #tpu.memory_space<vmem>>, vector<1x128xf32>,
    }
    %c8_i32_8 = arith.constant 8 : i32
    %c0_9 = arith.constant 0 : index
    %c0_10 = arith.constant 0 : index
    %7 = vector.load %arg7[%c0_9, %c0_10] : memref<1x128xf32, #tpu.memory_space<vmem>>, vector<1x128xf32>
    %cst_11 = arith.constant 4.8828125E-4 : f32
    %8 = vector.broadcast %cst_11 : f32 to vector<1x128xf32>
    %9 = arith.mulf %7, %8 : vector<1x128xf32>
    %c0_12 = arith.constant 0 : index
    %c0_13 = arith.constant 0 : index
    %10 = vector.load %arg8[%c0_12, %c0_13] : memref<1x128xf32, #tpu.memory_space<vmem>>, vector<1x128xf32>
    %cst_14 = arith.constant 4.8828125E-4 : f32
    %11 = vector.broadcast %cst_14 : f32 to vector<1x128xf32>
    %12 = arith.mulf %10, %11 : vector<1x128xf32>
    %13 = arith.mulf %9, %9 : vector<1x128xf32>
    %14 = arith.subf %12, %13 : vector<1x128xf32>
    %cst_15 = arith.constant 0.000000e+00 : f32
    %15 = vector.broadcast %cst_15 : f32 to vector<1x128xf32>
    %16 = arith.maximumf %14, %15 : vector<1x128xf32>
    %c0_16 = arith.constant 0 : index
    %c0_17 = arith.constant 0 : index
    %17 = vector.load %arg3[%c0_16, %c0_17] : memref<1x128xf32, #tpu.memory_space<vmem>>, vector<1x128xf32>
    %cst_18 = arith.constant 9.99999974E-6 : f32
    %18 = vector.broadcast %cst_18 : f32 to vector<1x128xf32>
    %19 = arith.addf %16, %18 : vector<1x128xf32>
    %20 = math.rsqrt %19 : vector<1x128xf32>
    %21 = arith.mulf %17, %20 : vector<1x128xf32>
    %c0_19 = arith.constant 0 : index
    %c0_20 = arith.constant 0 : index
    %22 = vector.load %arg4[%c0_19, %c0_20] : memref<1x128xf32, #tpu.memory_space<vmem>>, vector<1x128xf32>
    %23 = arith.mulf %9, %21 : vector<1x128xf32>
    %24 = arith.subf %22, %23 : vector<1x128xf32>
    %c0_i32_21 = arith.constant 0 : i32
    %c8_i32_22 = arith.constant 8 : i32
    %25 = arith.addi %c0_i32_21, %c8_i32_22 : i32
    %c1_i32_23 = arith.constant 1 : i32
    scf.for %arg9 = %c0_i32_21 to %25 step %c1_i32_23  : i32 {
      %c256_i32 = arith.constant 256 : i32
      %26 = arith.muli %arg9, %c256_i32 : i32
      %27 = tpu.assume_multiple %26, 256 : i32
      %28 = arith.index_cast %27 : i32 to index
      %c0_25 = arith.constant 0 : index
      %29 = vector.load %arg5[%28, %c0_25] : memref<2048x128xbf16, #tpu.memory_space<vmem>>, vector<256x128xbf16>
      %30 = arith.extf %29 : vector<256x128xbf16> to vector<256x128xf32>
      %31 = vector.broadcast %21 : vector<1x128xf32> to vector<256x128xf32>
      %32 = arith.mulf %30, %31 : vector<256x128xf32>
      %33 = vector.broadcast %24 : vector<1x128xf32> to vector<256x128xf32>
      %34 = arith.addf %32, %33 : vector<256x128xf32>
      %cst_26 = arith.constant 0.000000e+00 : f32
      %35 = vector.broadcast %cst_26 : f32 to vector<256x128xf32>
      %36 = arith.maximumf %34, %35 : vector<256x128xf32>
      %37 = arith.truncf %36 : vector<256x128xf32> to vector<256x128xbf16>
      %38 = arith.index_cast %27 : i32 to index
      %c0_27 = arith.constant 0 : index
      %39 = vector.load %arg6[%38, %c0_27] : memref<2048x128xbf16, #tpu.memory_space<vmem>>, vector<256x128xbf16>
      tpu.vector_store %arg6[%38, %c0_27], %37 {strides = array<i32>} : memref<2048x128xbf16, #tpu.memory_space<vmem>>, vector<256x128xbf16>,
    }
    %c8_i32_24 = arith.constant 8 : i32
    return
  }
}

module attributes {stable_mosaic.version = 11 : i64} {
  func.func @kernel(%arg0: memref<2048x144xbf16, #tpu.memory_space<vmem>>, %arg1: memref<144x128xbf16, #tpu.memory_space<vmem>>, %arg2: memref<1x128xf32, #tpu.memory_space<vmem>>, %arg3: memref<1x128xf32, #tpu.memory_space<vmem>>, %arg4: memref<1x128xf32, #tpu.memory_space<vmem>>, %arg5: memref<2048x128xbf16, #tpu.memory_space<vmem>>, %arg6: memref<1x128xf32, #tpu.memory_space<vmem>>, %arg7: memref<1x128xf32, #tpu.memory_space<vmem>>, %arg8: memref<2048x128xbf16, #tpu.memory_space<vmem>>) attributes {dimension_semantics = [], scalar_prefetch = 0 : i64, scratch_operands = 3 : i64, tpu.core_type = #tpu.core_type<tc>} {
    %c0 = arith.constant 0 : index
    %c0_0 = arith.constant 0 : index
    %0 = vector.load %arg1[%c0, %c0_0] : memref<144x128xbf16, #tpu.memory_space<vmem>>, vector<144x128xbf16>
    %c0_1 = arith.constant 0 : index
    %c0_2 = arith.constant 0 : index
    %1 = vector.load %arg2[%c0_1, %c0_2] : memref<1x128xf32, #tpu.memory_space<vmem>>, vector<1x128xf32>
    %cst = arith.constant 0.000000e+00 : f32
    %2 = vector.broadcast %cst : f32 to vector<1x128xf32>
    %c0_3 = arith.constant 0 : index
    %c0_4 = arith.constant 0 : index
    %3 = vector.load %arg6[%c0_3, %c0_4] : memref<1x128xf32, #tpu.memory_space<vmem>>, vector<1x128xf32>
    tpu.vector_store %arg6[%c0_3, %c0_4], %2 {strides = array<i32>} : memref<1x128xf32, #tpu.memory_space<vmem>>, vector<1x128xf32>,
    %cst_5 = arith.constant 0.000000e+00 : f32
    %4 = vector.broadcast %cst_5 : f32 to vector<1x128xf32>
    %c0_6 = arith.constant 0 : index
    %c0_7 = arith.constant 0 : index
    %5 = vector.load %arg7[%c0_6, %c0_7] : memref<1x128xf32, #tpu.memory_space<vmem>>, vector<1x128xf32>
    tpu.vector_store %arg7[%c0_6, %c0_7], %4 {strides = array<i32>} : memref<1x128xf32, #tpu.memory_space<vmem>>, vector<1x128xf32>,
    %c0_i32 = arith.constant 0 : i32
    %c8_i32 = arith.constant 8 : i32
    %6 = arith.addi %c0_i32, %c8_i32 : i32
    %c1_i32 = arith.constant 1 : i32
    scf.for %arg9 = %c0_i32 to %6 step %c1_i32  : i32 {
      %c256_i32 = arith.constant 256 : i32
      %26 = arith.muli %arg9, %c256_i32 : i32
      %27 = tpu.assume_multiple %26, 256 : i32
      %28 = arith.index_cast %27 : i32 to index
      %c0_25 = arith.constant 0 : index
      %29 = vector.load %arg0[%28, %c0_25] : memref<2048x144xbf16, #tpu.memory_space<vmem>>, vector<256x144xbf16>
      %cst_26 = arith.constant dense<0.000000e+00> : vector<256x128xf32>
      %30 = tpu.matmul %29, %0, %cst_26 {dimension_numbers = #tpu.dot_dimension_numbers<[1], [0], [0], [1], [0, 0, 1, 1], [], []>} : vector<256x144xbf16>, vector<144x128xbf16>, vector<256x128xf32> -> vector<256x128xf32>
      %31 = vector.broadcast %1 : vector<1x128xf32> to vector<256x128xf32>
      %32 = arith.addf %30, %31 : vector<256x128xf32>
      %33 = arith.truncf %32 : vector<256x128xf32> to vector<256x128xbf16>
      %34 = arith.index_cast %27 : i32 to index
      %c0_27 = arith.constant 0 : index
      %35 = vector.load %arg8[%34, %c0_27] : memref<2048x128xbf16, #tpu.memory_space<vmem>>, vector<256x128xbf16>
      tpu.vector_store %arg8[%34, %c0_27], %33 {strides = array<i32>} : memref<2048x128xbf16, #tpu.memory_space<vmem>>, vector<256x128xbf16>,
      %c0_28 = arith.constant 0 : index
      %c0_29 = arith.constant 0 : index
      %36 = vector.load %arg6[%c0_28, %c0_29] : memref<1x128xf32, #tpu.memory_space<vmem>>, vector<1x128xf32>
      %cst_30 = arith.constant dense<0.000000e+00> : vector<128xf32>
      %37 = vector.multi_reduction <add>, %32, %cst_30 [0] : vector<256x128xf32> to vector<128xf32>
      %38 = vector.shape_cast %37 : vector<128xf32> to vector<1x128xf32>
      %39 = arith.addf %36, %38 : vector<1x128xf32>
      %c0_31 = arith.constant 0 : index
      %c0_32 = arith.constant 0 : index
      %40 = vector.load %arg6[%c0_31, %c0_32] : memref<1x128xf32, #tpu.memory_space<vmem>>, vector<1x128xf32>
      tpu.vector_store %arg6[%c0_31, %c0_32], %39 {strides = array<i32>} : memref<1x128xf32, #tpu.memory_space<vmem>>, vector<1x128xf32>,
      %c0_33 = arith.constant 0 : index
      %c0_34 = arith.constant 0 : index
      %41 = vector.load %arg7[%c0_33, %c0_34] : memref<1x128xf32, #tpu.memory_space<vmem>>, vector<1x128xf32>
      %42 = arith.mulf %32, %32 : vector<256x128xf32>
      %cst_35 = arith.constant dense<0.000000e+00> : vector<128xf32>
      %43 = vector.multi_reduction <add>, %42, %cst_35 [0] : vector<256x128xf32> to vector<128xf32>
      %44 = vector.shape_cast %43 : vector<128xf32> to vector<1x128xf32>
      %45 = arith.addf %41, %44 : vector<1x128xf32>
      %c0_36 = arith.constant 0 : index
      %c0_37 = arith.constant 0 : index
      %46 = vector.load %arg7[%c0_36, %c0_37] : memref<1x128xf32, #tpu.memory_space<vmem>>, vector<1x128xf32>
      tpu.vector_store %arg7[%c0_36, %c0_37], %45 {strides = array<i32>} : memref<1x128xf32, #tpu.memory_space<vmem>>, vector<1x128xf32>,
    }
    %c8_i32_8 = arith.constant 8 : i32
    %c0_9 = arith.constant 0 : index
    %c0_10 = arith.constant 0 : index
    %7 = vector.load %arg6[%c0_9, %c0_10] : memref<1x128xf32, #tpu.memory_space<vmem>>, vector<1x128xf32>
    %cst_11 = arith.constant 4.8828125E-4 : f32
    %8 = vector.broadcast %cst_11 : f32 to vector<1x128xf32>
    %9 = arith.mulf %7, %8 : vector<1x128xf32>
    %c0_12 = arith.constant 0 : index
    %c0_13 = arith.constant 0 : index
    %10 = vector.load %arg7[%c0_12, %c0_13] : memref<1x128xf32, #tpu.memory_space<vmem>>, vector<1x128xf32>
    %cst_14 = arith.constant 4.8828125E-4 : f32
    %11 = vector.broadcast %cst_14 : f32 to vector<1x128xf32>
    %12 = arith.mulf %10, %11 : vector<1x128xf32>
    %13 = arith.mulf %9, %9 : vector<1x128xf32>
    %14 = arith.subf %12, %13 : vector<1x128xf32>
    %cst_15 = arith.constant 0.000000e+00 : f32
    %15 = vector.broadcast %cst_15 : f32 to vector<1x128xf32>
    %16 = arith.maximumf %14, %15 : vector<1x128xf32>
    %c0_16 = arith.constant 0 : index
    %c0_17 = arith.constant 0 : index
    %17 = vector.load %arg3[%c0_16, %c0_17] : memref<1x128xf32, #tpu.memory_space<vmem>>, vector<1x128xf32>
    %cst_18 = arith.constant 9.99999974E-6 : f32
    %18 = vector.broadcast %cst_18 : f32 to vector<1x128xf32>
    %19 = arith.addf %16, %18 : vector<1x128xf32>
    %20 = math.rsqrt %19 : vector<1x128xf32>
    %21 = arith.mulf %17, %20 : vector<1x128xf32>
    %c0_19 = arith.constant 0 : index
    %c0_20 = arith.constant 0 : index
    %22 = vector.load %arg4[%c0_19, %c0_20] : memref<1x128xf32, #tpu.memory_space<vmem>>, vector<1x128xf32>
    %23 = arith.mulf %9, %21 : vector<1x128xf32>
    %24 = arith.subf %22, %23 : vector<1x128xf32>
    %c0_i32_21 = arith.constant 0 : i32
    %c8_i32_22 = arith.constant 8 : i32
    %25 = arith.addi %c0_i32_21, %c8_i32_22 : i32
    %c1_i32_23 = arith.constant 1 : i32
    scf.for %arg9 = %c0_i32_21 to %25 step %c1_i32_23  : i32 {
      %c256_i32 = arith.constant 256 : i32
      %26 = arith.muli %arg9, %c256_i32 : i32
      %27 = tpu.assume_multiple %26, 256 : i32
      %28 = arith.index_cast %27 : i32 to index
      %c0_25 = arith.constant 0 : index
      %29 = vector.load %arg8[%28, %c0_25] : memref<2048x128xbf16, #tpu.memory_space<vmem>>, vector<256x128xbf16>
      %30 = arith.extf %29 : vector<256x128xbf16> to vector<256x128xf32>
      %31 = vector.broadcast %21 : vector<1x128xf32> to vector<256x128xf32>
      %32 = arith.mulf %30, %31 : vector<256x128xf32>
      %33 = vector.broadcast %24 : vector<1x128xf32> to vector<256x128xf32>
      %34 = arith.addf %32, %33 : vector<256x128xf32>
      %cst_26 = arith.constant 0.000000e+00 : f32
      %35 = vector.broadcast %cst_26 : f32 to vector<256x128xf32>
      %36 = arith.maximumf %34, %35 : vector<256x128xf32>
      %37 = arith.truncf %36 : vector<256x128xf32> to vector<256x128xbf16>
      %38 = arith.index_cast %27 : i32 to index
      %c0_27 = arith.constant 0 : index
      %39 = vector.load %arg5[%38, %c0_27] : memref<2048x128xbf16, #tpu.memory_space<vmem>>, vector<256x128xbf16>
      tpu.vector_store %arg5[%38, %c0_27], %37 {strides = array<i32>} : memref<2048x128xbf16, #tpu.memory_space<vmem>>, vector<256x128xbf16>,
    }
    %c8_i32_24 = arith.constant 8 : i32
    return
  }
}

module attributes {stable_mosaic.version = 11 : i64} {
  func.func @kernel(%arg0: memref<2048x144xbf16, #tpu.memory_space<vmem>>, %arg1: memref<144x128xbf16, #tpu.memory_space<vmem>>, %arg2: memref<1x128xf32, #tpu.memory_space<vmem>>, %arg3: memref<2048x128xbf16, #tpu.memory_space<vmem>>, %arg4: memref<1x128xf32, #tpu.memory_space<vmem>>, %arg5: memref<1x128xf32, #tpu.memory_space<vmem>>, %arg6: memref<2048x128xbf16, #tpu.memory_space<vmem>>, %arg7: memref<2048x128xbf16, #tpu.memory_space<vmem>>, %arg8: memref<1x128xf32, #tpu.memory_space<vmem>>, %arg9: memref<1x128xf32, #tpu.memory_space<vmem>>) attributes {dimension_semantics = [], scalar_prefetch = 0 : i64, scratch_operands = 2 : i64, tpu.core_type = #tpu.core_type<tc>} {
    %c0 = arith.constant 0 : index
    %c0_0 = arith.constant 0 : index
    %0 = vector.load %arg1[%c0, %c0_0] : memref<144x128xbf16, #tpu.memory_space<vmem>>, vector<144x128xbf16>
    %c0_1 = arith.constant 0 : index
    %c0_2 = arith.constant 0 : index
    %1 = vector.load %arg2[%c0_1, %c0_2] : memref<1x128xf32, #tpu.memory_space<vmem>>, vector<1x128xf32>
    %cst = arith.constant 0.000000e+00 : f32
    %2 = vector.broadcast %cst : f32 to vector<1x128xf32>
    %c0_3 = arith.constant 0 : index
    %c0_4 = arith.constant 0 : index
    %3 = vector.load %arg8[%c0_3, %c0_4] : memref<1x128xf32, #tpu.memory_space<vmem>>, vector<1x128xf32>
    tpu.vector_store %arg8[%c0_3, %c0_4], %2 {strides = array<i32>} : memref<1x128xf32, #tpu.memory_space<vmem>>, vector<1x128xf32>,
    %cst_5 = arith.constant 0.000000e+00 : f32
    %4 = vector.broadcast %cst_5 : f32 to vector<1x128xf32>
    %c0_6 = arith.constant 0 : index
    %c0_7 = arith.constant 0 : index
    %5 = vector.load %arg9[%c0_6, %c0_7] : memref<1x128xf32, #tpu.memory_space<vmem>>, vector<1x128xf32>
    tpu.vector_store %arg9[%c0_6, %c0_7], %4 {strides = array<i32>} : memref<1x128xf32, #tpu.memory_space<vmem>>, vector<1x128xf32>,
    %c0_i32 = arith.constant 0 : i32
    %c8_i32 = arith.constant 8 : i32
    %6 = arith.addi %c0_i32, %c8_i32 : i32
    %c1_i32 = arith.constant 1 : i32
    scf.for %arg10 = %c0_i32 to %6 step %c1_i32  : i32 {
      %c256_i32 = arith.constant 256 : i32
      %26 = arith.muli %arg10, %c256_i32 : i32
      %27 = tpu.assume_multiple %26, 256 : i32
      %28 = arith.index_cast %27 : i32 to index
      %c0_25 = arith.constant 0 : index
      %29 = vector.load %arg0[%28, %c0_25] : memref<2048x144xbf16, #tpu.memory_space<vmem>>, vector<256x144xbf16>
      %cst_26 = arith.constant dense<0.000000e+00> : vector<256x128xf32>
      %30 = tpu.matmul %29, %0, %cst_26 {dimension_numbers = #tpu.dot_dimension_numbers<[1], [0], [0], [1], [0, 0, 1, 1], [], []>} : vector<256x144xbf16>, vector<144x128xbf16>, vector<256x128xf32> -> vector<256x128xf32>
      %31 = vector.broadcast %1 : vector<1x128xf32> to vector<256x128xf32>
      %32 = arith.addf %30, %31 : vector<256x128xf32>
      %33 = arith.index_cast %27 : i32 to index
      %c0_27 = arith.constant 0 : index
      %34 = vector.load %arg3[%33, %c0_27] : memref<2048x128xbf16, #tpu.memory_space<vmem>>, vector<256x128xbf16>
      %35 = arith.extf %34 : vector<256x128xbf16> to vector<256x128xf32>
      %36 = arith.addf %32, %35 : vector<256x128xf32>
      %37 = arith.truncf %36 : vector<256x128xf32> to vector<256x128xbf16>
      %38 = arith.index_cast %27 : i32 to index
      %c0_28 = arith.constant 0 : index
      %39 = vector.load %arg6[%38, %c0_28] : memref<2048x128xbf16, #tpu.memory_space<vmem>>, vector<256x128xbf16>
      tpu.vector_store %arg6[%38, %c0_28], %37 {strides = array<i32>} : memref<2048x128xbf16, #tpu.memory_space<vmem>>, vector<256x128xbf16>,
      %c0_29 = arith.constant 0 : index
      %c0_30 = arith.constant 0 : index
      %40 = vector.load %arg8[%c0_29, %c0_30] : memref<1x128xf32, #tpu.memory_space<vmem>>, vector<1x128xf32>
      %cst_31 = arith.constant dense<0.000000e+00> : vector<128xf32>
      %41 = vector.multi_reduction <add>, %36, %cst_31 [0] : vector<256x128xf32> to vector<128xf32>
      %42 = vector.shape_cast %41 : vector<128xf32> to vector<1x128xf32>
      %43 = arith.addf %40, %42 : vector<1x128xf32>
      %c0_32 = arith.constant 0 : index
      %c0_33 = arith.constant 0 : index
      %44 = vector.load %arg8[%c0_32, %c0_33] : memref<1x128xf32, #tpu.memory_space<vmem>>, vector<1x128xf32>
      tpu.vector_store %arg8[%c0_32, %c0_33], %43 {strides = array<i32>} : memref<1x128xf32, #tpu.memory_space<vmem>>, vector<1x128xf32>,
      %c0_34 = arith.constant 0 : index
      %c0_35 = arith.constant 0 : index
      %45 = vector.load %arg9[%c0_34, %c0_35] : memref<1x128xf32, #tpu.memory_space<vmem>>, vector<1x128xf32>
      %46 = arith.mulf %36, %36 : vector<256x128xf32>
      %cst_36 = arith.constant dense<0.000000e+00> : vector<128xf32>
      %47 = vector.multi_reduction <add>, %46, %cst_36 [0] : vector<256x128xf32> to vector<128xf32>
      %48 = vector.shape_cast %47 : vector<128xf32> to vector<1x128xf32>
      %49 = arith.addf %45, %48 : vector<1x128xf32>
      %c0_37 = arith.constant 0 : index
      %c0_38 = arith.constant 0 : index
      %50 = vector.load %arg9[%c0_37, %c0_38] : memref<1x128xf32, #tpu.memory_space<vmem>>, vector<1x128xf32>
      tpu.vector_store %arg9[%c0_37, %c0_38], %49 {strides = array<i32>} : memref<1x128xf32, #tpu.memory_space<vmem>>, vector<1x128xf32>,
    }
    %c8_i32_8 = arith.constant 8 : i32
    %c0_9 = arith.constant 0 : index
    %c0_10 = arith.constant 0 : index
    %7 = vector.load %arg8[%c0_9, %c0_10] : memref<1x128xf32, #tpu.memory_space<vmem>>, vector<1x128xf32>
    %cst_11 = arith.constant 4.8828125E-4 : f32
    %8 = vector.broadcast %cst_11 : f32 to vector<1x128xf32>
    %9 = arith.mulf %7, %8 : vector<1x128xf32>
    %c0_12 = arith.constant 0 : index
    %c0_13 = arith.constant 0 : index
    %10 = vector.load %arg9[%c0_12, %c0_13] : memref<1x128xf32, #tpu.memory_space<vmem>>, vector<1x128xf32>
    %cst_14 = arith.constant 4.8828125E-4 : f32
    %11 = vector.broadcast %cst_14 : f32 to vector<1x128xf32>
    %12 = arith.mulf %10, %11 : vector<1x128xf32>
    %13 = arith.mulf %9, %9 : vector<1x128xf32>
    %14 = arith.subf %12, %13 : vector<1x128xf32>
    %cst_15 = arith.constant 0.000000e+00 : f32
    %15 = vector.broadcast %cst_15 : f32 to vector<1x128xf32>
    %16 = arith.maximumf %14, %15 : vector<1x128xf32>
    %c0_16 = arith.constant 0 : index
    %c0_17 = arith.constant 0 : index
    %17 = vector.load %arg4[%c0_16, %c0_17] : memref<1x128xf32, #tpu.memory_space<vmem>>, vector<1x128xf32>
    %cst_18 = arith.constant 9.99999974E-6 : f32
    %18 = vector.broadcast %cst_18 : f32 to vector<1x128xf32>
    %19 = arith.addf %16, %18 : vector<1x128xf32>
    %20 = math.rsqrt %19 : vector<1x128xf32>
    %21 = arith.mulf %17, %20 : vector<1x128xf32>
    %c0_19 = arith.constant 0 : index
    %c0_20 = arith.constant 0 : index
    %22 = vector.load %arg5[%c0_19, %c0_20] : memref<1x128xf32, #tpu.memory_space<vmem>>, vector<1x128xf32>
    %23 = arith.mulf %9, %21 : vector<1x128xf32>
    %24 = arith.subf %22, %23 : vector<1x128xf32>
    %c0_i32_21 = arith.constant 0 : i32
    %c8_i32_22 = arith.constant 8 : i32
    %25 = arith.addi %c0_i32_21, %c8_i32_22 : i32
    %c1_i32_23 = arith.constant 1 : i32
    scf.for %arg10 = %c0_i32_21 to %25 step %c1_i32_23  : i32 {
      %c256_i32 = arith.constant 256 : i32
      %26 = arith.muli %arg10, %c256_i32 : i32
      %27 = tpu.assume_multiple %26, 256 : i32
      %28 = arith.index_cast %27 : i32 to index
      %c0_25 = arith.constant 0 : index
      %29 = vector.load %arg6[%28, %c0_25] : memref<2048x128xbf16, #tpu.memory_space<vmem>>, vector<256x128xbf16>
      %30 = arith.extf %29 : vector<256x128xbf16> to vector<256x128xf32>
      %31 = vector.broadcast %21 : vector<1x128xf32> to vector<256x128xf32>
      %32 = arith.mulf %30, %31 : vector<256x128xf32>
      %33 = vector.broadcast %24 : vector<1x128xf32> to vector<256x128xf32>
      %34 = arith.addf %32, %33 : vector<256x128xf32>
      %cst_26 = arith.constant 0.000000e+00 : f32
      %35 = vector.broadcast %cst_26 : f32 to vector<256x128xf32>
      %36 = arith.maximumf %34, %35 : vector<256x128xf32>
      %37 = arith.truncf %36 : vector<256x128xf32> to vector<256x128xbf16>
      %38 = arith.index_cast %27 : i32 to index
      %c0_27 = arith.constant 0 : index
      %39 = vector.load %arg7[%38, %c0_27] : memref<2048x128xbf16, #tpu.memory_space<vmem>>, vector<256x128xbf16>
      tpu.vector_store %arg7[%38, %c0_27], %37 {strides = array<i32>} : memref<2048x128xbf16, #tpu.memory_space<vmem>>, vector<256x128xbf16>,
    }
    %c8_i32_24 = arith.constant 8 : i32
    return
  }
}

module attributes {stable_mosaic.version = 11 : i64} {
  func.func @kernel(%arg0: memref<512x288xbf16, #tpu.memory_space<vmem>>, %arg1: memref<288x128xbf16, #tpu.memory_space<vmem>>, %arg2: memref<1x128xf32, #tpu.memory_space<vmem>>, %arg3: memref<512x128xbf16, #tpu.memory_space<vmem>>, %arg4: memref<128x128xbf16, #tpu.memory_space<vmem>>, %arg5: memref<1x128xf32, #tpu.memory_space<vmem>>, %arg6: memref<1x128xf32, #tpu.memory_space<vmem>>, %arg7: memref<1x128xf32, #tpu.memory_space<vmem>>, %arg8: memref<512x128xbf16, #tpu.memory_space<vmem>>, %arg9: memref<512x128xbf16, #tpu.memory_space<vmem>>, %arg10: memref<1x128xf32, #tpu.memory_space<vmem>>, %arg11: memref<1x128xf32, #tpu.memory_space<vmem>>) attributes {dimension_semantics = [], scalar_prefetch = 0 : i64, scratch_operands = 2 : i64, tpu.core_type = #tpu.core_type<tc>} {
    %c0 = arith.constant 0 : index
    %c0_0 = arith.constant 0 : index
    %0 = vector.load %arg1[%c0, %c0_0] : memref<288x128xbf16, #tpu.memory_space<vmem>>, vector<288x128xbf16>
    %c0_1 = arith.constant 0 : index
    %c0_2 = arith.constant 0 : index
    %1 = vector.load %arg2[%c0_1, %c0_2] : memref<1x128xf32, #tpu.memory_space<vmem>>, vector<1x128xf32>
    %c0_3 = arith.constant 0 : index
    %c0_4 = arith.constant 0 : index
    %2 = vector.load %arg4[%c0_3, %c0_4] : memref<128x128xbf16, #tpu.memory_space<vmem>>, vector<128x128xbf16>
    %c0_5 = arith.constant 0 : index
    %c0_6 = arith.constant 0 : index
    %3 = vector.load %arg5[%c0_5, %c0_6] : memref<1x128xf32, #tpu.memory_space<vmem>>, vector<1x128xf32>
    %cst = arith.constant 0.000000e+00 : f32
    %4 = vector.broadcast %cst : f32 to vector<1x128xf32>
    %c0_7 = arith.constant 0 : index
    %c0_8 = arith.constant 0 : index
    %5 = vector.load %arg10[%c0_7, %c0_8] : memref<1x128xf32, #tpu.memory_space<vmem>>, vector<1x128xf32>
    tpu.vector_store %arg10[%c0_7, %c0_8], %4 {strides = array<i32>} : memref<1x128xf32, #tpu.memory_space<vmem>>, vector<1x128xf32>,
    %cst_9 = arith.constant 0.000000e+00 : f32
    %6 = vector.broadcast %cst_9 : f32 to vector<1x128xf32>
    %c0_10 = arith.constant 0 : index
    %c0_11 = arith.constant 0 : index
    %7 = vector.load %arg11[%c0_10, %c0_11] : memref<1x128xf32, #tpu.memory_space<vmem>>, vector<1x128xf32>
    tpu.vector_store %arg11[%c0_10, %c0_11], %6 {strides = array<i32>} : memref<1x128xf32, #tpu.memory_space<vmem>>, vector<1x128xf32>,
    %c0_i32 = arith.constant 0 : i32
    %c2_i32 = arith.constant 2 : i32
    %8 = arith.addi %c0_i32, %c2_i32 : i32
    %c1_i32 = arith.constant 1 : i32
    scf.for %arg12 = %c0_i32 to %8 step %c1_i32  : i32 {
      %c256_i32 = arith.constant 256 : i32
      %28 = arith.muli %arg12, %c256_i32 : i32
      %29 = tpu.assume_multiple %28, 256 : i32
      %30 = arith.index_cast %29 : i32 to index
      %c0_29 = arith.constant 0 : index
      %31 = vector.load %arg0[%30, %c0_29] : memref<512x288xbf16, #tpu.memory_space<vmem>>, vector<256x288xbf16>
      %cst_30 = arith.constant dense<0.000000e+00> : vector<256x128xf32>
      %32 = tpu.matmul %31, %0, %cst_30 {dimension_numbers = #tpu.dot_dimension_numbers<[1], [0], [0], [1], [0, 0, 1, 1], [], []>} : vector<256x288xbf16>, vector<288x128xbf16>, vector<256x128xf32> -> vector<256x128xf32>
      %33 = vector.broadcast %1 : vector<1x128xf32> to vector<256x128xf32>
      %34 = arith.addf %32, %33 : vector<256x128xf32>
      %35 = arith.index_cast %29 : i32 to index
      %c0_31 = arith.constant 0 : index
      %36 = vector.load %arg3[%35, %c0_31] : memref<512x128xbf16, #tpu.memory_space<vmem>>, vector<256x128xbf16>
      %cst_32 = arith.constant dense<0.000000e+00> : vector<256x128xf32>
      %37 = tpu.matmul %36, %2, %cst_32 {dimension_numbers = #tpu.dot_dimension_numbers<[1], [0], [0], [1], [0, 0, 1, 1], [], []>} : vector<256x128xbf16>, vector<128x128xbf16>, vector<256x128xf32> -> vector<256x128xf32>
      %38 = vector.broadcast %3 : vector<1x128xf32> to vector<256x128xf32>
      %39 = arith.addf %37, %38 : vector<256x128xf32>
      %40 = arith.addf %34, %39 : vector<256x128xf32>
      %41 = arith.truncf %40 : vector<256x128xf32> to vector<256x128xbf16>
      %42 = arith.index_cast %29 : i32 to index
      %c0_33 = arith.constant 0 : index
      %43 = vector.load %arg8[%42, %c0_33] : memref<512x128xbf16, #tpu.memory_space<vmem>>, vector<256x128xbf16>
      tpu.vector_store %arg8[%42, %c0_33], %41 {strides = array<i32>} : memref<512x128xbf16, #tpu.memory_space<vmem>>, vector<256x128xbf16>,
      %c0_34 = arith.constant 0 : index
      %c0_35 = arith.constant 0 : index
      %44 = vector.load %arg10[%c0_34, %c0_35] : memref<1x128xf32, #tpu.memory_space<vmem>>, vector<1x128xf32>
      %cst_36 = arith.constant dense<0.000000e+00> : vector<128xf32>
      %45 = vector.multi_reduction <add>, %40, %cst_36 [0] : vector<256x128xf32> to vector<128xf32>
      %46 = vector.shape_cast %45 : vector<128xf32> to vector<1x128xf32>
      %47 = arith.addf %44, %46 : vector<1x128xf32>
      %c0_37 = arith.constant 0 : index
      %c0_38 = arith.constant 0 : index
      %48 = vector.load %arg10[%c0_37, %c0_38] : memref<1x128xf32, #tpu.memory_space<vmem>>, vector<1x128xf32>
      tpu.vector_store %arg10[%c0_37, %c0_38], %47 {strides = array<i32>} : memref<1x128xf32, #tpu.memory_space<vmem>>, vector<1x128xf32>,
      %c0_39 = arith.constant 0 : index
      %c0_40 = arith.constant 0 : index
      %49 = vector.load %arg11[%c0_39, %c0_40] : memref<1x128xf32, #tpu.memory_space<vmem>>, vector<1x128xf32>
      %50 = arith.mulf %40, %40 : vector<256x128xf32>
      %cst_41 = arith.constant dense<0.000000e+00> : vector<128xf32>
      %51 = vector.multi_reduction <add>, %50, %cst_41 [0] : vector<256x128xf32> to vector<128xf32>
      %52 = vector.shape_cast %51 : vector<128xf32> to vector<1x128xf32>
      %53 = arith.addf %49, %52 : vector<1x128xf32>
      %c0_42 = arith.constant 0 : index
      %c0_43 = arith.constant 0 : index
      %54 = vector.load %arg11[%c0_42, %c0_43] : memref<1x128xf32, #tpu.memory_space<vmem>>, vector<1x128xf32>
      tpu.vector_store %arg11[%c0_42, %c0_43], %53 {strides = array<i32>} : memref<1x128xf32, #tpu.memory_space<vmem>>, vector<1x128xf32>,
    }
    %c2_i32_12 = arith.constant 2 : i32
    %c0_13 = arith.constant 0 : index
    %c0_14 = arith.constant 0 : index
    %9 = vector.load %arg10[%c0_13, %c0_14] : memref<1x128xf32, #tpu.memory_space<vmem>>, vector<1x128xf32>
    %cst_15 = arith.constant 0.001953125 : f32
    %10 = vector.broadcast %cst_15 : f32 to vector<1x128xf32>
    %11 = arith.mulf %9, %10 : vector<1x128xf32>
    %c0_16 = arith.constant 0 : index
    %c0_17 = arith.constant 0 : index
    %12 = vector.load %arg11[%c0_16, %c0_17] : memref<1x128xf32, #tpu.memory_space<vmem>>, vector<1x128xf32>
    %cst_18 = arith.constant 0.001953125 : f32
    %13 = vector.broadcast %cst_18 : f32 to vector<1x128xf32>
    %14 = arith.mulf %12, %13 : vector<1x128xf32>
    %15 = arith.mulf %11, %11 : vector<1x128xf32>
    %16 = arith.subf %14, %15 : vector<1x128xf32>
    %cst_19 = arith.constant 0.000000e+00 : f32
    %17 = vector.broadcast %cst_19 : f32 to vector<1x128xf32>
    %18 = arith.maximumf %16, %17 : vector<1x128xf32>
    %c0_20 = arith.constant 0 : index
    %c0_21 = arith.constant 0 : index
    %19 = vector.load %arg6[%c0_20, %c0_21] : memref<1x128xf32, #tpu.memory_space<vmem>>, vector<1x128xf32>
    %cst_22 = arith.constant 9.99999974E-6 : f32
    %20 = vector.broadcast %cst_22 : f32 to vector<1x128xf32>
    %21 = arith.addf %18, %20 : vector<1x128xf32>
    %22 = math.rsqrt %21 : vector<1x128xf32>
    %23 = arith.mulf %19, %22 : vector<1x128xf32>
    %c0_23 = arith.constant 0 : index
    %c0_24 = arith.constant 0 : index
    %24 = vector.load %arg7[%c0_23, %c0_24] : memref<1x128xf32, #tpu.memory_space<vmem>>, vector<1x128xf32>
    %25 = arith.mulf %11, %23 : vector<1x128xf32>
    %26 = arith.subf %24, %25 : vector<1x128xf32>
    %c0_i32_25 = arith.constant 0 : i32
    %c2_i32_26 = arith.constant 2 : i32
    %27 = arith.addi %c0_i32_25, %c2_i32_26 : i32
    %c1_i32_27 = arith.constant 1 : i32
    scf.for %arg12 = %c0_i32_25 to %27 step %c1_i32_27  : i32 {
      %c256_i32 = arith.constant 256 : i32
      %28 = arith.muli %arg12, %c256_i32 : i32
      %29 = tpu.assume_multiple %28, 256 : i32
      %30 = arith.index_cast %29 : i32 to index
      %c0_29 = arith.constant 0 : index
      %31 = vector.load %arg8[%30, %c0_29] : memref<512x128xbf16, #tpu.memory_space<vmem>>, vector<256x128xbf16>
      %32 = arith.extf %31 : vector<256x128xbf16> to vector<256x128xf32>
      %33 = vector.broadcast %23 : vector<1x128xf32> to vector<256x128xf32>
      %34 = arith.mulf %32, %33 : vector<256x128xf32>
      %35 = vector.broadcast %26 : vector<1x128xf32> to vector<256x128xf32>
      %36 = arith.addf %34, %35 : vector<256x128xf32>
      %cst_30 = arith.constant 0.000000e+00 : f32
      %37 = vector.broadcast %cst_30 : f32 to vector<256x128xf32>
      %38 = arith.maximumf %36, %37 : vector<256x128xf32>
      %39 = arith.truncf %38 : vector<256x128xf32> to vector<256x128xbf16>
      %40 = arith.index_cast %29 : i32 to index
      %c0_31 = arith.constant 0 : index
      %41 = vector.load %arg9[%40, %c0_31] : memref<512x128xbf16, #tpu.memory_space<vmem>>, vector<256x128xbf16>
      tpu.vector_store %arg9[%40, %c0_31], %39 {strides = array<i32>} : memref<512x128xbf16, #tpu.memory_space<vmem>>, vector<256x128xbf16>,
    }
    %c2_i32_28 = arith.constant 2 : i32
    return
  }
}

module attributes {stable_mosaic.version = 11 : i64} {
  func.func @kernel(%arg0: memref<512x288xbf16, #tpu.memory_space<vmem>>, %arg1: memref<288x128xbf16, #tpu.memory_space<vmem>>, %arg2: memref<1x128xf32, #tpu.memory_space<vmem>>, %arg3: memref<1x128xf32, #tpu.memory_space<vmem>>, %arg4: memref<1x128xf32, #tpu.memory_space<vmem>>, %arg5: memref<512x128xbf16, #tpu.memory_space<vmem>>, %arg6: memref<1x128xf32, #tpu.memory_space<vmem>>, %arg7: memref<1x128xf32, #tpu.memory_space<vmem>>, %arg8: memref<512x128xbf16, #tpu.memory_space<vmem>>) attributes {dimension_semantics = [], scalar_prefetch = 0 : i64, scratch_operands = 3 : i64, tpu.core_type = #tpu.core_type<tc>} {
    %c0 = arith.constant 0 : index
    %c0_0 = arith.constant 0 : index
    %0 = vector.load %arg1[%c0, %c0_0] : memref<288x128xbf16, #tpu.memory_space<vmem>>, vector<288x128xbf16>
    %c0_1 = arith.constant 0 : index
    %c0_2 = arith.constant 0 : index
    %1 = vector.load %arg2[%c0_1, %c0_2] : memref<1x128xf32, #tpu.memory_space<vmem>>, vector<1x128xf32>
    %cst = arith.constant 0.000000e+00 : f32
    %2 = vector.broadcast %cst : f32 to vector<1x128xf32>
    %c0_3 = arith.constant 0 : index
    %c0_4 = arith.constant 0 : index
    %3 = vector.load %arg6[%c0_3, %c0_4] : memref<1x128xf32, #tpu.memory_space<vmem>>, vector<1x128xf32>
    tpu.vector_store %arg6[%c0_3, %c0_4], %2 {strides = array<i32>} : memref<1x128xf32, #tpu.memory_space<vmem>>, vector<1x128xf32>,
    %cst_5 = arith.constant 0.000000e+00 : f32
    %4 = vector.broadcast %cst_5 : f32 to vector<1x128xf32>
    %c0_6 = arith.constant 0 : index
    %c0_7 = arith.constant 0 : index
    %5 = vector.load %arg7[%c0_6, %c0_7] : memref<1x128xf32, #tpu.memory_space<vmem>>, vector<1x128xf32>
    tpu.vector_store %arg7[%c0_6, %c0_7], %4 {strides = array<i32>} : memref<1x128xf32, #tpu.memory_space<vmem>>, vector<1x128xf32>,
    %c0_i32 = arith.constant 0 : i32
    %c2_i32 = arith.constant 2 : i32
    %6 = arith.addi %c0_i32, %c2_i32 : i32
    %c1_i32 = arith.constant 1 : i32
    scf.for %arg9 = %c0_i32 to %6 step %c1_i32  : i32 {
      %c256_i32 = arith.constant 256 : i32
      %26 = arith.muli %arg9, %c256_i32 : i32
      %27 = tpu.assume_multiple %26, 256 : i32
      %28 = arith.index_cast %27 : i32 to index
      %c0_25 = arith.constant 0 : index
      %29 = vector.load %arg0[%28, %c0_25] : memref<512x288xbf16, #tpu.memory_space<vmem>>, vector<256x288xbf16>
      %cst_26 = arith.constant dense<0.000000e+00> : vector<256x128xf32>
      %30 = tpu.matmul %29, %0, %cst_26 {dimension_numbers = #tpu.dot_dimension_numbers<[1], [0], [0], [1], [0, 0, 1, 1], [], []>} : vector<256x288xbf16>, vector<288x128xbf16>, vector<256x128xf32> -> vector<256x128xf32>
      %31 = vector.broadcast %1 : vector<1x128xf32> to vector<256x128xf32>
      %32 = arith.addf %30, %31 : vector<256x128xf32>
      %33 = arith.truncf %32 : vector<256x128xf32> to vector<256x128xbf16>
      %34 = arith.index_cast %27 : i32 to index
      %c0_27 = arith.constant 0 : index
      %35 = vector.load %arg8[%34, %c0_27] : memref<512x128xbf16, #tpu.memory_space<vmem>>, vector<256x128xbf16>
      tpu.vector_store %arg8[%34, %c0_27], %33 {strides = array<i32>} : memref<512x128xbf16, #tpu.memory_space<vmem>>, vector<256x128xbf16>,
      %c0_28 = arith.constant 0 : index
      %c0_29 = arith.constant 0 : index
      %36 = vector.load %arg6[%c0_28, %c0_29] : memref<1x128xf32, #tpu.memory_space<vmem>>, vector<1x128xf32>
      %cst_30 = arith.constant dense<0.000000e+00> : vector<128xf32>
      %37 = vector.multi_reduction <add>, %32, %cst_30 [0] : vector<256x128xf32> to vector<128xf32>
      %38 = vector.shape_cast %37 : vector<128xf32> to vector<1x128xf32>
      %39 = arith.addf %36, %38 : vector<1x128xf32>
      %c0_31 = arith.constant 0 : index
      %c0_32 = arith.constant 0 : index
      %40 = vector.load %arg6[%c0_31, %c0_32] : memref<1x128xf32, #tpu.memory_space<vmem>>, vector<1x128xf32>
      tpu.vector_store %arg6[%c0_31, %c0_32], %39 {strides = array<i32>} : memref<1x128xf32, #tpu.memory_space<vmem>>, vector<1x128xf32>,
      %c0_33 = arith.constant 0 : index
      %c0_34 = arith.constant 0 : index
      %41 = vector.load %arg7[%c0_33, %c0_34] : memref<1x128xf32, #tpu.memory_space<vmem>>, vector<1x128xf32>
      %42 = arith.mulf %32, %32 : vector<256x128xf32>
      %cst_35 = arith.constant dense<0.000000e+00> : vector<128xf32>
      %43 = vector.multi_reduction <add>, %42, %cst_35 [0] : vector<256x128xf32> to vector<128xf32>
      %44 = vector.shape_cast %43 : vector<128xf32> to vector<1x128xf32>
      %45 = arith.addf %41, %44 : vector<1x128xf32>
      %c0_36 = arith.constant 0 : index
      %c0_37 = arith.constant 0 : index
      %46 = vector.load %arg7[%c0_36, %c0_37] : memref<1x128xf32, #tpu.memory_space<vmem>>, vector<1x128xf32>
      tpu.vector_store %arg7[%c0_36, %c0_37], %45 {strides = array<i32>} : memref<1x128xf32, #tpu.memory_space<vmem>>, vector<1x128xf32>,
    }
    %c2_i32_8 = arith.constant 2 : i32
    %c0_9 = arith.constant 0 : index
    %c0_10 = arith.constant 0 : index
    %7 = vector.load %arg6[%c0_9, %c0_10] : memref<1x128xf32, #tpu.memory_space<vmem>>, vector<1x128xf32>
    %cst_11 = arith.constant 0.001953125 : f32
    %8 = vector.broadcast %cst_11 : f32 to vector<1x128xf32>
    %9 = arith.mulf %7, %8 : vector<1x128xf32>
    %c0_12 = arith.constant 0 : index
    %c0_13 = arith.constant 0 : index
    %10 = vector.load %arg7[%c0_12, %c0_13] : memref<1x128xf32, #tpu.memory_space<vmem>>, vector<1x128xf32>
    %cst_14 = arith.constant 0.001953125 : f32
    %11 = vector.broadcast %cst_14 : f32 to vector<1x128xf32>
    %12 = arith.mulf %10, %11 : vector<1x128xf32>
    %13 = arith.mulf %9, %9 : vector<1x128xf32>
    %14 = arith.subf %12, %13 : vector<1x128xf32>
    %cst_15 = arith.constant 0.000000e+00 : f32
    %15 = vector.broadcast %cst_15 : f32 to vector<1x128xf32>
    %16 = arith.maximumf %14, %15 : vector<1x128xf32>
    %c0_16 = arith.constant 0 : index
    %c0_17 = arith.constant 0 : index
    %17 = vector.load %arg3[%c0_16, %c0_17] : memref<1x128xf32, #tpu.memory_space<vmem>>, vector<1x128xf32>
    %cst_18 = arith.constant 9.99999974E-6 : f32
    %18 = vector.broadcast %cst_18 : f32 to vector<1x128xf32>
    %19 = arith.addf %16, %18 : vector<1x128xf32>
    %20 = math.rsqrt %19 : vector<1x128xf32>
    %21 = arith.mulf %17, %20 : vector<1x128xf32>
    %c0_19 = arith.constant 0 : index
    %c0_20 = arith.constant 0 : index
    %22 = vector.load %arg4[%c0_19, %c0_20] : memref<1x128xf32, #tpu.memory_space<vmem>>, vector<1x128xf32>
    %23 = arith.mulf %9, %21 : vector<1x128xf32>
    %24 = arith.subf %22, %23 : vector<1x128xf32>
    %c0_i32_21 = arith.constant 0 : i32
    %c2_i32_22 = arith.constant 2 : i32
    %25 = arith.addi %c0_i32_21, %c2_i32_22 : i32
    %c1_i32_23 = arith.constant 1 : i32
    scf.for %arg9 = %c0_i32_21 to %25 step %c1_i32_23  : i32 {
      %c256_i32 = arith.constant 256 : i32
      %26 = arith.muli %arg9, %c256_i32 : i32
      %27 = tpu.assume_multiple %26, 256 : i32
      %28 = arith.index_cast %27 : i32 to index
      %c0_25 = arith.constant 0 : index
      %29 = vector.load %arg8[%28, %c0_25] : memref<512x128xbf16, #tpu.memory_space<vmem>>, vector<256x128xbf16>
      %30 = arith.extf %29 : vector<256x128xbf16> to vector<256x128xf32>
      %31 = vector.broadcast %21 : vector<1x128xf32> to vector<256x128xf32>
      %32 = arith.mulf %30, %31 : vector<256x128xf32>
      %33 = vector.broadcast %24 : vector<1x128xf32> to vector<256x128xf32>
      %34 = arith.addf %32, %33 : vector<256x128xf32>
      %cst_26 = arith.constant 0.000000e+00 : f32
      %35 = vector.broadcast %cst_26 : f32 to vector<256x128xf32>
      %36 = arith.maximumf %34, %35 : vector<256x128xf32>
      %37 = arith.truncf %36 : vector<256x128xf32> to vector<256x128xbf16>
      %38 = arith.index_cast %27 : i32 to index
      %c0_27 = arith.constant 0 : index
      %39 = vector.load %arg5[%38, %c0_27] : memref<512x128xbf16, #tpu.memory_space<vmem>>, vector<256x128xbf16>
      tpu.vector_store %arg5[%38, %c0_27], %37 {strides = array<i32>} : memref<512x128xbf16, #tpu.memory_space<vmem>>, vector<256x128xbf16>,
    }
    %c2_i32_24 = arith.constant 2 : i32
    return
  }
}

module attributes {stable_mosaic.version = 11 : i64} {
  func.func @kernel(%arg0: memref<128x576xbf16, #tpu.memory_space<vmem>>, %arg1: memref<576x128xbf16, #tpu.memory_space<vmem>>, %arg2: memref<1x128xf32, #tpu.memory_space<vmem>>, %arg3: memref<128x128xbf16, #tpu.memory_space<vmem>>, %arg4: memref<128x128xbf16, #tpu.memory_space<vmem>>, %arg5: memref<1x128xf32, #tpu.memory_space<vmem>>, %arg6: memref<1x128xf32, #tpu.memory_space<vmem>>, %arg7: memref<1x128xf32, #tpu.memory_space<vmem>>, %arg8: memref<128x128xbf16, #tpu.memory_space<vmem>>, %arg9: memref<1x128xf32, #tpu.memory_space<vmem>>, %arg10: memref<1x128xf32, #tpu.memory_space<vmem>>, %arg11: memref<128x128xbf16, #tpu.memory_space<vmem>>) attributes {dimension_semantics = [], scalar_prefetch = 0 : i64, scratch_operands = 3 : i64, tpu.core_type = #tpu.core_type<tc>} {
    %c0 = arith.constant 0 : index
    %c0_0 = arith.constant 0 : index
    %0 = vector.load %arg1[%c0, %c0_0] : memref<576x128xbf16, #tpu.memory_space<vmem>>, vector<576x128xbf16>
    %c0_1 = arith.constant 0 : index
    %c0_2 = arith.constant 0 : index
    %1 = vector.load %arg2[%c0_1, %c0_2] : memref<1x128xf32, #tpu.memory_space<vmem>>, vector<1x128xf32>
    %c0_3 = arith.constant 0 : index
    %c0_4 = arith.constant 0 : index
    %2 = vector.load %arg4[%c0_3, %c0_4] : memref<128x128xbf16, #tpu.memory_space<vmem>>, vector<128x128xbf16>
    %c0_5 = arith.constant 0 : index
    %c0_6 = arith.constant 0 : index
    %3 = vector.load %arg5[%c0_5, %c0_6] : memref<1x128xf32, #tpu.memory_space<vmem>>, vector<1x128xf32>
    %cst = arith.constant 0.000000e+00 : f32
    %4 = vector.broadcast %cst : f32 to vector<1x128xf32>
    %c0_7 = arith.constant 0 : index
    %c0_8 = arith.constant 0 : index
    %5 = vector.load %arg9[%c0_7, %c0_8] : memref<1x128xf32, #tpu.memory_space<vmem>>, vector<1x128xf32>
    tpu.vector_store %arg9[%c0_7, %c0_8], %4 {strides = array<i32>} : memref<1x128xf32, #tpu.memory_space<vmem>>, vector<1x128xf32>,
    %cst_9 = arith.constant 0.000000e+00 : f32
    %6 = vector.broadcast %cst_9 : f32 to vector<1x128xf32>
    %c0_10 = arith.constant 0 : index
    %c0_11 = arith.constant 0 : index
    %7 = vector.load %arg10[%c0_10, %c0_11] : memref<1x128xf32, #tpu.memory_space<vmem>>, vector<1x128xf32>
    tpu.vector_store %arg10[%c0_10, %c0_11], %6 {strides = array<i32>} : memref<1x128xf32, #tpu.memory_space<vmem>>, vector<1x128xf32>,
    %c0_12 = arith.constant 0 : index
    %c0_13 = arith.constant 0 : index
    %8 = vector.load %arg0[%c0_12, %c0_13] : memref<128x576xbf16, #tpu.memory_space<vmem>>, vector<128x576xbf16>
    %cst_14 = arith.constant dense<0.000000e+00> : vector<128x128xf32>
    %9 = tpu.matmul %8, %0, %cst_14 {dimension_numbers = #tpu.dot_dimension_numbers<[1], [0], [0], [1], [0, 0, 1, 1], [], []>} : vector<128x576xbf16>, vector<576x128xbf16>, vector<128x128xf32> -> vector<128x128xf32>
    %10 = vector.broadcast %1 : vector<1x128xf32> to vector<128x128xf32>
    %11 = arith.addf %9, %10 : vector<128x128xf32>
    %c0_15 = arith.constant 0 : index
    %c0_16 = arith.constant 0 : index
    %12 = vector.load %arg3[%c0_15, %c0_16] : memref<128x128xbf16, #tpu.memory_space<vmem>>, vector<128x128xbf16>
    %cst_17 = arith.constant dense<0.000000e+00> : vector<128x128xf32>
    %13 = tpu.matmul %12, %2, %cst_17 {dimension_numbers = #tpu.dot_dimension_numbers<[1], [0], [0], [1], [0, 0, 1, 1], [], []>} : vector<128x128xbf16>, vector<128x128xbf16>, vector<128x128xf32> -> vector<128x128xf32>
    %14 = vector.broadcast %3 : vector<1x128xf32> to vector<128x128xf32>
    %15 = arith.addf %13, %14 : vector<128x128xf32>
    %16 = arith.addf %11, %15 : vector<128x128xf32>
    %17 = arith.truncf %16 : vector<128x128xf32> to vector<128x128xbf16>
    %c0_18 = arith.constant 0 : index
    %c0_19 = arith.constant 0 : index
    %18 = vector.load %arg11[%c0_18, %c0_19] : memref<128x128xbf16, #tpu.memory_space<vmem>>, vector<128x128xbf16>
    tpu.vector_store %arg11[%c0_18, %c0_19], %17 {strides = array<i32>} : memref<128x128xbf16, #tpu.memory_space<vmem>>, vector<128x128xbf16>,
    %c0_20 = arith.constant 0 : index
    %c0_21 = arith.constant 0 : index
    %19 = vector.load %arg9[%c0_20, %c0_21] : memref<1x128xf32, #tpu.memory_space<vmem>>, vector<1x128xf32>
    %cst_22 = arith.constant dense<0.000000e+00> : vector<128xf32>
    %20 = vector.multi_reduction <add>, %16, %cst_22 [0] : vector<128x128xf32> to vector<128xf32>
    %21 = vector.shape_cast %20 : vector<128xf32> to vector<1x128xf32>
    %22 = arith.addf %19, %21 : vector<1x128xf32>
    %c0_23 = arith.constant 0 : index
    %c0_24 = arith.constant 0 : index
    %23 = vector.load %arg9[%c0_23, %c0_24] : memref<1x128xf32, #tpu.memory_space<vmem>>, vector<1x128xf32>
    tpu.vector_store %arg9[%c0_23, %c0_24], %22 {strides = array<i32>} : memref<1x128xf32, #tpu.memory_space<vmem>>, vector<1x128xf32>,
    %c0_25 = arith.constant 0 : index
    %c0_26 = arith.constant 0 : index
    %24 = vector.load %arg10[%c0_25, %c0_26] : memref<1x128xf32, #tpu.memory_space<vmem>>, vector<1x128xf32>
    %25 = arith.mulf %16, %16 : vector<128x128xf32>
    %cst_27 = arith.constant dense<0.000000e+00> : vector<128xf32>
    %26 = vector.multi_reduction <add>, %25, %cst_27 [0] : vector<128x128xf32> to vector<128xf32>
    %27 = vector.shape_cast %26 : vector<128xf32> to vector<1x128xf32>
    %28 = arith.addf %24, %27 : vector<1x128xf32>
    %c0_28 = arith.constant 0 : index
    %c0_29 = arith.constant 0 : index
    %29 = vector.load %arg10[%c0_28, %c0_29] : memref<1x128xf32, #tpu.memory_space<vmem>>, vector<1x128xf32>
    tpu.vector_store %arg10[%c0_28, %c0_29], %28 {strides = array<i32>} : memref<1x128xf32, #tpu.memory_space<vmem>>, vector<1x128xf32>,
    %c0_30 = arith.constant 0 : index
    %c0_31 = arith.constant 0 : index
    %30 = vector.load %arg9[%c0_30, %c0_31] : memref<1x128xf32, #tpu.memory_space<vmem>>, vector<1x128xf32>
    %cst_32 = arith.constant 7.812500e-03 : f32
    %31 = vector.broadcast %cst_32 : f32 to vector<1x128xf32>
    %32 = arith.mulf %30, %31 : vector<1x128xf32>
    %c0_33 = arith.constant 0 : index
    %c0_34 = arith.constant 0 : index
    %33 = vector.load %arg10[%c0_33, %c0_34] : memref<1x128xf32, #tpu.memory_space<vmem>>, vector<1x128xf32>
    %cst_35 = arith.constant 7.812500e-03 : f32
    %34 = vector.broadcast %cst_35 : f32 to vector<1x128xf32>
    %35 = arith.mulf %33, %34 : vector<1x128xf32>
    %36 = arith.mulf %32, %32 : vector<1x128xf32>
    %37 = arith.subf %35, %36 : vector<1x128xf32>
    %cst_36 = arith.constant 0.000000e+00 : f32
    %38 = vector.broadcast %cst_36 : f32 to vector<1x128xf32>
    %39 = arith.maximumf %37, %38 : vector<1x128xf32>
    %c0_37 = arith.constant 0 : index
    %c0_38 = arith.constant 0 : index
    %40 = vector.load %arg6[%c0_37, %c0_38] : memref<1x128xf32, #tpu.memory_space<vmem>>, vector<1x128xf32>
    %cst_39 = arith.constant 9.99999974E-6 : f32
    %41 = vector.broadcast %cst_39 : f32 to vector<1x128xf32>
    %42 = arith.addf %39, %41 : vector<1x128xf32>
    %43 = math.rsqrt %42 : vector<1x128xf32>
    %44 = arith.mulf %40, %43 : vector<1x128xf32>
    %c0_40 = arith.constant 0 : index
    %c0_41 = arith.constant 0 : index
    %45 = vector.load %arg7[%c0_40, %c0_41] : memref<1x128xf32, #tpu.memory_space<vmem>>, vector<1x128xf32>
    %46 = arith.mulf %32, %44 : vector<1x128xf32>
    %47 = arith.subf %45, %46 : vector<1x128xf32>
    %c0_42 = arith.constant 0 : index
    %c0_43 = arith.constant 0 : index
    %48 = vector.load %arg11[%c0_42, %c0_43] : memref<128x128xbf16, #tpu.memory_space<vmem>>, vector<128x128xbf16>
    %49 = arith.extf %48 : vector<128x128xbf16> to vector<128x128xf32>
    %50 = vector.broadcast %44 : vector<1x128xf32> to vector<128x128xf32>
    %51 = arith.mulf %49, %50 : vector<128x128xf32>
    %52 = vector.broadcast %47 : vector<1x128xf32> to vector<128x128xf32>
    %53 = arith.addf %51, %52 : vector<128x128xf32>
    %cst_44 = arith.constant 0.000000e+00 : f32
    %54 = vector.broadcast %cst_44 : f32 to vector<128x128xf32>
    %55 = arith.maximumf %53, %54 : vector<128x128xf32>
    %56 = arith.truncf %55 : vector<128x128xf32> to vector<128x128xbf16>
    %c0_45 = arith.constant 0 : index
    %c0_46 = arith.constant 0 : index
    %57 = vector.load %arg8[%c0_45, %c0_46] : memref<128x128xbf16, #tpu.memory_space<vmem>>, vector<128x128xbf16>
    tpu.vector_store %arg8[%c0_45, %c0_46], %56 {strides = array<i32>} : memref<128x128xbf16, #tpu.memory_space<vmem>>, vector<128x128xbf16>,
    return
  }
}

module attributes {stable_mosaic.version = 11 : i64} {
  func.func @_head_kernel(%arg0: memref<2x64x128xbf16, #tpu.memory_space<vmem>>, %arg1: memref<128x128xbf16, #tpu.memory_space<vmem>>, %arg2: memref<1x128xf32, #tpu.memory_space<vmem>>, %arg3: memref<2x128xf32, #tpu.memory_space<vmem>>) attributes {dimension_semantics = [], scalar_prefetch = 0 : i64, scratch_operands = 0 : i64, tpu.core_type = #tpu.core_type<tc>} {
    %c0 = arith.constant 0 : index
    %c0_0 = arith.constant 0 : index
    %c0_1 = arith.constant 0 : index
    %0 = vector.load %arg0[%c0, %c0_0, %c0_1] : memref<2x64x128xbf16, #tpu.memory_space<vmem>>, vector<2x64x128xbf16>
    %1 = arith.extf %0 : vector<2x64x128xbf16> to vector<2x64x128xf32>
    %cst = arith.constant dense<0.000000e+00> : vector<2x128xf32>
    %2 = vector.multi_reduction <add>, %1, %cst [1] : vector<2x64x128xf32> to vector<2x128xf32>
    %cst_2 = arith.constant 1.562500e-02 : f32
    %3 = vector.broadcast %cst_2 : f32 to vector<2x128xf32>
    %4 = arith.mulf %2, %3 : vector<2x128xf32>
    %5 = arith.truncf %4 : vector<2x128xf32> to vector<2x128xbf16>
    %c0_3 = arith.constant 0 : index
    %c0_4 = arith.constant 0 : index
    %6 = vector.load %arg1[%c0_3, %c0_4] : memref<128x128xbf16, #tpu.memory_space<vmem>>, vector<128x128xbf16>
    %cst_5 = arith.constant dense<0.000000e+00> : vector<2x128xf32>
    %7 = tpu.matmul %5, %6, %cst_5 {dimension_numbers = #tpu.dot_dimension_numbers<[1], [0], [0], [1], [0, 0, 1, 1], [], []>} : vector<2x128xbf16>, vector<128x128xbf16>, vector<2x128xf32> -> vector<2x128xf32>
    %c0_6 = arith.constant 0 : index
    %c0_7 = arith.constant 0 : index
    %8 = vector.load %arg2[%c0_6, %c0_7] : memref<1x128xf32, #tpu.memory_space<vmem>>, vector<1x128xf32>
    %9 = vector.broadcast %8 : vector<1x128xf32> to vector<2x128xf32>
    %10 = arith.addf %7, %9 : vector<2x128xf32>
    %c0_8 = arith.constant 0 : index
    %c0_9 = arith.constant 0 : index
    %11 = vector.load %arg3[%c0_8, %c0_9] : memref<2x128xf32, #tpu.memory_space<vmem>>, vector<2x128xf32>
    tpu.vector_store %arg3[%c0_8, %c0_9], %10 {strides = array<i32>} : memref<2x128xf32, #tpu.memory_space<vmem>>, vector<2x128xf32>,
    return
  }
}

</mosaic_0001>

<bundles_post_ra>
// kernel: _lambda_.8
= control target key start
LH: loop header
LB: loop body
LE: loop exit
PB: predicated region body
PF: predicated region fallthrough
CT: control target
= control target key end

     0   :  { %v1594_v3 = vmov 0.0   ;;  %s1656_s7 = smov 0   ;;  %s1971_s0 = inlined_call_operand.vmem [shape: bf16[2048,27], index: 0, kind: input, shape index: {}]   ;;  %s1972_s1 = inlined_call_operand.vmem [shape: bf16[27,128], index: 1, kind: input, shape index: {}]   ;;  %s1973_s2 = inlined_call_operand.vmem [shape: f32[1,128], index: 2, kind: input, shape index: {}]   ;;  %s1974_s3 = inlined_call_operand.vmem [shape: f32[1,128], index: 3, kind: input, shape index: {}]   ;;  %s1975_s4 = inlined_call_operand.vmem [shape: f32[1,128], index: 4, kind: input, shape index: {}]   ;;  %s1976_s5 = inlined_call_operand.vmem [shape: bf16[2048,128], index: 5, kind: output, shape index: {0}]   ;;  %s1977_s6 = inlined_call_operand.vmem [shape: bf16[2048,128], index: 6, kind: output, shape index: {1}]  }
   0x1   :  { %v1634_v0 = vld [vmem:[%s1972_s1] sm:$0xf]  ;;  %v1639_v1 = vld [vmem:[%s1972_s1 + $0x4] sm:$0xf]  ;;  %v1644_v2 = vld [vmem:[%s1972_s1 + $0x8] sm:$0xf] }
   0x2   :  { %28 = vst [vmem:[#allocation2] sm:$0x1] %v1594_v3  ;;  %29 = vst [vmem:[#allocation3] sm:$0x1] %v1594_v3  ;;  %v1649_v4 = vld [vmem:[%s1972_s1 + $0xc] sm:$0x3] }
   0x3   :  { %v1654_v5 = vld [vmem:[%s1973_s2] ss:$0 sm:$0xff] }
   0x4 LB: > { %v1065_v6 = vcombine.low %v1634_v0, %v1639_v1  ;;  %v1066_v7 = vcombine.low %v1644_v2, %v1649_v4  ;;  %vm219_vm0 = vcmask 1044480   ;;  %vm220_vm1 = vcmask 1045504   ;;  %s1046_s1 = sshll.u32 %s1588_s7, 8  ;;  %s35_s7 = sadd.s32 1, %s1588_s7   ;;  %s1588_s7 = sphi %s1656_s7, %s35_s7  }
   0x5   : > { %v1595_v8 = vmov 65535   ;;  %s1666_s2 = sshra.s32 %s1046_s1, 3  ;;  %vm170_vm2 = vcmask 220160   ;;  %p32_p0 = scmp.ge.s32.totalorder %s35_s7, 8  }
   0x6   : > { %1502 = vmatprep.subr.bf16.mxu0 %v1065_v6  ;;  %v221_v9 = vsel %vm219_vm0, 4294967295, %v1595_v8  ;;  %1538 = vmatprep.subr.bf16.mxu1 %v1065_v6  ;;  %s1047_s8 = sshll.u32 %s1666_s2, 2 }
   0x7   : > { %1503 = vmatpush3.bf16.msra.mxu0 %v1065_v6  ;;  %v222_v10 = vsel %vm220_vm1, %v221_v9, 0  ;;  %1540 = vmatpush3.bf16.msra.mxu1 %v1065_v6  ;;  %s1674_s11 = scalar_lea.vmem %s1971_s0, %s1047_s8  ;;  %s1716_s14 = scalar_lea.vmem %s1976_s5, %s1047_s8 }
   0x8   : > { %v224_v11 = vand.u32 %v1066_v7, %v222_v10  ;;  %v1560_v12 = vld [vmem:[%s1674_s11] sm:$0xff]   ;;  %v1561_v13 = vld [vmem:[%s1674_s11 + $0x8] sm:$0xff]   ;;  %v1562_v14 = vld [vmem:[%s1674_s11 + $0x10] sm:$0xff]   ;;  %s1841_s0 = smov (%p32_p0), 0  }
   0x9   : > { %1506 = vmatprep.mubr.msk.bf16.mxu0 %vm170_vm2, %v1560_v12  ;;  %v1563_v15 = vld [vmem:[%s1674_s11 + $0x18] sm:$0xff]   ;;  %v1564_v16 = vld [vmem:[%s1674_s11 + $0x20] sm:$0xff]   ;;  %v1569_v18 = vld [vmem:[%s1674_s11 + $0x48] sm:$0xff]  }
   0xa   : > { %1504 = vmatprep.subr.bf16.mxu0 %v224_v11  ;;  %1539 = vmatprep.subr.bf16.mxu1 %v224_v11  ;;  %v1568_v17 = vld [vmem:[%s1674_s11 + $0x40] sm:$0xff]   ;;  %v1570_v19 = vld [vmem:[%s1674_s11 + $0x50] sm:$0xff]   ;;  %v1571_v20 = vld [vmem:[%s1674_s11 + $0x58] sm:$0xff]  }
   0xb   : > { %1505 = vmatpush3.bf16.msra.mxu0 %v224_v11  ;;  %1541 = vmatpush3.bf16.msra.mxu1 %v224_v11  ;;  %v1565_v21 = vld [vmem:[%s1674_s11 + $0x28] sm:$0xff]   ;;  %v1572_v22 = vld [vmem:[%s1674_s11 + $0x60] sm:$0xff]   ;;  %v1566_v23 = vld [vmem:[%s1674_s11 + $0x30] sm:$0xff]  }
   0xc   : > { %1522 = vmatprep.mubr.msk.bf16.mxu1 %vm170_vm2, %v1568_v17  ;;  %v1573_v24 = vld [vmem:[%s1674_s11 + $0x68] sm:$0xff]   ;;  %v1567_v25 = vld [vmem:[%s1674_s11 + $0x38] sm:$0xff]   ;;  %v1574_v26 = vld [vmem:[%s1674_s11 + $0x70] sm:$0xff]  }
   0xd   : > { %v1575_v27 = vld [vmem:[%s1674_s11 + $0x78] sm:$0xff]  }
   0xe   : > { %1507 = vmatmul.mubr.msk.bf16.vlgmr.msra.gmra.mrb[0].mxu0 %vm170_vm2, %v1561_v13  ;;  %1523 = vmatmul.mubr.msk.bf16.vlgmr.msra.gmra.mrb[0].mxu1 %vm170_vm2, %v1569_v18 }
   0xf   : > { %1510 = vmatprep.mubr.msk.bf16.mxu0 %vm170_vm2, %v1562_v14  ;;  %1526 = vmatprep.mubr.msk.bf16.mxu1 %vm170_vm2, %v1570_v19 }
  0x16   : > { %1511 = vmatmul.mubr.msk.bf16.gmra.mrb[4].mxu0 %vm170_vm2, %v1563_v15  ;;  %1527 = vmatmul.mubr.msk.bf16.gmra.mrb[4].mxu1 %vm170_vm2, %v1571_v20 }
  0x17   : > { %1514 = vmatprep.mubr.msk.bf16.mxu0 %vm170_vm2, %v1564_v16  ;;  %1530 = vmatprep.mubr.msk.bf16.mxu1 %vm170_vm2, %v1572_v22 }
  0x1e   : > { %1515 = vmatmul.mubr.msk.bf16.gmra.mrb[8].mxu0 %vm170_vm2, %v1565_v21  ;;  %1531 = vmatmul.mubr.msk.bf16.gmra.mrb[8].mxu1 %vm170_vm2, %v1573_v24 }
  0x1f   : > { %1518 = vmatprep.mubr.msk.bf16.mxu0 %vm170_vm2, %v1566_v23  ;;  %1534 = vmatprep.mubr.msk.bf16.mxu1 %vm170_vm2, %v1574_v26 }
  0x26   : > { %1519 = vmatmul.mubr.msk.bf16.gmra.mrb[12].mxu0 %vm170_vm2, %v1567_v25  ;;  %1535 = vmatmul.mubr.msk.bf16.gmra.mrb[12].mxu1 %vm170_vm2, %v1575_v27 }
  0xe1   : > { %v1508_v28 = vpop.f32.mrb[0].mxu0  ;;  %v1524_v41 = vpop.f32.mrb[0].mxu1 }
  0xe2   : > { %v260_v29 = vpop.f32.mrb[1].mxu0  ;;  %v269_v32 = vadd.f32 %v1508_v28, %v1654_v5  ;;  %v324_v46 = vpop.f32.mrb[1].mxu1  ;;  %v1722_v48 = vadd.f32 %v1524_v41, %v1654_v5 }
  0xe3   : > { %v261_v30 = vadd.f32 %v1654_v5, %v260_v29  ;;  %v1509_v31 = vpop.f32.mrb[2].mxu0  ;;  %v1525_v49 = vpop.f32.mrb[2].mxu1  ;;  %v1732_v6 = vadd.f32 %v1654_v5, %v324_v46 }
  0xe4   : > { %v272_v33 = vadd.f32 %v1509_v31, %v1654_v5  ;;  %v263_v34 = vpop.f32.mrb[3].mxu0  ;;  %v592_v42 = vmul.f32 %v269_v32, %v269_v32  ;;  %v327_v55 = vpop.f32.mrb[3].mxu1  ;;  %v1728_v59 = vadd.f32 %v1525_v49, %v1654_v5 }
  0xe5   : > { %v264_v35 = vadd.f32 %v1654_v5, %v263_v34  ;;  %v590_v37 = vmul.f32 %v261_v30, %v261_v30  ;;  %v1739_v12 = vadd.f32 %v1654_v5, %v327_v55 }
  0xe6   : > { %v1223_v36 = vpack.c.bf16 %v272_v33, %v269_v32  ;;  %v593_v50 = vmul.f32 %v272_v33, %v272_v33  ;;  %v1263_v7 = vpack.c.bf16 %v1728_v59, %v1722_v48 }
  0xe7   : > { %v1218_v38 = vpack.c.bf16 %v264_v35, %v261_v30  ;;  %v550_v39 = vadd.f32 %v264_v35, %v261_v30  ;;  %v591_v40 = vmul.f32 %v264_v35, %v264_v35  ;;  %v1258_v20 = vpack.c.bf16 %v1739_v12, %v1732_v6 }
  0xe8   : > { %1439 = vst [vmem:[%s1716_s14 + $0x8] sm:$0xff] %v1223_v36   ;;  %1447 = vst [vmem:[%s1716_s14 + $0x48] sm:$0xff] %v1263_v7  }
  0xe9   : > { %1219 = vst [vmem:[%s1716_s14] sm:$0xff] %v1218_v38   ;;  %v551_v43 = vadd.f32 %v550_v39, %v269_v32  ;;  %v622_v44 = vadd.f32 %v591_v40, %v590_v37  ;;  %v1512_v45 = vpop.f32.mrb[4].mxu0  ;;  %v1528_v13 = vpop.f32.mrb[4].mxu1  ;;  %1446 = vst [vmem:[%s1716_s14 + $0x40] sm:$0xff] %v1258_v20  }
  0xea   : > { %v276_v47 = vpop.f32.mrb[5].mxu0  ;;  %v285_v56 = vadd.f32 %v1512_v45, %v1654_v5  ;;  %v340_v18 = vpop.f32.mrb[5].mxu1  ;;  %v1745_v21 = vadd.f32 %v1528_v13, %v1654_v5 }
  0xeb   : > { %v623_v51 = vadd.f32 %v622_v44, %v592_v42  ;;  %v277_v52 = vadd.f32 %v1654_v5, %v276_v47  ;;  %v552_v53 = vadd.f32 %v551_v43, %v272_v33  ;;  %v1513_v54 = vpop.f32.mrb[6].mxu0  ;;  %v1529_v22 = vpop.f32.mrb[6].mxu1  ;;  %v1756_v38 = vadd.f32 %v1654_v5, %v340_v18 }
  0xec   : > { %v288_v57 = vadd.f32 %v1513_v54, %v1654_v5  ;;  %v279_v58 = vpop.f32.mrb[7].mxu0  ;;  %v596_v14 = vmul.f32 %v285_v56, %v285_v56  ;;  %v343_v28 = vpop.f32.mrb[7].mxu1  ;;  %v1752_v32 = vadd.f32 %v1529_v22, %v1654_v5 }
  0xed   : > { %v553_v60 = vadd.f32 %v552_v53, %v277_v52  ;;  %v594_v61 = vmul.f32 %v277_v52, %v277_v52  ;;  %v624_v62 = vadd.f32 %v623_v51, %v593_v50  ;;  %v280_v63 = vadd.f32 %v1654_v5, %v279_v58 }
  0xee   : > { %v1233_v3 = vpack.c.bf16 %v288_v57, %v285_v56  ;;  %v597_v23 = vmul.f32 %v288_v57, %v288_v57  ;;  %v1273_v39 = vpack.c.bf16 %v1752_v32, %v1745_v21  ;;  %v1763_v44 = vadd.f32 %v1654_v5, %v343_v28 }
  0xef   : > { %v625_v8 = vadd.f32 %v624_v62, %v594_v61  ;;  %v1228_v9 = vpack.c.bf16 %v280_v63, %v277_v52  ;;  %v554_v10 = vadd.f32 %v553_v60, %v280_v63  ;;  %v595_v11 = vmul.f32 %v280_v63, %v280_v63 }
  0xf0   : > { %1441 = vst [vmem:[%s1716_s14 + $0x18] sm:$0xff] %v1233_v3   ;;  %1449 = vst [vmem:[%s1716_s14 + $0x58] sm:$0xff] %v1273_v39   ;;  %v1268_v53 = vpack.c.bf16 %v1763_v44, %v1756_v38 }
  0xf1   : > { %1440 = vst [vmem:[%s1716_s14 + $0x10] sm:$0xff] %v1228_v9   ;;  %v555_v15 = vadd.f32 %v554_v10, %v285_v56  ;;  %v626_v16 = vadd.f32 %v625_v8, %v595_v11  ;;  %v1516_v17 = vpop.f32.mrb[8].mxu0  ;;  %v1532_v45 = vpop.f32.mrb[8].mxu1 }
  0xf2   : > { %v292_v19 = vpop.f32.mrb[9].mxu0  ;;  %v301_v29 = vadd.f32 %v1516_v17, %v1654_v5  ;;  %v356_v51 = vpop.f32.mrb[9].mxu1  ;;  %v1769_v54 = vadd.f32 %v1532_v45, %v1654_v5  ;;  %1448 = vst [vmem:[%s1716_s14 + $0x50] sm:$0xff] %v1268_v53  }
  0xf3   : > { %v627_v24 = vadd.f32 %v626_v16, %v596_v14  ;;  %v293_v25 = vadd.f32 %v1654_v5, %v292_v19  ;;  %v556_v26 = vadd.f32 %v555_v15, %v288_v57  ;;  %v1517_v27 = vpop.f32.mrb[10].mxu0  ;;  %v1533_v55 = vpop.f32.mrb[10].mxu1  ;;  %v357_v15 = vadd.f32 %v1654_v5, %v356_v51 }
  0xf4   : > { %v304_v30 = vadd.f32 %v1517_v27, %v1654_v5  ;;  %v295_v31 = vpop.f32.mrb[11].mxu0  ;;  %v600_v46 = vmul.f32 %v301_v29, %v301_v29  ;;  %v359_v62 = vpop.f32.mrb[11].mxu1  ;;  %v1776_v8 = vadd.f32 %v1533_v55, %v1654_v5 }
  0xf5   : > { %v557_v33 = vadd.f32 %v556_v26, %v293_v25  ;;  %v598_v34 = vmul.f32 %v293_v25, %v293_v25  ;;  %v628_v35 = vadd.f32 %v627_v24, %v597_v23  ;;  %v296_v36 = vadd.f32 %v1654_v5, %v295_v31 }
  0xf6   : > { %v1243_v37 = vpack.c.bf16 %v304_v30, %v301_v29  ;;  %v601_v56 = vmul.f32 %v304_v30, %v304_v30  ;;  %v1283_v16 = vpack.c.bf16 %v1776_v8, %v1769_v54  ;;  %v360_v22 = vadd.f32 %v1654_v5, %v359_v62 }
  0xf7   : > { %v629_v40 = vadd.f32 %v628_v35, %v598_v34  ;;  %v1238_v41 = vpack.c.bf16 %v296_v36, %v293_v25  ;;  %v558_v42 = vadd.f32 %v557_v33, %v296_v36  ;;  %v599_v43 = vmul.f32 %v296_v36, %v296_v36 }
  0xf8   : > { %1443 = vst [vmem:[%s1716_s14 + $0x28] sm:$0xff] %v1243_v37   ;;  %1451 = vst [vmem:[%s1716_s14 + $0x68] sm:$0xff] %v1283_v16  }
  0xf9   : > { %1442 = vst [vmem:[%s1716_s14 + $0x20] sm:$0xff] %v1238_v41   ;;  %v559_v47 = vadd.f32 %v558_v42, %v301_v29  ;;  %v630_v49 = vadd.f32 %v629_v40, %v599_v43  ;;  %v1520_v50 = vpop.f32.mrb[12].mxu0  ;;  %v1536_v23 = vpop.f32.mrb[12].mxu1  ;;  %v606_v29 = vmul.f32 %v1732_v6, %v1732_v6 }
  0xfa   : > { %v308_v52 = vpop.f32.mrb[13].mxu0  ;;  %v317_v63 = vadd.f32 %v1520_v50, %v1654_v5  ;;  %v381_v27 = vadd.f32 %v1536_v23, %v1654_v5  ;;  %v372_v28 = vpop.f32.mrb[13].mxu1  ;;  %v608_v50 = vmul.f32 %v1722_v48, %v1722_v48 }
  0xfb   : > { %v631_v57 = vadd.f32 %v630_v49, %v600_v46  ;;  %v309_v58 = vadd.f32 %v1654_v5, %v308_v52  ;;  %v560_v60 = vadd.f32 %v559_v47, %v304_v30  ;;  %v1521_v61 = vpop.f32.mrb[14].mxu0  ;;  %v1278_v30 = vpack.c.bf16 %v360_v22, %v357_v15  ;;  %v1537_v33 = vpop.f32.mrb[14].mxu1 }
  0xfc   : > { %v320_v3 = vadd.f32 %v1521_v61, %v1654_v5  ;;  %v311_v7 = vpop.f32.mrb[15].mxu0  ;;  %v604_v24 = vmul.f32 %v317_v63, %v317_v63  ;;  %v373_v31 = vadd.f32 %v1654_v5, %v372_v28  ;;  %v384_v37 = vadd.f32 %v1537_v33, %v1654_v5  ;;  %v375_v39 = vpop.f32.mrb[15].mxu1 }
  0xfd   : > { %v561_v9 = vadd.f32 %v560_v60, %v309_v58  ;;  %v602_v10 = vmul.f32 %v309_v58, %v309_v58  ;;  %v632_v11 = vadd.f32 %v631_v57, %v601_v56  ;;  %v312_v13 = vadd.f32 %v1654_v5, %v311_v7  ;;  %1450 = vst [vmem:[%s1716_s14 + $0x60] sm:$0xff] %v1278_v30  }
  0xfe   : > { %v1253_v14 = vpack.c.bf16 %v320_v3, %v317_v63  ;;  %v605_v34 = vmul.f32 %v320_v3, %v320_v3  ;;  %v376_v40 = vadd.f32 %v1654_v5, %v375_v39  ;;  %v1293_v43 = vpack.c.bf16 %v384_v37, %v381_v27 }
  0xff   : > { %v633_v17 = vadd.f32 %v632_v11, %v602_v10  ;;  %v1248_v18 = vpack.c.bf16 %v312_v13, %v309_v58  ;;  %v562_v19 = vadd.f32 %v561_v9, %v312_v13  ;;  %v603_v20 = vmul.f32 %v312_v13, %v312_v13 }
 0x100   : > { %1445 = vst [vmem:[%s1716_s14 + $0x38] sm:$0xff] %v1253_v14   ;;  %v1288_v45 = vpack.c.bf16 %v376_v40, %v373_v31  ;;  %v607_v49 = vmul.f32 %v1739_v12, %v1739_v12  ;;  %1453 = vst [vmem:[%s1716_s14 + $0x78] sm:$0xff] %v1293_v43   ;;  %v610_v56 = vmul.f32 %v1756_v38, %v1756_v38 }
 0x101   : > { %1444 = vst [vmem:[%s1716_s14 + $0x30] sm:$0xff] %v1248_v18   ;;  %v563_v25 = vadd.f32 %v562_v19, %v317_v63  ;;  %v634_v26 = vadd.f32 %v633_v17, %v603_v20  ;;  %v611_v61 = vmul.f32 %v1763_v44, %v1763_v44  ;;  %v615_v14 = vmul.f32 %v360_v22, %v360_v22 }
 0x102   : > { %1452 = vst [vmem:[%s1716_s14 + $0x70] sm:$0xff] %v1288_v45   ;;  %v618_v20 = vmul.f32 %v373_v31, %v373_v31  ;;  %v549_v45 = vld [vmem:[#allocation2] sm:$0x1] }
 0x103   : > { %v635_v35 = vadd.f32 %v634_v26, %v604_v24  ;;  %v564_v36 = vadd.f32 %v563_v25, %v320_v3  ;;  %v619_v25 = vmul.f32 %v376_v40, %v376_v40  ;;  %v620_v26 = vmul.f32 %v381_v27, %v381_v27 }
 0x105   : > { %v565_v41 = vadd.f32 %v564_v36, %v1732_v6  ;;  %v636_v42 = vadd.f32 %v635_v35, %v605_v34  ;;  %v609_v6 = vmul.f32 %v1728_v59, %v1728_v59 }
 0x107   : > { %v637_v46 = vadd.f32 %v636_v42, %v606_v29  ;;  %v566_v47 = vadd.f32 %v565_v41, %v1739_v12  ;;  %v621_v29 = vmul.f32 %v384_v37, %v384_v37 }
 0x109   : > { %v567_v51 = vadd.f32 %v566_v47, %v1722_v48  ;;  %v638_v52 = vadd.f32 %v637_v46, %v607_v49  ;;  %v612_v48 = vmul.f32 %v1745_v21, %v1745_v21 }
 0x10b   : > { %v639_v53 = vadd.f32 %v638_v52, %v608_v50  ;;  %v568_v55 = vadd.f32 %v567_v51, %v1728_v59  ;;  %v613_v59 = vmul.f32 %v1752_v32, %v1752_v32 }
 0x10d   : > { %v569_v57 = vadd.f32 %v568_v55, %v1756_v38  ;;  %v640_v12 = vadd.f32 %v639_v53, %v609_v6  ;;  %v614_v38 = vmul.f32 %v357_v15, %v357_v15 }
 0x10f   : > { %v641_v58 = vadd.f32 %v640_v12, %v610_v56  ;;  %v570_v60 = vadd.f32 %v569_v57, %v1763_v44  ;;  %v616_v44 = vmul.f32 %v1769_v54, %v1769_v54  ;;  %v668_v12 = vld [vmem:[%s1974_s3] sm:$0x1] (%p32_p0) }
 0x111   : > { %v571_v62 = vadd.f32 %v570_v60, %v1745_v21  ;;  %v642_v63 = vadd.f32 %v641_v58, %v611_v61  ;;  %v617_v21 = vmul.f32 %v1776_v8, %v1776_v8  ;;  %v1834_v61 = vld [vmem:[%s1975_s4] sm:$0x1] (%p32_p0) }
 0x113   : > { %v643_v3 = vadd.f32 %v642_v63, %v612_v48  ;;  %v572_v7 = vadd.f32 %v571_v62, %v1752_v32 }
 0x115   : > { %v573_v9 = vadd.f32 %v572_v7, %v357_v15  ;;  %v644_v10 = vadd.f32 %v643_v3, %v613_v59 }
 0x117   : > { %v645_v11 = vadd.f32 %v644_v10, %v614_v38  ;;  %v574_v13 = vadd.f32 %v573_v9, %v360_v22 }
 0x119   : > { %v575_v16 = vadd.f32 %v574_v13, %v1769_v54  ;;  %v646_v17 = vadd.f32 %v645_v11, %v615_v14 }
 0x11b   : > { %v647_v18 = vadd.f32 %v646_v17, %v616_v44  ;;  %v576_v19 = vadd.f32 %v575_v16, %v1776_v8 }
 0x11d   : > { %v577_v32 = vadd.f32 %v576_v19, %v373_v31  ;;  %v648_v23 = vadd.f32 %v647_v18, %v617_v21 }
 0x11f   : > { %v649_v15 = vadd.f32 %v648_v23, %v618_v20  ;;  %v578_v24 = vadd.f32 %v577_v32, %v376_v40  ;;  %v589_v40 = vld [vmem:[#allocation3] sm:$0x1] }
 0x121   : > { %v579_v22 = vadd.f32 %v578_v24, %v381_v27  ;;  %v650_v28 = vadd.f32 %v649_v15, %v619_v25 }
 0x123   : > { %v580_v30 = vadd.f32 %v579_v22, %v384_v37  ;;  %v651_v33 = vadd.f32 %v650_v28, %v620_v26 }
 0x125   : > { %v581_v54 = vrot.slane %v580_v30, 4  ;;  %v652_v34 = vadd.f32 %v651_v33, %v621_v29 }
 0x127   : > { %v582_v35 = vadd.f32 %v581_v54, %v580_v30  ;;  %v653_v36 = vrot.slane %v652_v34, 4 }
 0x129   : > { %v583_v39 = vrot.slane %v582_v35, 2  ;;  %v654_v41 = vadd.f32 %v653_v36, %v652_v34 }
 0x12b   : > { %v584_v42 = vadd.f32 %v583_v39, %v582_v35  ;;  %v655_v8 = vrot.slane %v654_v41, 2 }
 0x12d   : > { %v585_v43 = vrot.slane %v584_v42, 1  ;;  %v656_v31 = vadd.f32 %v655_v8, %v654_v41 }
 0x12f   : > { %v586_v46 = vadd.f32 %v585_v43, %v584_v42  ;;  %v657_v47 = vrot.slane %v656_v31, 1  ;;  %34 = sbr.rel (!%p32_p0) target bundleno = 4 (0x4), region = 66 }
 0x131   : > { %v587_v49 = vadd.f32 %v586_v46, %v549_v45  ;;  %v658_v27 = vadd.f32 %v657_v47, %v656_v31 }
 0x133   : > { %588 = vst [vmem:[#allocation2] sm:$0x1] %v587_v49  ;;  %v659_v50 = vadd.f32 %v658_v27, %v589_v40 }
 0x135   : > { %660 = vst [vmem:[#allocation3] sm:$0x1] %v659_v50 }
 0x13a   :  { %v661_v37 = vld [vmem:[#allocation2] sm:$0x1] }
 0x13b   :  { %v662_v52 = vmul.f32 0.00048828125, %v661_v37 }
 0x13c   :  { %v663_v51 = vld [vmem:[#allocation3] sm:$0x1] }
 0x13d   :  { %v664_v6 = vmul.f32 0.00048828125, %v663_v51  ;;  %v665_v53 = vmul.f32 %v662_v52, %v662_v52 }
 0x13f   :  { %v666_v55 = vsub.f32 %v664_v6, %v665_v53 }
 0x141   :  { %v667_v56 = vmax.f32 %v666_v55, 0.0 }
 0x143   :  { %v669_v57 = vadd.f32 1e-05, %v667_v56 }
 0x145   :  { %1576 = vrsqrt.f32 %v669_v57 }
 0x14f   :  { %v1577_v58 = vpop.eup %1576 }
 0x150   :  { %v1829_v60 = vmul.f32 %v1577_v58, %v668_v12 }
 0x152   :  { %v1837_v0 = vmul.f32 %v1829_v60, %v662_v52 }
 0x154   :  { %v674_v1 = vsub.f32 %v1834_v61, %v1837_v0 }
 0x155 LB: > { %v751_v2 = vlaneseq  ;;  %s1116_s3 = sshll.u32 %s1592_s0, 8  ;;  %s680_s0 = sadd.s32 1, %s1592_s0   ;;  %s1592_s0 = sphi %s1841_s0, %s680_s0  }
 0x156   : > { %s1847_s19 = sshra.s32 %s1116_s3, 3  ;;  %p677_p1 = scmp.ge.s32.totalorder %s680_s0, 8  }
 0x157   : > { %v752_v4 = vshrl.u32 %v751_v2, 7  ;;  %s1117_s4 = sshll.u32 %s1847_s19, 2 }
 0x158   : > { %s1855_s22 = scalar_lea.vmem %s1976_s5, %s1117_s4  ;;  %s1892_s25 = scalar_lea.vmem %s1977_s6, %s1117_s4 }
 0x159   : > { %v753_v5 = vsub.s32 0, %v752_v4  ;;  %v1296_v48 = vld [vmem:[%s1855_s22] sm:$0xff]   ;;  %v1454_v59 = vld [vmem:[%s1855_s22 + $0x8] sm:$0xff]   ;;  %v1455_v3 = vld [vmem:[%s1855_s22 + $0x10] sm:$0xff]  }
 0x15a   : > { %v1297_v7 = vunpack.c.l.bf16 %v1296_v48  ;;  %v1298_v38 = vunpack.c.h.bf16 %v1296_v48  ;;  %v1301_v9 = vunpack.c.l.bf16 %v1454_v59  ;;  %v1302_v10 = vunpack.c.h.bf16 %v1454_v59  ;;  %v1456_v11 = vld [vmem:[%s1855_s22 + $0x18] sm:$0xff]   ;;  %v1457_v54 = vld [vmem:[%s1855_s22 + $0x20] sm:$0xff]   ;;  %v1458_v41 = vld [vmem:[%s1855_s22 + $0x28] sm:$0xff]  }
 0x15b   : > { %v1859_v62 = vrot.slane %v1829_v60, %v753_v5  ;;  %v1864_v63 = vrot.slane %v674_v1, %v753_v5  ;;  %v1305_v13 = vunpack.c.l.bf16 %v1455_v3  ;;  %v1306_v14 = vunpack.c.h.bf16 %v1455_v3  ;;  %v1459_v45 = vld [vmem:[%s1855_s22 + $0x30] sm:$0xff]   ;;  %v1460_v27 = vld [vmem:[%s1855_s22 + $0x38] sm:$0xff]  }
 0x15c   : > { %v1309_v44 = vunpack.c.l.bf16 %v1456_v11  ;;  %v1310_v16 = vunpack.c.h.bf16 %v1456_v11  ;;  %v1313_v40 = vunpack.c.l.bf16 %v1457_v54  ;;  %v1314_v49 = vunpack.c.h.bf16 %v1457_v54 }
 0x15d   : > { %v756_v17 = vmul.f32 %v1297_v7, %v1859_v62  ;;  %v757_v21 = vmul.f32 %v1298_v38, %v1859_v62  ;;  %v758_v18 = vmul.f32 %v1301_v9, %v1859_v62  ;;  %v759_v19 = vmul.f32 %v1302_v10, %v1859_v62  ;;  %v1461_v10 = vld [vmem:[%s1855_s22 + $0x40] sm:$0xff]  }
 0x15e   : > { %v760_v20 = vmul.f32 %v1305_v13, %v1859_v62  ;;  %v761_v32 = vmul.f32 %v1306_v14, %v1859_v62  ;;  %v762_v23 = vmul.f32 %v1309_v44, %v1859_v62  ;;  %v763_v15 = vmul.f32 %v1310_v16, %v1859_v62 }
 0x15f   : > { %v794_v24 = vadd.f32 %v1864_v63, %v756_v17  ;;  %v795_v25 = vadd.f32 %v1864_v63, %v757_v21  ;;  %v796_v26 = vadd.f32 %v1864_v63, %v758_v18  ;;  %v797_v22 = vadd.f32 %v1864_v63, %v759_v19  ;;  %v1462_v19 = vld [vmem:[%s1855_s22 + $0x48] sm:$0xff]  }
 0x160   : > { %v798_v28 = vadd.f32 %v1864_v63, %v760_v20  ;;  %v799_v29 = vadd.f32 %v1864_v63, %v761_v32  ;;  %v800_v30 = vadd.f32 %v1864_v63, %v762_v23  ;;  %v801_v33 = vadd.f32 %v1864_v63, %v763_v15 }
 0x161   : > { %v826_v34 = vmax.f32 %v794_v24, 0.0  ;;  %v827_v35 = vmax.f32 %v795_v25, 0.0  ;;  %v828_v36 = vmax.f32 %v796_v26, 0.0  ;;  %v829_v39 = vmax.f32 %v797_v22, 0.0  ;;  %v1463_v24 = vld [vmem:[%s1855_s22 + $0x50] sm:$0xff]  }
 0x162   : > { %v830_v42 = vmax.f32 %v798_v28, 0.0  ;;  %v831_v8 = vmax.f32 %v799_v29, 0.0  ;;  %v832_v43 = vmax.f32 %v800_v30, 0.0  ;;  %v833_v31 = vmax.f32 %v801_v33, 0.0  ;;  %v1464_v29 = vld [vmem:[%s1855_s22 + $0x58] sm:$0xff]  }
 0x163   : > { %v1362_v46 = vpack.c.bf16 %v827_v35, %v826_v34  ;;  %v1367_v47 = vpack.c.bf16 %v829_v39, %v828_v36  ;;  %v1317_v51 = vunpack.c.l.bf16 %v1458_v41  ;;  %v1318_v52 = vunpack.c.h.bf16 %v1458_v41 }
 0x164   : > { %v1372_v50 = vpack.c.bf16 %v831_v8, %v830_v42  ;;  %v1377_v37 = vpack.c.bf16 %v833_v31, %v832_v43  ;;  %v764_v6 = vmul.f32 %v1313_v40, %v1859_v62  ;;  %v765_v53 = vmul.f32 %v1314_v49, %v1859_v62  ;;  %v1465_v49 = vld [vmem:[%s1855_s22 + $0x60] sm:$0xff]  }
 0x165   : > { %1363 = vst [vmem:[%s1892_s25] sm:$0xff] %v1362_v46   ;;  %1469 = vst [vmem:[%s1892_s25 + $0x8] sm:$0xff] %v1367_v47   ;;  %v1321_v55 = vunpack.c.l.bf16 %v1459_v45  ;;  %v1322_v56 = vunpack.c.h.bf16 %v1459_v45  ;;  %v766_v57 = vmul.f32 %v1317_v51, %v1859_v62  ;;  %v767_v12 = vmul.f32 %v1318_v52, %v1859_v62 }
 0x166   : > { %1470 = vst [vmem:[%s1892_s25 + $0x10] sm:$0xff] %v1372_v50   ;;  %1471 = vst [vmem:[%s1892_s25 + $0x18] sm:$0xff] %v1377_v37   ;;  %v1325_v58 = vunpack.c.l.bf16 %v1460_v27  ;;  %v1326_v2 = vunpack.c.h.bf16 %v1460_v27  ;;  %v802_v4 = vadd.f32 %v1864_v63, %v764_v6  ;;  %v803_v5 = vadd.f32 %v1864_v63, %v765_v53 }
 0x167   : > { %v768_v48 = vmul.f32 %v1321_v55, %v1859_v62  ;;  %v769_v59 = vmul.f32 %v1322_v56, %v1859_v62  ;;  %v804_v3 = vadd.f32 %v1864_v63, %v766_v57  ;;  %v805_v7 = vadd.f32 %v1864_v63, %v767_v12 }
 0x168   : > { %v770_v38 = vmul.f32 %v1325_v58, %v1859_v62  ;;  %v771_v9 = vmul.f32 %v1326_v2, %v1859_v62  ;;  %v834_v11 = vmax.f32 %v802_v4, 0.0  ;;  %v835_v13 = vmax.f32 %v803_v5, 0.0  ;;  %v1466_v2 = vld [vmem:[%s1855_s22 + $0x68] sm:$0xff]  }
 0x169   : > { %v806_v14 = vadd.f32 %v1864_v63, %v768_v48  ;;  %v807_v44 = vadd.f32 %v1864_v63, %v769_v59  ;;  %v836_v16 = vmax.f32 %v804_v3, 0.0  ;;  %v837_v17 = vmax.f32 %v805_v7, 0.0  ;;  %v1467_v3 = vld [vmem:[%s1855_s22 + $0x70] sm:$0xff]  }
 0x16a   : > { %v808_v21 = vadd.f32 %v1864_v63, %v770_v38  ;;  %v809_v18 = vadd.f32 %v1864_v63, %v771_v9  ;;  %v1382_v20 = vpack.c.bf16 %v835_v13, %v834_v11  ;;  %v1329_v15 = vunpack.c.l.bf16 %v1461_v10  ;;  %v1468_v11 = vld [vmem:[%s1855_s22 + $0x78] sm:$0xff]  }
 0x16b   : > { %v838_v32 = vmax.f32 %v806_v14, 0.0  ;;  %v839_v23 = vmax.f32 %v807_v44, 0.0  ;;  %v1387_v25 = vpack.c.bf16 %v837_v17, %v836_v16  ;;  %v1330_v28 = vunpack.c.h.bf16 %v1461_v10 }
 0x16c   : > { %v840_v26 = vmax.f32 %v808_v21, 0.0  ;;  %v841_v22 = vmax.f32 %v809_v18, 0.0  ;;  %1472 = vst [vmem:[%s1892_s25 + $0x20] sm:$0xff] %v1382_v20   ;;  %v772_v33 = vmul.f32 %v1329_v15, %v1859_v62  ;;  %v1333_v54 = vunpack.c.l.bf16 %v1462_v19 }
 0x16d   : > { %v1392_v30 = vpack.c.bf16 %v839_v23, %v838_v32  ;;  %v1334_v34 = vunpack.c.h.bf16 %v1462_v19  ;;  %1473 = vst [vmem:[%s1892_s25 + $0x28] sm:$0xff] %v1387_v25   ;;  %v773_v36 = vmul.f32 %v1330_v28, %v1859_v62  ;;  %v1337_v39 = vunpack.c.l.bf16 %v1463_v24 }
 0x16e   : > { %v1397_v35 = vpack.c.bf16 %v841_v22, %v840_v26  ;;  %v1338_v41 = vunpack.c.h.bf16 %v1463_v24  ;;  %v810_v42 = vadd.f32 %v1864_v63, %v772_v33  ;;  %v774_v8 = vmul.f32 %v1333_v54, %v1859_v62 }
 0x16f   : > { %1474 = vst [vmem:[%s1892_s25 + $0x30] sm:$0xff] %v1392_v30   ;;  %v775_v43 = vmul.f32 %v1334_v34, %v1859_v62  ;;  %v1341_v31 = vunpack.c.l.bf16 %v1464_v29  ;;  %v811_v45 = vadd.f32 %v1864_v63, %v773_v36  ;;  %v776_v46 = vmul.f32 %v1337_v39, %v1859_v62 }
 0x170   : > { %1475 = vst [vmem:[%s1892_s25 + $0x38] sm:$0xff] %v1397_v35   ;;  %v777_v47 = vmul.f32 %v1338_v41, %v1859_v62  ;;  %v1342_v40 = vunpack.c.h.bf16 %v1464_v29  ;;  %v842_v27 = vmax.f32 %v810_v42, 0.0  ;;  %v812_v50 = vadd.f32 %v1864_v63, %v774_v8 }
 0x171   : > { %v813_v37 = vadd.f32 %v1864_v63, %v775_v43  ;;  %v778_v51 = vmul.f32 %v1341_v31, %v1859_v62  ;;  %v843_v52 = vmax.f32 %v811_v45, 0.0  ;;  %v814_v6 = vadd.f32 %v1864_v63, %v776_v46 }
 0x172   : > { %v815_v53 = vadd.f32 %v1864_v63, %v777_v47  ;;  %v779_v55 = vmul.f32 %v1342_v40, %v1859_v62  ;;  %v844_v56 = vmax.f32 %v812_v50, 0.0  ;;  %v1345_v58 = vunpack.c.l.bf16 %v1465_v49 }
 0x173   : > { %v845_v57 = vmax.f32 %v813_v37, 0.0  ;;  %v816_v12 = vadd.f32 %v1864_v63, %v778_v51  ;;  %v1402_v4 = vpack.c.bf16 %v843_v52, %v842_v27  ;;  %v846_v5 = vmax.f32 %v814_v6, 0.0 }
 0x174   : > { %v847_v48 = vmax.f32 %v815_v53, 0.0  ;;  %v817_v59 = vadd.f32 %v1864_v63, %v779_v55  ;;  %v1346_v9 = vunpack.c.h.bf16 %v1465_v49  ;;  %v780_v10 = vmul.f32 %v1345_v58, %v1859_v62 }
 0x175   : > { %v1407_v7 = vpack.c.bf16 %v845_v57, %v844_v56  ;;  %v848_v38 = vmax.f32 %v816_v12, 0.0  ;;  %1476 = vst [vmem:[%s1892_s25 + $0x40] sm:$0xff] %v1402_v4   ;;  %v1349_v44 = vunpack.c.l.bf16 %v1466_v2  ;;  %v1350_v16 = vunpack.c.h.bf16 %v1466_v2 }
 0x176   : > { %v1412_v13 = vpack.c.bf16 %v847_v48, %v846_v5  ;;  %v849_v14 = vmax.f32 %v817_v59, 0.0  ;;  %v781_v17 = vmul.f32 %v1346_v9, %v1859_v62  ;;  %v818_v21 = vadd.f32 %v1864_v63, %v780_v10 }
 0x177   : > { %1477 = vst [vmem:[%s1892_s25 + $0x48] sm:$0xff] %v1407_v7   ;;  %v1353_v18 = vunpack.c.l.bf16 %v1467_v3  ;;  %v1354_v19 = vunpack.c.h.bf16 %v1467_v3  ;;  %v782_v32 = vmul.f32 %v1349_v44, %v1859_v62  ;;  %v783_v23 = vmul.f32 %v1350_v16, %v1859_v62 }
 0x178   : > { %1478 = vst [vmem:[%s1892_s25 + $0x50] sm:$0xff] %v1412_v13   ;;  %v1417_v20 = vpack.c.bf16 %v849_v14, %v848_v38  ;;  %v1357_v15 = vunpack.c.l.bf16 %v1468_v11  ;;  %v819_v24 = vadd.f32 %v1864_v63, %v781_v17  ;;  %v850_v25 = vmax.f32 %v818_v21, 0.0 }
 0x179   : > { %v784_v26 = vmul.f32 %v1353_v18, %v1859_v62  ;;  %v785_v22 = vmul.f32 %v1354_v19, %v1859_v62  ;;  %v820_v28 = vadd.f32 %v1864_v63, %v782_v32  ;;  %v821_v29 = vadd.f32 %v1864_v63, %v783_v23 }
 0x17a   : > { %1479 = vst [vmem:[%s1892_s25 + $0x58] sm:$0xff] %v1417_v20   ;;  %v1358_v30 = vunpack.c.h.bf16 %v1468_v11  ;;  %v786_v33 = vmul.f32 %v1357_v15, %v1859_v62  ;;  %v851_v54 = vmax.f32 %v819_v24, 0.0 }
 0x17b   : > { %v822_v34 = vadd.f32 %v1864_v63, %v784_v26  ;;  %v823_v35 = vadd.f32 %v1864_v63, %v785_v22  ;;  %v852_v36 = vmax.f32 %v820_v28, 0.0  ;;  %v853_v39 = vmax.f32 %v821_v29, 0.0 }
 0x17c   : > { %v787_v41 = vmul.f32 %v1358_v30, %v1859_v62  ;;  %v824_v42 = vadd.f32 %v1864_v63, %v786_v33  ;;  %v1422_v8 = vpack.c.bf16 %v851_v54, %v850_v25 }
 0x17d   : > { %v854_v43 = vmax.f32 %v822_v34, 0.0  ;;  %v855_v31 = vmax.f32 %v823_v35, 0.0  ;;  %v1427_v45 = vpack.c.bf16 %v853_v39, %v852_v36 }
 0x17e   : > { %v825_v46 = vadd.f32 %v1864_v63, %v787_v41  ;;  %v856_v47 = vmax.f32 %v824_v42, 0.0  ;;  %1480 = vst [vmem:[%s1892_s25 + $0x60] sm:$0xff] %v1422_v8   ;;  %679 = sbr.rel (!%p677_p1) target bundleno = 341 (0x155), region = 77 }
 0x17f   : > { %v1432_v40 = vpack.c.bf16 %v855_v31, %v854_v43  ;;  %1481 = vst [vmem:[%s1892_s25 + $0x68] sm:$0xff] %v1427_v45  }
 0x180   : > { %v857_v49 = vmax.f32 %v825_v46, 0.0 }
 0x181   : > { %1482 = vst [vmem:[%s1892_s25 + $0x70] sm:$0xff] %v1432_v40  }
 0x182   : > { %v1437_v27 = vpack.c.bf16 %v857_v49, %v856_v47 }
 0x184   : > { %1483 = vst [vmem:[%s1892_s25 + $0x78] sm:$0xff] %v1437_v27  }

// kernel: _lambda_.9
= control target key start
LH: loop header
LB: loop body
LE: loop exit
PB: predicated region body
PF: predicated region fallthrough
CT: control target
= control target key end

     0   :  { %v1342_v3 = vmov 0.0   ;;  %s1469_s6 = smov 0   ;;  %s1825_s0 = inlined_call_operand.vmem [shape: bf16[2048,144], index: 0, kind: input, shape index: {}]   ;;  %s1826_s1 = inlined_call_operand.vmem [shape: bf16[144,128], index: 1, kind: input, shape index: {}]   ;;  %s1827_s3 = inlined_call_operand.vmem [shape: f32[1,128], index: 3, kind: input, shape index: {}]   ;;  %s1828_s4 = inlined_call_operand.vmem [shape: f32[1,128], index: 4, kind: input, shape index: {}]   ;;  %s1829_s5 = inlined_call_operand.vmem [shape: bf16[2048,128], index: 5, kind: output, shape index: {}]   ;;  %s1830_s2 = inlined_call_operand.vmem [shape: f32[1,128], index: 2, kind: input, shape index: {}]  }
   0x1   :  { %v1377_v0 = vld [vmem:[%s1826_s1] sm:$0xf]  ;;  %v1382_v1 = vld [vmem:[%s1826_s1 + $0x4] sm:$0xf]  ;;  %v1387_v2 = vld [vmem:[%s1826_s1 + $0x8] sm:$0xf] }
   0x2   :  { %40 = vst [vmem:[#allocation2] sm:$0x1] %v1342_v3  ;;  %41 = vst [vmem:[#allocation3] sm:$0x1] %v1342_v3  ;;  %v1392_v4 = vld [vmem:[%s1826_s1 + $0xc] sm:$0xf] }
   0x3   :  { %v1397_v5 = vld [vmem:[%s1826_s1 + $0x10] sm:$0xf]  ;;  %v1402_v6 = vld [vmem:[%s1826_s1 + $0x14] sm:$0xf]  ;;  %v1407_v7 = vld [vmem:[%s1826_s1 + $0x18] sm:$0xf] }
   0x4   :  { %v1412_v8 = vld [vmem:[%s1826_s1 + $0x1c] sm:$0xf]  ;;  %v1417_v9 = vld [vmem:[%s1826_s1 + $0x20] sm:$0xf]  ;;  %v1422_v10 = vld [vmem:[%s1826_s1 + $0x24] sm:$0xf] }
   0x5   :  { %v1427_v11 = vld [vmem:[%s1826_s1 + $0x28] sm:$0xf]  ;;  %v1432_v12 = vld [vmem:[%s1826_s1 + $0x2c] sm:$0xf]  ;;  %v1437_v13 = vld [vmem:[%s1826_s1 + $0x30] sm:$0xf] }
   0x6   :  { %v1442_v14 = vld [vmem:[%s1826_s1 + $0x34] sm:$0xf]  ;;  %v1447_v15 = vld [vmem:[%s1826_s1 + $0x38] sm:$0xf]  ;;  %v1452_v16 = vld [vmem:[%s1826_s1 + $0x3c] sm:$0xf] }
   0x7   :  { %v1457_v17 = vld [vmem:[%s1826_s1 + $0x40] sm:$0xf]  ;;  %v1462_v18 = vld [vmem:[%s1826_s1 + $0x44] sm:$0xf] }
   0x8   :  { %v1467_v19 = vld [vmem:[%s1830_s2] ss:$0 sm:$0xff] }
   0x9 LB: > { %v1051_v20 = vcombine.low %v1377_v0, %v1382_v1  ;;  %v1343_v21 = vmov 0   ;;  %v1052_v22 = vcombine.low %v1387_v2, %v1392_v4  ;;  %s1015_s1 = sshll.u32 %s1336_s6, 8  ;;  %vm290_vm0 = vcmask 130048   ;;  %s47_s6 = sadd.s32 1, %s1336_s6   ;;  %s1336_s6 = sphi %s1469_s6, %s47_s6  }
   0xa   : > { %339 = vmatprep.subr.bf16.mxu0 %v1343_v21  ;;  %1240 = vmatprep.subr.bf16.mxu1 %v1343_v21  ;;  %s1484_s8 = scalar_lea.vmem %s1825_s0, %s1015_s1  ;;  %v1053_v24 = vcombine.low %v1397_v5, %v1402_v6  ;;  %v1054_v25 = vcombine.low %v1407_v7, %v1412_v8  ;;  %v1055_v27 = vcombine.low %v1417_v9, %v1422_v10  ;;  %s516_s9 = sshra.s32 %s1015_s1, 4 }
   0xb   : > { %340 = vmatpush1.bf16.msra.mxu0 %v1051_v20  ;;  %1249 = vmatpush1.bf16.msra.mxu1 %v1051_v20  ;;  %v1278_v23 = vld [vmem:[%s1484_s8 + $0x4] ss:$8 sps:$4 sm:$0xff]   ;;  %v1056_v28 = vcombine.low %v1427_v11, %v1432_v12  ;;  %v1057_v29 = vcombine.low %v1437_v13, %v1442_v14  ;;  %v1058_v30 = vcombine.low %v1447_v15, %v1452_v16  ;;  %v1276_v32 = vld [vmem:[%s1484_s8] ss:$8 sps:$4 sm:$0xff]   ;;  %v1279_v33 = vld [vmem:[%s1484_s8 + $0x14] ss:$8 sps:$4 sm:$0xff]  }
   0xc   : > { %341 = vmatprep.subr.bf16.mxu0 %v1343_v21  ;;  %1241 = vmatprep.subr.bf16.mxu1 %v1343_v21  ;;  %v1290_v26 = vld [vmem:[%s1484_s8 + $0x84] ss:$8 sps:$4 sm:$0xff]   ;;  %v1059_v31 = vcombine.low %v1457_v17, %v1462_v18  ;;  %v1288_v34 = vld [vmem:[%s1484_s8 + $0x80] ss:$8 sps:$4 sm:$0xff]   ;;  %v1294_v35 = vld [vmem:[%s1484_s8 + $0x94] ss:$8 sps:$4 sm:$0xff]  }
   0xd   : > { %1060 = vmatprep.mubr.msk.bf16.mxu0 %vm290_vm0, %v1278_v23  ;;  %1068 = vmatprep.mubr.msk.bf16.mxu1 %vm290_vm0, %v1290_v26  ;;  %v1281_v36 = vld [vmem:[%s1484_s8 + $0x10] ss:$8 sps:$4 sm:$0xff]   ;;  %v1282_v37 = vld [vmem:[%s1484_s8 + $0x24] ss:$8 sps:$4 sm:$0xff]   ;;  %v1284_v40 = vld [vmem:[%s1484_s8 + $0x20] ss:$8 sps:$4 sm:$0xff]  }
   0xe   : > { %v1296_v38 = vld [vmem:[%s1484_s8 + $0x90] ss:$8 sps:$4 sm:$0xff]   ;;  %v1300_v39 = vld [vmem:[%s1484_s8 + $0xa4] ss:$8 sps:$4 sm:$0xff]   ;;  %v1285_v41 = vld [vmem:[%s1484_s8 + $0x34] ss:$8 sps:$4 sm:$0xff]  }
   0xf   : > { %342 = vmatpush1.bf16.msra.mxu0 %v1052_v22  ;;  %1250 = vmatpush1.bf16.msra.mxu1 %v1052_v22  ;;  %v1302_v42 = vld [vmem:[%s1484_s8 + $0xa0] ss:$8 sps:$4 sm:$0xff]   ;;  %v1306_v43 = vld [vmem:[%s1484_s8 + $0xb4] ss:$8 sps:$4 sm:$0xff]   ;;  %v1287_v44 = vld [vmem:[%s1484_s8 + $0x30] ss:$8 sps:$4 sm:$0xff]  }
  0x10   : > { %343 = vmatprep.subr.bf16.mxu0 %v1343_v21  ;;  %1242 = vmatprep.subr.bf16.mxu1 %v1343_v21  ;;  %v1291_v45 = vld [vmem:[%s1484_s8 + $0x44] ss:$8 sps:$4 sm:$0xff]   ;;  %v1308_v46 = vld [vmem:[%s1484_s8 + $0xb0] ss:$8 sps:$4 sm:$0xff]   ;;  %v1293_v48 = vld [vmem:[%s1484_s8 + $0x40] ss:$8 sps:$4 sm:$0xff]  }
  0x11   : > { %v1312_v47 = vld [vmem:[%s1484_s8 + $0xc4] ss:$8 sps:$4 sm:$0xff]   ;;  %v1297_v49 = vld [vmem:[%s1484_s8 + $0x54] ss:$8 sps:$4 sm:$0xff]   ;;  %v1314_v50 = vld [vmem:[%s1484_s8 + $0xc0] ss:$8 sps:$4 sm:$0xff]  }
  0x12   : > { %v1315_v51 = vld [vmem:[%s1484_s8 + $0xd4] ss:$8 sps:$4 sm:$0xff]   ;;  %v1299_v52 = vld [vmem:[%s1484_s8 + $0x50] ss:$8 sps:$4 sm:$0xff]   ;;  %v1303_v53 = vld [vmem:[%s1484_s8 + $0x64] ss:$8 sps:$4 sm:$0xff]  }
  0x13   : > { %344 = vmatpush1.bf16.msra.mxu0 %v1053_v24  ;;  %1251 = vmatpush1.bf16.msra.mxu1 %v1053_v24  ;;  %v1317_v54 = vld [vmem:[%s1484_s8 + $0xd0] ss:$8 sps:$4 sm:$0xff]   ;;  %v1318_v55 = vld [vmem:[%s1484_s8 + $0xe4] ss:$8 sps:$4 sm:$0xff]   ;;  %v1305_v56 = vld [vmem:[%s1484_s8 + $0x60] ss:$8 sps:$4 sm:$0xff]  }
  0x14   : > { %345 = vmatprep.subr.bf16.mxu0 %v1343_v21  ;;  %1243 = vmatprep.subr.bf16.mxu1 %v1343_v21  ;;  %v1309_v57 = vld [vmem:[%s1484_s8 + $0x74] ss:$8 sps:$4 sm:$0xff]   ;;  %v1320_v58 = vld [vmem:[%s1484_s8 + $0xe0] ss:$8 sps:$4 sm:$0xff]   ;;  %v1311_v60 = vld [vmem:[%s1484_s8 + $0x70] ss:$8 sps:$4 sm:$0xff]  }
  0x15   : > { %v1321_v59 = vld [vmem:[%s1484_s8 + $0xf4] ss:$8 sps:$4 sm:$0xff]   ;;  %v1323_v61 = vld [vmem:[%s1484_s8 + $0xf0] ss:$8 sps:$4 sm:$0xff]   ;;  %s1076_s10 = sshll.u32 %s516_s9, 3  ;;  %p44_p0 = scmp.ge.s32.totalorder %s47_s6, 8  }
  0x16   : > { %s1560_s11 = scalar_lea.vmem [#allocation4], %s1076_s10  ;;  %s1702_s0 = smov (%p44_p0), 0  }
  0x17   : > { %346 = vmatpush1.bf16.msra.mxu0 %v1054_v25  ;;  %1252 = vmatpush1.bf16.msra.mxu1 %v1054_v25 }
  0x18   : > { %347 = vmatprep.subr.bf16.mxu0 %v1343_v21  ;;  %1244 = vmatprep.subr.bf16.mxu1 %v1343_v21 }
  0x1b   : > { %348 = vmatpush1.bf16.msra.mxu0 %v1055_v27  ;;  %1253 = vmatpush1.bf16.msra.mxu1 %v1055_v27 }
  0x1c   : > { %349 = vmatprep.subr.bf16.mxu0 %v1343_v21  ;;  %1245 = vmatprep.subr.bf16.mxu1 %v1343_v21 }
  0x1f   : > { %350 = vmatpush1.bf16.msra.mxu0 %v1056_v28  ;;  %1254 = vmatpush1.bf16.msra.mxu1 %v1056_v28 }
  0x20   : > { %351 = vmatprep.subr.bf16.mxu0 %v1343_v21  ;;  %1246 = vmatprep.subr.bf16.mxu1 %v1343_v21 }
  0x23   : > { %352 = vmatpush1.bf16.msra.mxu0 %v1057_v29  ;;  %1255 = vmatpush1.bf16.msra.mxu1 %v1057_v29 }
  0x24   : > { %353 = vmatprep.subr.bf16.mxu0 %v1343_v21  ;;  %1247 = vmatprep.subr.bf16.mxu1 %v1343_v21 }
  0x27   : > { %354 = vmatpush1.bf16.msra.mxu0 %v1058_v30  ;;  %1256 = vmatpush1.bf16.msra.mxu1 %v1058_v30 }
  0x28   : > { %355 = vmatprep.subr.bf16.mxu0 %v1343_v21  ;;  %1248 = vmatprep.subr.bf16.mxu1 %v1343_v21 }
  0x2b   : > { %356 = vmatpush1.bf16.msra.mxu0 %v1059_v31  ;;  %1257 = vmatpush1.bf16.msra.mxu1 %v1059_v31 }
  0x2e   : > { %372 = vmatmul.mubr.bf16.vlgmr.msra.gmra.mrb[0].mxu0 %v1276_v32  ;;  %436 = vmatmul.mubr.bf16.vlgmr.msra.gmra.mrb[0].mxu1 %v1288_v34 }
  0x2f   : > { %1061 = vmatprep.mubr.msk.bf16.mxu0 %vm290_vm0, %v1279_v33  ;;  %1069 = vmatprep.mubr.msk.bf16.mxu1 %vm290_vm0, %v1294_v35 }
  0x36   : > { %380 = vmatmul.mubr.bf16.gmra.mrb[4].mxu0 %v1281_v36  ;;  %444 = vmatmul.mubr.bf16.gmra.mrb[4].mxu1 %v1296_v38 }
  0x37   : > { %1062 = vmatprep.mubr.msk.bf16.mxu0 %vm290_vm0, %v1282_v37  ;;  %1070 = vmatprep.mubr.msk.bf16.mxu1 %vm290_vm0, %v1300_v39 }
  0x3e   : > { %388 = vmatmul.mubr.bf16.gmra.mrb[8].mxu0 %v1284_v40  ;;  %452 = vmatmul.mubr.bf16.gmra.mrb[8].mxu1 %v1302_v42 }
  0x3f   : > { %1063 = vmatprep.mubr.msk.bf16.mxu0 %vm290_vm0, %v1285_v41  ;;  %1071 = vmatprep.mubr.msk.bf16.mxu1 %vm290_vm0, %v1306_v43 }
  0x46   : > { %396 = vmatmul.mubr.bf16.gmra.mrb[12].mxu0 %v1287_v44  ;;  %460 = vmatmul.mubr.bf16.gmra.mrb[12].mxu1 %v1308_v46 }
  0x47   : > { %1064 = vmatprep.mubr.msk.bf16.mxu0 %vm290_vm0, %v1291_v45  ;;  %1072 = vmatprep.mubr.msk.bf16.mxu1 %vm290_vm0, %v1312_v47 }
  0x4e   : > { %404 = vmatmul.mubr.bf16.gmra.mrb[16].mxu0 %v1293_v48  ;;  %468 = vmatmul.mubr.bf16.gmra.mrb[16].mxu1 %v1314_v50 }
  0x4f   : > { %1065 = vmatprep.mubr.msk.bf16.mxu0 %vm290_vm0, %v1297_v49  ;;  %1073 = vmatprep.mubr.msk.bf16.mxu1 %vm290_vm0, %v1315_v51 }
  0x56   : > { %412 = vmatmul.mubr.bf16.gmra.mrb[20].mxu0 %v1299_v52  ;;  %476 = vmatmul.mubr.bf16.gmra.mrb[20].mxu1 %v1317_v54 }
  0x57   : > { %1066 = vmatprep.mubr.msk.bf16.mxu0 %vm290_vm0, %v1303_v53  ;;  %1074 = vmatprep.mubr.msk.bf16.mxu1 %vm290_vm0, %v1318_v55 }
  0x5e   : > { %420 = vmatmul.mubr.bf16.gmra.mrb[24].mxu0 %v1305_v56  ;;  %484 = vmatmul.mubr.bf16.gmra.mrb[24].mxu1 %v1320_v58 }
  0x5f   : > { %1067 = vmatprep.mubr.msk.bf16.mxu0 %vm290_vm0, %v1309_v57  ;;  %1075 = vmatprep.mubr.msk.bf16.mxu1 %vm290_vm0, %v1321_v59 }
  0x66   : > { %428 = vmatmul.mubr.bf16.gmra.mrb[28].mxu0 %v1311_v60  ;;  %492 = vmatmul.mubr.bf16.gmra.mrb[28].mxu1 %v1323_v61 }
 0x101   : > { %v373_v62 = vpop.f32.mrb[0].mxu0  ;;  %v437_v20 = vpop.f32.mrb[0].mxu1 }
 0x102   : > { %v374_v63 = vadd.f32 %v1467_v19, %v373_v62  ;;  %v375_v3 = vpop.f32.mrb[1].mxu0  ;;  %v1552_v22 = vadd.f32 %v1467_v19, %v437_v20  ;;  %v439_v23 = vpop.f32.mrb[1].mxu1 }
 0x103   : > { %v376_v21 = vpop.f32.mrb[2].mxu0  ;;  %v440_v26 = vpop.f32.mrb[2].mxu1 }
 0x104   : > { %v377_v24 = vadd.f32 %v1467_v19, %v376_v21  ;;  %v378_v25 = vpop.f32.mrb[3].mxu0  ;;  %v1556_v27 = vadd.f32 %v1467_v19, %v440_v26  ;;  %v442_v28 = vpop.f32.mrb[3].mxu1  ;;  %v577_v29 = vmul.f32 %v374_v63, %v374_v63 }
 0x106   : > { %v500_v30 = vpack.c.bf16 %v377_v24, %v374_v63  ;;  %v537_v31 = vadd.f32 %v377_v24, %v374_v63  ;;  %v578_v32 = vmul.f32 %v377_v24, %v377_v24  ;;  %v508_v33 = vpack.c.bf16 %v1556_v27, %v1552_v22 }
 0x108   : > { %520 = vst [vmem:[%s1560_s11] sm:$0xff] %v500_v30  ;;  %v609_v34 = vadd.f32 %v578_v32, %v577_v29  ;;  %528 = vst [vmem:[%s1560_s11 + $0x40] sm:$0xff] %v508_v33 }
 0x109   : > { %v381_v35 = vpop.f32.mrb[4].mxu0  ;;  %v445_v38 = vpop.f32.mrb[4].mxu1 }
 0x10a   : > { %v382_v36 = vadd.f32 %v1467_v19, %v381_v35  ;;  %v383_v37 = vpop.f32.mrb[5].mxu0  ;;  %v1566_v40 = vadd.f32 %v1467_v19, %v445_v38  ;;  %v447_v41 = vpop.f32.mrb[5].mxu1 }
 0x10b   : > { %v384_v39 = vpop.f32.mrb[6].mxu0  ;;  %v448_v46 = vpop.f32.mrb[6].mxu1 }
 0x10c   : > { %v538_v42 = vadd.f32 %v537_v31, %v382_v36  ;;  %v579_v43 = vmul.f32 %v382_v36, %v382_v36  ;;  %v385_v44 = vadd.f32 %v1467_v19, %v384_v39  ;;  %v386_v45 = vpop.f32.mrb[7].mxu0  ;;  %v1570_v47 = vadd.f32 %v1467_v19, %v448_v46  ;;  %v450_v48 = vpop.f32.mrb[7].mxu1 }
 0x10e   : > { %v610_v49 = vadd.f32 %v609_v34, %v579_v43  ;;  %v501_v50 = vpack.c.bf16 %v385_v44, %v382_v36  ;;  %v539_v51 = vadd.f32 %v538_v42, %v385_v44  ;;  %v580_v52 = vmul.f32 %v385_v44, %v385_v44 }
 0x10f   : > { %v509_v53 = vpack.c.bf16 %v1570_v47, %v1566_v40 }
 0x110   : > { %521 = vst [vmem:[%s1560_s11 + $0x8] sm:$0xff] %v501_v50  ;;  %v611_v54 = vadd.f32 %v610_v49, %v580_v52 }
 0x111   : > { %v389_v55 = vpop.f32.mrb[8].mxu0  ;;  %529 = vst [vmem:[%s1560_s11 + $0x48] sm:$0xff] %v509_v53  ;;  %v453_v58 = vpop.f32.mrb[8].mxu1 }
 0x112   : > { %v390_v56 = vadd.f32 %v1467_v19, %v389_v55  ;;  %v391_v57 = vpop.f32.mrb[9].mxu0  ;;  %v1578_v60 = vadd.f32 %v1467_v19, %v453_v58  ;;  %v455_v61 = vpop.f32.mrb[9].mxu1 }
 0x113   : > { %v392_v59 = vpop.f32.mrb[10].mxu0  ;;  %v456_v21 = vpop.f32.mrb[10].mxu1 }
 0x114   : > { %v540_v62 = vadd.f32 %v539_v51, %v390_v56  ;;  %v581_v63 = vmul.f32 %v390_v56, %v390_v56  ;;  %v393_v3 = vadd.f32 %v1467_v19, %v392_v59  ;;  %v394_v20 = vpop.f32.mrb[11].mxu0  ;;  %v1582_v23 = vadd.f32 %v1467_v19, %v456_v21  ;;  %v458_v24 = vpop.f32.mrb[11].mxu1 }
 0x116   : > { %v612_v25 = vadd.f32 %v611_v54, %v581_v63  ;;  %v502_v26 = vpack.c.bf16 %v393_v3, %v390_v56  ;;  %v541_v28 = vadd.f32 %v540_v62, %v393_v3  ;;  %v582_v29 = vmul.f32 %v393_v3, %v393_v3 }
 0x117   : > { %v510_v30 = vpack.c.bf16 %v1582_v23, %v1578_v60 }
 0x118   : > { %522 = vst [vmem:[%s1560_s11 + $0x10] sm:$0xff] %v502_v26  ;;  %v613_v31 = vadd.f32 %v612_v25, %v582_v29 }
 0x119   : > { %v397_v32 = vpop.f32.mrb[12].mxu0  ;;  %530 = vst [vmem:[%s1560_s11 + $0x50] sm:$0xff] %v510_v30  ;;  %v461_v35 = vpop.f32.mrb[12].mxu1 }
 0x11a   : > { %v398_v33 = vadd.f32 %v1467_v19, %v397_v32  ;;  %v399_v34 = vpop.f32.mrb[13].mxu0  ;;  %v1590_v37 = vadd.f32 %v1467_v19, %v461_v35  ;;  %v463_v38 = vpop.f32.mrb[13].mxu1 }
 0x11b   : > { %v400_v36 = vpop.f32.mrb[14].mxu0  ;;  %v464_v44 = vpop.f32.mrb[14].mxu1 }
 0x11c   : > { %v542_v39 = vadd.f32 %v541_v28, %v398_v33  ;;  %v583_v41 = vmul.f32 %v398_v33, %v398_v33  ;;  %v401_v42 = vadd.f32 %v1467_v19, %v400_v36  ;;  %v402_v43 = vpop.f32.mrb[15].mxu0  ;;  %v1594_v45 = vadd.f32 %v1467_v19, %v464_v44  ;;  %v466_v46 = vpop.f32.mrb[15].mxu1 }
 0x11e   : > { %v614_v48 = vadd.f32 %v613_v31, %v583_v41  ;;  %v503_v49 = vpack.c.bf16 %v401_v42, %v398_v33  ;;  %v543_v50 = vadd.f32 %v542_v39, %v401_v42  ;;  %v584_v51 = vmul.f32 %v401_v42, %v401_v42 }
 0x11f   : > { %v511_v52 = vpack.c.bf16 %v1594_v45, %v1590_v37 }
 0x120   : > { %523 = vst [vmem:[%s1560_s11 + $0x18] sm:$0xff] %v503_v49  ;;  %v615_v53 = vadd.f32 %v614_v48, %v584_v51 }
 0x121   : > { %v405_v54 = vpop.f32.mrb[16].mxu0  ;;  %531 = vst [vmem:[%s1560_s11 + $0x58] sm:$0xff] %v511_v52  ;;  %v469_v57 = vpop.f32.mrb[16].mxu1 }
 0x122   : > { %v406_v55 = vadd.f32 %v1467_v19, %v405_v54  ;;  %v407_v56 = vpop.f32.mrb[17].mxu0  ;;  %v1602_v59 = vadd.f32 %v1467_v19, %v469_v57  ;;  %v471_v61 = vpop.f32.mrb[17].mxu1 }
 0x123   : > { %v408_v58 = vpop.f32.mrb[18].mxu0  ;;  %v472_v21 = vpop.f32.mrb[18].mxu1 }
 0x124   : > { %v544_v62 = vadd.f32 %v543_v50, %v406_v55  ;;  %v585_v63 = vmul.f32 %v406_v55, %v406_v55  ;;  %v409_v3 = vadd.f32 %v1467_v19, %v408_v58  ;;  %v410_v20 = vpop.f32.mrb[19].mxu0  ;;  %v1606_v24 = vadd.f32 %v1467_v19, %v472_v21  ;;  %v474_v25 = vpop.f32.mrb[19].mxu1 }
 0x126   : > { %v616_v26 = vadd.f32 %v615_v53, %v585_v63  ;;  %v504_v28 = vpack.c.bf16 %v409_v3, %v406_v55  ;;  %v545_v29 = vadd.f32 %v544_v62, %v409_v3  ;;  %v586_v30 = vmul.f32 %v409_v3, %v409_v3 }
 0x127   : > { %v512_v31 = vpack.c.bf16 %v1606_v24, %v1602_v59 }
 0x128   : > { %524 = vst [vmem:[%s1560_s11 + $0x20] sm:$0xff] %v504_v28  ;;  %v617_v32 = vadd.f32 %v616_v26, %v586_v30 }
 0x129   : > { %v413_v33 = vpop.f32.mrb[20].mxu0  ;;  %532 = vst [vmem:[%s1560_s11 + $0x60] sm:$0xff] %v512_v31  ;;  %v477_v36 = vpop.f32.mrb[20].mxu1 }
 0x12a   : > { %v414_v34 = vadd.f32 %v1467_v19, %v413_v33  ;;  %v415_v35 = vpop.f32.mrb[21].mxu0  ;;  %v1614_v39 = vadd.f32 %v1467_v19, %v477_v36  ;;  %v479_v41 = vpop.f32.mrb[21].mxu1 }
 0x12b   : > { %v416_v38 = vpop.f32.mrb[22].mxu0  ;;  %v480_v48 = vpop.f32.mrb[22].mxu1 }
 0x12c   : > { %v546_v42 = vadd.f32 %v545_v29, %v414_v34  ;;  %v587_v43 = vmul.f32 %v414_v34, %v414_v34  ;;  %v417_v44 = vadd.f32 %v1467_v19, %v416_v38  ;;  %v418_v46 = vpop.f32.mrb[23].mxu0  ;;  %v1618_v49 = vadd.f32 %v1467_v19, %v480_v48  ;;  %v482_v50 = vpop.f32.mrb[23].mxu1 }
 0x12e   : > { %v618_v51 = vadd.f32 %v617_v32, %v587_v43  ;;  %v505_v52 = vpack.c.bf16 %v417_v44, %v414_v34  ;;  %v547_v53 = vadd.f32 %v546_v42, %v417_v44  ;;  %v588_v54 = vmul.f32 %v417_v44, %v417_v44 }
 0x12f   : > { %v513_v55 = vpack.c.bf16 %v1618_v49, %v1614_v39 }
 0x130   : > { %525 = vst [vmem:[%s1560_s11 + $0x28] sm:$0xff] %v505_v52  ;;  %v619_v56 = vadd.f32 %v618_v51, %v588_v54 }
 0x131   : > { %v421_v57 = vpop.f32.mrb[24].mxu0  ;;  %533 = vst [vmem:[%s1560_s11 + $0x68] sm:$0xff] %v513_v55  ;;  %v485_v62 = vpop.f32.mrb[24].mxu1 }
 0x132   : > { %v422_v58 = vadd.f32 %v1467_v19, %v421_v57  ;;  %v423_v61 = vpop.f32.mrb[25].mxu0  ;;  %v1626_v3 = vadd.f32 %v1467_v19, %v485_v62  ;;  %v487_v20 = vpop.f32.mrb[25].mxu1 }
 0x133   : > { %v424_v63 = vpop.f32.mrb[26].mxu0  ;;  %v488_v29 = vpop.f32.mrb[26].mxu1 }
 0x134   : > { %v548_v21 = vadd.f32 %v547_v53, %v422_v58  ;;  %v589_v25 = vmul.f32 %v422_v58, %v422_v58  ;;  %v425_v26 = vadd.f32 %v1467_v19, %v424_v63  ;;  %v426_v28 = vpop.f32.mrb[27].mxu0  ;;  %v1630_v30 = vadd.f32 %v1467_v19, %v488_v29  ;;  %v490_v31 = vpop.f32.mrb[27].mxu1 }
 0x135   : > { %v594_v28 = vmul.f32 %v1556_v27, %v1556_v27 }
 0x136   : > { %v620_v32 = vadd.f32 %v619_v56, %v589_v25  ;;  %v506_v33 = vpack.c.bf16 %v425_v26, %v422_v58  ;;  %v549_v34 = vadd.f32 %v548_v21, %v425_v26  ;;  %v590_v35 = vmul.f32 %v425_v26, %v425_v26 }
 0x137   : > { %v514_v36 = vpack.c.bf16 %v1630_v30, %v1626_v3  ;;  %v593_v21 = vmul.f32 %v1552_v22, %v1552_v22 }
 0x138   : > { %526 = vst [vmem:[%s1560_s11 + $0x30] sm:$0xff] %v506_v33  ;;  %v621_v38 = vadd.f32 %v620_v32, %v590_v35  ;;  %v595_v32 = vmul.f32 %v1566_v40, %v1566_v40  ;;  %v596_v35 = vmul.f32 %v1570_v47, %v1570_v47 }
 0x139   : > { %v429_v41 = vpop.f32.mrb[28].mxu0  ;;  %534 = vst [vmem:[%s1560_s11 + $0x70] sm:$0xff] %v514_v36  ;;  %v493_v44 = vpop.f32.mrb[28].mxu1 }
 0x13a   : > { %v430_v42 = vadd.f32 %v1467_v19, %v429_v41  ;;  %v431_v43 = vpop.f32.mrb[29].mxu0  ;;  %v494_v48 = vadd.f32 %v1467_v19, %v493_v44  ;;  %v495_v50 = vpop.f32.mrb[29].mxu1 }
 0x13b   : > { %v432_v46 = vpop.f32.mrb[30].mxu0  ;;  %v496_v55 = vpop.f32.mrb[30].mxu1 }
 0x13c   : > { %v550_v51 = vadd.f32 %v549_v34, %v430_v42  ;;  %v591_v52 = vmul.f32 %v430_v42, %v430_v42  ;;  %v433_v53 = vadd.f32 %v1467_v19, %v432_v46  ;;  %v434_v54 = vpop.f32.mrb[31].mxu0  ;;  %v497_v56 = vadd.f32 %v1467_v19, %v496_v55  ;;  %v498_v57 = vpop.f32.mrb[31].mxu1 }
 0x13d   : > { %v602_v57 = vmul.f32 %v1606_v24, %v1606_v24 }
 0x13e   : > { %v622_v58 = vadd.f32 %v621_v38, %v591_v52  ;;  %v507_v61 = vpack.c.bf16 %v433_v53, %v430_v42  ;;  %v551_v62 = vadd.f32 %v550_v51, %v433_v53  ;;  %v592_v63 = vmul.f32 %v433_v53, %v433_v53 }
 0x13f   : > { %v515_v20 = vpack.c.bf16 %v497_v56, %v494_v48  ;;  %v597_v38 = vmul.f32 %v1578_v60, %v1578_v60  ;;  %v601_v53 = vmul.f32 %v1602_v59, %v1602_v59 }
 0x140   : > { %527 = vst [vmem:[%s1560_s11 + $0x38] sm:$0xff] %v507_v61  ;;  %v552_v25 = vadd.f32 %v551_v62, %v1552_v22  ;;  %v623_v26 = vadd.f32 %v622_v58, %v592_v63  ;;  %v603_v61 = vmul.f32 %v1614_v39, %v1614_v39  ;;  %v604_v63 = vmul.f32 %v1618_v49, %v1618_v49 }
 0x141   : > { %535 = vst [vmem:[%s1560_s11 + $0x78] sm:$0xff] %v515_v20 }
 0x142   : > { %v553_v29 = vadd.f32 %v552_v25, %v1556_v27  ;;  %v624_v31 = vadd.f32 %v623_v26, %v593_v21  ;;  %v598_v27 = vmul.f32 %v1582_v23, %v1582_v23  ;;  %v605_v21 = vmul.f32 %v1626_v3, %v1626_v3 }
 0x143   : > { %v606_v26 = vmul.f32 %v1630_v30, %v1630_v30 }
 0x144   : > { %v554_v33 = vadd.f32 %v553_v29, %v1566_v40  ;;  %v625_v34 = vadd.f32 %v624_v31, %v594_v28  ;;  %v599_v40 = vmul.f32 %v1590_v37, %v1590_v37  ;;  %v607_v28 = vmul.f32 %v494_v48, %v494_v48 }
 0x146   : > { %v555_v36 = vadd.f32 %v554_v33, %v1570_v47  ;;  %v626_v22 = vadd.f32 %v625_v34, %v595_v32  ;;  %v600_v47 = vmul.f32 %v1594_v45, %v1594_v45  ;;  %v608_v33 = vmul.f32 %v497_v56, %v497_v56 }
 0x148   : > { %v627_v41 = vadd.f32 %v626_v22, %v596_v35  ;;  %v556_v42 = vadd.f32 %v555_v36, %v1578_v60 }
 0x14a   : > { %v557_v43 = vadd.f32 %v556_v42, %v1582_v23  ;;  %v628_v44 = vadd.f32 %v627_v41, %v597_v38 }
 0x14c   : > { %v558_v46 = vadd.f32 %v557_v43, %v1590_v37  ;;  %v629_v50 = vadd.f32 %v628_v44, %v598_v27  ;;  %v536_v43 = vld [vmem:[#allocation2] sm:$0x1] }
 0x14e   : > { %v559_v51 = vadd.f32 %v558_v46, %v1594_v45  ;;  %v630_v52 = vadd.f32 %v629_v50, %v599_v40 }
 0x150   : > { %v560_v60 = vadd.f32 %v559_v51, %v1602_v59  ;;  %v631_v54 = vadd.f32 %v630_v52, %v600_v47 }
 0x152   : > { %v632_v23 = vadd.f32 %v631_v54, %v601_v53  ;;  %v561_v55 = vadd.f32 %v560_v60, %v1606_v24 }
 0x154   : > { %v633_v37 = vadd.f32 %v632_v23, %v602_v57  ;;  %v562_v58 = vadd.f32 %v561_v55, %v1614_v39  ;;  %v655_v55 = vld [vmem:[%s1827_s3] sm:$0x1] (%p44_p0) }
 0x156   : > { %v634_v45 = vadd.f32 %v633_v37, %v603_v61  ;;  %v563_v62 = vadd.f32 %v562_v58, %v1618_v49  ;;  %v1695_v58 = vld [vmem:[%s1828_s4] sm:$0x1] (%p44_p0) }
 0x158   : > { %v635_v59 = vadd.f32 %v634_v45, %v604_v63  ;;  %v564_v20 = vadd.f32 %v563_v62, %v1626_v3 }
 0x15a   : > { %v636_v25 = vadd.f32 %v635_v59, %v605_v21  ;;  %v565_v24 = vadd.f32 %v564_v20, %v1630_v30  ;;  %v576_v30 = vld [vmem:[#allocation3] sm:$0x1] }
 0x15c   : > { %v637_v39 = vadd.f32 %v636_v25, %v606_v26  ;;  %v566_v29 = vadd.f32 %v565_v24, %v494_v48 }
 0x15e   : > { %v638_v31 = vadd.f32 %v637_v39, %v607_v28  ;;  %v567_v32 = vadd.f32 %v566_v29, %v497_v56 }
 0x160   : > { %v568_v34 = vrot.slane %v567_v32, 4  ;;  %v639_v49 = vadd.f32 %v638_v31, %v608_v33 }
 0x162   : > { %v569_v35 = vadd.f32 %v568_v34, %v567_v32  ;;  %v640_v36 = vrot.slane %v639_v49, 4 }
 0x164   : > { %v570_v22 = vrot.slane %v569_v35, 2  ;;  %v641_v38 = vadd.f32 %v640_v36, %v639_v49 }
 0x166   : > { %v571_v41 = vadd.f32 %v570_v22, %v569_v35  ;;  %v642_v3 = vrot.slane %v641_v38, 2 }
 0x168   : > { %v572_v42 = vrot.slane %v571_v41, 1  ;;  %v643_v27 = vadd.f32 %v642_v3, %v641_v38 }
 0x16a   : > { %v573_v44 = vadd.f32 %v572_v42, %v571_v41  ;;  %v644_v40 = vrot.slane %v643_v27, 1  ;;  %46 = sbr.rel (!%p44_p0) target bundleno = 9 (0x9), region = 58 }
 0x16c   : > { %v574_v46 = vadd.f32 %v573_v44, %v536_v43  ;;  %v645_v50 = vadd.f32 %v644_v40, %v643_v27 }
 0x16e   : > { %575 = vst [vmem:[#allocation2] sm:$0x1] %v574_v46  ;;  %v646_v48 = vadd.f32 %v645_v50, %v576_v30 }
 0x170   : > { %647 = vst [vmem:[#allocation3] sm:$0x1] %v646_v48 }
 0x175   :  { %v648_v56 = vld [vmem:[#allocation2] sm:$0x1] }
 0x176   :  { %v649_v51 = vmul.f32 0.00048828125, %v648_v56 }
 0x177   :  { %v650_v47 = vld [vmem:[#allocation3] sm:$0x1] }
 0x178   :  { %v651_v52 = vmul.f32 0.00048828125, %v650_v47  ;;  %v652_v60 = vmul.f32 %v649_v51, %v649_v51 }
 0x17a   :  { %v653_v53 = vsub.f32 %v651_v52, %v652_v60 }
 0x17c   :  { %v654_v54 = vmax.f32 %v653_v53, 0.0 }
 0x17e   :  { %v656_v23 = vadd.f32 1e-05, %v654_v54 }
 0x180   :  { %1324 = vrsqrt.f32 %v656_v23 }
 0x18a   :  { %v1325_v57 = vpop.eup %1324 }
 0x18b   :  { %v1690_v37 = vmul.f32 %v1325_v57, %v655_v55 }
 0x18d   :  { %v1698_v0 = vmul.f32 %v1690_v37, %v649_v51 }
 0x18f   :  { %v661_v1 = vsub.f32 %v1695_v58, %v1698_v0 }
 0x190 LB: > { %v722_v2 = vlaneseq  ;;  %s1077_s3 = sshll.u32 %s1340_s0, 8  ;;  %s667_s0 = sadd.s32 1, %s1340_s0   ;;  %s1340_s0 = sphi %s1702_s0, %s667_s0  }
 0x191   : > { %s669_s16 = sshra.s32 %s1077_s3, 4  ;;  %s1722_s18 = sshra.s32 %s1077_s3, 3 }
 0x192   : > { %v723_v4 = vshrl.u32 %v722_v2, 7  ;;  %s1078_s4 = sshll.u32 %s669_s16, 3  ;;  %s1111_s19 = sshll.u32 %s1722_s18, 2 }
 0x193   : > { %s1708_s17 = scalar_lea.vmem [#allocation4], %s1078_s4  ;;  %s1746_s22 = scalar_lea.vmem %s1829_s5, %s1111_s19 }
 0x194   : > { %v724_v5 = vsub.s32 0, %v723_v4  ;;  %v673_v6 = vld [vmem:[%s1708_s17] sm:$0xff]  ;;  %v674_v9 = vld [vmem:[%s1708_s17 + $0x8] sm:$0xff]  ;;  %v675_v10 = vld [vmem:[%s1708_s17 + $0x10] sm:$0xff]  ;;  %p664_p1 = scmp.ge.s32.totalorder %s667_s0, 8  }
 0x195   : > { %v689_v11 = vunpack.c.l.bf16 %v673_v6  ;;  %v690_v12 = vunpack.c.h.bf16 %v673_v6  ;;  %v691_v13 = vunpack.c.l.bf16 %v674_v9  ;;  %v692_v14 = vunpack.c.h.bf16 %v674_v9  ;;  %v676_v15 = vld [vmem:[%s1708_s17 + $0x18] sm:$0xff]  ;;  %v677_v34 = vld [vmem:[%s1708_s17 + $0x20] sm:$0xff]  ;;  %v678_v38 = vld [vmem:[%s1708_s17 + $0x28] sm:$0xff] }
 0x196   : > { %v1712_v7 = vrot.slane %v1690_v37, %v724_v5  ;;  %v1717_v8 = vrot.slane %v661_v1, %v724_v5  ;;  %v693_v16 = vunpack.c.l.bf16 %v675_v10  ;;  %v694_v17 = vunpack.c.h.bf16 %v675_v10  ;;  %v679_v43 = vld [vmem:[%s1708_s17 + $0x30] sm:$0xff]  ;;  %v680_v50 = vld [vmem:[%s1708_s17 + $0x38] sm:$0xff] }
 0x197   : > { %v695_v18 = vunpack.c.l.bf16 %v676_v15  ;;  %v696_v19 = vunpack.c.h.bf16 %v676_v15  ;;  %v697_v30 = vunpack.c.l.bf16 %v677_v34  ;;  %v698_v46 = vunpack.c.h.bf16 %v677_v34 }
 0x198   : > { %v727_v61 = vmul.f32 %v1712_v7, %v689_v11  ;;  %v728_v45 = vmul.f32 %v1712_v7, %v690_v12  ;;  %v729_v62 = vmul.f32 %v1712_v7, %v691_v13  ;;  %v730_v63 = vmul.f32 %v1712_v7, %v692_v14  ;;  %v681_v14 = vld [vmem:[%s1708_s17 + $0x40] sm:$0xff] }
 0x199   : > { %v731_v59 = vmul.f32 %v1712_v7, %v693_v16  ;;  %v732_v20 = vmul.f32 %v1712_v7, %v694_v17  ;;  %v733_v21 = vmul.f32 %v1712_v7, %v695_v18  ;;  %v734_v25 = vmul.f32 %v1712_v7, %v696_v19 }
 0x19a   : > { %v765_v24 = vadd.f32 %v1717_v8, %v727_v61  ;;  %v766_v26 = vadd.f32 %v1717_v8, %v728_v45  ;;  %v767_v28 = vadd.f32 %v1717_v8, %v729_v62  ;;  %v768_v39 = vadd.f32 %v1717_v8, %v730_v63  ;;  %v682_v63 = vld [vmem:[%s1708_s17 + $0x48] sm:$0xff] }
 0x19b   : > { %v769_v29 = vadd.f32 %v1717_v8, %v731_v59  ;;  %v770_v31 = vadd.f32 %v1717_v8, %v732_v20  ;;  %v771_v32 = vadd.f32 %v1717_v8, %v733_v21  ;;  %v772_v33 = vadd.f32 %v1717_v8, %v734_v25 }
 0x19c   : > { %v797_v49 = vmax.f32 %v765_v24, 0.0  ;;  %v798_v35 = vmax.f32 %v766_v26, 0.0  ;;  %v799_v36 = vmax.f32 %v767_v28, 0.0  ;;  %v800_v22 = vmax.f32 %v768_v39, 0.0  ;;  %v683_v24 = vld [vmem:[%s1708_s17 + $0x50] sm:$0xff] }
 0x19d   : > { %v801_v41 = vmax.f32 %v769_v29, 0.0  ;;  %v802_v3 = vmax.f32 %v770_v31, 0.0  ;;  %v803_v42 = vmax.f32 %v771_v32, 0.0  ;;  %v804_v27 = vmax.f32 %v772_v33, 0.0  ;;  %v684_v31 = vld [vmem:[%s1708_s17 + $0x58] sm:$0xff] }
 0x19e   : > { %v1148_v44 = vpack.c.bf16 %v798_v35, %v797_v49  ;;  %v1153_v40 = vpack.c.bf16 %v800_v22, %v799_v36  ;;  %v699_v47 = vunpack.c.l.bf16 %v678_v38  ;;  %v700_v51 = vunpack.c.h.bf16 %v678_v38 }
 0x19f   : > { %v1158_v48 = vpack.c.bf16 %v802_v3, %v801_v41  ;;  %v1163_v56 = vpack.c.bf16 %v804_v27, %v803_v42  ;;  %v735_v52 = vmul.f32 %v1712_v7, %v697_v30  ;;  %v736_v60 = vmul.f32 %v1712_v7, %v698_v46  ;;  %v685_v46 = vld [vmem:[%s1708_s17 + $0x60] sm:$0xff] }
 0x1a0   : > { %1149 = vst [vmem:[%s1746_s22] sm:$0xff] %v1148_v44   ;;  %1225 = vst [vmem:[%s1746_s22 + $0x8] sm:$0xff] %v1153_v40   ;;  %v701_v53 = vunpack.c.l.bf16 %v679_v43  ;;  %v702_v54 = vunpack.c.h.bf16 %v679_v43  ;;  %v737_v23 = vmul.f32 %v1712_v7, %v699_v47  ;;  %v738_v55 = vmul.f32 %v1712_v7, %v700_v51 }
 0x1a1   : > { %1226 = vst [vmem:[%s1746_s22 + $0x10] sm:$0xff] %v1158_v48   ;;  %1227 = vst [vmem:[%s1746_s22 + $0x18] sm:$0xff] %v1163_v56   ;;  %v703_v57 = vunpack.c.l.bf16 %v680_v50  ;;  %v704_v2 = vunpack.c.h.bf16 %v680_v50  ;;  %v773_v4 = vadd.f32 %v1717_v8, %v735_v52  ;;  %v774_v5 = vadd.f32 %v1717_v8, %v736_v60 }
 0x1a2   : > { %v739_v6 = vmul.f32 %v1712_v7, %v701_v53  ;;  %v740_v9 = vmul.f32 %v1712_v7, %v702_v54  ;;  %v775_v10 = vadd.f32 %v1717_v8, %v737_v23  ;;  %v776_v11 = vadd.f32 %v1717_v8, %v738_v55 }
 0x1a3   : > { %v741_v12 = vmul.f32 %v1712_v7, %v703_v57  ;;  %v742_v13 = vmul.f32 %v1712_v7, %v704_v2  ;;  %v805_v15 = vmax.f32 %v773_v4, 0.0  ;;  %v806_v16 = vmax.f32 %v774_v5, 0.0  ;;  %v686_v2 = vld [vmem:[%s1708_s17 + $0x68] sm:$0xff] }
 0x1a4   : > { %v777_v17 = vadd.f32 %v1717_v8, %v739_v6  ;;  %v778_v18 = vadd.f32 %v1717_v8, %v740_v9  ;;  %v807_v19 = vmax.f32 %v775_v10, 0.0  ;;  %v808_v61 = vmax.f32 %v776_v11, 0.0  ;;  %v687_v10 = vld [vmem:[%s1708_s17 + $0x70] sm:$0xff] }
 0x1a5   : > { %v779_v45 = vadd.f32 %v1717_v8, %v741_v12  ;;  %v780_v62 = vadd.f32 %v1717_v8, %v742_v13  ;;  %v1168_v59 = vpack.c.bf16 %v806_v16, %v805_v15  ;;  %v705_v25 = vunpack.c.l.bf16 %v681_v14  ;;  %v688_v15 = vld [vmem:[%s1708_s17 + $0x78] sm:$0xff] }
 0x1a6   : > { %v809_v20 = vmax.f32 %v777_v17, 0.0  ;;  %v810_v21 = vmax.f32 %v778_v18, 0.0  ;;  %v1173_v26 = vpack.c.bf16 %v808_v61, %v807_v19  ;;  %v706_v29 = vunpack.c.h.bf16 %v681_v14 }
 0x1a7   : > { %v811_v28 = vmax.f32 %v779_v45, 0.0  ;;  %v812_v39 = vmax.f32 %v780_v62, 0.0  ;;  %1228 = vst [vmem:[%s1746_s22 + $0x20] sm:$0xff] %v1168_v59   ;;  %v743_v33 = vmul.f32 %v1712_v7, %v705_v25  ;;  %v707_v34 = vunpack.c.l.bf16 %v682_v63 }
 0x1a8   : > { %v1178_v32 = vpack.c.bf16 %v810_v21, %v809_v20  ;;  %v708_v49 = vunpack.c.h.bf16 %v682_v63  ;;  %1229 = vst [vmem:[%s1746_s22 + $0x28] sm:$0xff] %v1173_v26   ;;  %v744_v36 = vmul.f32 %v1712_v7, %v706_v29  ;;  %v709_v22 = vunpack.c.l.bf16 %v683_v24 }
 0x1a9   : > { %v1183_v35 = vpack.c.bf16 %v812_v39, %v811_v28  ;;  %v710_v38 = vunpack.c.h.bf16 %v683_v24  ;;  %v781_v41 = vadd.f32 %v1717_v8, %v743_v33  ;;  %v745_v3 = vmul.f32 %v1712_v7, %v707_v34 }
 0x1aa   : > { %1230 = vst [vmem:[%s1746_s22 + $0x30] sm:$0xff] %v1178_v32   ;;  %v746_v42 = vmul.f32 %v1712_v7, %v708_v49  ;;  %v711_v27 = vunpack.c.l.bf16 %v684_v31  ;;  %v782_v43 = vadd.f32 %v1717_v8, %v744_v36  ;;  %v747_v44 = vmul.f32 %v1712_v7, %v709_v22 }
 0x1ab   : > { %1231 = vst [vmem:[%s1746_s22 + $0x38] sm:$0xff] %v1183_v35   ;;  %v748_v40 = vmul.f32 %v1712_v7, %v710_v38  ;;  %v712_v30 = vunpack.c.h.bf16 %v684_v31  ;;  %v813_v50 = vmax.f32 %v781_v41, 0.0  ;;  %v783_v48 = vadd.f32 %v1717_v8, %v745_v3 }
 0x1ac   : > { %v784_v56 = vadd.f32 %v1717_v8, %v746_v42  ;;  %v749_v47 = vmul.f32 %v1712_v7, %v711_v27  ;;  %v814_v51 = vmax.f32 %v782_v43, 0.0  ;;  %v785_v52 = vadd.f32 %v1717_v8, %v747_v44 }
 0x1ad   : > { %v786_v60 = vadd.f32 %v1717_v8, %v748_v40  ;;  %v750_v53 = vmul.f32 %v1712_v7, %v712_v30  ;;  %v815_v54 = vmax.f32 %v783_v48, 0.0  ;;  %v713_v57 = vunpack.c.l.bf16 %v685_v46 }
 0x1ae   : > { %v816_v23 = vmax.f32 %v784_v56, 0.0  ;;  %v787_v55 = vadd.f32 %v1717_v8, %v749_v47  ;;  %v1188_v4 = vpack.c.bf16 %v814_v51, %v813_v50  ;;  %v817_v5 = vmax.f32 %v785_v52, 0.0 }
 0x1af   : > { %v818_v6 = vmax.f32 %v786_v60, 0.0  ;;  %v788_v9 = vadd.f32 %v1717_v8, %v750_v53  ;;  %v714_v13 = vunpack.c.h.bf16 %v685_v46  ;;  %v751_v14 = vmul.f32 %v1712_v7, %v713_v57 }
 0x1b0   : > { %v1193_v11 = vpack.c.bf16 %v816_v23, %v815_v54  ;;  %v819_v12 = vmax.f32 %v787_v55, 0.0  ;;  %1232 = vst [vmem:[%s1746_s22 + $0x40] sm:$0xff] %v1188_v4   ;;  %v715_v18 = vunpack.c.l.bf16 %v686_v2  ;;  %v716_v19 = vunpack.c.h.bf16 %v686_v2 }
 0x1b1   : > { %v1198_v16 = vpack.c.bf16 %v818_v6, %v817_v5  ;;  %v820_v17 = vmax.f32 %v788_v9, 0.0  ;;  %v752_v61 = vmul.f32 %v1712_v7, %v714_v13  ;;  %v789_v45 = vadd.f32 %v1717_v8, %v751_v14 }
 0x1b2   : > { %1233 = vst [vmem:[%s1746_s22 + $0x48] sm:$0xff] %v1193_v11   ;;  %v717_v62 = vunpack.c.l.bf16 %v687_v10  ;;  %v718_v63 = vunpack.c.h.bf16 %v687_v10  ;;  %v753_v20 = vmul.f32 %v1712_v7, %v715_v18  ;;  %v754_v21 = vmul.f32 %v1712_v7, %v716_v19 }
 0x1b3   : > { %1234 = vst [vmem:[%s1746_s22 + $0x50] sm:$0xff] %v1198_v16   ;;  %v1203_v59 = vpack.c.bf16 %v820_v17, %v819_v12  ;;  %v719_v25 = vunpack.c.l.bf16 %v688_v15  ;;  %v790_v24 = vadd.f32 %v1717_v8, %v752_v61  ;;  %v821_v26 = vmax.f32 %v789_v45, 0.0 }
 0x1b4   : > { %v755_v28 = vmul.f32 %v1712_v7, %v717_v62  ;;  %v756_v39 = vmul.f32 %v1712_v7, %v718_v63  ;;  %v791_v29 = vadd.f32 %v1717_v8, %v753_v20  ;;  %v792_v31 = vadd.f32 %v1717_v8, %v754_v21 }
 0x1b5   : > { %1235 = vst [vmem:[%s1746_s22 + $0x58] sm:$0xff] %v1203_v59   ;;  %v720_v32 = vunpack.c.h.bf16 %v688_v15  ;;  %v757_v33 = vmul.f32 %v1712_v7, %v719_v25  ;;  %v822_v34 = vmax.f32 %v790_v24, 0.0 }
 0x1b6   : > { %v793_v49 = vadd.f32 %v1717_v8, %v755_v28  ;;  %v794_v35 = vadd.f32 %v1717_v8, %v756_v39  ;;  %v823_v36 = vmax.f32 %v791_v29, 0.0  ;;  %v824_v22 = vmax.f32 %v792_v31, 0.0 }
 0x1b7   : > { %v758_v38 = vmul.f32 %v1712_v7, %v720_v32  ;;  %v795_v41 = vadd.f32 %v1717_v8, %v757_v33  ;;  %v1208_v3 = vpack.c.bf16 %v822_v34, %v821_v26 }
 0x1b8   : > { %v825_v42 = vmax.f32 %v793_v49, 0.0  ;;  %v826_v27 = vmax.f32 %v794_v35, 0.0  ;;  %v1213_v43 = vpack.c.bf16 %v824_v22, %v823_v36 }
 0x1b9   : > { %v796_v44 = vadd.f32 %v1717_v8, %v758_v38  ;;  %v827_v40 = vmax.f32 %v795_v41, 0.0  ;;  %1236 = vst [vmem:[%s1746_s22 + $0x60] sm:$0xff] %v1208_v3   ;;  %666 = sbr.rel (!%p664_p1) target bundleno = 400 (0x190), region = 69 }
 0x1ba   : > { %v1218_v30 = vpack.c.bf16 %v826_v27, %v825_v42  ;;  %1237 = vst [vmem:[%s1746_s22 + $0x68] sm:$0xff] %v1213_v43  }
 0x1bb   : > { %v828_v46 = vmax.f32 %v796_v44, 0.0 }
 0x1bc   : > { %1238 = vst [vmem:[%s1746_s22 + $0x70] sm:$0xff] %v1218_v30  }
 0x1bd   : > { %v1223_v50 = vpack.c.bf16 %v828_v46, %v827_v40 }
 0x1bf   : > { %1239 = vst [vmem:[%s1746_s22 + $0x78] sm:$0xff] %v1223_v50  }

// kernel: _lambda_.10
= control target key start
LH: loop header
LB: loop body
LE: loop exit
PB: predicated region body
PF: predicated region fallthrough
CT: control target
= control target key end

     0   :  { %v1909_v3 = vmov 0.0   ;;  %s2046_s16 = smov 0   ;;  %s2433_s0 = inlined_call_operand.vmem [shape: bf16[2048,144], index: 0, kind: input, shape index: {}]   ;;  %s2434_s1 = inlined_call_operand.vmem [shape: bf16[144,128], index: 1, kind: input, shape index: {}]   ;;  %s2435_s3 = inlined_call_operand.vmem [shape: bf16[2048,128], index: 3, kind: input, shape index: {}]   ;;  %s2436_s4 = inlined_call_operand.vmem [shape: f32[1,128], index: 4, kind: input, shape index: {}]   ;;  %s2437_s5 = inlined_call_operand.vmem [shape: f32[1,128], index: 5, kind: input, shape index: {}]   ;;  %s2438_s6 = inlined_call_operand.vmem [shape: bf16[2048,128], index: 6, kind: output, shape index: {0}]   ;;  %s2439_s7 = inlined_call_operand.vmem [shape: bf16[2048,128], index: 7, kind: output, shape index: {1}]   ;;  %s2440_s2 = inlined_call_operand.vmem [shape: f32[1,128], index: 2, kind: input, shape index: {}]  }
   0x1   :  { %v1954_v0 = vld [vmem:[%s2434_s1] sm:$0xf]  ;;  %v1959_v1 = vld [vmem:[%s2434_s1 + $0x4] sm:$0xf]  ;;  %v1964_v2 = vld [vmem:[%s2434_s1 + $0x8] sm:$0xf] }
   0x2   :  { %45 = vst [vmem:[#allocation2] sm:$0x1] %v1909_v3  ;;  %46 = vst [vmem:[#allocation3] sm:$0x1] %v1909_v3  ;;  %v1969_v4 = vld [vmem:[%s2434_s1 + $0xc] sm:$0xf] }
   0x3   :  { %v1974_v5 = vld [vmem:[%s2434_s1 + $0x10] sm:$0xf]  ;;  %v1979_v6 = vld [vmem:[%s2434_s1 + $0x14] sm:$0xf]  ;;  %v1984_v7 = vld [vmem:[%s2434_s1 + $0x18] sm:$0xf] }
   0x4   :  { %v1989_v8 = vld [vmem:[%s2434_s1 + $0x1c] sm:$0xf]  ;;  %v1994_v9 = vld [vmem:[%s2434_s1 + $0x20] sm:$0xf]  ;;  %v1999_v10 = vld [vmem:[%s2434_s1 + $0x24] sm:$0xf] }
   0x5   :  { %v2004_v11 = vld [vmem:[%s2434_s1 + $0x28] sm:$0xf]  ;;  %v2009_v12 = vld [vmem:[%s2434_s1 + $0x2c] sm:$0xf]  ;;  %v2014_v13 = vld [vmem:[%s2434_s1 + $0x30] sm:$0xf] }
   0x6   :  { %v2019_v14 = vld [vmem:[%s2434_s1 + $0x34] sm:$0xf]  ;;  %v2024_v15 = vld [vmem:[%s2434_s1 + $0x38] sm:$0xf]  ;;  %v2029_v16 = vld [vmem:[%s2434_s1 + $0x3c] sm:$0xf] }
   0x7   :  { %v2034_v17 = vld [vmem:[%s2434_s1 + $0x40] sm:$0xf]  ;;  %v2039_v18 = vld [vmem:[%s2434_s1 + $0x44] sm:$0xf] }
   0x8   :  { %v2044_v19 = vld [vmem:[%s2440_s2] ss:$0 sm:$0xff] }
   0x9 LB: > { %v1300_v20 = vcombine.low %v1954_v0, %v1959_v1  ;;  %v1910_v21 = vmov 0   ;;  %v1301_v22 = vcombine.low %v1964_v2, %v1969_v4  ;;  %s1264_s1 = sshll.u32 %s1903_s16, 8  ;;  %vm295_vm0 = vcmask 130048   ;;  %s52_s16 = sadd.s32 1, %s1903_s16   ;;  %s1903_s16 = sphi %s2046_s16, %s52_s16  }
   0xa   : > { %344 = vmatprep.subr.bf16.mxu0 %v1910_v21  ;;  %1807 = vmatprep.subr.bf16.mxu1 %v1910_v21  ;;  %s2061_s18 = scalar_lea.vmem %s2433_s0, %s1264_s1  ;;  %v1302_v24 = vcombine.low %v1974_v5, %v1979_v6  ;;  %v1303_v25 = vcombine.low %v1984_v7, %v1989_v8  ;;  %v1304_v27 = vcombine.low %v1994_v9, %v1999_v10  ;;  %s54_s19 = sshra.s32 %s1264_s1, 3 }
   0xb   : > { %345 = vmatpush1.bf16.msra.mxu0 %v1300_v20  ;;  %1816 = vmatpush1.bf16.msra.mxu1 %v1300_v20  ;;  %v1845_v23 = vld [vmem:[%s2061_s18 + $0x4] ss:$8 sps:$4 sm:$0xff]   ;;  %v1305_v28 = vcombine.low %v2004_v11, %v2009_v12  ;;  %v1306_v29 = vcombine.low %v2014_v13, %v2019_v14  ;;  %v1307_v30 = vcombine.low %v2024_v15, %v2029_v16  ;;  %v1843_v32 = vld [vmem:[%s2061_s18] ss:$8 sps:$4 sm:$0xff]   ;;  %v1846_v33 = vld [vmem:[%s2061_s18 + $0x14] ss:$8 sps:$4 sm:$0xff]  }
   0xc   : > { %346 = vmatprep.subr.bf16.mxu0 %v1910_v21  ;;  %1808 = vmatprep.subr.bf16.mxu1 %v1910_v21  ;;  %v1857_v26 = vld [vmem:[%s2061_s18 + $0x84] ss:$8 sps:$4 sm:$0xff]   ;;  %v1308_v31 = vcombine.low %v2034_v17, %v2039_v18  ;;  %v1855_v34 = vld [vmem:[%s2061_s18 + $0x80] ss:$8 sps:$4 sm:$0xff]   ;;  %v1861_v35 = vld [vmem:[%s2061_s18 + $0x94] ss:$8 sps:$4 sm:$0xff]  }
   0xd   : > { %1309 = vmatprep.mubr.msk.bf16.mxu0 %vm295_vm0, %v1845_v23  ;;  %1317 = vmatprep.mubr.msk.bf16.mxu1 %vm295_vm0, %v1857_v26  ;;  %v1848_v36 = vld [vmem:[%s2061_s18 + $0x10] ss:$8 sps:$4 sm:$0xff]   ;;  %v1849_v37 = vld [vmem:[%s2061_s18 + $0x24] ss:$8 sps:$4 sm:$0xff]   ;;  %v1851_v40 = vld [vmem:[%s2061_s18 + $0x20] ss:$8 sps:$4 sm:$0xff]  }
   0xe   : > { %v1863_v38 = vld [vmem:[%s2061_s18 + $0x90] ss:$8 sps:$4 sm:$0xff]   ;;  %v1867_v39 = vld [vmem:[%s2061_s18 + $0xa4] ss:$8 sps:$4 sm:$0xff]   ;;  %v1852_v41 = vld [vmem:[%s2061_s18 + $0x34] ss:$8 sps:$4 sm:$0xff]  }
   0xf   : > { %347 = vmatpush1.bf16.msra.mxu0 %v1301_v22  ;;  %1817 = vmatpush1.bf16.msra.mxu1 %v1301_v22  ;;  %v1869_v42 = vld [vmem:[%s2061_s18 + $0xa0] ss:$8 sps:$4 sm:$0xff]   ;;  %v1873_v43 = vld [vmem:[%s2061_s18 + $0xb4] ss:$8 sps:$4 sm:$0xff]   ;;  %v1854_v44 = vld [vmem:[%s2061_s18 + $0x30] ss:$8 sps:$4 sm:$0xff]  }
  0x10   : > { %348 = vmatprep.subr.bf16.mxu0 %v1910_v21  ;;  %1809 = vmatprep.subr.bf16.mxu1 %v1910_v21  ;;  %v1858_v45 = vld [vmem:[%s2061_s18 + $0x44] ss:$8 sps:$4 sm:$0xff]   ;;  %v1875_v46 = vld [vmem:[%s2061_s18 + $0xb0] ss:$8 sps:$4 sm:$0xff]   ;;  %v1860_v48 = vld [vmem:[%s2061_s18 + $0x40] ss:$8 sps:$4 sm:$0xff]  }
  0x11   : > { %v1879_v47 = vld [vmem:[%s2061_s18 + $0xc4] ss:$8 sps:$4 sm:$0xff]   ;;  %v1864_v49 = vld [vmem:[%s2061_s18 + $0x54] ss:$8 sps:$4 sm:$0xff]   ;;  %v1881_v50 = vld [vmem:[%s2061_s18 + $0xc0] ss:$8 sps:$4 sm:$0xff]  }
  0x12   : > { %v1882_v51 = vld [vmem:[%s2061_s18 + $0xd4] ss:$8 sps:$4 sm:$0xff]   ;;  %v1866_v52 = vld [vmem:[%s2061_s18 + $0x50] ss:$8 sps:$4 sm:$0xff]   ;;  %v1870_v53 = vld [vmem:[%s2061_s18 + $0x64] ss:$8 sps:$4 sm:$0xff]  }
  0x13   : > { %349 = vmatpush1.bf16.msra.mxu0 %v1302_v24  ;;  %1818 = vmatpush1.bf16.msra.mxu1 %v1302_v24  ;;  %v1884_v54 = vld [vmem:[%s2061_s18 + $0xd0] ss:$8 sps:$4 sm:$0xff]   ;;  %v1885_v55 = vld [vmem:[%s2061_s18 + $0xe4] ss:$8 sps:$4 sm:$0xff]   ;;  %v1872_v56 = vld [vmem:[%s2061_s18 + $0x60] ss:$8 sps:$4 sm:$0xff]  }
  0x14   : > { %350 = vmatprep.subr.bf16.mxu0 %v1910_v21  ;;  %1810 = vmatprep.subr.bf16.mxu1 %v1910_v21  ;;  %v1876_v57 = vld [vmem:[%s2061_s18 + $0x74] ss:$8 sps:$4 sm:$0xff]   ;;  %v1887_v58 = vld [vmem:[%s2061_s18 + $0xe0] ss:$8 sps:$4 sm:$0xff]   ;;  %v1878_v60 = vld [vmem:[%s2061_s18 + $0x70] ss:$8 sps:$4 sm:$0xff]  }
  0x15   : > { %v1888_v59 = vld [vmem:[%s2061_s18 + $0xf4] ss:$8 sps:$4 sm:$0xff]   ;;  %v1890_v61 = vld [vmem:[%s2061_s18 + $0xf0] ss:$8 sps:$4 sm:$0xff]   ;;  %s1325_s20 = sshll.u32 %s54_s19, 2  ;;  %p49_p0 = scmp.ge.s32.totalorder %s52_s16, 8  }
  0x16   : > { %s2130_s23 = scalar_lea.vmem %s2435_s3, %s1325_s20  ;;  %s2145_s26 = scalar_lea.vmem %s2438_s6, %s1325_s20 }
  0x17   : > { %351 = vmatpush1.bf16.msra.mxu0 %v1303_v25  ;;  %1819 = vmatpush1.bf16.msra.mxu1 %v1303_v25  ;;  %v1460_v62 = vld [vmem:[%s2130_s23] sm:$0xff]   ;;  %s2303_s0 = smov (%p49_p0), 0  }
  0x18   : > { %352 = vmatprep.subr.bf16.mxu0 %v1910_v21  ;;  %1811 = vmatprep.subr.bf16.mxu1 %v1910_v21  ;;  %v1754_v63 = vld [vmem:[%s2130_s23 + $0x40] sm:$0xff]   ;;  %v1461_v3 = vunpack.c.l.bf16 %v1460_v62  ;;  %v1462_v24 = vunpack.c.h.bf16 %v1460_v62 }
  0x1b   : > { %353 = vmatpush1.bf16.msra.mxu0 %v1304_v27  ;;  %1820 = vmatpush1.bf16.msra.mxu1 %v1304_v27 }
  0x1c   : > { %354 = vmatprep.subr.bf16.mxu0 %v1910_v21  ;;  %1812 = vmatprep.subr.bf16.mxu1 %v1910_v21 }
  0x1f   : > { %355 = vmatpush1.bf16.msra.mxu0 %v1305_v28  ;;  %1821 = vmatpush1.bf16.msra.mxu1 %v1305_v28 }
  0x20   : > { %356 = vmatprep.subr.bf16.mxu0 %v1910_v21  ;;  %1813 = vmatprep.subr.bf16.mxu1 %v1910_v21 }
  0x23   : > { %357 = vmatpush1.bf16.msra.mxu0 %v1306_v29  ;;  %1822 = vmatpush1.bf16.msra.mxu1 %v1306_v29  ;;  %v1494_v29 = vunpack.c.h.bf16 %v1754_v63 }
  0x24   : > { %358 = vmatprep.subr.bf16.mxu0 %v1910_v21  ;;  %1814 = vmatprep.subr.bf16.mxu1 %v1910_v21 }
  0x27   : > { %359 = vmatpush1.bf16.msra.mxu0 %v1307_v30  ;;  %1823 = vmatpush1.bf16.msra.mxu1 %v1307_v30 }
  0x28   : > { %360 = vmatprep.subr.bf16.mxu0 %v1910_v21  ;;  %1815 = vmatprep.subr.bf16.mxu1 %v1910_v21  ;;  %v1493_v21 = vunpack.c.l.bf16 %v1754_v63 }
  0x2b   : > { %361 = vmatpush1.bf16.msra.mxu0 %v1308_v31  ;;  %1824 = vmatpush1.bf16.msra.mxu1 %v1308_v31 }
  0x2e   : > { %377 = vmatmul.mubr.bf16.vlgmr.msra.gmra.mrb[0].mxu0 %v1843_v32  ;;  %441 = vmatmul.mubr.bf16.vlgmr.msra.gmra.mrb[0].mxu1 %v1855_v34 }
  0x2f   : > { %1310 = vmatprep.mubr.msk.bf16.mxu0 %vm295_vm0, %v1846_v33  ;;  %1318 = vmatprep.mubr.msk.bf16.mxu1 %vm295_vm0, %v1861_v35  ;;  %v1747_v33 = vld [vmem:[%s2130_s23 + $0x8] sm:$0xff]  }
  0x36   : > { %385 = vmatmul.mubr.bf16.gmra.mrb[4].mxu0 %v1848_v36  ;;  %449 = vmatmul.mubr.bf16.gmra.mrb[4].mxu1 %v1863_v38 }
  0x37   : > { %1311 = vmatprep.mubr.msk.bf16.mxu0 %vm295_vm0, %v1849_v37  ;;  %1319 = vmatprep.mubr.msk.bf16.mxu1 %vm295_vm0, %v1867_v39  ;;  %v1755_v39 = vld [vmem:[%s2130_s23 + $0x48] sm:$0xff]  }
  0x3e   : > { %393 = vmatmul.mubr.bf16.gmra.mrb[8].mxu0 %v1851_v40  ;;  %457 = vmatmul.mubr.bf16.gmra.mrb[8].mxu1 %v1869_v42  ;;  %v1465_v40 = vunpack.c.l.bf16 %v1747_v33 }
  0x3f   : > { %1312 = vmatprep.mubr.msk.bf16.mxu0 %vm295_vm0, %v1852_v41  ;;  %1320 = vmatprep.mubr.msk.bf16.mxu1 %vm295_vm0, %v1873_v43 }
  0x46   : > { %401 = vmatmul.mubr.bf16.gmra.mrb[12].mxu0 %v1854_v44  ;;  %465 = vmatmul.mubr.bf16.gmra.mrb[12].mxu1 %v1875_v46 }
  0x47   : > { %1313 = vmatprep.mubr.msk.bf16.mxu0 %vm295_vm0, %v1858_v45  ;;  %1321 = vmatprep.mubr.msk.bf16.mxu1 %vm295_vm0, %v1879_v47 }
  0x4e   : > { %409 = vmatmul.mubr.bf16.gmra.mrb[16].mxu0 %v1860_v48  ;;  %473 = vmatmul.mubr.bf16.gmra.mrb[16].mxu1 %v1881_v50  ;;  %v1497_v48 = vunpack.c.l.bf16 %v1755_v39 }
  0x4f   : > { %1314 = vmatprep.mubr.msk.bf16.mxu0 %vm295_vm0, %v1864_v49  ;;  %1322 = vmatprep.mubr.msk.bf16.mxu1 %vm295_vm0, %v1882_v51 }
  0x56   : > { %417 = vmatmul.mubr.bf16.gmra.mrb[20].mxu0 %v1866_v52  ;;  %481 = vmatmul.mubr.bf16.gmra.mrb[20].mxu1 %v1884_v54  ;;  %v1466_v52 = vunpack.c.h.bf16 %v1747_v33 }
  0x57   : > { %1315 = vmatprep.mubr.msk.bf16.mxu0 %vm295_vm0, %v1870_v53  ;;  %1323 = vmatprep.mubr.msk.bf16.mxu1 %vm295_vm0, %v1885_v55 }
  0x5e   : > { %425 = vmatmul.mubr.bf16.gmra.mrb[24].mxu0 %v1872_v56  ;;  %489 = vmatmul.mubr.bf16.gmra.mrb[24].mxu1 %v1887_v58 }
  0x5f   : > { %1316 = vmatprep.mubr.msk.bf16.mxu0 %vm295_vm0, %v1876_v57  ;;  %1324 = vmatprep.mubr.msk.bf16.mxu1 %vm295_vm0, %v1888_v59  ;;  %v1498_v57 = vunpack.c.h.bf16 %v1755_v39 }
  0x66   : > { %433 = vmatmul.mubr.bf16.gmra.mrb[28].mxu0 %v1878_v60  ;;  %497 = vmatmul.mubr.bf16.gmra.mrb[28].mxu1 %v1890_v61  ;;  %v1748_v61 = vld [vmem:[%s2130_s23 + $0x10] sm:$0xff]  }
 0x101   : > { %v378_v20 = vpop.f32.mrb[0].mxu0  ;;  %v442_v25 = vpop.f32.mrb[0].mxu1 }
 0x102   : > { %v379_v22 = vadd.f32 %v2044_v19, %v378_v20  ;;  %v380_v23 = vpop.f32.mrb[1].mxu0  ;;  %v443_v27 = vadd.f32 %v2044_v19, %v442_v25  ;;  %v444_v28 = vpop.f32.mrb[1].mxu1  ;;  %v1469_v25 = vunpack.c.l.bf16 %v1748_v61 }
 0x103   : > { %v381_v26 = vpop.f32.mrb[2].mxu0  ;;  %v445_v34 = vpop.f32.mrb[2].mxu1 }
 0x104   : > { %v571_v30 = vadd.f32 %v1461_v3, %v379_v22  ;;  %v382_v31 = vadd.f32 %v2044_v19, %v381_v26  ;;  %v383_v32 = vpop.f32.mrb[3].mxu0  ;;  %v2138_v35 = vadd.f32 %v1493_v21, %v443_v27  ;;  %v446_v36 = vadd.f32 %v2044_v19, %v445_v34  ;;  %v447_v37 = vpop.f32.mrb[3].mxu1 }
 0x106   : > { %v572_v38 = vadd.f32 %v1462_v24, %v382_v31  ;;  %v2147_v41 = vadd.f32 %v1494_v29, %v446_v36  ;;  %v806_v42 = vmul.f32 %v571_v30, %v571_v30  ;;  %v1756_v24 = vld [vmem:[%s2130_s23 + $0x50] sm:$0xff]  }
 0x107   : > { %v1501_v33 = vunpack.c.l.bf16 %v1756_v24 }
 0x108   : > { %v1526_v43 = vpack.c.bf16 %v572_v38, %v571_v30  ;;  %v766_v44 = vadd.f32 %v572_v38, %v571_v30  ;;  %v807_v45 = vmul.f32 %v572_v38, %v572_v38  ;;  %v1566_v47 = vpack.c.bf16 %v2147_v41, %v2138_v35 }
 0x109   : > { %v386_v46 = vpop.f32.mrb[4].mxu0  ;;  %v450_v53 = vpop.f32.mrb[4].mxu1  ;;  %v1470_v38 = vunpack.c.h.bf16 %v1748_v61 }
 0x10a   : > { %1527 = vst [vmem:[%s2145_s26] sm:$0xff] %v1526_v43   ;;  %v838_v49 = vadd.f32 %v807_v45, %v806_v42  ;;  %v387_v50 = vadd.f32 %v2044_v19, %v386_v46  ;;  %v388_v51 = vpop.f32.mrb[5].mxu0  ;;  %1769 = vst [vmem:[%s2145_s26 + $0x40] sm:$0xff] %v1566_v47   ;;  %v451_v55 = vadd.f32 %v2044_v19, %v450_v53  ;;  %v452_v56 = vpop.f32.mrb[5].mxu1 }
 0x10b   : > { %v389_v54 = vpop.f32.mrb[6].mxu0  ;;  %v453_v62 = vpop.f32.mrb[6].mxu1  ;;  %v1757_v56 = vld [vmem:[%s2130_s23 + $0x58] sm:$0xff]  }
 0x10c   : > { %v573_v58 = vadd.f32 %v1465_v40, %v387_v50  ;;  %v390_v59 = vadd.f32 %v2044_v19, %v389_v54  ;;  %v391_v60 = vpop.f32.mrb[7].mxu0  ;;  %v2157_v63 = vadd.f32 %v1497_v48, %v451_v55  ;;  %v454_v3 = vadd.f32 %v2044_v19, %v453_v62  ;;  %v455_v20 = vpop.f32.mrb[7].mxu1  ;;  %v1749_v48 = vld [vmem:[%s2130_s23 + $0x18] sm:$0xff]  }
 0x10e   : > { %v767_v21 = vadd.f32 %v766_v44, %v573_v58  ;;  %v808_v22 = vmul.f32 %v573_v58, %v573_v58  ;;  %v574_v23 = vadd.f32 %v1466_v52, %v390_v59  ;;  %v2161_v26 = vadd.f32 %v1498_v57, %v454_v3 }
 0x10f   : > { %v1502_v44 = vunpack.c.h.bf16 %v1756_v24  ;;  %v1473_v57 = vunpack.c.l.bf16 %v1749_v48 }
 0x110   : > { %v839_v27 = vadd.f32 %v838_v49, %v808_v22  ;;  %v1531_v28 = vpack.c.bf16 %v574_v23, %v573_v58  ;;  %v768_v29 = vadd.f32 %v767_v21, %v574_v23  ;;  %v809_v30 = vmul.f32 %v574_v23, %v574_v23 }
 0x111   : > { %v394_v31 = vpop.f32.mrb[8].mxu0  ;;  %v1571_v32 = vpack.c.bf16 %v2161_v26, %v2157_v63  ;;  %v458_v39 = vpop.f32.mrb[8].mxu1  ;;  %v1505_v21 = vunpack.c.l.bf16 %v1757_v56 }
 0x112   : > { %1762 = vst [vmem:[%s2145_s26 + $0x8] sm:$0xff] %v1531_v28   ;;  %v840_v34 = vadd.f32 %v839_v27, %v809_v30  ;;  %v395_v36 = vadd.f32 %v2044_v19, %v394_v31  ;;  %v396_v37 = vpop.f32.mrb[9].mxu0  ;;  %v459_v42 = vadd.f32 %v2044_v19, %v458_v39  ;;  %v460_v43 = vpop.f32.mrb[9].mxu1  ;;  %v1506_v31 = vunpack.c.h.bf16 %v1757_v56 }
 0x113   : > { %v397_v40 = vpop.f32.mrb[10].mxu0  ;;  %1770 = vst [vmem:[%s2145_s26 + $0x48] sm:$0xff] %v1571_v32   ;;  %v461_v49 = vpop.f32.mrb[10].mxu1 }
 0x114   : > { %v575_v45 = vadd.f32 %v1469_v25, %v395_v36  ;;  %v398_v46 = vadd.f32 %v2044_v19, %v397_v40  ;;  %v399_v47 = vpop.f32.mrb[11].mxu0  ;;  %v2171_v50 = vadd.f32 %v1501_v33, %v459_v42  ;;  %v462_v51 = vadd.f32 %v2044_v19, %v461_v49  ;;  %v463_v52 = vpop.f32.mrb[11].mxu1  ;;  %v1750_v36 = vld [vmem:[%s2130_s23 + $0x20] sm:$0xff]  }
 0x115   : > { %v1474_v25 = vunpack.c.h.bf16 %v1749_v48 }
 0x116   : > { %v769_v53 = vadd.f32 %v768_v29, %v575_v45  ;;  %v810_v54 = vmul.f32 %v575_v45, %v575_v45  ;;  %v576_v55 = vadd.f32 %v1470_v38, %v398_v46  ;;  %v2175_v58 = vadd.f32 %v1502_v44, %v462_v51 }
 0x117   : > { %v1477_v46 = vunpack.c.l.bf16 %v1750_v36 }
 0x118   : > { %v841_v59 = vadd.f32 %v840_v34, %v810_v54  ;;  %v1536_v60 = vpack.c.bf16 %v576_v55, %v575_v45  ;;  %v770_v61 = vadd.f32 %v769_v53, %v576_v55  ;;  %v811_v62 = vmul.f32 %v576_v55, %v576_v55  ;;  %v1758_v45 = vld [vmem:[%s2130_s23 + $0x60] sm:$0xff]  }
 0x119   : > { %v402_v3 = vpop.f32.mrb[12].mxu0  ;;  %v1576_v20 = vpack.c.bf16 %v2175_v58, %v2171_v50  ;;  %v466_v27 = vpop.f32.mrb[12].mxu1  ;;  %v1509_v55 = vunpack.c.l.bf16 %v1758_v45 }
 0x11a   : > { %1763 = vst [vmem:[%s2145_s26 + $0x10] sm:$0xff] %v1536_v60   ;;  %v842_v22 = vadd.f32 %v841_v59, %v811_v62  ;;  %v403_v23 = vadd.f32 %v2044_v19, %v402_v3  ;;  %v404_v24 = vpop.f32.mrb[13].mxu0  ;;  %v467_v29 = vadd.f32 %v2044_v19, %v466_v27  ;;  %v468_v30 = vpop.f32.mrb[13].mxu1  ;;  %v1478_v60 = vunpack.c.h.bf16 %v1750_v36 }
 0x11b   : > { %v405_v28 = vpop.f32.mrb[14].mxu0  ;;  %1771 = vst [vmem:[%s2145_s26 + $0x50] sm:$0xff] %v1576_v20   ;;  %v469_v37 = vpop.f32.mrb[14].mxu1 }
 0x11c   : > { %v577_v32 = vadd.f32 %v1473_v57, %v403_v23  ;;  %v406_v33 = vadd.f32 %v2044_v19, %v405_v28  ;;  %v407_v34 = vpop.f32.mrb[15].mxu0  ;;  %v2185_v38 = vadd.f32 %v1505_v21, %v467_v29  ;;  %v470_v39 = vadd.f32 %v2044_v19, %v469_v37  ;;  %v471_v40 = vpop.f32.mrb[15].mxu1 }
 0x11d   : > { %v1510_v21 = vunpack.c.h.bf16 %v1758_v45  ;;  %v1759_v34 = vld [vmem:[%s2130_s23 + $0x68] sm:$0xff]  }
 0x11e   : > { %v771_v42 = vadd.f32 %v770_v61, %v577_v32  ;;  %v812_v43 = vmul.f32 %v577_v32, %v577_v32  ;;  %v578_v44 = vadd.f32 %v1474_v25, %v406_v33  ;;  %v2189_v47 = vadd.f32 %v1506_v31, %v470_v39  ;;  %v1751_v25 = vld [vmem:[%s2130_s23 + $0x28] sm:$0xff]  }
 0x11f   : > { %v1481_v36 = vunpack.c.l.bf16 %v1751_v25 }
 0x120   : > { %v843_v48 = vadd.f32 %v842_v22, %v812_v43  ;;  %v1541_v49 = vpack.c.bf16 %v578_v44, %v577_v32  ;;  %v772_v51 = vadd.f32 %v771_v42, %v578_v44  ;;  %v813_v52 = vmul.f32 %v578_v44, %v578_v44 }
 0x121   : > { %v410_v53 = vpop.f32.mrb[16].mxu0  ;;  %v1581_v54 = vpack.c.bf16 %v2189_v47, %v2185_v38  ;;  %v474_v61 = vpop.f32.mrb[16].mxu1 }
 0x122   : > { %1764 = vst [vmem:[%s2145_s26 + $0x18] sm:$0xff] %v1541_v49   ;;  %v844_v56 = vadd.f32 %v843_v48, %v813_v52  ;;  %v411_v57 = vadd.f32 %v2044_v19, %v410_v53  ;;  %v412_v59 = vpop.f32.mrb[17].mxu0  ;;  %v475_v3 = vadd.f32 %v2044_v19, %v474_v61  ;;  %v476_v20 = vpop.f32.mrb[17].mxu1  ;;  %v1482_v52 = vunpack.c.h.bf16 %v1751_v25 }
 0x123   : > { %v413_v62 = vpop.f32.mrb[18].mxu0  ;;  %1772 = vst [vmem:[%s2145_s26 + $0x58] sm:$0xff] %v1581_v54   ;;  %v477_v27 = vpop.f32.mrb[18].mxu1 }
 0x124   : > { %v579_v22 = vadd.f32 %v1477_v46, %v411_v57  ;;  %v414_v23 = vadd.f32 %v2044_v19, %v413_v62  ;;  %v415_v24 = vpop.f32.mrb[19].mxu0  ;;  %v2199_v28 = vadd.f32 %v1509_v55, %v475_v3  ;;  %v478_v29 = vadd.f32 %v2044_v19, %v477_v27  ;;  %v479_v30 = vpop.f32.mrb[19].mxu1  ;;  %v1752_v62 = vld [vmem:[%s2130_s23 + $0x30] sm:$0xff]  }
 0x125   : > { %v1513_v46 = vunpack.c.l.bf16 %v1759_v34  ;;  %v1514_v57 = vunpack.c.h.bf16 %v1759_v34  ;;  %v1760_v27 = vld [vmem:[%s2130_s23 + $0x70] sm:$0xff]  }
 0x126   : > { %v773_v31 = vadd.f32 %v772_v51, %v579_v22  ;;  %v814_v32 = vmul.f32 %v579_v22, %v579_v22  ;;  %v580_v33 = vadd.f32 %v1478_v60, %v414_v23  ;;  %v2203_v37 = vadd.f32 %v1510_v21, %v478_v29 }
 0x127   : > { %v1485_v29 = vunpack.c.l.bf16 %v1752_v62 }
 0x128   : > { %v845_v39 = vadd.f32 %v844_v56, %v814_v32  ;;  %v1546_v40 = vpack.c.bf16 %v580_v33, %v579_v22  ;;  %v774_v42 = vadd.f32 %v773_v31, %v580_v33  ;;  %v815_v43 = vmul.f32 %v580_v33, %v580_v33 }
 0x129   : > { %v418_v44 = vpop.f32.mrb[20].mxu0  ;;  %v1586_v45 = vpack.c.bf16 %v2203_v37, %v2199_v28  ;;  %v482_v53 = vpop.f32.mrb[20].mxu1 }
 0x12a   : > { %1765 = vst [vmem:[%s2145_s26 + $0x20] sm:$0xff] %v1546_v40   ;;  %v846_v48 = vadd.f32 %v845_v39, %v815_v43  ;;  %v419_v49 = vadd.f32 %v2044_v19, %v418_v44  ;;  %v420_v51 = vpop.f32.mrb[21].mxu0  ;;  %v483_v55 = vadd.f32 %v2044_v19, %v482_v53  ;;  %v484_v56 = vpop.f32.mrb[21].mxu1  ;;  %v1517_v40 = vunpack.c.l.bf16 %v1760_v27 }
 0x12b   : > { %v421_v54 = vpop.f32.mrb[22].mxu0  ;;  %1773 = vst [vmem:[%s2145_s26 + $0x60] sm:$0xff] %v1586_v45   ;;  %v485_v3 = vpop.f32.mrb[22].mxu1  ;;  %v1486_v45 = vunpack.c.h.bf16 %v1752_v62  ;;  %v1753_v56 = vld [vmem:[%s2130_s23 + $0x38] sm:$0xff]  }
 0x12c   : > { %v581_v59 = vadd.f32 %v1481_v36, %v419_v49  ;;  %v422_v60 = vadd.f32 %v2044_v19, %v421_v54  ;;  %v423_v61 = vpop.f32.mrb[23].mxu0  ;;  %v2213_v20 = vadd.f32 %v1513_v46, %v483_v55  ;;  %v486_v21 = vadd.f32 %v2044_v19, %v485_v3  ;;  %v487_v22 = vpop.f32.mrb[23].mxu1 }
 0x12d   : > { %v1761_v22 = vld [vmem:[%s2130_s23 + $0x78] sm:$0xff]  }
 0x12e   : > { %v775_v23 = vadd.f32 %v774_v42, %v581_v59  ;;  %v816_v24 = vmul.f32 %v581_v59, %v581_v59  ;;  %v582_v25 = vadd.f32 %v1482_v52, %v422_v60  ;;  %v2217_v30 = vadd.f32 %v1514_v57, %v486_v21 }
 0x12f   : > { %v1518_v52 = vunpack.c.h.bf16 %v1760_v27 }
 0x130   : > { %v847_v31 = vadd.f32 %v846_v48, %v816_v24  ;;  %v1551_v32 = vpack.c.bf16 %v582_v25, %v581_v59  ;;  %v776_v33 = vadd.f32 %v775_v23, %v582_v25  ;;  %v817_v34 = vmul.f32 %v582_v25, %v582_v25 }
 0x131   : > { %v426_v36 = vpop.f32.mrb[24].mxu0  ;;  %v1591_v39 = vpack.c.bf16 %v2217_v30, %v2213_v20  ;;  %v490_v46 = vpop.f32.mrb[24].mxu1  ;;  %v1489_v23 = vunpack.c.l.bf16 %v1753_v56 }
 0x132   : > { %1766 = vst [vmem:[%s2145_s26 + $0x28] sm:$0xff] %v1551_v32   ;;  %v848_v43 = vadd.f32 %v847_v31, %v817_v34  ;;  %v427_v42 = vadd.f32 %v2044_v19, %v426_v36  ;;  %v428_v44 = vpop.f32.mrb[25].mxu0  ;;  %v491_v48 = vadd.f32 %v2044_v19, %v490_v46  ;;  %v492_v51 = vpop.f32.mrb[25].mxu1  ;;  %v1521_v36 = vunpack.c.l.bf16 %v1761_v22 }
 0x133   : > { %v429_v49 = vpop.f32.mrb[26].mxu0  ;;  %1774 = vst [vmem:[%s2145_s26 + $0x68] sm:$0xff] %v1591_v39   ;;  %v493_v57 = vpop.f32.mrb[26].mxu1 }
 0x134   : > { %v583_v53 = vadd.f32 %v1485_v29, %v427_v42  ;;  %v430_v54 = vadd.f32 %v2044_v19, %v429_v49  ;;  %v431_v55 = vpop.f32.mrb[27].mxu0  ;;  %v2227_v59 = vadd.f32 %v1517_v40, %v491_v48  ;;  %v494_v60 = vadd.f32 %v2044_v19, %v493_v57  ;;  %v495_v61 = vpop.f32.mrb[27].mxu1 }
 0x135   : > { %v1490_v42 = vunpack.c.h.bf16 %v1753_v56  ;;  %v1522_v49 = vunpack.c.h.bf16 %v1761_v22 }
 0x136   : > { %v777_v62 = vadd.f32 %v776_v33, %v583_v53  ;;  %v818_v3 = vmul.f32 %v583_v53, %v583_v53  ;;  %v584_v21 = vadd.f32 %v1486_v45, %v430_v54  ;;  %v2231_v24 = vadd.f32 %v1518_v52, %v494_v60 }
 0x138   : > { %v849_v25 = vadd.f32 %v848_v43, %v818_v3  ;;  %v1556_v27 = vpack.c.bf16 %v584_v21, %v583_v53  ;;  %v778_v29 = vadd.f32 %v777_v62, %v584_v21  ;;  %v819_v31 = vmul.f32 %v584_v21, %v584_v21 }
 0x139   : > { %v434_v32 = vpop.f32.mrb[28].mxu0  ;;  %v1596_v34 = vpack.c.bf16 %v2231_v24, %v2227_v59  ;;  %v498_v44 = vpop.f32.mrb[28].mxu1 }
 0x13a   : > { %1767 = vst [vmem:[%s2145_s26 + $0x30] sm:$0xff] %v1556_v27   ;;  %v850_v39 = vadd.f32 %v849_v25, %v819_v31  ;;  %v435_v33 = vadd.f32 %v2044_v19, %v434_v32  ;;  %v436_v40 = vpop.f32.mrb[29].mxu0  ;;  %v499_v46 = vadd.f32 %v2044_v19, %v498_v44  ;;  %v500_v43 = vpop.f32.mrb[29].mxu1 }
 0x13b   : > { %v437_v45 = vpop.f32.mrb[30].mxu0  ;;  %1775 = vst [vmem:[%s2145_s26 + $0x70] sm:$0xff] %v1596_v34   ;;  %v501_v53 = vpop.f32.mrb[30].mxu1  ;;  %v823_v34 = vmul.f32 %v2147_v41, %v2147_v41 }
 0x13c   : > { %v585_v48 = vadd.f32 %v1489_v23, %v435_v33  ;;  %v438_v51 = vadd.f32 %v2044_v19, %v437_v45  ;;  %v439_v52 = vpop.f32.mrb[31].mxu0  ;;  %v601_v54 = vadd.f32 %v1521_v36, %v499_v46  ;;  %v502_v55 = vadd.f32 %v2044_v19, %v501_v53  ;;  %v503_v57 = vpop.f32.mrb[31].mxu1 }
 0x13d   : > { %v822_v23 = vmul.f32 %v2138_v35, %v2138_v35  ;;  %v826_v45 = vmul.f32 %v2171_v50, %v2171_v50  ;;  %v830_v57 = vmul.f32 %v2199_v28, %v2199_v28 }
 0x13e   : > { %v779_v60 = vadd.f32 %v778_v29, %v585_v48  ;;  %v820_v56 = vmul.f32 %v585_v48, %v585_v48  ;;  %v586_v61 = vadd.f32 %v1490_v42, %v438_v51  ;;  %v602_v62 = vadd.f32 %v1522_v49, %v502_v55 }
 0x13f   : > { %v825_v42 = vmul.f32 %v2161_v26, %v2161_v26 }
 0x140   : > { %v851_v3 = vadd.f32 %v850_v39, %v820_v56  ;;  %v1561_v21 = vpack.c.bf16 %v586_v61, %v585_v48  ;;  %v780_v25 = vadd.f32 %v779_v60, %v586_v61  ;;  %v821_v27 = vmul.f32 %v586_v61, %v586_v61 }
 0x141   : > { %v1601_v22 = vpack.c.bf16 %v602_v62, %v601_v54  ;;  %v824_v39 = vmul.f32 %v2157_v63, %v2157_v63  ;;  %v831_v61 = vmul.f32 %v2203_v37, %v2203_v37 }
 0x142   : > { %1768 = vst [vmem:[%s2145_s26 + $0x38] sm:$0xff] %v1561_v21   ;;  %v781_v31 = vadd.f32 %v780_v25, %v2138_v35  ;;  %v852_v32 = vadd.f32 %v851_v3, %v821_v27  ;;  %v832_v21 = vmul.f32 %v2213_v20, %v2213_v20  ;;  %v833_v27 = vmul.f32 %v2217_v30, %v2217_v30 }
 0x143   : > { %1776 = vst [vmem:[%s2145_s26 + $0x78] sm:$0xff] %v1601_v22  }
 0x144   : > { %v782_v29 = vadd.f32 %v781_v31, %v2147_v41  ;;  %v853_v36 = vadd.f32 %v852_v32, %v822_v23  ;;  %v827_v41 = vmul.f32 %v2175_v58, %v2175_v58  ;;  %v834_v23 = vmul.f32 %v2227_v59, %v2227_v59 }
 0x145   : > { %v835_v32 = vmul.f32 %v2231_v24, %v2231_v24 }
 0x146   : > { %v783_v33 = vadd.f32 %v782_v29, %v2157_v63  ;;  %v854_v40 = vadd.f32 %v853_v36, %v823_v34  ;;  %v828_v63 = vmul.f32 %v2185_v38, %v2185_v38  ;;  %v836_v34 = vmul.f32 %v601_v54, %v601_v54 }
 0x148   : > { %v784_v44 = vadd.f32 %v783_v33, %v2161_v26  ;;  %v855_v35 = vadd.f32 %v854_v40, %v824_v39  ;;  %v829_v26 = vmul.f32 %v2189_v47, %v2189_v47  ;;  %v837_v33 = vmul.f32 %v602_v62, %v602_v62 }
 0x14a   : > { %v856_v46 = vadd.f32 %v855_v35, %v825_v42  ;;  %v785_v43 = vadd.f32 %v784_v44, %v2171_v50 }
 0x14c   : > { %v786_v49 = vadd.f32 %v785_v43, %v2175_v58  ;;  %v857_v48 = vadd.f32 %v856_v46, %v826_v45 }
 0x14e   : > { %v787_v51 = vadd.f32 %v786_v49, %v2185_v38  ;;  %v858_v52 = vadd.f32 %v857_v48, %v827_v41  ;;  %v765_v49 = vld [vmem:[#allocation2] sm:$0x1] }
 0x150   : > { %v788_v53 = vadd.f32 %v787_v51, %v2189_v47  ;;  %v859_v55 = vadd.f32 %v858_v52, %v828_v63 }
 0x152   : > { %v789_v50 = vadd.f32 %v788_v53, %v2199_v28  ;;  %v860_v60 = vadd.f32 %v859_v55, %v829_v26 }
 0x154   : > { %v861_v58 = vadd.f32 %v860_v60, %v830_v57  ;;  %v790_v56 = vadd.f32 %v789_v50, %v2203_v37 }
 0x156   : > { %v862_v38 = vadd.f32 %v861_v58, %v831_v61  ;;  %v791_v3 = vadd.f32 %v790_v56, %v2213_v20  ;;  %v884_v56 = vld [vmem:[%s2436_s4] sm:$0x1] (%p49_p0) }
 0x158   : > { %v863_v47 = vadd.f32 %v862_v38, %v832_v21  ;;  %v792_v25 = vadd.f32 %v791_v3, %v2217_v30  ;;  %v2296_v3 = vld [vmem:[%s2437_s5] sm:$0x1] (%p49_p0) }
 0x15a   : > { %v864_v28 = vadd.f32 %v863_v47, %v833_v27  ;;  %v793_v22 = vadd.f32 %v792_v25, %v2227_v59 }
 0x15c   : > { %v865_v31 = vadd.f32 %v864_v28, %v834_v23  ;;  %v794_v37 = vadd.f32 %v793_v22, %v2231_v24  ;;  %v805_v24 = vld [vmem:[#allocation3] sm:$0x1] }
 0x15e   : > { %v866_v20 = vadd.f32 %v865_v31, %v835_v32  ;;  %v795_v29 = vadd.f32 %v794_v37, %v601_v54 }
 0x160   : > { %v867_v36 = vadd.f32 %v866_v20, %v836_v34  ;;  %v796_v39 = vadd.f32 %v795_v29, %v602_v62 }
 0x162   : > { %v797_v40 = vrot.slane %v796_v39, 4  ;;  %v868_v30 = vadd.f32 %v867_v36, %v837_v33 }
 0x164   : > { %v798_v42 = vadd.f32 %v797_v40, %v796_v39  ;;  %v869_v44 = vrot.slane %v868_v30, 4 }
 0x166   : > { %v799_v35 = vrot.slane %v798_v42, 2  ;;  %v870_v45 = vadd.f32 %v869_v44, %v868_v30 }
 0x168   : > { %v800_v46 = vadd.f32 %v799_v35, %v798_v42  ;;  %v871_v59 = vrot.slane %v870_v45, 2 }
 0x16a   : > { %v801_v43 = vrot.slane %v800_v46, 1  ;;  %v872_v41 = vadd.f32 %v871_v59, %v870_v45 }
 0x16c   : > { %v802_v48 = vadd.f32 %v801_v43, %v800_v46  ;;  %v873_v63 = vrot.slane %v872_v41, 1  ;;  %51 = sbr.rel (!%p49_p0) target bundleno = 9 (0x9), region = 71 }
 0x16e   : > { %v803_v51 = vadd.f32 %v802_v48, %v765_v49  ;;  %v874_v52 = vadd.f32 %v873_v63, %v872_v41 }
 0x170   : > { %804 = vst [vmem:[#allocation2] sm:$0x1] %v803_v51  ;;  %v875_v54 = vadd.f32 %v874_v52, %v805_v24 }
 0x172   : > { %876 = vst [vmem:[#allocation3] sm:$0x1] %v875_v54 }
 0x177   :  { %v877_v62 = vld [vmem:[#allocation2] sm:$0x1] }
 0x178   :  { %v878_v53 = vmul.f32 0.00048828125, %v877_v62 }
 0x179   :  { %v879_v26 = vld [vmem:[#allocation3] sm:$0x1] }
 0x17a   :  { %v880_v55 = vmul.f32 0.00048828125, %v879_v26  ;;  %v881_v50 = vmul.f32 %v878_v53, %v878_v53 }
 0x17c   :  { %v882_v57 = vsub.f32 %v880_v55, %v881_v50 }
 0x17e   :  { %v883_v60 = vmax.f32 %v882_v57, 0.0 }
 0x180   :  { %v885_v58 = vadd.f32 1e-05, %v883_v60 }
 0x182   :  { %1891 = vrsqrt.f32 %v885_v58 }
 0x18c   :  { %v1892_v61 = vpop.eup %1891 }
 0x18d   :  { %v2291_v38 = vmul.f32 %v1892_v61, %v884_v56 }
 0x18f   :  { %v2299_v0 = vmul.f32 %v2291_v38, %v878_v53 }
 0x191   :  { %v890_v1 = vsub.f32 %v2296_v3, %v2299_v0 }
 0x192 LB: > { %v967_v2 = vlaneseq  ;;  %s1359_s3 = sshll.u32 %s1907_s0, 8  ;;  %s896_s0 = sadd.s32 1, %s1907_s0   ;;  %s1907_s0 = sphi %s2303_s0, %s896_s0  }
 0x193   : > { %s2309_s4 = sshra.s32 %s1359_s3, 3  ;;  %p893_p1 = scmp.ge.s32.totalorder %s896_s0, 8  }
 0x194   : > { %v968_v4 = vshrl.u32 %v967_v2, 7  ;;  %s1360_s5 = sshll.u32 %s2309_s4, 2 }
 0x195   : > { %s2317_s10 = scalar_lea.vmem %s2438_s6, %s1360_s5  ;;  %s2354_s13 = scalar_lea.vmem %s2439_s7, %s1360_s5 }
 0x196   : > { %v969_v5 = vsub.s32 0, %v968_v4  ;;  %v1604_v6 = vld [vmem:[%s2317_s10] sm:$0xff]   ;;  %v1777_v9 = vld [vmem:[%s2317_s10 + $0x8] sm:$0xff]   ;;  %v1778_v10 = vld [vmem:[%s2317_s10 + $0x10] sm:$0xff]  }
 0x197   : > { %v1605_v11 = vunpack.c.l.bf16 %v1604_v6  ;;  %v1606_v12 = vunpack.c.h.bf16 %v1604_v6  ;;  %v1609_v13 = vunpack.c.l.bf16 %v1777_v9  ;;  %v1610_v14 = vunpack.c.h.bf16 %v1777_v9  ;;  %v1779_v15 = vld [vmem:[%s2317_s10 + $0x18] sm:$0xff]   ;;  %v1780_v40 = vld [vmem:[%s2317_s10 + $0x20] sm:$0xff]   ;;  %v1781_v45 = vld [vmem:[%s2317_s10 + $0x28] sm:$0xff]  }
 0x198   : > { %v2321_v7 = vrot.slane %v2291_v38, %v969_v5  ;;  %v2326_v8 = vrot.slane %v890_v1, %v969_v5  ;;  %v1613_v16 = vunpack.c.l.bf16 %v1778_v10  ;;  %v1614_v17 = vunpack.c.h.bf16 %v1778_v10  ;;  %v1782_v49 = vld [vmem:[%s2317_s10 + $0x30] sm:$0xff]   ;;  %v1783_v52 = vld [vmem:[%s2317_s10 + $0x38] sm:$0xff]  }
 0x199   : > { %v1617_v18 = vunpack.c.l.bf16 %v1779_v15  ;;  %v1618_v19 = vunpack.c.h.bf16 %v1779_v15  ;;  %v1621_v24 = vunpack.c.l.bf16 %v1780_v40  ;;  %v1622_v51 = vunpack.c.h.bf16 %v1780_v40 }
 0x19a   : > { %v972_v21 = vmul.f32 %v1605_v11, %v2321_v7  ;;  %v973_v47 = vmul.f32 %v1606_v12, %v2321_v7  ;;  %v974_v25 = vmul.f32 %v1609_v13, %v2321_v7  ;;  %v975_v27 = vmul.f32 %v1610_v14, %v2321_v7  ;;  %v1784_v14 = vld [vmem:[%s2317_s10 + $0x40] sm:$0xff]  }
 0x19b   : > { %v976_v28 = vmul.f32 %v1613_v16, %v2321_v7  ;;  %v977_v22 = vmul.f32 %v1614_v17, %v2321_v7  ;;  %v978_v23 = vmul.f32 %v1617_v18, %v2321_v7  ;;  %v979_v31 = vmul.f32 %v1618_v19, %v2321_v7 }
 0x19c   : > { %v1010_v37 = vadd.f32 %v2326_v8, %v972_v21  ;;  %v1011_v32 = vadd.f32 %v2326_v8, %v973_v47  ;;  %v1012_v34 = vadd.f32 %v2326_v8, %v974_v25  ;;  %v1013_v20 = vadd.f32 %v2326_v8, %v975_v27  ;;  %v1785_v27 = vld [vmem:[%s2317_s10 + $0x48] sm:$0xff]  }
 0x19d   : > { %v1014_v29 = vadd.f32 %v2326_v8, %v976_v28  ;;  %v1015_v36 = vadd.f32 %v2326_v8, %v977_v22  ;;  %v1016_v39 = vadd.f32 %v2326_v8, %v978_v23  ;;  %v1017_v33 = vadd.f32 %v2326_v8, %v979_v31 }
 0x19e   : > { %v1042_v30 = vmax.f32 %v1010_v37, 0.0  ;;  %v1043_v42 = vmax.f32 %v1011_v32, 0.0  ;;  %v1044_v44 = vmax.f32 %v1012_v34, 0.0  ;;  %v1045_v35 = vmax.f32 %v1013_v20, 0.0  ;;  %v1786_v37 = vld [vmem:[%s2317_s10 + $0x50] sm:$0xff]  }
 0x19f   : > { %v1046_v46 = vmax.f32 %v1014_v29, 0.0  ;;  %v1047_v59 = vmax.f32 %v1015_v36, 0.0  ;;  %v1048_v43 = vmax.f32 %v1016_v39, 0.0  ;;  %v1049_v41 = vmax.f32 %v1017_v33, 0.0  ;;  %v1787_v36 = vld [vmem:[%s2317_s10 + $0x58] sm:$0xff]  }
 0x1a0   : > { %v1670_v48 = vpack.c.bf16 %v1043_v42, %v1042_v30  ;;  %v1675_v63 = vpack.c.bf16 %v1045_v35, %v1044_v44  ;;  %v1625_v26 = vunpack.c.l.bf16 %v1781_v45  ;;  %v1626_v53 = vunpack.c.h.bf16 %v1781_v45 }
 0x1a1   : > { %v1680_v54 = vpack.c.bf16 %v1047_v59, %v1046_v46  ;;  %v1685_v62 = vpack.c.bf16 %v1049_v41, %v1048_v43  ;;  %v980_v55 = vmul.f32 %v1621_v24, %v2321_v7  ;;  %v981_v50 = vmul.f32 %v1622_v51, %v2321_v7  ;;  %v1788_v51 = vld [vmem:[%s2317_s10 + $0x60] sm:$0xff]  }
 0x1a2   : > { %1671 = vst [vmem:[%s2354_s13] sm:$0xff] %v1670_v48   ;;  %1792 = vst [vmem:[%s2354_s13 + $0x8] sm:$0xff] %v1675_v63   ;;  %v1629_v57 = vunpack.c.l.bf16 %v1782_v49  ;;  %v1630_v60 = vunpack.c.h.bf16 %v1782_v49  ;;  %v982_v58 = vmul.f32 %v1625_v26, %v2321_v7  ;;  %v983_v56 = vmul.f32 %v1626_v53, %v2321_v7 }
 0x1a3   : > { %1793 = vst [vmem:[%s2354_s13 + $0x10] sm:$0xff] %v1680_v54   ;;  %1794 = vst [vmem:[%s2354_s13 + $0x18] sm:$0xff] %v1685_v62   ;;  %v1633_v61 = vunpack.c.l.bf16 %v1783_v52  ;;  %v1634_v2 = vunpack.c.h.bf16 %v1783_v52  ;;  %v1018_v4 = vadd.f32 %v2326_v8, %v980_v55  ;;  %v1019_v5 = vadd.f32 %v2326_v8, %v981_v50 }
 0x1a4   : > { %v984_v6 = vmul.f32 %v1629_v57, %v2321_v7  ;;  %v985_v9 = vmul.f32 %v1630_v60, %v2321_v7  ;;  %v1020_v10 = vadd.f32 %v2326_v8, %v982_v58  ;;  %v1021_v11 = vadd.f32 %v2326_v8, %v983_v56 }
 0x1a5   : > { %v986_v12 = vmul.f32 %v1633_v61, %v2321_v7  ;;  %v987_v13 = vmul.f32 %v1634_v2, %v2321_v7  ;;  %v1050_v15 = vmax.f32 %v1018_v4, 0.0  ;;  %v1051_v16 = vmax.f32 %v1019_v5, 0.0  ;;  %v1789_v2 = vld [vmem:[%s2317_s10 + $0x68] sm:$0xff]  }
 0x1a6   : > { %v1022_v17 = vadd.f32 %v2326_v8, %v984_v6  ;;  %v1023_v18 = vadd.f32 %v2326_v8, %v985_v9  ;;  %v1052_v19 = vmax.f32 %v1020_v10, 0.0  ;;  %v1053_v21 = vmax.f32 %v1021_v11, 0.0  ;;  %v1790_v10 = vld [vmem:[%s2317_s10 + $0x70] sm:$0xff]  }
 0x1a7   : > { %v1024_v47 = vadd.f32 %v2326_v8, %v986_v12  ;;  %v1025_v25 = vadd.f32 %v2326_v8, %v987_v13  ;;  %v1690_v28 = vpack.c.bf16 %v1051_v16, %v1050_v15  ;;  %v1637_v31 = vunpack.c.l.bf16 %v1784_v14  ;;  %v1791_v15 = vld [vmem:[%s2317_s10 + $0x78] sm:$0xff]  }
 0x1a8   : > { %v1054_v22 = vmax.f32 %v1022_v17, 0.0  ;;  %v1055_v23 = vmax.f32 %v1023_v18, 0.0  ;;  %v1695_v32 = vpack.c.bf16 %v1053_v21, %v1052_v19  ;;  %v1638_v29 = vunpack.c.h.bf16 %v1784_v14 }
 0x1a9   : > { %v1056_v34 = vmax.f32 %v1024_v47, 0.0  ;;  %v1057_v20 = vmax.f32 %v1025_v25, 0.0  ;;  %1795 = vst [vmem:[%s2354_s13 + $0x20] sm:$0xff] %v1690_v28   ;;  %v988_v33 = vmul.f32 %v1637_v31, %v2321_v7  ;;  %v1641_v40 = vunpack.c.l.bf16 %v1785_v27 }
 0x1aa   : > { %v1700_v39 = vpack.c.bf16 %v1055_v23, %v1054_v22  ;;  %v1642_v30 = vunpack.c.h.bf16 %v1785_v27  ;;  %1796 = vst [vmem:[%s2354_s13 + $0x28] sm:$0xff] %v1695_v32   ;;  %v989_v44 = vmul.f32 %v1638_v29, %v2321_v7  ;;  %v1645_v35 = vunpack.c.l.bf16 %v1786_v37 }
 0x1ab   : > { %v1705_v42 = vpack.c.bf16 %v1057_v20, %v1056_v34  ;;  %v1646_v45 = vunpack.c.h.bf16 %v1786_v37  ;;  %v1026_v46 = vadd.f32 %v2326_v8, %v988_v33  ;;  %v990_v59 = vmul.f32 %v1641_v40, %v2321_v7 }
 0x1ac   : > { %1797 = vst [vmem:[%s2354_s13 + $0x30] sm:$0xff] %v1700_v39   ;;  %v991_v43 = vmul.f32 %v1642_v30, %v2321_v7  ;;  %v1649_v41 = vunpack.c.l.bf16 %v1787_v36  ;;  %v1027_v49 = vadd.f32 %v2326_v8, %v989_v44  ;;  %v992_v48 = vmul.f32 %v1645_v35, %v2321_v7 }
 0x1ad   : > { %1798 = vst [vmem:[%s2354_s13 + $0x38] sm:$0xff] %v1705_v42   ;;  %v993_v63 = vmul.f32 %v1646_v45, %v2321_v7  ;;  %v1650_v24 = vunpack.c.h.bf16 %v1787_v36  ;;  %v1058_v52 = vmax.f32 %v1026_v46, 0.0  ;;  %v1028_v54 = vadd.f32 %v2326_v8, %v990_v59 }
 0x1ae   : > { %v1029_v62 = vadd.f32 %v2326_v8, %v991_v43  ;;  %v994_v26 = vmul.f32 %v1649_v41, %v2321_v7  ;;  %v1059_v53 = vmax.f32 %v1027_v49, 0.0  ;;  %v1030_v55 = vadd.f32 %v2326_v8, %v992_v48 }
 0x1af   : > { %v1031_v50 = vadd.f32 %v2326_v8, %v993_v63  ;;  %v995_v57 = vmul.f32 %v1650_v24, %v2321_v7  ;;  %v1060_v60 = vmax.f32 %v1028_v54, 0.0  ;;  %v1653_v61 = vunpack.c.l.bf16 %v1788_v51 }
 0x1b0   : > { %v1061_v58 = vmax.f32 %v1029_v62, 0.0  ;;  %v1032_v56 = vadd.f32 %v2326_v8, %v994_v26  ;;  %v1710_v4 = vpack.c.bf16 %v1059_v53, %v1058_v52  ;;  %v1062_v5 = vmax.f32 %v1030_v55, 0.0 }
 0x1b1   : > { %v1063_v6 = vmax.f32 %v1031_v50, 0.0  ;;  %v1033_v9 = vadd.f32 %v2326_v8, %v995_v57  ;;  %v1654_v13 = vunpack.c.h.bf16 %v1788_v51  ;;  %v996_v14 = vmul.f32 %v1653_v61, %v2321_v7 }
 0x1b2   : > { %v1715_v11 = vpack.c.bf16 %v1061_v58, %v1060_v60  ;;  %v1064_v12 = vmax.f32 %v1032_v56, 0.0  ;;  %1799 = vst [vmem:[%s2354_s13 + $0x40] sm:$0xff] %v1710_v4   ;;  %v1657_v18 = vunpack.c.l.bf16 %v1789_v2  ;;  %v1658_v19 = vunpack.c.h.bf16 %v1789_v2 }
 0x1b3   : > { %v1720_v16 = vpack.c.bf16 %v1063_v6, %v1062_v5  ;;  %v1065_v17 = vmax.f32 %v1033_v9, 0.0  ;;  %v997_v21 = vmul.f32 %v1654_v13, %v2321_v7  ;;  %v1034_v47 = vadd.f32 %v2326_v8, %v996_v14 }
 0x1b4   : > { %1800 = vst [vmem:[%s2354_s13 + $0x48] sm:$0xff] %v1715_v11   ;;  %v1661_v25 = vunpack.c.l.bf16 %v1790_v10  ;;  %v1662_v27 = vunpack.c.h.bf16 %v1790_v10  ;;  %v998_v22 = vmul.f32 %v1657_v18, %v2321_v7  ;;  %v999_v23 = vmul.f32 %v1658_v19, %v2321_v7 }
 0x1b5   : > { %1801 = vst [vmem:[%s2354_s13 + $0x50] sm:$0xff] %v1720_v16   ;;  %v1725_v28 = vpack.c.bf16 %v1065_v17, %v1064_v12  ;;  %v1665_v31 = vunpack.c.l.bf16 %v1791_v15  ;;  %v1035_v37 = vadd.f32 %v2326_v8, %v997_v21  ;;  %v1066_v32 = vmax.f32 %v1034_v47, 0.0 }
 0x1b6   : > { %v1000_v34 = vmul.f32 %v1661_v25, %v2321_v7  ;;  %v1001_v20 = vmul.f32 %v1662_v27, %v2321_v7  ;;  %v1036_v29 = vadd.f32 %v2326_v8, %v998_v22  ;;  %v1037_v36 = vadd.f32 %v2326_v8, %v999_v23 }
 0x1b7   : > { %1802 = vst [vmem:[%s2354_s13 + $0x58] sm:$0xff] %v1725_v28   ;;  %v1666_v39 = vunpack.c.h.bf16 %v1791_v15  ;;  %v1002_v33 = vmul.f32 %v1665_v31, %v2321_v7  ;;  %v1067_v40 = vmax.f32 %v1035_v37, 0.0 }
 0x1b8   : > { %v1038_v30 = vadd.f32 %v2326_v8, %v1000_v34  ;;  %v1039_v42 = vadd.f32 %v2326_v8, %v1001_v20  ;;  %v1068_v44 = vmax.f32 %v1036_v29, 0.0  ;;  %v1069_v35 = vmax.f32 %v1037_v36, 0.0 }
 0x1b9   : > { %v1003_v45 = vmul.f32 %v1666_v39, %v2321_v7  ;;  %v1040_v46 = vadd.f32 %v2326_v8, %v1002_v33  ;;  %v1730_v59 = vpack.c.bf16 %v1067_v40, %v1066_v32 }
 0x1ba   : > { %v1070_v43 = vmax.f32 %v1038_v30, 0.0  ;;  %v1071_v41 = vmax.f32 %v1039_v42, 0.0  ;;  %v1735_v49 = vpack.c.bf16 %v1069_v35, %v1068_v44 }
 0x1bb   : > { %v1041_v48 = vadd.f32 %v2326_v8, %v1003_v45  ;;  %v1072_v63 = vmax.f32 %v1040_v46, 0.0  ;;  %1803 = vst [vmem:[%s2354_s13 + $0x60] sm:$0xff] %v1730_v59   ;;  %895 = sbr.rel (!%p893_p1) target bundleno = 402 (0x192), region = 82 }
 0x1bc   : > { %v1740_v24 = vpack.c.bf16 %v1071_v41, %v1070_v43  ;;  %1804 = vst [vmem:[%s2354_s13 + $0x68] sm:$0xff] %v1735_v49  }
 0x1bd   : > { %v1073_v51 = vmax.f32 %v1041_v48, 0.0 }
 0x1be   : > { %1805 = vst [vmem:[%s2354_s13 + $0x70] sm:$0xff] %v1740_v24  }
 0x1bf   : > { %v1745_v52 = vpack.c.bf16 %v1073_v51, %v1072_v63 }
 0x1c1   : > { %1806 = vst [vmem:[%s2354_s13 + $0x78] sm:$0xff] %v1745_v52  }

// kernel: _lambda_.12
= control target key start
LH: loop header
LB: loop body
LE: loop exit
PB: predicated region body
PF: predicated region fallthrough
CT: control target
= control target key end

     0   :  { %v2889_v3 = vmov 0.0   ;;  %s3210_s29 = smov 0   ;;  %s3614_s0 = inlined_call_operand.vmem [shape: bf16[512,288], index: 0, kind: input, shape index: {}]   ;;  %s3615_s1 = inlined_call_operand.vmem [shape: bf16[288,128], index: 1, kind: input, shape index: {}]   ;;  %s3616_s3 = inlined_call_operand.vmem [shape: bf16[512,128], index: 3, kind: input, shape index: {}]   ;;  %s3617_s6 = inlined_call_operand.vmem [shape: f32[1,128], index: 6, kind: input, shape index: {}]   ;;  %s3618_s7 = inlined_call_operand.vmem [shape: f32[1,128], index: 7, kind: input, shape index: {}]   ;;  %s3619_s8 = inlined_call_operand.vmem [shape: bf16[512,128], index: 8, kind: output, shape index: {0}]   ;;  %s3620_s9 = inlined_call_operand.vmem [shape: bf16[512,128], index: 9, kind: output, shape index: {1}]   ;;  %s3621_s2 = inlined_call_operand.vmem [shape: f32[1,128], index: 2, kind: input, shape index: {}]   ;;  %s3622_s4 = inlined_call_operand.vmem [shape: bf16[128,128], index: 4, kind: input, shape index: {}]   ;;  %s3623_s5 = inlined_call_operand.vmem [shape: f32[1,128], index: 5, kind: input, shape index: {}]  }
   0x1   :  { %v2943_v0 = vld [vmem:[%s3615_s1] sm:$0xf]  ;;  %v2948_v1 = vld [vmem:[%s3615_s1 + $0x4] sm:$0xf]  ;;  %v2953_v2 = vld [vmem:[%s3615_s1 + $0x8] sm:$0xf] }
   0x2   :  { %3624 = vst [vmem:[#allocation4_spill] sm:$0xff] %v2943_v0  ;;  %3625 = vst [vmem:[#allocation5_spill] sm:$0xff] %v2948_v1  ;;  %v2958_v4 = vld [vmem:[%s3615_s1 + $0xc] sm:$0xf]  ;;  %v2963_v5 = vld [vmem:[%s3615_s1 + $0x10] sm:$0xf] }
   0x3   :  { %3626 = vst [vmem:[#allocation6_spill] sm:$0xff] %v2953_v2  ;;  %86 = vst [vmem:[#allocation2] sm:$0x1] %v2889_v3  ;;  %v2968_v6 = vld [vmem:[%s3615_s1 + $0x14] sm:$0xf] }
   0x4   :  { %87 = vst [vmem:[#allocation3] sm:$0x1] %v2889_v3  ;;  %3627 = vst [vmem:[#allocation7_spill] sm:$0xff] %v2958_v4  ;;  %v2973_v7 = vld [vmem:[%s3615_s1 + $0x18] sm:$0xf] }
   0x5   :  { %3628 = vst [vmem:[#allocation8_spill] sm:$0xff] %v2963_v5  ;;  %3629 = vst [vmem:[#allocation9_spill] sm:$0xff] %v2968_v6  ;;  %v2978_v8 = vld [vmem:[%s3615_s1 + $0x1c] sm:$0xf]  ;;  %v2983_v9 = vld [vmem:[%s3615_s1 + $0x20] sm:$0xf] }
   0x6   :  { %3630 = vst [vmem:[#allocation10_spill] sm:$0xff] %v2973_v7  ;;  %3631 = vst [vmem:[#allocation11_spill] sm:$0xff] %v2978_v8  ;;  %v2988_v10 = vld [vmem:[%s3615_s1 + $0x24] sm:$0xf]  ;;  %v2993_v11 = vld [vmem:[%s3615_s1 + $0x28] sm:$0xf] }
   0x7   :  { %3632 = vst [vmem:[#allocation12_spill] sm:$0xff] %v2983_v9  ;;  %3633 = vst [vmem:[#allocation13_spill] sm:$0xff] %v2988_v10  ;;  %v2998_v12 = vld [vmem:[%s3615_s1 + $0x2c] sm:$0xf]  ;;  %v3003_v13 = vld [vmem:[%s3615_s1 + $0x30] sm:$0xf] }
   0x8   :  { %3634 = vst [vmem:[#allocation14_spill] sm:$0xff] %v2993_v11  ;;  %3635 = vst [vmem:[#allocation15_spill] sm:$0xff] %v2998_v12  ;;  %v3008_v14 = vld [vmem:[%s3615_s1 + $0x34] sm:$0xf]  ;;  %v3013_v15 = vld [vmem:[%s3615_s1 + $0x38] sm:$0xf] }
   0x9   :  { %3636 = vst [vmem:[#allocation16_spill] sm:$0xff] %v3003_v13  ;;  %3637 = vst [vmem:[#allocation17_spill] sm:$0xff] %v3008_v14  ;;  %v3018_v16 = vld [vmem:[%s3615_s1 + $0x3c] sm:$0xf]  ;;  %v3023_v17 = vld [vmem:[%s3615_s1 + $0x40] sm:$0xf] }
   0xa   :  { %3638 = vst [vmem:[#allocation18_spill] sm:$0xff] %v3013_v15  ;;  %3639 = vst [vmem:[#allocation19_spill] sm:$0xff] %v3018_v16  ;;  %v3028_v18 = vld [vmem:[%s3615_s1 + $0x44] sm:$0xf]  ;;  %v3033_v19 = vld [vmem:[%s3615_s1 + $0x48] sm:$0xf] }
   0xb   :  { %3640 = vst [vmem:[#allocation20_spill] sm:$0xff] %v3023_v17  ;;  %3641 = vst [vmem:[#allocation21_spill] sm:$0xff] %v3028_v18  ;;  %v3038_v20 = vld [vmem:[%s3615_s1 + $0x4c] sm:$0xf]  ;;  %v3043_v21 = vld [vmem:[%s3615_s1 + $0x50] sm:$0xf] }
   0xc   :  { %3642 = vst [vmem:[#allocation22_spill] sm:$0xff] %v3033_v19  ;;  %3643 = vst [vmem:[#allocation23_spill] sm:$0xff] %v3038_v20  ;;  %v3048_v22 = vld [vmem:[%s3615_s1 + $0x54] sm:$0xf]  ;;  %v3053_v23 = vld [vmem:[%s3615_s1 + $0x58] sm:$0xf] }
   0xd   :  { %3644 = vst [vmem:[#allocation24_spill] sm:$0xff] %v3043_v21  ;;  %3645 = vst [vmem:[#allocation25_spill] sm:$0xff] %v3048_v22  ;;  %v3058_v24 = vld [vmem:[%s3615_s1 + $0x5c] sm:$0xf]  ;;  %v3063_v25 = vld [vmem:[%s3615_s1 + $0x60] sm:$0xf] }
   0xe   :  { %v3068_v26 = vld [vmem:[%s3615_s1 + $0x64] sm:$0xf]  ;;  %v3073_v27 = vld [vmem:[%s3615_s1 + $0x68] sm:$0xf]  ;;  %v3078_v28 = vld [vmem:[%s3615_s1 + $0x6c] sm:$0xf] }
   0xf   :  { %v3083_v29 = vld [vmem:[%s3615_s1 + $0x70] sm:$0xf]  ;;  %v3088_v30 = vld [vmem:[%s3615_s1 + $0x74] sm:$0xf]  ;;  %v3093_v31 = vld [vmem:[%s3615_s1 + $0x78] sm:$0xf] }
  0x10   :  { %v3098_v32 = vld [vmem:[%s3615_s1 + $0x7c] sm:$0xf]  ;;  %v3103_v33 = vld [vmem:[%s3615_s1 + $0x80] sm:$0xf]  ;;  %v3108_v34 = vld [vmem:[%s3615_s1 + $0x84] sm:$0xf] }
  0x11   :  { %v3113_v35 = vld [vmem:[%s3615_s1 + $0x88] sm:$0xf]  ;;  %v3118_v36 = vld [vmem:[%s3615_s1 + $0x8c] sm:$0xf]  ;;  %v3123_v37 = vld [vmem:[%s3621_s2] ss:$0 sm:$0xff] }
  0x12   :  { %v3128_v38 = vld [vmem:[%s3622_s4] sm:$0xf]  ;;  %v3133_v39 = vld [vmem:[%s3622_s4 + $0x4] sm:$0xf]  ;;  %v3138_v40 = vld [vmem:[%s3622_s4 + $0x8] sm:$0xf] }
  0x13   :  { %v3143_v41 = vld [vmem:[%s3622_s4 + $0xc] sm:$0xf]  ;;  %v3148_v42 = vld [vmem:[%s3622_s4 + $0x10] sm:$0xf]  ;;  %v3153_v43 = vld [vmem:[%s3622_s4 + $0x14] sm:$0xf] }
  0x14   :  { %v3158_v44 = vld [vmem:[%s3622_s4 + $0x18] sm:$0xf]  ;;  %v3163_v45 = vld [vmem:[%s3622_s4 + $0x1c] sm:$0xf]  ;;  %v3168_v46 = vld [vmem:[%s3622_s4 + $0x20] sm:$0xf] }
  0x15   :  { %v3173_v47 = vld [vmem:[%s3622_s4 + $0x24] sm:$0xf]  ;;  %v3178_v48 = vld [vmem:[%s3622_s4 + $0x28] sm:$0xf]  ;;  %v3183_v49 = vld [vmem:[%s3622_s4 + $0x2c] sm:$0xf] }
  0x16   :  { %v3188_v50 = vld [vmem:[%s3622_s4 + $0x30] sm:$0xf]  ;;  %v3193_v51 = vld [vmem:[%s3622_s4 + $0x34] sm:$0xf]  ;;  %v3198_v52 = vld [vmem:[%s3622_s4 + $0x38] sm:$0xf] }
  0x17   :  { %v3203_v53 = vld [vmem:[%s3622_s4 + $0x3c] sm:$0xf]  ;;  %v3208_v54 = vld [vmem:[%s3623_s5] ss:$0 sm:$0xff] }
  0x18 LB: > { %v3646_v18 = vld [vmem:[#allocation21_spill] sm:$0xff]  ;;  %v3647_v17 = vld [vmem:[#allocation20_spill] sm:$0xff]  ;;  %v1994_v57 = vcombine.low %v3103_v33, %v3108_v34  ;;  %v3650_v20 = vld [vmem:[#allocation23_spill] sm:$0xff]  ;;  %v1995_v59 = vcombine.low %v3113_v35, %v3118_v36  ;;  %s1927_s4 = sshll.u32 %s2883_s29, 8  ;;  %v2030_v62 = vcombine.low %v3128_v38, %v3133_v39  ;;  %vm518_vm0 = vcmask 261120   ;;  %s93_s29 = sadd.s32 1, %s2883_s29   ;;  %s2883_s29 = sphi %s3210_s29, %s93_s29  }
  0x19   : > { %v1986_v55 = vcombine.low %v3647_v17, %v3646_v18  ;;  %v3648_v1 = vld [vmem:[#allocation5_spill] sm:$0xff]  ;;  %v3649_v0 = vld [vmem:[#allocation4_spill] sm:$0xff]  ;;  %v3651_v19 = vld [vmem:[#allocation22_spill] sm:$0xff]  ;;  %s3228_s5 = sshra.s32 %s1927_s4, 3  ;;  %p90_p0 = scmp.ge.s32.totalorder %s93_s29, 2  }
  0x1a   : > { %v1978_v56 = vcombine.low %v3649_v0, %v3648_v1  ;;  %v1987_v58 = vcombine.low %v3651_v19, %v3650_v20  ;;  %2594 = vmatprep.subr.bf16.mxu1 %v1994_v57  ;;  %v3652_v4 = vld [vmem:[#allocation7_spill] sm:$0xff]  ;;  %v3653_v2 = vld [vmem:[#allocation6_spill] sm:$0xff]  ;;  %v3654_v22 = vld [vmem:[#allocation25_spill] sm:$0xff]  ;;  %s2106_s30 = smul.u32 12, %s3228_s5  ;;  %s2012_s10 = sshll.u32 %s3228_s5, 2  ;;  %v2032_v0 = vcombine.low %v3148_v42, %v3153_v43 }
  0x1b   : > { %2440 = vmatprep.subr.bf16.mxu0 %v1986_v55  ;;  %2595 = vmatpush3.bf16.msra.mxu1 %v1994_v57  ;;  %v1979_v60 = vcombine.low %v3653_v2, %v3652_v4  ;;  %v3655_v21 = vld [vmem:[#allocation24_spill] sm:$0xff]  ;;  %s3241_s13 = scalar_lea.vmem %s3616_s3, %s2012_s10  ;;  %v3656_v6 = vld [vmem:[#allocation9_spill] sm:$0xff]  ;;  %v3658_v8 = vld [vmem:[#allocation11_spill] sm:$0xff]  ;;  %s3382_s19 = scalar_lea.vmem %s3619_s8, %s2012_s10 }
  0x1c   : > { %2441 = vmatpush3.bf16.msra.mxu0 %v1978_v56  ;;  %2596 = vmatprep.subr.bf16.mxu1 %v1995_v59  ;;  %v1988_v61 = vcombine.low %v3655_v21, %v3654_v22  ;;  %s3246_s16 = scalar_lea.vmem %s3614_s0, %s2106_s30  ;;  %v3657_v5 = vld [vmem:[#allocation8_spill] sm:$0xff]  ;;  %v1989_v56 = vcombine.low %v3053_v23, %v3058_v24  ;;  %v3659_v7 = vld [vmem:[#allocation10_spill] sm:$0xff]  ;;  %v3660_v10 = vld [vmem:[#allocation13_spill] sm:$0xff]  ;;  %s3484_s0 = smov (%p90_p0), 0  }
  0x1d   : > { %2442 = vmatprep.subr.bf16.mxu0 %v1987_v58  ;;  %v2791_v63 = vld [vmem:[%s3246_s16 + $0x8] ss:$12 sps:$4 sm:$0xff]   ;;  %v1980_v3 = vcombine.low %v3657_v5, %v3656_v6  ;;  %v2792_v55 = vld [vmem:[%s3246_s16 + $0x20] ss:$12 sps:$4 sm:$0xff]   ;;  %v2793_v57 = vld [vmem:[%s3246_s16 + $0x38] ss:$12 sps:$4 sm:$0xff]   ;;  %v2031_v58 = vcombine.low %v3138_v40, %v3143_v41 }
  0x1e   : > { %2598 = vmatprep.mubr.msk.bf16.mxu1 %vm518_vm0, %v2791_v63  ;;  %v2799_v63 = vld [vmem:[%s3246_s16 + $0x4] ss:$12 sps:$4 sm:$0xff]   ;;  %v3662_v12 = vld [vmem:[#allocation15_spill] sm:$0xff]  ;;  %v2870_v1 = vld [vmem:[%s3246_s16 + $0x168] ss:$12 sps:$4 sm:$0xff]  }
  0x1f   : > { %2597 = vmatpush3.bf16.msra.mxu1 %v1995_v59  ;;  %v1981_v59 = vcombine.low %v3659_v7, %v3658_v8  ;;  %v3661_v9 = vld [vmem:[#allocation12_spill] sm:$0xff]  ;;  %599 = vmatprep.mubr.bf16.mxu0 %v2799_v63  ;;  %v3663_v11 = vld [vmem:[#allocation14_spill] sm:$0xff]  ;;  %v3664_v14 = vld [vmem:[#allocation17_spill] sm:$0xff] }
  0x20   : > { %2443 = vmatpush3.bf16.msra.mxu0 %v1979_v60  ;;  %2630 = vmatprep.subr.bf16.mxu1 %v2030_v62  ;;  %v1990_v60 = vcombine.low %v3063_v25, %v3068_v26  ;;  %v3665_v13 = vld [vmem:[#allocation16_spill] sm:$0xff]  ;;  %v3666_v16 = vld [vmem:[#allocation19_spill] sm:$0xff]  ;;  %v3667_v15 = vld [vmem:[#allocation18_spill] sm:$0xff] }
  0x21   : > { %2444 = vmatprep.subr.bf16.mxu0 %v1988_v61  ;;  %v2794_v61 = vld [vmem:[%s3246_s16 + $0x50] ss:$12 sps:$4 sm:$0xff]   ;;  %v2800_v63 = vld [vmem:[%s3246_s16 + $0x98] ss:$12 sps:$4 sm:$0xff]  }
  0x22   : > { %2599 = vmatmul.mubr.msk.bf16.vlgmr.msra.gmra.mrb[0].mxu1 %vm518_vm0, %v2792_v55  ;;  %v2795_v55 = vld [vmem:[%s3246_s16 + $0x68] ss:$12 sps:$4 sm:$0xff]  }
  0x23   : > { %2602 = vmatprep.mubr.msk.bf16.mxu1 %vm518_vm0, %v2793_v57  ;;  %2631 = vmatpush3.bf16.msra.mxu1 %v2030_v62  ;;  %v2033_v62 = vcombine.low %v3158_v44, %v3163_v45  ;;  %v1983_v57 = vcombine.low %v3663_v11, %v3662_v12 }
  0x24   : > { %2445 = vmatpush3.bf16.msra.mxu0 %v1980_v3  ;;  %2632 = vmatprep.subr.bf16.mxu1 %v2031_v58  ;;  %v1982_v3 = vcombine.low %v3661_v9, %v3660_v10 }
  0x25   : > { %2446 = vmatprep.subr.bf16.mxu0 %v1989_v56  ;;  %v1991_v56 = vcombine.low %v3073_v27, %v3078_v28 }
  0x27   : > { %2633 = vmatpush3.bf16.msra.mxu1 %v2031_v58  ;;  %v2034_v58 = vcombine.low %v3168_v46, %v3173_v47 }
  0x28   : > { %2447 = vmatpush3.bf16.msra.mxu0 %v1981_v59  ;;  %2634 = vmatprep.subr.bf16.mxu1 %v2032_v0  ;;  %v1992_v59 = vcombine.low %v3083_v29, %v3088_v30 }
  0x29   : > { %2448 = vmatprep.subr.bf16.mxu0 %v1990_v60  ;;  %v2796_v60 = vld [vmem:[%s3246_s16 + $0x80] ss:$12 sps:$4 sm:$0xff]  }
  0x2a   : > { %2603 = vmatmul.mubr.msk.bf16.gmra.mrb[4].mxu1 %vm518_vm0, %v2794_v61  ;;  %v1984_v61 = vcombine.low %v3665_v13, %v3664_v14 }
  0x2b   : > { %2606 = vmatprep.mubr.msk.bf16.mxu1 %vm518_vm0, %v2795_v55  ;;  %2635 = vmatpush3.bf16.msra.mxu1 %v2032_v0  ;;  %v2035_v0 = vcombine.low %v3178_v48, %v3183_v49  ;;  %v1985_v55 = vcombine.low %v3667_v15, %v3666_v16 }
  0x2c   : > { %2449 = vmatpush3.bf16.msra.mxu0 %v1982_v3  ;;  %2636 = vmatprep.subr.bf16.mxu1 %v2033_v62  ;;  %v1993_v3 = vcombine.low %v3093_v31, %v3098_v32 }
  0x2d   : > { %2450 = vmatprep.subr.bf16.mxu0 %v1991_v56  ;;  %v2797_v56 = vld [vmem:[%s3246_s16] ss:$12 sps:$4 sm:$0xff]  }
  0x2f   : > { %2637 = vmatpush3.bf16.msra.mxu1 %v2033_v62  ;;  %v2805_v62 = vld [vmem:[%s3246_s16 + $0xc8] ss:$12 sps:$4 sm:$0xff]  }
  0x30   : > { %2451 = vmatpush3.bf16.msra.mxu0 %v1983_v57  ;;  %2638 = vmatprep.subr.bf16.mxu1 %v2034_v58  ;;  %v2801_v57 = vld [vmem:[%s3246_s16 + $0xb0] ss:$12 sps:$4 sm:$0xff]  }
  0x31   : > { %2452 = vmatprep.subr.bf16.mxu0 %v1992_v59  ;;  %v2802_v59 = vld [vmem:[%s3246_s16 + $0x1c] ss:$12 sps:$4 sm:$0xff]  }
  0x32   : > { %2607 = vmatmul.mubr.msk.bf16.gmra.mrb[8].mxu1 %vm518_vm0, %v2796_v60  ;;  %v2036_v60 = vcombine.low %v3188_v50, %v3193_v51 }
  0x33   : > { %2610 = vmatprep.mubr.msk.bf16.mxu1 %vm518_vm0, %v2800_v63  ;;  %2639 = vmatpush3.bf16.msra.mxu1 %v2034_v58  ;;  %v2804_v58 = vld [vmem:[%s3246_s16 + $0x18] ss:$12 sps:$4 sm:$0xff]   ;;  %v2806_v63 = vld [vmem:[%s3246_s16 + $0xe0] ss:$12 sps:$4 sm:$0xff]  }
  0x34   : > { %2453 = vmatpush3.bf16.msra.mxu0 %v1984_v61  ;;  %2640 = vmatprep.subr.bf16.mxu1 %v2035_v0  ;;  %v2037_v61 = vcombine.low %v3198_v52, %v3203_v53 }
  0x35   : > { %2454 = vmatprep.subr.bf16.mxu0 %v1993_v3  ;;  %v2807_v3 = vld [vmem:[%s3246_s16 + $0x34] ss:$12 sps:$4 sm:$0xff]  }
  0x37   : > { %2641 = vmatpush3.bf16.msra.mxu1 %v2035_v0  ;;  %v2810_v0 = vld [vmem:[%s3246_s16 + $0xf8] ss:$12 sps:$4 sm:$0xff]  }
  0x38   : > { %2455 = vmatpush3.bf16.msra.mxu0 %v1985_v55  ;;  %2642 = vmatprep.subr.bf16.mxu1 %v2036_v60  ;;  %v2809_v55 = vld [vmem:[%s3246_s16 + $0x30] ss:$12 sps:$4 sm:$0xff]  }
  0x3a   : > { %2611 = vmatmul.mubr.msk.bf16.gmra.mrb[12].mxu1 %vm518_vm0, %v2801_v57  ;;  %v2812_v57 = vld [vmem:[%s3246_s16 + $0x4c] ss:$12 sps:$4 sm:$0xff]  }
  0x3b   : > { %600 = vmatmul.mubr.bf16.vlgmr.msra.gmra.mrb[0].mxu0 %v2797_v56  ;;  %2614 = vmatprep.mubr.msk.bf16.mxu1 %vm518_vm0, %v2805_v62  ;;  %v2811_v56 = vld [vmem:[%s3246_s16 + $0x110] ss:$12 sps:$4 sm:$0xff]   ;;  %v2814_v62 = vld [vmem:[%s3246_s16 + $0x48] ss:$12 sps:$4 sm:$0xff]  }
  0x3c   : > { %607 = vmatprep.mubr.bf16.mxu0 %v2802_v59  ;;  %2643 = vmatpush3.bf16.msra.mxu1 %v2036_v60  ;;  %v2815_v59 = vld [vmem:[%s3246_s16 + $0x128] ss:$12 sps:$4 sm:$0xff]   ;;  %v2816_v60 = vld [vmem:[%s3246_s16 + $0x140] ss:$12 sps:$4 sm:$0xff]  }
  0x3d   : > { %2644 = vmatprep.subr.bf16.mxu1 %v2037_v61 }
  0x40   : > { %2645 = vmatpush3.bf16.msra.mxu1 %v2037_v61  ;;  %v2817_v61 = vld [vmem:[%s3246_s16 + $0x64] ss:$12 sps:$4 sm:$0xff]  }
  0x42   : > { %2615 = vmatmul.mubr.msk.bf16.gmra.mrb[16].mxu1 %vm518_vm0, %v2806_v63  ;;  %v2819_v63 = vld [vmem:[%s3246_s16 + $0x60] ss:$12 sps:$4 sm:$0xff]  }
  0x43   : > { %608 = vmatmul.mubr.bf16.gmra.mrb[4].mxu0 %v2804_v58  ;;  %2618 = vmatprep.mubr.msk.bf16.mxu1 %vm518_vm0, %v2810_v0  ;;  %v2820_v58 = vld [vmem:[%s3246_s16 + $0x158] ss:$12 sps:$4 sm:$0xff]   ;;  %v2822_v0 = vld [vmem:[%s3246_s16 + $0x7c] ss:$12 sps:$4 sm:$0xff]  }
  0x44   : > { %615 = vmatprep.mubr.bf16.mxu0 %v2807_v3  ;;  %v2821_v3 = vld [vmem:[%s3246_s16 + $0x170] ss:$12 sps:$4 sm:$0xff]  }
  0x4a   : > { %2619 = vmatmul.mubr.msk.bf16.gmra.mrb[20].mxu1 %vm518_vm0, %v2811_v56  ;;  %v2824_v56 = vld [vmem:[%s3246_s16 + $0x78] ss:$12 sps:$4 sm:$0xff]  }
  0x4b   : > { %616 = vmatmul.mubr.bf16.gmra.mrb[8].mxu0 %v2809_v55  ;;  %2622 = vmatprep.mubr.msk.bf16.mxu1 %vm518_vm0, %v2815_v59  ;;  %v2825_v55 = vld [vmem:[%s3241_s13] sm:$0xff]  }
  0x4c   : > { %623 = vmatprep.mubr.bf16.mxu0 %v2812_v57  ;;  %v2826_v57 = vld [vmem:[%s3241_s13 + $0x8] sm:$0xff]   ;;  %v2827_v59 = vld [vmem:[%s3246_s16 + $0x94] ss:$12 sps:$4 sm:$0xff]  }
  0x52   : > { %2623 = vmatmul.mubr.msk.bf16.gmra.mrb[24].mxu1 %vm518_vm0, %v2816_v60  ;;  %v2829_v60 = vld [vmem:[%s3246_s16 + $0x90] ss:$12 sps:$4 sm:$0xff]  }
  0x53   : > { %624 = vmatmul.mubr.bf16.gmra.mrb[12].mxu0 %v2814_v62  ;;  %2626 = vmatprep.mubr.msk.bf16.mxu1 %vm518_vm0, %v2820_v58  ;;  %v2830_v62 = vld [vmem:[%s3241_s13 + $0x10] sm:$0xff]   ;;  %v2832_v58 = vld [vmem:[%s3246_s16 + $0xac] ss:$12 sps:$4 sm:$0xff]  }
  0x54   : > { %631 = vmatprep.mubr.bf16.mxu0 %v2817_v61  ;;  %v2831_v61 = vld [vmem:[%s3241_s13 + $0x18] sm:$0xff]  }
  0x5a   : > { %2627 = vmatmul.mubr.msk.bf16.gmra.mrb[28].mxu1 %vm518_vm0, %v2821_v3  ;;  %v2834_v3 = vld [vmem:[%s3246_s16 + $0xa8] ss:$12 sps:$4 sm:$0xff]  }
  0x5b   : > { %632 = vmatmul.mubr.bf16.gmra.mrb[16].mxu0 %v2819_v63  ;;  %2646 = vmatprep.mubr.bf16.mxu1 %v2825_v55  ;;  %v2835_v63 = vld [vmem:[%s3241_s13 + $0x20] sm:$0xff]  }
  0x5c   : > { %639 = vmatprep.mubr.bf16.mxu0 %v2822_v0  ;;  %v2836_v0 = vld [vmem:[%s3241_s13 + $0x28] sm:$0xff]   ;;  %v2837_v55 = vld [vmem:[%s3246_s16 + $0xc4] ss:$12 sps:$4 sm:$0xff]  }
  0x62   : > { %2647 = vmatmul.mubr.bf16.vlgmr.msra.gmra.mrb[0].mxu1 %v2826_v57  ;;  %v2839_v57 = vld [vmem:[%s3246_s16 + $0xc0] ss:$12 sps:$4 sm:$0xff]  }
  0x63   : > { %640 = vmatmul.mubr.bf16.gmra.mrb[20].mxu0 %v2824_v56  ;;  %2650 = vmatprep.mubr.bf16.mxu1 %v2830_v62  ;;  %v2840_v56 = vld [vmem:[%s3241_s13 + $0x30] sm:$0xff]   ;;  %v2842_v62 = vld [vmem:[%s3246_s16 + $0xdc] ss:$12 sps:$4 sm:$0xff]  }
  0x64   : > { %647 = vmatprep.mubr.bf16.mxu0 %v2827_v59  ;;  %v2841_v59 = vld [vmem:[%s3241_s13 + $0x38] sm:$0xff]  }
  0x6a   : > { %2651 = vmatmul.mubr.bf16.gmra.mrb[4].mxu1 %v2831_v61  ;;  %v2844_v61 = vld [vmem:[%s3246_s16 + $0xd8] ss:$12 sps:$4 sm:$0xff]  }
  0x6b   : > { %648 = vmatmul.mubr.bf16.gmra.mrb[24].mxu0 %v2829_v60  ;;  %2654 = vmatprep.mubr.bf16.mxu1 %v2835_v63  ;;  %v2845_v60 = vld [vmem:[%s3241_s13 + $0x40] sm:$0xff]  }
  0x6c   : > { %655 = vmatprep.mubr.bf16.mxu0 %v2832_v58  ;;  %v2846_v58 = vld [vmem:[%s3241_s13 + $0x48] sm:$0xff]   ;;  %v2847_v63 = vld [vmem:[%s3246_s16 + $0xf4] ss:$12 sps:$4 sm:$0xff]  }
  0x72   : > { %2655 = vmatmul.mubr.bf16.gmra.mrb[8].mxu1 %v2836_v0  ;;  %v2849_v0 = vld [vmem:[%s3246_s16 + $0xf0] ss:$12 sps:$4 sm:$0xff]  }
  0x73   : > { %656 = vmatmul.mubr.bf16.gmra.mrb[28].mxu0 %v2834_v3  ;;  %2658 = vmatprep.mubr.bf16.mxu1 %v2840_v56  ;;  %v2850_v3 = vld [vmem:[%s3241_s13 + $0x50] sm:$0xff]   ;;  %v2852_v56 = vld [vmem:[%s3246_s16 + $0x10c] ss:$12 sps:$4 sm:$0xff]  }
  0x74   : > { %663 = vmatprep.mubr.bf16.mxu0 %v2837_v55  ;;  %v2851_v55 = vld [vmem:[%s3241_s13 + $0x58] sm:$0xff]  }
  0x7a   : > { %2659 = vmatmul.mubr.bf16.gmra.mrb[12].mxu1 %v2841_v59  ;;  %v2854_v59 = vld [vmem:[%s3246_s16 + $0x108] ss:$12 sps:$4 sm:$0xff]  }
  0x7b   : > { %664 = vmatmul.mubr.bf16.gmra.mrb[32].mxu0 %v2839_v57  ;;  %2662 = vmatprep.mubr.bf16.mxu1 %v2845_v60  ;;  %v2855_v57 = vld [vmem:[%s3241_s13 + $0x60] sm:$0xff]  }
  0x7c   : > { %671 = vmatprep.mubr.bf16.mxu0 %v2842_v62  ;;  %v2856_v62 = vld [vmem:[%s3241_s13 + $0x68] sm:$0xff]   ;;  %v2857_v60 = vld [vmem:[%s3246_s16 + $0x124] ss:$12 sps:$4 sm:$0xff]  }
  0x82   : > { %2663 = vmatmul.mubr.bf16.gmra.mrb[16].mxu1 %v2846_v58  ;;  %v2859_v58 = vld [vmem:[%s3246_s16 + $0x120] ss:$12 sps:$4 sm:$0xff]  }
  0x83   : > { %672 = vmatmul.mubr.bf16.gmra.mrb[36].mxu0 %v2844_v61  ;;  %2666 = vmatprep.mubr.bf16.mxu1 %v2850_v3  ;;  %v2860_v61 = vld [vmem:[%s3241_s13 + $0x70] sm:$0xff]   ;;  %v2862_v3 = vld [vmem:[%s3246_s16 + $0x13c] ss:$12 sps:$4 sm:$0xff]  }
  0x84   : > { %679 = vmatprep.mubr.bf16.mxu0 %v2847_v63  ;;  %v2861_v63 = vld [vmem:[%s3241_s13 + $0x78] sm:$0xff]  }
  0x8a   : > { %2667 = vmatmul.mubr.bf16.gmra.mrb[20].mxu1 %v2851_v55  ;;  %v2865_v55 = vld [vmem:[%s3246_s16 + $0x154] ss:$12 sps:$4 sm:$0xff]  }
  0x8b   : > { %680 = vmatmul.mubr.bf16.gmra.mrb[40].mxu0 %v2849_v0  ;;  %2670 = vmatprep.mubr.bf16.mxu1 %v2855_v57  ;;  %v2864_v0 = vld [vmem:[%s3246_s16 + $0x138] ss:$12 sps:$4 sm:$0xff]  }
  0x8c   : > { %687 = vmatprep.mubr.bf16.mxu0 %v2852_v56  ;;  %v2867_v56 = vld [vmem:[%s3246_s16 + $0x150] ss:$12 sps:$4 sm:$0xff]   ;;  %v2868_v57 = vld [vmem:[%s3246_s16 + $0x16c] ss:$12 sps:$4 sm:$0xff]  }
  0x92   : > { %2671 = vmatmul.mubr.bf16.gmra.mrb[24].mxu1 %v2856_v62 }
  0x93   : > { %688 = vmatmul.mubr.bf16.gmra.mrb[44].mxu0 %v2854_v59  ;;  %2674 = vmatprep.mubr.bf16.mxu1 %v2860_v61 }
  0x94   : > { %695 = vmatprep.mubr.bf16.mxu0 %v2857_v60 }
  0x9a   : > { %2675 = vmatmul.mubr.bf16.gmra.mrb[28].mxu1 %v2861_v63 }
  0x9b   : > { %696 = vmatmul.mubr.bf16.gmra.mrb[48].mxu0 %v2859_v58 }
  0x9c   : > { %703 = vmatprep.mubr.bf16.mxu0 %v2862_v3 }
  0xa3   : > { %704 = vmatmul.mubr.bf16.gmra.mrb[52].mxu0 %v2864_v0 }
  0xa4   : > { %711 = vmatprep.mubr.bf16.mxu0 %v2865_v55 }
  0xab   : > { %712 = vmatmul.mubr.bf16.gmra.mrb[56].mxu0 %v2867_v56 }
  0xac   : > { %719 = vmatprep.mubr.bf16.mxu0 %v2868_v57 }
  0xb3   : > { %720 = vmatmul.mubr.bf16.gmra.mrb[60].mxu0 %v2870_v1 }
 0x10e   : > { %v2456_v59 = vpop.f32.mrb[0].mxu0 }
 0x10f   : > { %v2457_v62 = vpop.f32.mrb[1].mxu0 }
 0x110   : > { %v2458_v60 = vadd.f32 %v2457_v62, %v2456_v59  ;;  %v2459_v61 = vpop.f32.mrb[2].mxu0 }
 0x111   : > { %v2460_v2 = vpop.f32.mrb[3].mxu0 }
 0x112   : > { %v2461_v4 = vadd.f32 %v2460_v2, %v2459_v61 }
 0x116   : > { %v2462_v5 = vpop.f32.mrb[4].mxu0 }
 0x117   : > { %v2463_v58 = vpop.f32.mrb[5].mxu0 }
 0x118   : > { %v2464_v63 = vadd.f32 %v2463_v58, %v2462_v5  ;;  %v2465_v3 = vpop.f32.mrb[6].mxu0 }
 0x119   : > { %v2466_v6 = vpop.f32.mrb[7].mxu0 }
 0x11a   : > { %v2467_v7 = vadd.f32 %v2466_v6, %v2465_v3  ;;  %v610_v5 = vadd.f32 %v2464_v63, %v3123_v37  ;;  %v602_v6 = vadd.f32 %v2458_v60, %v3123_v37 }
 0x11e   : > { %v2468_v0 = vpop.f32.mrb[8].mxu0 }
 0x11f   : > { %v2469_v55 = vpop.f32.mrb[9].mxu0 }
 0x120   : > { %v2470_v8 = vadd.f32 %v2469_v55, %v2468_v0  ;;  %v2471_v9 = vpop.f32.mrb[10].mxu0  ;;  %v613_v0 = vadd.f32 %v2467_v7, %v3123_v37  ;;  %v2680_v55 = vadd.f32 %v3208_v54, %v602_v6 }
 0x121   : > { %v2472_v56 = vpop.f32.mrb[11].mxu0 }
 0x122   : > { %v2473_v57 = vadd.f32 %v2472_v56, %v2471_v9  ;;  %v605_v9 = vadd.f32 %v2461_v4, %v3123_v37  ;;  %v618_v6 = vadd.f32 %v2470_v8, %v3123_v37 }
 0x124   : > { %v2684_v60 = vadd.f32 %v3208_v54, %v605_v9  ;;  %v621_v17 = vadd.f32 %v2473_v57, %v3123_v37 }
 0x126   : > { %v2474_v10 = vpop.f32.mrb[12].mxu0 }
 0x127   : > { %v2475_v1 = vpop.f32.mrb[13].mxu0 }
 0x128   : > { %v2476_v11 = vadd.f32 %v2475_v1, %v2474_v10  ;;  %v2477_v12 = vpop.f32.mrb[14].mxu0  ;;  %v2678_v10 = vadd.f32 %v3208_v54, %v610_v5 }
 0x129   : > { %v2478_v59 = vpop.f32.mrb[15].mxu0 }
 0x12a   : > { %v2479_v62 = vadd.f32 %v2478_v59, %v2477_v12  ;;  %v626_v4 = vadd.f32 %v2476_v11, %v3123_v37 }
 0x12e   : > { %v2480_v13 = vpop.f32.mrb[16].mxu0 }
 0x12f   : > { %v2481_v2 = vpop.f32.mrb[17].mxu0 }
 0x130   : > { %v2482_v61 = vadd.f32 %v2481_v2, %v2480_v13  ;;  %v2483_v14 = vpop.f32.mrb[18].mxu0  ;;  %v2682_v13 = vadd.f32 %v3208_v54, %v613_v0 }
 0x131   : > { %v2484_v58 = vpop.f32.mrb[19].mxu0 }
 0x132   : > { %v3366_v3 = vadd.f32 %v2484_v58, %v2483_v14 }
 0x135   : > { %v2648_v56 = vpop.f32.mrb[0].mxu1 }
 0x136   : > { %v2486_v12 = vpop.f32.mrb[20].mxu0  ;;  %v2679_v63 = vadd.f32 %v2678_v10, %v2648_v56  ;;  %v1107_v59 = vpop.f32.mrb[1].mxu1  ;;  %v629_v10 = vadd.f32 %v2479_v62, %v3123_v37  ;;  %v2686_v56 = vadd.f32 %v3208_v54, %v626_v4 }
 0x137   : > { %v2487_v1 = vpop.f32.mrb[21].mxu0  ;;  %v2681_v58 = vadd.f32 %v2680_v55, %v1107_v59  ;;  %v2649_v7 = vpop.f32.mrb[2].mxu1 }
 0x138   : > { %v2488_v14 = vadd.f32 %v2487_v1, %v2486_v12  ;;  %v2489_v2 = vpop.f32.mrb[22].mxu0  ;;  %v2683_v5 = vadd.f32 %v2682_v13, %v2649_v7  ;;  %v1110_v16 = vpop.f32.mrb[3].mxu1  ;;  %v2692_v13 = vadd.f32 %v3208_v54, %v621_v17  ;;  %v634_v17 = vadd.f32 %v2482_v61, %v3123_v37 }
 0x139   : > { %v2490_v15 = vpop.f32.mrb[23].mxu0  ;;  %v2685_v9 = vadd.f32 %v2684_v60, %v1110_v16  ;;  %v1469_v8 = vmul.f32 %v2681_v58, %v2681_v58  ;;  %v2690_v16 = vadd.f32 %v3208_v54, %v629_v10  ;;  %v1471_v60 = vmul.f32 %v2679_v63, %v2679_v63 }
 0x13a   : > { %v2491_v0 = vadd.f32 %v2490_v15, %v2489_v2  ;;  %v2179_v11 = vpack.c.bf16 %v2683_v5, %v2679_v63  ;;  %v2688_v15 = vadd.f32 %v3208_v54, %v618_v6  ;;  %v642_v4 = vadd.f32 %v2488_v14, %v3123_v37 }
 0x13b   : > { %v2174_v55 = vpack.c.bf16 %v2685_v9, %v2681_v58  ;;  %v1429_v12 = vadd.f32 %v2685_v9, %v2681_v58  ;;  %v1470_v57 = vmul.f32 %v2685_v9, %v2685_v9 }
 0x13c   : > { %2395 = vst [vmem:[%s3382_s19 + $0x8] sm:$0xff] %v2179_v11   ;;  %v2694_v61 = vadd.f32 %v3208_v54, %v642_v4 }
 0x13d   : > { %2175 = vst [vmem:[%s3382_s19] sm:$0xff] %v2174_v55   ;;  %v1430_v1 = vadd.f32 %v2679_v63, %v1429_v12  ;;  %v2652_v2 = vpop.f32.mrb[4].mxu1  ;;  %v1501_v62 = vadd.f32 %v1470_v57, %v1469_v8  ;;  %v1472_v55 = vmul.f32 %v2683_v5, %v2683_v5  ;;  %v645_v63 = vadd.f32 %v2491_v0, %v3123_v37 }
 0x13e   : > { %v2492_v59 = vpop.f32.mrb[24].mxu0  ;;  %v2687_v18 = vadd.f32 %v2686_v56, %v2652_v2  ;;  %v1123_v19 = vpop.f32.mrb[5].mxu1 }
 0x13f   : > { %v2493_v7 = vpop.f32.mrb[25].mxu0  ;;  %v2689_v9 = vadd.f32 %v2688_v15, %v1123_v19  ;;  %v1431_v20 = vadd.f32 %v2683_v5, %v1430_v1  ;;  %v2653_v6 = vpop.f32.mrb[6].mxu1  ;;  %v1502_v12 = vadd.f32 %v1501_v62, %v1471_v60  ;;  %v637_v19 = vadd.f32 %v3366_v3, %v3123_v37 }
 0x140   : > { %v2494_v58 = vadd.f32 %v2493_v7, %v2492_v59  ;;  %v2495_v11 = vpop.f32.mrb[26].mxu0  ;;  %v2691_v22 = vadd.f32 %v2690_v16, %v2653_v6  ;;  %v1126_v10 = vpop.f32.mrb[7].mxu1  ;;  %v2696_v60 = vadd.f32 %v3208_v54, %v634_v17  ;;  %v1475_v62 = vmul.f32 %v2687_v18, %v2687_v18 }
 0x141   : > { %v2496_v21 = vpop.f32.mrb[27].mxu0  ;;  %v1432_v8 = vadd.f32 %v2689_v9, %v1431_v20  ;;  %v1473_v56 = vmul.f32 %v2689_v9, %v2689_v9  ;;  %v1503_v14 = vadd.f32 %v1502_v12, %v1472_v55  ;;  %v2693_v2 = vadd.f32 %v2692_v13, %v1126_v10 }
 0x142   : > { %v2497_v57 = vadd.f32 %v2496_v21, %v2495_v11  ;;  %v2189_v59 = vpack.c.bf16 %v2691_v22, %v2687_v18  ;;  %v2698_v20 = vadd.f32 %v3208_v54, %v645_v63  ;;  %v2700_v4 = vadd.f32 %v3208_v54, %v637_v19 }
 0x143   : > { %v1504_v15 = vadd.f32 %v1503_v14, %v1473_v56  ;;  %v2184_v5 = vpack.c.bf16 %v2693_v2, %v2689_v9  ;;  %v1433_v1 = vadd.f32 %v2693_v2, %v1432_v8  ;;  %v1474_v16 = vmul.f32 %v2693_v2, %v2693_v2 }
 0x144   : > { %2397 = vst [vmem:[%s3382_s19 + $0x18] sm:$0xff] %v2189_v59   ;;  %v650_v55 = vadd.f32 %v2494_v58, %v3123_v37  ;;  %v1476_v17 = vmul.f32 %v2691_v22, %v2691_v22  ;;  %v653_v19 = vadd.f32 %v2497_v57, %v3123_v37 }
 0x145   : > { %v2656_v21 = vpop.f32.mrb[8].mxu1  ;;  %2396 = vst [vmem:[%s3382_s19 + $0x10] sm:$0xff] %v2184_v5   ;;  %v1434_v7 = vadd.f32 %v2687_v18, %v1433_v1  ;;  %v1505_v13 = vadd.f32 %v1504_v15, %v1474_v16 }
 0x146   : > { %v2498_v0 = vpop.f32.mrb[28].mxu0  ;;  %v2695_v6 = vadd.f32 %v2694_v61, %v2656_v21  ;;  %v1139_v3 = vpop.f32.mrb[9].mxu1 }
 0x147   : > { %v2499_v11 = vpop.f32.mrb[29].mxu0  ;;  %v2697_v10 = vadd.f32 %v2696_v60, %v1139_v3  ;;  %v2657_v8 = vpop.f32.mrb[10].mxu1  ;;  %v1506_v56 = vadd.f32 %v1505_v13, %v1475_v62  ;;  %v1435_v63 = vadd.f32 %v2691_v22, %v1434_v7  ;;  %v2704_v7 = vadd.f32 %v3208_v54, %v650_v55 }
 0x148   : > { %v2500_v9 = vadd.f32 %v2499_v11, %v2498_v0  ;;  %v2501_v12 = vpop.f32.mrb[30].mxu0  ;;  %v2699_v59 = vadd.f32 %v2698_v20, %v2657_v8  ;;  %v1142_v2 = vpop.f32.mrb[11].mxu1  ;;  %v1479_v57 = vmul.f32 %v2695_v6, %v2695_v6 }
 0x149   : > { %v2502_v14 = vpop.f32.mrb[31].mxu0  ;;  %v1477_v15 = vmul.f32 %v2697_v10, %v2697_v10  ;;  %v2701_v5 = vadd.f32 %v2700_v4, %v1142_v2  ;;  %v1436_v58 = vadd.f32 %v2697_v10, %v1435_v63  ;;  %v1507_v1 = vadd.f32 %v1506_v56, %v1476_v17 }
 0x14a   : > { %v658_v18 = vadd.f32 %v2500_v9, %v3123_v37  ;;  %v2503_v61 = vadd.f32 %v2502_v14, %v2501_v12  ;;  %v2199_v16 = vpack.c.bf16 %v2699_v59, %v2695_v6  ;;  %v2708_v56 = vadd.f32 %v3208_v54, %v653_v19 }
 0x14b   : > { %v2194_v22 = vpack.c.bf16 %v2701_v5, %v2697_v10  ;;  %v1478_v21 = vmul.f32 %v2701_v5, %v2701_v5  ;;  %v1508_v62 = vadd.f32 %v1507_v1, %v1477_v15  ;;  %v1437_v20 = vadd.f32 %v2701_v5, %v1436_v58 }
 0x14c   : > { %v2702_v60 = vadd.f32 %v3208_v54, %v658_v18  ;;  %v661_v0 = vadd.f32 %v2503_v61, %v3123_v37  ;;  %2399 = vst [vmem:[%s3382_s19 + $0x28] sm:$0xff] %v2199_v16   ;;  %v1480_v18 = vmul.f32 %v2699_v59, %v2699_v59 }
 0x14d   : > { %2398 = vst [vmem:[%s3382_s19 + $0x20] sm:$0xff] %v2194_v22   ;;  %v2660_v3 = vpop.f32.mrb[12].mxu1  ;;  %v1438_v4 = vadd.f32 %v2695_v6, %v1437_v20  ;;  %v1509_v9 = vadd.f32 %v1508_v62, %v1478_v21 }
 0x14e   : > { %v2706_v13 = vadd.f32 %v3208_v54, %v661_v0  ;;  %v2504_v11 = vpop.f32.mrb[32].mxu0  ;;  %v2703_v8 = vadd.f32 %v2702_v60, %v2660_v3  ;;  %v1155_v17 = vpop.f32.mrb[13].mxu1 }
 0x14f   : > { %v2505_v12 = vpop.f32.mrb[33].mxu0  ;;  %v2705_v14 = vadd.f32 %v2704_v7, %v1155_v17  ;;  %v2661_v2 = vpop.f32.mrb[14].mxu1  ;;  %v1510_v15 = vadd.f32 %v1509_v9, %v1479_v57  ;;  %v1439_v55 = vadd.f32 %v2699_v59, %v1438_v4 }
 0x150   : > { %v2506_v10 = vadd.f32 %v2505_v12, %v2504_v11  ;;  %v2507_v63 = vpop.f32.mrb[34].mxu0  ;;  %v2707_v5 = vadd.f32 %v2706_v13, %v2661_v2  ;;  %v1158_v58 = vpop.f32.mrb[15].mxu1  ;;  %v1483_v57 = vmul.f32 %v2703_v8, %v2703_v8 }
 0x151   : > { %v2508_v61 = vpop.f32.mrb[35].mxu0  ;;  %v1481_v1 = vmul.f32 %v2705_v14, %v2705_v14  ;;  %v2709_v60 = vadd.f32 %v2708_v56, %v1158_v58  ;;  %v1440_v0 = vadd.f32 %v2705_v14, %v1439_v55  ;;  %v1511_v22 = vadd.f32 %v1510_v15, %v1480_v18 }
 0x152   : > { %v666_v6 = vadd.f32 %v2506_v10, %v3123_v37  ;;  %v2509_v16 = vadd.f32 %v2508_v61, %v2507_v63  ;;  %v2209_v19 = vpack.c.bf16 %v2707_v5, %v2703_v8  ;;  %v1484_v18 = vmul.f32 %v2707_v5, %v2707_v5 }
 0x153   : > { %v2204_v62 = vpack.c.bf16 %v2709_v60, %v2705_v14  ;;  %v1482_v20 = vmul.f32 %v2709_v60, %v2709_v60  ;;  %v1512_v7 = vadd.f32 %v1511_v22, %v1481_v1  ;;  %v1441_v11 = vadd.f32 %v2709_v60, %v1440_v0 }
 0x154   : > { %v669_v21 = vadd.f32 %v2509_v16, %v3123_v37  ;;  %2401 = vst [vmem:[%s3382_s19 + $0x38] sm:$0xff] %v2209_v19   ;;  %v2712_v59 = vadd.f32 %v3208_v54, %v666_v6 }
 0x155   : > { %2400 = vst [vmem:[%s3382_s19 + $0x30] sm:$0xff] %v2204_v62   ;;  %v2664_v3 = vpop.f32.mrb[16].mxu1  ;;  %v1442_v4 = vadd.f32 %v2703_v8, %v1441_v11  ;;  %v1513_v9 = vadd.f32 %v1512_v7, %v1482_v20 }
 0x156   : > { %v2510_v13 = vpop.f32.mrb[36].mxu0  ;;  %v1171_v17 = vpop.f32.mrb[17].mxu1  ;;  %v2716_v56 = vadd.f32 %v3208_v54, %v669_v21 }
 0x157   : > { %v2511_v12 = vpop.f32.mrb[37].mxu0  ;;  %v2713_v2 = vadd.f32 %v2712_v59, %v1171_v17  ;;  %v2665_v14 = vpop.f32.mrb[18].mxu1  ;;  %v1514_v15 = vadd.f32 %v1513_v9, %v1483_v57  ;;  %v1443_v55 = vadd.f32 %v2707_v5, %v1442_v4 }
 0x158   : > { %v2512_v10 = vadd.f32 %v2511_v12, %v2510_v13  ;;  %v2513_v63 = vpop.f32.mrb[38].mxu0  ;;  %v1174_v58 = vpop.f32.mrb[19].mxu1 }
 0x159   : > { %v2514_v61 = vpop.f32.mrb[39].mxu0  ;;  %v1485_v1 = vmul.f32 %v2713_v2, %v2713_v2  ;;  %v2717_v8 = vadd.f32 %v2716_v56, %v1174_v58  ;;  %v1444_v60 = vadd.f32 %v2713_v2, %v1443_v55  ;;  %v1515_v0 = vadd.f32 %v1514_v15, %v1484_v18 }
 0x15a   : > { %v674_v6 = vadd.f32 %v2512_v10, %v3123_v37  ;;  %v2515_v16 = vadd.f32 %v2514_v61, %v2513_v63 }
 0x15b   : > { %v2214_v21 = vpack.c.bf16 %v2717_v8, %v2713_v2  ;;  %v1486_v62 = vmul.f32 %v2717_v8, %v2717_v8  ;;  %v1516_v20 = vadd.f32 %v1515_v0, %v1485_v1  ;;  %v1445_v7 = vadd.f32 %v2717_v8, %v1444_v60 }
 0x15c   : > { %v2710_v22 = vadd.f32 %v3208_v54, %v674_v6  ;;  %v677_v19 = vadd.f32 %v2515_v16, %v3123_v37 }
 0x15d   : > { %2402 = vst [vmem:[%s3382_s19 + $0x40] sm:$0xff] %v2214_v21   ;;  %v2668_v13 = vpop.f32.mrb[20].mxu1  ;;  %v1517_v57 = vadd.f32 %v1516_v20, %v1486_v62 }
 0x15e   : > { %v2711_v11 = vadd.f32 %v2710_v22, %v2664_v3  ;;  %v2714_v5 = vadd.f32 %v3208_v54, %v677_v19  ;;  %v2516_v59 = vpop.f32.mrb[40].mxu0  ;;  %v1187_v9 = vpop.f32.mrb[21].mxu1 }
 0x15f   : > { %v2517_v4 = vpop.f32.mrb[41].mxu0  ;;  %v2669_v18 = vpop.f32.mrb[22].mxu1 }
 0x160   : > { %v1487_v12 = vmul.f32 %v2711_v11, %v2711_v11  ;;  %v2715_v17 = vadd.f32 %v2714_v5, %v2665_v14  ;;  %v1446_v56 = vadd.f32 %v2711_v11, %v1445_v7  ;;  %v2518_v10 = vadd.f32 %v2517_v4, %v2516_v59  ;;  %v2519_v63 = vpop.f32.mrb[42].mxu0  ;;  %v1190_v15 = vpop.f32.mrb[23].mxu1 }
 0x161   : > { %v2520_v2 = vpop.f32.mrb[43].mxu0 }
 0x162   : > { %v2219_v55 = vpack.c.bf16 %v2715_v17, %v2711_v11  ;;  %v1488_v61 = vmul.f32 %v2715_v17, %v2715_v17  ;;  %v1518_v3 = vadd.f32 %v1517_v57, %v1487_v12  ;;  %v682_v58 = vadd.f32 %v2518_v10, %v3123_v37 }
 0x163   : > { %v1447_v6 = vadd.f32 %v2715_v17, %v1446_v56  ;;  %v2521_v1 = vadd.f32 %v2520_v2, %v2519_v63 }
 0x164   : > { %2403 = vst [vmem:[%s3382_s19 + $0x48] sm:$0xff] %v2219_v55   ;;  %v2720_v16 = vadd.f32 %v3208_v54, %v682_v58  ;;  %v1519_v8 = vadd.f32 %v1518_v3, %v1488_v61 }
 0x165   : > { %v685_v60 = vadd.f32 %v2521_v1, %v3123_v37  ;;  %v3427_v22 = vpop.f32.mrb[24].mxu1 }
 0x166   : > { %v2721_v14 = vadd.f32 %v2720_v16, %v1187_v9  ;;  %v2522_v0 = vpop.f32.mrb[44].mxu0  ;;  %v1203_v62 = vpop.f32.mrb[25].mxu1 }
 0x167   : > { %v2724_v19 = vadd.f32 %v3208_v54, %v685_v60  ;;  %v2523_v21 = vpop.f32.mrb[45].mxu0  ;;  %v3430_v59 = vpop.f32.mrb[26].mxu1 }
 0x168   : > { %v1448_v20 = vadd.f32 %v2721_v14, %v1447_v6  ;;  %v1489_v7 = vmul.f32 %v2721_v14, %v2721_v14  ;;  %v2524_v11 = vadd.f32 %v2523_v21, %v2522_v0  ;;  %v2525_v5 = vpop.f32.mrb[46].mxu0  ;;  %v1206_v12 = vpop.f32.mrb[27].mxu1 }
 0x169   : > { %v2725_v57 = vadd.f32 %v2724_v19, %v1190_v15  ;;  %v2526_v4 = vpop.f32.mrb[47].mxu0 }
 0x16a   : > { %v1520_v17 = vadd.f32 %v1519_v8, %v1489_v7  ;;  %v690_v9 = vadd.f32 %v2524_v11, %v3123_v37  ;;  %v2527_v56 = vadd.f32 %v2526_v4, %v2525_v5 }
 0x16b   : > { %v2224_v10 = vpack.c.bf16 %v2725_v57, %v2721_v14  ;;  %v1449_v63 = vadd.f32 %v2725_v57, %v1448_v20  ;;  %v1490_v2 = vmul.f32 %v2725_v57, %v2725_v57 }
 0x16c   : > { %v2718_v55 = vadd.f32 %v3208_v54, %v690_v9  ;;  %v693_v61 = vadd.f32 %v2527_v56, %v3123_v37 }
 0x16d   : > { %2404 = vst [vmem:[%s3382_s19 + $0x50] sm:$0xff] %v2224_v10   ;;  %v1521_v3 = vadd.f32 %v1520_v17, %v1490_v2  ;;  %v3437_v15 = vpop.f32.mrb[28].mxu1 }
 0x16e   : > { %v2719_v58 = vadd.f32 %v2718_v55, %v2668_v13  ;;  %v2722_v6 = vadd.f32 %v3208_v54, %v693_v61  ;;  %v2528_v1 = vpop.f32.mrb[48].mxu0  ;;  %v1219_v8 = vpop.f32.mrb[29].mxu1 }
 0x16f   : > { %v2529_v16 = vpop.f32.mrb[49].mxu0  ;;  %v3439_v20 = vpop.f32.mrb[30].mxu1 }
 0x170   : > { %v1450_v60 = vadd.f32 %v2719_v58, %v1449_v63  ;;  %v1491_v0 = vmul.f32 %v2719_v58, %v2719_v58  ;;  %v2723_v14 = vadd.f32 %v2722_v6, %v2669_v18  ;;  %v2530_v19 = vadd.f32 %v2529_v16, %v2528_v1  ;;  %v2531_v21 = vpop.f32.mrb[50].mxu0  ;;  %v1222_v11 = vpop.f32.mrb[31].mxu1 }
 0x171   : > { %v2532_v7 = vpop.f32.mrb[51].mxu0 }
 0x172   : > { %v1522_v5 = vadd.f32 %v1521_v3, %v1491_v0  ;;  %v2229_v57 = vpack.c.bf16 %v2723_v14, %v2719_v58  ;;  %v1451_v13 = vadd.f32 %v2723_v14, %v1450_v60  ;;  %v1492_v4 = vmul.f32 %v2723_v14, %v2723_v14 }
 0x173   : > { %v698_v17 = vadd.f32 %v2530_v19, %v3123_v37  ;;  %v2533_v9 = vadd.f32 %v2532_v7, %v2531_v21 }
 0x174   : > { %2405 = vst [vmem:[%s3382_s19 + $0x58] sm:$0xff] %v2229_v57   ;;  %v1523_v56 = vadd.f32 %v1522_v5, %v1492_v4 }
 0x175   : > { %v2728_v10 = vadd.f32 %v3208_v54, %v698_v17  ;;  %v701_v63 = vadd.f32 %v2533_v9, %v3123_v37 }
 0x176   : > { %v2534_v18 = vpop.f32.mrb[52].mxu0 }
 0x177   : > { %v2729_v2 = vadd.f32 %v2728_v10, %v1203_v62  ;;  %v2732_v55 = vadd.f32 %v3208_v54, %v701_v63  ;;  %v2535_v61 = vpop.f32.mrb[53].mxu0 }
 0x178   : > { %v2536_v6 = vadd.f32 %v2535_v61, %v2534_v18  ;;  %v2537_v3 = vpop.f32.mrb[54].mxu0 }
 0x179   : > { %v1452_v58 = vadd.f32 %v2729_v2, %v1451_v13  ;;  %v1493_v1 = vmul.f32 %v2729_v2, %v2729_v2  ;;  %v2733_v16 = vadd.f32 %v2732_v55, %v1206_v12  ;;  %v2538_v60 = vpop.f32.mrb[55].mxu0 }
 0x17a   : > { %v706_v0 = vadd.f32 %v2536_v6, %v3123_v37  ;;  %v2539_v14 = vadd.f32 %v2538_v60, %v2537_v3 }
 0x17b   : > { %v1524_v19 = vadd.f32 %v1523_v56, %v1493_v1  ;;  %v2234_v21 = vpack.c.bf16 %v2733_v16, %v2729_v2  ;;  %v1453_v7 = vadd.f32 %v2733_v16, %v1452_v58  ;;  %v1494_v5 = vmul.f32 %v2733_v16, %v2733_v16 }
 0x17c   : > { %v2726_v57 = vadd.f32 %v3208_v54, %v706_v0  ;;  %v709_v62 = vadd.f32 %v2539_v14, %v3123_v37 }
 0x17d   : > { %2406 = vst [vmem:[%s3382_s19 + $0x60] sm:$0xff] %v2234_v21   ;;  %v1525_v4 = vadd.f32 %v1524_v19, %v1494_v5 }
 0x17e   : > { %v2727_v17 = vadd.f32 %v2726_v57, %v3427_v22  ;;  %v2730_v13 = vadd.f32 %v3208_v54, %v709_v62  ;;  %v2540_v12 = vpop.f32.mrb[56].mxu0 }
 0x17f   : > { %v2541_v9 = vpop.f32.mrb[57].mxu0 }
 0x180   : > { %v1454_v10 = vadd.f32 %v2727_v17, %v1453_v7  ;;  %v1495_v63 = vmul.f32 %v2727_v17, %v2727_v17  ;;  %v2731_v56 = vadd.f32 %v2730_v13, %v3430_v59  ;;  %v2542_v18 = vadd.f32 %v2541_v9, %v2540_v12  ;;  %v2543_v2 = vpop.f32.mrb[58].mxu0 }
 0x181   : > { %v2544_v55 = vpop.f32.mrb[59].mxu0 }
 0x182   : > { %v1526_v61 = vadd.f32 %v1525_v4, %v1495_v63  ;;  %v2239_v6 = vpack.c.bf16 %v2731_v56, %v2727_v17  ;;  %v1455_v3 = vadd.f32 %v2731_v56, %v1454_v10  ;;  %v1496_v58 = vmul.f32 %v2731_v56, %v2731_v56 }
 0x183   : > { %v714_v1 = vadd.f32 %v2542_v18, %v3123_v37  ;;  %v2545_v16 = vadd.f32 %v2544_v55, %v2543_v2 }
 0x184   : > { %2407 = vst [vmem:[%s3382_s19 + $0x68] sm:$0xff] %v2239_v6   ;;  %v1527_v22 = vadd.f32 %v1526_v61, %v1496_v58 }
 0x185   : > { %v2736_v60 = vadd.f32 %v3208_v54, %v714_v1  ;;  %v717_v0 = vadd.f32 %v2545_v16, %v3123_v37 }
 0x186   : > { %v2546_v14 = vpop.f32.mrb[60].mxu0 }
 0x187   : > { %v2737_v19 = vadd.f32 %v2736_v60, %v1219_v8  ;;  %v2740_v59 = vadd.f32 %v3208_v54, %v717_v0  ;;  %v2547_v21 = vpop.f32.mrb[61].mxu0 }
 0x188   : > { %v2548_v7 = vadd.f32 %v2547_v21, %v2546_v14  ;;  %v2549_v5 = vpop.f32.mrb[62].mxu0 }
 0x189   : > { %v1456_v57 = vadd.f32 %v2737_v19, %v1455_v3  ;;  %v1497_v62 = vmul.f32 %v2737_v19, %v2737_v19  ;;  %v2741_v4 = vadd.f32 %v2740_v59, %v1222_v11  ;;  %v2550_v17 = vpop.f32.mrb[63].mxu0 }
 0x18a   : > { %v722_v13 = vadd.f32 %v2548_v7, %v3123_v37  ;;  %v2551_v12 = vadd.f32 %v2550_v17, %v2549_v5 }
 0x18b   : > { %v1528_v9 = vadd.f32 %v1527_v22, %v1497_v62  ;;  %v2244_v10 = vpack.c.bf16 %v2741_v4, %v2737_v19  ;;  %v1457_v63 = vadd.f32 %v2741_v4, %v1456_v57  ;;  %v1498_v56 = vmul.f32 %v2741_v4, %v2741_v4  ;;  %v1428_v62 = vld [vmem:[#allocation2] sm:$0x1] }
 0x18c   : > { %v2734_v8 = vadd.f32 %v3208_v54, %v722_v13  ;;  %v725_v18 = vadd.f32 %v2551_v12, %v3123_v37  ;;  %v1468_v13 = vld [vmem:[#allocation3] sm:$0x1] }
 0x18d   : > { %2408 = vst [vmem:[%s3382_s19 + $0x70] sm:$0xff] %v2244_v10   ;;  %v1529_v2 = vadd.f32 %v1528_v9, %v1498_v56 }
 0x18e   : > { %v2735_v55 = vadd.f32 %v2734_v8, %v3437_v15  ;;  %v2738_v61 = vadd.f32 %v3208_v54, %v725_v18 }
 0x190   : > { %v1458_v11 = vadd.f32 %v2735_v55, %v1457_v63  ;;  %v1499_v6 = vmul.f32 %v2735_v55, %v2735_v55  ;;  %v2739_v3 = vadd.f32 %v2738_v61, %v3439_v20 }
 0x192   : > { %v1530_v58 = vadd.f32 %v1529_v2, %v1499_v6  ;;  %v2249_v1 = vpack.c.bf16 %v2739_v3, %v2735_v55  ;;  %v1459_v16 = vadd.f32 %v2739_v3, %v1458_v11  ;;  %v1500_v22 = vmul.f32 %v2739_v3, %v2739_v3  ;;  %v1547_v11 = vld [vmem:[%s3617_s6] sm:$0x1] (%p90_p0) }
 0x194   : > { %2409 = vst [vmem:[%s3382_s19 + $0x78] sm:$0xff] %v2249_v1   ;;  %v1460_v60 = vrot.slane %v1459_v16, 4  ;;  %v1531_v0 = vadd.f32 %v1530_v58, %v1500_v22  ;;  %v3477_v58 = vld [vmem:[%s3618_s7] sm:$0x1] (%p90_p0) }
 0x196   : > { %v1461_v14 = vadd.f32 %v1460_v60, %v1459_v16  ;;  %v1532_v19 = vrot.slane %v1531_v0, 4 }
 0x198   : > { %v1462_v59 = vrot.slane %v1461_v14, 2  ;;  %v1533_v21 = vadd.f32 %v1532_v19, %v1531_v0 }
 0x19a   : > { %v1463_v7 = vadd.f32 %v1462_v59, %v1461_v14  ;;  %v1534_v5 = vrot.slane %v1533_v21, 2 }
 0x19c   : > { %v1464_v15 = vrot.slane %v1463_v7, 1  ;;  %v1535_v57 = vadd.f32 %v1534_v5, %v1533_v21 }
 0x19e   : > { %v1465_v4 = vadd.f32 %v1464_v15, %v1463_v7  ;;  %v1536_v17 = vrot.slane %v1535_v57, 1  ;;  %92 = sbr.rel (!%p90_p0) target bundleno = 24 (0x18), region = 79 }
 0x1a0   : > { %v1466_v20 = vadd.f32 %v1465_v4, %v1428_v62  ;;  %v1537_v12 = vadd.f32 %v1536_v17, %v1535_v57 }
 0x1a2   : > { %1467 = vst [vmem:[#allocation2] sm:$0x1] %v1466_v20  ;;  %v1538_v9 = vadd.f32 %v1537_v12, %v1468_v13 }
 0x1a4   : > { %1539 = vst [vmem:[#allocation3] sm:$0x1] %v1538_v9 }
 0x1a9   :  { %v1540_v10 = vld [vmem:[#allocation2] sm:$0x1] }
 0x1aa   :  { %v1541_v56 = vmul.f32 0.001953125, %v1540_v10 }
 0x1ab   :  { %v1542_v63 = vld [vmem:[#allocation3] sm:$0x1] }
 0x1ac   :  { %v1543_v8 = vmul.f32 0.001953125, %v1542_v63  ;;  %v1544_v18 = vmul.f32 %v1541_v56, %v1541_v56 }
 0x1ae   :  { %v1545_v2 = vsub.f32 %v1543_v8, %v1544_v18 }
 0x1b0   :  { %v1546_v55 = vmax.f32 %v1545_v2, 0.0 }
 0x1b2   :  { %v1548_v61 = vadd.f32 1e-05, %v1546_v55 }
 0x1b4   :  { %2871 = vrsqrt.f32 %v1548_v61 }
 0x1be   :  { %v2872_v6 = vpop.eup %2871 }
 0x1bf   :  { %v3472_v3 = vmul.f32 %v2872_v6, %v1547_v11 }
 0x1c1   :  { %v3480_v23 = vmul.f32 %v3472_v3, %v1541_v56 }
 0x1c3   :  { %v1553_v24 = vsub.f32 %v3477_v58, %v3480_v23 }
 0x1c4 LB: > { %v1630_v25 = vlaneseq  ;;  %s2071_s3 = sshll.u32 %s2887_s0, 8  ;;  %s1559_s0 = sadd.s32 1, %s2887_s0   ;;  %s2887_s0 = sphi %s3484_s0, %s1559_s0  }
 0x1c5   : > { %s3490_s6 = sshra.s32 %s2071_s3, 3  ;;  %p1556_p1 = scmp.ge.s32.totalorder %s1559_s0, 2  }
 0x1c6   : > { %v1631_v26 = vshrl.u32 %v1630_v25, 7  ;;  %s2072_s7 = sshll.u32 %s3490_s6, 2 }
 0x1c7   : > { %s3498_s1 = scalar_lea.vmem %s3619_s8, %s2072_s7  ;;  %s3535_s27 = scalar_lea.vmem %s3620_s9, %s2072_s7 }
 0x1c8   : > { %v1632_v27 = vsub.s32 0, %v1631_v26  ;;  %v2252_v28 = vld [vmem:[%s3498_s1] sm:$0xff]   ;;  %v2410_v31 = vld [vmem:[%s3498_s1 + $0x8] sm:$0xff]   ;;  %v2411_v32 = vld [vmem:[%s3498_s1 + $0x10] sm:$0xff]  }
 0x1c9   : > { %v2253_v33 = vunpack.c.l.bf16 %v2252_v28  ;;  %v2254_v34 = vunpack.c.h.bf16 %v2252_v28  ;;  %v2257_v35 = vunpack.c.l.bf16 %v2410_v31  ;;  %v2258_v36 = vunpack.c.h.bf16 %v2410_v31  ;;  %v2412_v37 = vld [vmem:[%s3498_s1 + $0x18] sm:$0xff]   ;;  %v2413_v60 = vld [vmem:[%s3498_s1 + $0x20] sm:$0xff]   ;;  %v2414_v21 = vld [vmem:[%s3498_s1 + $0x28] sm:$0xff]  }
 0x1ca   : > { %v3502_v29 = vrot.slane %v3472_v3, %v1632_v27  ;;  %v3507_v30 = vrot.slane %v1553_v24, %v1632_v27  ;;  %v2261_v38 = vunpack.c.l.bf16 %v2411_v32  ;;  %v2262_v39 = vunpack.c.h.bf16 %v2411_v32  ;;  %v2415_v62 = vld [vmem:[%s3498_s1 + $0x30] sm:$0xff]   ;;  %v2416_v12 = vld [vmem:[%s3498_s1 + $0x38] sm:$0xff]  }
 0x1cb   : > { %v2265_v40 = vunpack.c.l.bf16 %v2412_v37  ;;  %v2266_v41 = vunpack.c.h.bf16 %v2412_v37  ;;  %v2269_v13 = vunpack.c.l.bf16 %v2413_v60  ;;  %v2270_v20 = vunpack.c.h.bf16 %v2413_v60 }
 0x1cc   : > { %v1635_v42 = vmul.f32 %v2253_v33, %v3502_v29  ;;  %v1636_v43 = vmul.f32 %v2254_v34, %v3502_v29  ;;  %v1637_v44 = vmul.f32 %v2257_v35, %v3502_v29  ;;  %v1638_v45 = vmul.f32 %v2258_v36, %v3502_v29  ;;  %v2417_v36 = vld [vmem:[%s3498_s1 + $0x40] sm:$0xff]  }
 0x1cd   : > { %v1639_v46 = vmul.f32 %v2261_v38, %v3502_v29  ;;  %v1640_v47 = vmul.f32 %v2262_v39, %v3502_v29  ;;  %v1641_v48 = vmul.f32 %v2265_v40, %v3502_v29  ;;  %v1642_v49 = vmul.f32 %v2266_v41, %v3502_v29 }
 0x1ce   : > { %v1673_v50 = vadd.f32 %v3507_v30, %v1635_v42  ;;  %v1674_v51 = vadd.f32 %v3507_v30, %v1636_v43  ;;  %v1675_v52 = vadd.f32 %v3507_v30, %v1637_v44  ;;  %v1676_v53 = vadd.f32 %v3507_v30, %v1638_v45  ;;  %v2418_v45 = vld [vmem:[%s3498_s1 + $0x48] sm:$0xff]  }
 0x1cf   : > { %v1677_v54 = vadd.f32 %v3507_v30, %v1639_v46  ;;  %v1678_v1 = vadd.f32 %v3507_v30, %v1640_v47  ;;  %v1679_v16 = vadd.f32 %v3507_v30, %v1641_v48  ;;  %v1680_v22 = vadd.f32 %v3507_v30, %v1642_v49 }
 0x1d0   : > { %v1705_v0 = vmax.f32 %v1673_v50, 0.0  ;;  %v1706_v14 = vmax.f32 %v1674_v51, 0.0  ;;  %v1707_v19 = vmax.f32 %v1675_v52, 0.0  ;;  %v1708_v59 = vmax.f32 %v1676_v53, 0.0  ;;  %v2419_v50 = vld [vmem:[%s3498_s1 + $0x50] sm:$0xff]  }
 0x1d1   : > { %v1709_v7 = vmax.f32 %v1677_v54, 0.0  ;;  %v1710_v5 = vmax.f32 %v1678_v1, 0.0  ;;  %v1711_v15 = vmax.f32 %v1679_v16, 0.0  ;;  %v1712_v57 = vmax.f32 %v1680_v22, 0.0  ;;  %v2420_v1 = vld [vmem:[%s3498_s1 + $0x58] sm:$0xff]  }
 0x1d2   : > { %v2318_v4 = vpack.c.bf16 %v1706_v14, %v1705_v0  ;;  %v2323_v17 = vpack.c.bf16 %v1708_v59, %v1707_v19  ;;  %v2273_v63 = vunpack.c.l.bf16 %v2414_v21  ;;  %v2274_v56 = vunpack.c.h.bf16 %v2414_v21 }
 0x1d3   : > { %v2328_v9 = vpack.c.bf16 %v1710_v5, %v1709_v7  ;;  %v2333_v10 = vpack.c.bf16 %v1712_v57, %v1711_v15  ;;  %v1643_v8 = vmul.f32 %v2269_v13, %v3502_v29  ;;  %v1644_v18 = vmul.f32 %v2270_v20, %v3502_v29  ;;  %v2421_v20 = vld [vmem:[%s3498_s1 + $0x60] sm:$0xff]  }
 0x1d4   : > { %2319 = vst [vmem:[%s3535_s27] sm:$0xff] %v2318_v4   ;;  %2425 = vst [vmem:[%s3535_s27 + $0x8] sm:$0xff] %v2323_v17   ;;  %v2277_v2 = vunpack.c.l.bf16 %v2415_v62  ;;  %v2278_v55 = vunpack.c.h.bf16 %v2415_v62  ;;  %v1645_v61 = vmul.f32 %v2273_v63, %v3502_v29  ;;  %v1646_v11 = vmul.f32 %v2274_v56, %v3502_v29 }
 0x1d5   : > { %2426 = vst [vmem:[%s3535_s27 + $0x10] sm:$0xff] %v2328_v9   ;;  %2427 = vst [vmem:[%s3535_s27 + $0x18] sm:$0xff] %v2333_v10   ;;  %v2281_v6 = vunpack.c.l.bf16 %v2416_v12  ;;  %v2282_v25 = vunpack.c.h.bf16 %v2416_v12  ;;  %v1681_v26 = vadd.f32 %v3507_v30, %v1643_v8  ;;  %v1682_v27 = vadd.f32 %v3507_v30, %v1644_v18 }
 0x1d6   : > { %v1647_v28 = vmul.f32 %v2277_v2, %v3502_v29  ;;  %v1648_v31 = vmul.f32 %v2278_v55, %v3502_v29  ;;  %v1683_v32 = vadd.f32 %v3507_v30, %v1645_v61  ;;  %v1684_v33 = vadd.f32 %v3507_v30, %v1646_v11 }
 0x1d7   : > { %v1649_v34 = vmul.f32 %v2281_v6, %v3502_v29  ;;  %v1650_v35 = vmul.f32 %v2282_v25, %v3502_v29  ;;  %v1713_v37 = vmax.f32 %v1681_v26, 0.0  ;;  %v1714_v38 = vmax.f32 %v1682_v27, 0.0  ;;  %v2422_v25 = vld [vmem:[%s3498_s1 + $0x68] sm:$0xff]  }
 0x1d8   : > { %v1685_v39 = vadd.f32 %v3507_v30, %v1647_v28  ;;  %v1686_v40 = vadd.f32 %v3507_v30, %v1648_v31  ;;  %v1715_v41 = vmax.f32 %v1683_v32, 0.0  ;;  %v1716_v42 = vmax.f32 %v1684_v33, 0.0  ;;  %v2423_v32 = vld [vmem:[%s3498_s1 + $0x70] sm:$0xff]  }
 0x1d9   : > { %v1687_v43 = vadd.f32 %v3507_v30, %v1649_v34  ;;  %v1688_v44 = vadd.f32 %v3507_v30, %v1650_v35  ;;  %v2338_v46 = vpack.c.bf16 %v1714_v38, %v1713_v37  ;;  %v2285_v49 = vunpack.c.l.bf16 %v2417_v36  ;;  %v2424_v37 = vld [vmem:[%s3498_s1 + $0x78] sm:$0xff]  }
 0x1da   : > { %v1717_v47 = vmax.f32 %v1685_v39, 0.0  ;;  %v1718_v48 = vmax.f32 %v1686_v40, 0.0  ;;  %v2343_v51 = vpack.c.bf16 %v1716_v42, %v1715_v41  ;;  %v2286_v54 = vunpack.c.h.bf16 %v2417_v36 }
 0x1db   : > { %v1719_v52 = vmax.f32 %v1687_v43, 0.0  ;;  %v1720_v53 = vmax.f32 %v1688_v44, 0.0  ;;  %2428 = vst [vmem:[%s3535_s27 + $0x20] sm:$0xff] %v2338_v46   ;;  %v1651_v22 = vmul.f32 %v2285_v49, %v3502_v29  ;;  %v2289_v60 = vunpack.c.l.bf16 %v2418_v45 }
 0x1dc   : > { %v2348_v16 = vpack.c.bf16 %v1718_v48, %v1717_v47  ;;  %v2290_v0 = vunpack.c.h.bf16 %v2418_v45  ;;  %2429 = vst [vmem:[%s3535_s27 + $0x28] sm:$0xff] %v2343_v51   ;;  %v1652_v19 = vmul.f32 %v2286_v54, %v3502_v29  ;;  %v2293_v59 = vunpack.c.l.bf16 %v2419_v50 }
 0x1dd   : > { %v2353_v14 = vpack.c.bf16 %v1720_v53, %v1719_v52  ;;  %v2294_v21 = vunpack.c.h.bf16 %v2419_v50  ;;  %v1689_v7 = vadd.f32 %v3507_v30, %v1651_v22  ;;  %v1653_v5 = vmul.f32 %v2289_v60, %v3502_v29 }
 0x1de   : > { %2430 = vst [vmem:[%s3535_s27 + $0x30] sm:$0xff] %v2348_v16   ;;  %v1654_v15 = vmul.f32 %v2290_v0, %v3502_v29  ;;  %v2297_v57 = vunpack.c.l.bf16 %v2420_v1  ;;  %v1690_v62 = vadd.f32 %v3507_v30, %v1652_v19  ;;  %v1655_v4 = vmul.f32 %v2293_v59, %v3502_v29 }
 0x1df   : > { %2431 = vst [vmem:[%s3535_s27 + $0x38] sm:$0xff] %v2353_v14   ;;  %v1656_v17 = vmul.f32 %v2294_v21, %v3502_v29  ;;  %v2298_v13 = vunpack.c.h.bf16 %v2420_v1  ;;  %v1721_v12 = vmax.f32 %v1689_v7, 0.0  ;;  %v1691_v9 = vadd.f32 %v3507_v30, %v1653_v5 }
 0x1e0   : > { %v1692_v10 = vadd.f32 %v3507_v30, %v1654_v15  ;;  %v1657_v63 = vmul.f32 %v2297_v57, %v3502_v29  ;;  %v1722_v56 = vmax.f32 %v1690_v62, 0.0  ;;  %v1693_v8 = vadd.f32 %v3507_v30, %v1655_v4 }
 0x1e1   : > { %v1694_v18 = vadd.f32 %v3507_v30, %v1656_v17  ;;  %v1658_v2 = vmul.f32 %v2298_v13, %v3502_v29  ;;  %v1723_v55 = vmax.f32 %v1691_v9, 0.0  ;;  %v2301_v6 = vunpack.c.l.bf16 %v2421_v20 }
 0x1e2   : > { %v1724_v61 = vmax.f32 %v1692_v10, 0.0  ;;  %v1695_v11 = vadd.f32 %v3507_v30, %v1657_v63  ;;  %v2358_v26 = vpack.c.bf16 %v1722_v56, %v1721_v12  ;;  %v1725_v27 = vmax.f32 %v1693_v8, 0.0 }
 0x1e3   : > { %v1726_v28 = vmax.f32 %v1694_v18, 0.0  ;;  %v1696_v31 = vadd.f32 %v3507_v30, %v1658_v2  ;;  %v2302_v35 = vunpack.c.h.bf16 %v2421_v20  ;;  %v1659_v36 = vmul.f32 %v2301_v6, %v3502_v29 }
 0x1e4   : > { %v2363_v33 = vpack.c.bf16 %v1724_v61, %v1723_v55  ;;  %v1727_v34 = vmax.f32 %v1695_v11, 0.0  ;;  %2432 = vst [vmem:[%s3535_s27 + $0x40] sm:$0xff] %v2358_v26   ;;  %v2305_v40 = vunpack.c.l.bf16 %v2422_v25  ;;  %v2306_v41 = vunpack.c.h.bf16 %v2422_v25 }
 0x1e5   : > { %v2368_v38 = vpack.c.bf16 %v1726_v28, %v1725_v27  ;;  %v1728_v39 = vmax.f32 %v1696_v31, 0.0  ;;  %v1660_v42 = vmul.f32 %v2302_v35, %v3502_v29  ;;  %v1697_v43 = vadd.f32 %v3507_v30, %v1659_v36 }
 0x1e6   : > { %2433 = vst [vmem:[%s3535_s27 + $0x48] sm:$0xff] %v2363_v33   ;;  %v2309_v44 = vunpack.c.l.bf16 %v2423_v32  ;;  %v2310_v45 = vunpack.c.h.bf16 %v2423_v32  ;;  %v1661_v47 = vmul.f32 %v2305_v40, %v3502_v29  ;;  %v1662_v48 = vmul.f32 %v2306_v41, %v3502_v29 }
 0x1e7   : > { %2434 = vst [vmem:[%s3535_s27 + $0x50] sm:$0xff] %v2368_v38   ;;  %v2373_v46 = vpack.c.bf16 %v1728_v39, %v1727_v34  ;;  %v2313_v49 = vunpack.c.l.bf16 %v2424_v37  ;;  %v1698_v50 = vadd.f32 %v3507_v30, %v1660_v42  ;;  %v1729_v51 = vmax.f32 %v1697_v43, 0.0 }
 0x1e8   : > { %v1663_v52 = vmul.f32 %v2309_v44, %v3502_v29  ;;  %v1664_v53 = vmul.f32 %v2310_v45, %v3502_v29  ;;  %v1699_v54 = vadd.f32 %v3507_v30, %v1661_v47  ;;  %v1700_v1 = vadd.f32 %v3507_v30, %v1662_v48 }
 0x1e9   : > { %2435 = vst [vmem:[%s3535_s27 + $0x58] sm:$0xff] %v2373_v46   ;;  %v2314_v16 = vunpack.c.h.bf16 %v2424_v37  ;;  %v1665_v22 = vmul.f32 %v2313_v49, %v3502_v29  ;;  %v1730_v60 = vmax.f32 %v1698_v50, 0.0 }
 0x1ea   : > { %v1701_v0 = vadd.f32 %v3507_v30, %v1663_v52  ;;  %v1702_v14 = vadd.f32 %v3507_v30, %v1664_v53  ;;  %v1731_v19 = vmax.f32 %v1699_v54, 0.0  ;;  %v1732_v59 = vmax.f32 %v1700_v1, 0.0 }
 0x1eb   : > { %v1666_v21 = vmul.f32 %v2314_v16, %v3502_v29  ;;  %v1703_v7 = vadd.f32 %v3507_v30, %v1665_v22  ;;  %v2378_v5 = vpack.c.bf16 %v1730_v60, %v1729_v51 }
 0x1ec   : > { %v1733_v15 = vmax.f32 %v1701_v0, 0.0  ;;  %v1734_v57 = vmax.f32 %v1702_v14, 0.0  ;;  %v2383_v62 = vpack.c.bf16 %v1732_v59, %v1731_v19 }
 0x1ed   : > { %v1704_v4 = vadd.f32 %v3507_v30, %v1666_v21  ;;  %v1735_v17 = vmax.f32 %v1703_v7, 0.0  ;;  %2436 = vst [vmem:[%s3535_s27 + $0x60] sm:$0xff] %v2378_v5   ;;  %1558 = sbr.rel (!%p1556_p1) target bundleno = 452 (0x1c4), region = 90 }
 0x1ee   : > { %v2388_v13 = vpack.c.bf16 %v1734_v57, %v1733_v15  ;;  %2437 = vst [vmem:[%s3535_s27 + $0x68] sm:$0xff] %v2383_v62  }
 0x1ef   : > { %v1736_v20 = vmax.f32 %v1704_v4, 0.0 }
 0x1f0   : > { %2438 = vst [vmem:[%s3535_s27 + $0x70] sm:$0xff] %v2388_v13  }
 0x1f1   : > { %v2393_v12 = vpack.c.bf16 %v1736_v20, %v1735_v17 }
 0x1f3   : > { %2439 = vst [vmem:[%s3535_s27 + $0x78] sm:$0xff] %v2393_v12  }

// kernel: _lambda_.13
= control target key start
LH: loop header
LB: loop body
LE: loop exit
PB: predicated region body
PF: predicated region fallthrough
CT: control target
= control target key end

     0   :  { %v1906_v3 = vmov 0.0   ;;  %s2122_s17 = smov 0   ;;  %s2470_s0 = inlined_call_operand.vmem [shape: bf16[512,288], index: 0, kind: input, shape index: {}]   ;;  %s2471_s1 = inlined_call_operand.vmem [shape: bf16[288,128], index: 1, kind: input, shape index: {}]   ;;  %s2472_s3 = inlined_call_operand.vmem [shape: f32[1,128], index: 3, kind: input, shape index: {}]   ;;  %s2473_s4 = inlined_call_operand.vmem [shape: f32[1,128], index: 4, kind: input, shape index: {}]   ;;  %s2474_s5 = inlined_call_operand.vmem [shape: bf16[512,128], index: 5, kind: output, shape index: {}]   ;;  %s2475_s2 = inlined_call_operand.vmem [shape: f32[1,128], index: 2, kind: input, shape index: {}]  }
   0x1   :  { %v1940_v0 = vld [vmem:[%s2471_s1] sm:$0xf]  ;;  %v1945_v1 = vld [vmem:[%s2471_s1 + $0x4] sm:$0xf]  ;;  %v1950_v2 = vld [vmem:[%s2471_s1 + $0x8] sm:$0xf] }
   0x2   :  { %2476 = vst [vmem:[#allocation5_spill] sm:$0xff] %v1940_v0  ;;  %2477 = vst [vmem:[#allocation6_spill] sm:$0xff] %v1945_v1  ;;  %v1955_v4 = vld [vmem:[%s2471_s1 + $0xc] sm:$0xf]  ;;  %v1960_v5 = vld [vmem:[%s2471_s1 + $0x10] sm:$0xf] }
   0x3   :  { %2478 = vst [vmem:[#allocation7_spill] sm:$0xff] %v1950_v2  ;;  %58 = vst [vmem:[#allocation2] sm:$0x1] %v1906_v3  ;;  %v1965_v6 = vld [vmem:[%s2471_s1 + $0x14] sm:$0xf] }
   0x4   :  { %59 = vst [vmem:[#allocation3] sm:$0x1] %v1906_v3  ;;  %2479 = vst [vmem:[#allocation8_spill] sm:$0xff] %v1955_v4  ;;  %v1970_v7 = vld [vmem:[%s2471_s1 + $0x18] sm:$0xf] }
   0x5   :  { %2480 = vst [vmem:[#allocation9_spill] sm:$0xff] %v1960_v5  ;;  %2481 = vst [vmem:[#allocation10_spill] sm:$0xff] %v1965_v6  ;;  %v1975_v8 = vld [vmem:[%s2471_s1 + $0x1c] sm:$0xf]  ;;  %v1980_v9 = vld [vmem:[%s2471_s1 + $0x20] sm:$0xf] }
   0x6   :  { %2482 = vst [vmem:[#allocation11_spill] sm:$0xff] %v1970_v7  ;;  %2483 = vst [vmem:[#allocation12_spill] sm:$0xff] %v1975_v8  ;;  %v1985_v10 = vld [vmem:[%s2471_s1 + $0x24] sm:$0xf]  ;;  %v1990_v11 = vld [vmem:[%s2471_s1 + $0x28] sm:$0xf] }
   0x7   :  { %2484 = vst [vmem:[#allocation13_spill] sm:$0xff] %v1980_v9  ;;  %2485 = vst [vmem:[#allocation14_spill] sm:$0xff] %v1985_v10  ;;  %v1995_v12 = vld [vmem:[%s2471_s1 + $0x2c] sm:$0xf]  ;;  %v2000_v13 = vld [vmem:[%s2471_s1 + $0x30] sm:$0xf] }
   0x8   :  { %2486 = vst [vmem:[#allocation15_spill] sm:$0xff] %v1990_v11  ;;  %2487 = vst [vmem:[#allocation16_spill] sm:$0xff] %v1995_v12  ;;  %v2005_v14 = vld [vmem:[%s2471_s1 + $0x34] sm:$0xf]  ;;  %v2010_v15 = vld [vmem:[%s2471_s1 + $0x38] sm:$0xf] }
   0x9   :  { %v2015_v16 = vld [vmem:[%s2471_s1 + $0x3c] sm:$0xf]  ;;  %v2020_v17 = vld [vmem:[%s2471_s1 + $0x40] sm:$0xf]  ;;  %v2025_v18 = vld [vmem:[%s2471_s1 + $0x44] sm:$0xf] }
   0xa   :  { %v2030_v19 = vld [vmem:[%s2471_s1 + $0x48] sm:$0xf]  ;;  %v2035_v20 = vld [vmem:[%s2471_s1 + $0x4c] sm:$0xf]  ;;  %v2040_v21 = vld [vmem:[%s2471_s1 + $0x50] sm:$0xf] }
   0xb   :  { %v2045_v22 = vld [vmem:[%s2471_s1 + $0x54] sm:$0xf]  ;;  %v2050_v23 = vld [vmem:[%s2471_s1 + $0x58] sm:$0xf]  ;;  %v2055_v24 = vld [vmem:[%s2471_s1 + $0x5c] sm:$0xf] }
   0xc   :  { %v2060_v25 = vld [vmem:[%s2471_s1 + $0x60] sm:$0xf]  ;;  %v2065_v26 = vld [vmem:[%s2471_s1 + $0x64] sm:$0xf]  ;;  %v2070_v27 = vld [vmem:[%s2471_s1 + $0x68] sm:$0xf] }
   0xd   :  { %v2075_v28 = vld [vmem:[%s2471_s1 + $0x6c] sm:$0xf]  ;;  %v2080_v29 = vld [vmem:[%s2471_s1 + $0x70] sm:$0xf]  ;;  %v2085_v30 = vld [vmem:[%s2471_s1 + $0x74] sm:$0xf] }
   0xe   :  { %v2090_v31 = vld [vmem:[%s2471_s1 + $0x78] sm:$0xf]  ;;  %v2095_v32 = vld [vmem:[%s2471_s1 + $0x7c] sm:$0xf]  ;;  %v2100_v33 = vld [vmem:[%s2471_s1 + $0x80] sm:$0xf] }
   0xf   :  { %v2105_v34 = vld [vmem:[%s2471_s1 + $0x84] sm:$0xf]  ;;  %v2110_v35 = vld [vmem:[%s2471_s1 + $0x88] sm:$0xf]  ;;  %v2115_v36 = vld [vmem:[%s2471_s1 + $0x8c] sm:$0xf] }
  0x10   :  { %v2120_v37 = vld [vmem:[%s2475_s2] ss:$0 sm:$0xff] }
  0x11 LB: > { %v1435_v38 = vcombine.low %v2020_v17, %v2025_v18  ;;  %v2488_v1 = vld [vmem:[#allocation6_spill] sm:$0xff]  ;;  %v2489_v0 = vld [vmem:[#allocation5_spill] sm:$0xff]  ;;  %v1436_v40 = vcombine.low %v2030_v19, %v2035_v20  ;;  %s1376_s1 = sshll.u32 %s1900_s17, 8  ;;  %v2490_v4 = vld [vmem:[#allocation8_spill] sm:$0xff]  ;;  %v1437_v42 = vcombine.low %v2040_v21, %v2045_v22  ;;  %v1438_v44 = vcombine.low %v2050_v23, %v2055_v24  ;;  %s65_s17 = sadd.s32 1, %s1900_s17   ;;  %s1900_s17 = sphi %s2122_s17, %s65_s17  }
  0x12   : > { %v1427_v39 = vcombine.low %v2489_v0, %v2488_v1  ;;  %v2491_v2 = vld [vmem:[#allocation7_spill] sm:$0xff]  ;;  %s67_s2 = sshra.s32 %s1376_s1, 3  ;;  %v2492_v6 = vld [vmem:[#allocation10_spill] sm:$0xff]  ;;  %v2493_v5 = vld [vmem:[#allocation9_spill] sm:$0xff]  ;;  %v1439_v48 = vcombine.low %v2060_v25, %v2065_v26  ;;  %v1440_v50 = vcombine.low %v2070_v27, %v2075_v28  ;;  %v1441_v52 = vcombine.low %v2080_v29, %v2085_v30  ;;  %s877_s22 = sshra.s32 %s1376_s1, 4 }
  0x13   : > { %1625 = vmatprep.subr.bf16.mxu0 %v1435_v38  ;;  %1791 = vmatprep.subr.bf16.mxu1 %v1435_v38  ;;  %v1428_v41 = vcombine.low %v2491_v2, %v2490_v4  ;;  %s1497_s18 = smul.u32 12, %s67_s2  ;;  %v1429_v43 = vcombine.low %v2493_v5, %v2492_v6  ;;  %v2494_v8 = vld [vmem:[#allocation12_spill] sm:$0xff]  ;;  %v2495_v7 = vld [vmem:[#allocation11_spill] sm:$0xff]  ;;  %v2496_v10 = vld [vmem:[#allocation14_spill] sm:$0xff]  ;;  %v1433_v53 = vcombine.low %v2000_v13, %v2005_v14  ;;  %vm490_vm0 = vcmask 261120   ;;  %s1461_s23 = sshll.u32 %s877_s22, 3 }
  0x14   : > { %1626 = vmatpush3.bf16.msra.mxu0 %v1427_v39  ;;  %1799 = vmatpush3.bf16.msra.mxu1 %v1427_v39  ;;  %v1430_v47 = vcombine.low %v2495_v7, %v2494_v8  ;;  %v2497_v9 = vld [vmem:[#allocation13_spill] sm:$0xff]  ;;  %v2498_v12 = vld [vmem:[#allocation16_spill] sm:$0xff]  ;;  %v2499_v11 = vld [vmem:[#allocation15_spill] sm:$0xff]  ;;  %v1442_v54 = vcombine.low %v2090_v31, %v2095_v32  ;;  %v1434_v55 = vcombine.low %v2010_v15, %v2015_v16  ;;  %s2258_s24 = scalar_lea.vmem [#allocation4], %s1461_s23  ;;  %p62_p0 = scmp.ge.s32.totalorder %s65_s17, 2  }
  0x15   : > { %1627 = vmatprep.subr.bf16.mxu0 %v1436_v40  ;;  %1792 = vmatprep.subr.bf16.mxu1 %v1436_v40  ;;  %s2143_s21 = scalar_lea.vmem %s2470_s0, %s1497_s18  ;;  %v1431_v49 = vcombine.low %v2497_v9, %v2496_v10  ;;  %v1432_v51 = vcombine.low %v2499_v11, %v2498_v12  ;;  %v1443_v56 = vcombine.low %v2100_v33, %v2105_v34  ;;  %s2347_s0 = smov (%p62_p0), 0  }
  0x16   : > { %v1826_v45 = vld [vmem:[%s2143_s21 + $0x4] ss:$12 sps:$4 sm:$0xff]   ;;  %v1824_v57 = vld [vmem:[%s2143_s21] ss:$12 sps:$4 sm:$0xff]   ;;  %v1830_v59 = vld [vmem:[%s2143_s21 + $0x1c] ss:$12 sps:$4 sm:$0xff]   ;;  %v1444_v61 = vcombine.low %v2110_v35, %v2115_v36 }
  0x17   : > { %v1829_v46 = vld [vmem:[%s2143_s21 + $0x124] ss:$12 sps:$4 sm:$0xff]   ;;  %571 = vmatprep.mubr.bf16.mxu0 %v1826_v45  ;;  %v1827_v58 = vld [vmem:[%s2143_s21 + $0x120] ss:$12 sps:$4 sm:$0xff]   ;;  %v1832_v60 = vld [vmem:[%s2143_s21 + $0x13c] ss:$12 sps:$4 sm:$0xff]  }
  0x18   : > { %1628 = vmatpush3.bf16.msra.mxu0 %v1428_v41  ;;  %1800 = vmatpush3.bf16.msra.mxu1 %v1428_v41  ;;  %v1834_v62 = vld [vmem:[%s2143_s21 + $0x18] ss:$12 sps:$4 sm:$0xff]   ;;  %v1836_v3 = vld [vmem:[%s2143_s21 + $0x34] ss:$12 sps:$4 sm:$0xff]   ;;  %v1840_v39 = vld [vmem:[%s2143_s21 + $0x30] ss:$12 sps:$4 sm:$0xff]  }
  0x19   : > { %1629 = vmatprep.subr.bf16.mxu0 %v1437_v42  ;;  %1793 = vmatprep.subr.bf16.mxu1 %v1437_v42  ;;  %v1835_v63 = vld [vmem:[%s2143_s21 + $0x138] ss:$12 sps:$4 sm:$0xff]   ;;  %v1838_v38 = vld [vmem:[%s2143_s21 + $0x154] ss:$12 sps:$4 sm:$0xff]   ;;  %v1841_v40 = vld [vmem:[%s2143_s21 + $0x150] ss:$12 sps:$4 sm:$0xff]  }
  0x1a   : > { %667 = vmatprep.mubr.bf16.mxu1 %v1829_v46  ;;  %v1842_v41 = vld [vmem:[%s2143_s21 + $0x4c] ss:$12 sps:$4 sm:$0xff]   ;;  %v1848_v45 = vld [vmem:[%s2143_s21 + $0x64] ss:$12 sps:$4 sm:$0xff]   ;;  %v1850_v46 = vld [vmem:[%s2143_s21 + $0x8] ss:$12 sps:$4 sm:$0xff]  }
  0x1b   : > { %v1844_v42 = vld [vmem:[%s2143_s21 + $0x16c] ss:$12 sps:$4 sm:$0xff]  }
  0x1c   : > { %1630 = vmatpush3.bf16.msra.mxu0 %v1429_v43  ;;  %1801 = vmatpush3.bf16.msra.mxu1 %v1429_v43  ;;  %v1846_v43 = vld [vmem:[%s2143_s21 + $0x48] ss:$12 sps:$4 sm:$0xff]  }
  0x1d   : > { %1631 = vmatprep.subr.bf16.mxu0 %v1438_v44  ;;  %1794 = vmatprep.subr.bf16.mxu1 %v1438_v44  ;;  %v1847_v44 = vld [vmem:[%s2143_s21 + $0x168] ss:$12 sps:$4 sm:$0xff]  }
  0x20   : > { %1632 = vmatpush3.bf16.msra.mxu0 %v1430_v47  ;;  %1802 = vmatpush3.bf16.msra.mxu1 %v1430_v47  ;;  %v1851_v47 = vld [vmem:[%s2143_s21 + $0x60] ss:$12 sps:$4 sm:$0xff]  }
  0x21   : > { %1633 = vmatprep.subr.bf16.mxu0 %v1439_v48  ;;  %1795 = vmatprep.subr.bf16.mxu1 %v1439_v48  ;;  %v1852_v48 = vld [vmem:[%s2143_s21 + $0x20] ss:$12 sps:$4 sm:$0xff]  }
  0x24   : > { %1634 = vmatpush3.bf16.msra.mxu0 %v1431_v49  ;;  %1803 = vmatpush3.bf16.msra.mxu1 %v1431_v49  ;;  %v1853_v49 = vld [vmem:[%s2143_s21 + $0x7c] ss:$12 sps:$4 sm:$0xff]  }
  0x25   : > { %1635 = vmatprep.subr.bf16.mxu0 %v1440_v50  ;;  %1796 = vmatprep.subr.bf16.mxu1 %v1440_v50  ;;  %v1855_v50 = vld [vmem:[%s2143_s21 + $0x38] ss:$12 sps:$4 sm:$0xff]  }
  0x28   : > { %1636 = vmatpush3.bf16.msra.mxu0 %v1432_v51  ;;  %1804 = vmatpush3.bf16.msra.mxu1 %v1432_v51  ;;  %v1856_v51 = vld [vmem:[%s2143_s21 + $0x78] ss:$12 sps:$4 sm:$0xff]  }
  0x29   : > { %1637 = vmatprep.subr.bf16.mxu0 %v1441_v52  ;;  %1797 = vmatprep.subr.bf16.mxu1 %v1441_v52  ;;  %v1857_v52 = vld [vmem:[%s2143_s21 + $0x50] ss:$12 sps:$4 sm:$0xff]  }
  0x2c   : > { %1638 = vmatpush3.bf16.msra.mxu0 %v1433_v53  ;;  %1805 = vmatpush3.bf16.msra.mxu1 %v1433_v53  ;;  %v1858_v53 = vld [vmem:[%s2143_s21 + $0x94] ss:$12 sps:$4 sm:$0xff]  }
  0x2d   : > { %1639 = vmatprep.subr.bf16.mxu0 %v1442_v54  ;;  %1798 = vmatprep.subr.bf16.mxu1 %v1442_v54  ;;  %v1860_v54 = vld [vmem:[%s2143_s21 + $0x68] ss:$12 sps:$4 sm:$0xff]  }
  0x30   : > { %1640 = vmatpush3.bf16.msra.mxu0 %v1434_v55  ;;  %1806 = vmatpush3.bf16.msra.mxu1 %v1434_v55  ;;  %v1861_v55 = vld [vmem:[%s2143_s21 + $0x90] ss:$12 sps:$4 sm:$0xff]  }
  0x31   : > { %1755 = vmatprep.subr.bf16.mxu1 %v1443_v56 }
  0x33   : > { %572 = vmatmul.mubr.bf16.vlgmr.msra.gmra.mrb[0].mxu0 %v1824_v57  ;;  %668 = vmatmul.mubr.bf16.vlgmr.msra.gmra.mrb[0].mxu1 %v1827_v58  ;;  %v1863_v57 = vld [vmem:[%s2143_s21 + $0xac] ss:$12 sps:$4 sm:$0xff]  }
  0x34   : > { %579 = vmatprep.mubr.bf16.mxu0 %v1830_v59  ;;  %675 = vmatprep.mubr.bf16.mxu1 %v1832_v60  ;;  %v1865_v58 = vld [vmem:[%s2143_s21 + $0x98] ss:$12 sps:$4 sm:$0xff]   ;;  %v1866_v59 = vld [vmem:[%s2143_s21 + $0xa8] ss:$12 sps:$4 sm:$0xff]   ;;  %v1867_v60 = vld [vmem:[%s2143_s21 + $0xb0] ss:$12 sps:$4 sm:$0xff]  }
  0x35   : > { %1756 = vmatpush3.bf16.msra.mxu1 %v1443_v56  ;;  %v1862_v56 = vld [vmem:[%s2143_s21 + $0x80] ss:$12 sps:$4 sm:$0xff]  }
  0x36   : > { %1757 = vmatprep.subr.bf16.mxu1 %v1444_v61 }
  0x39   : > { %1758 = vmatpush3.bf16.msra.mxu1 %v1444_v61  ;;  %v1868_v61 = vld [vmem:[%s2143_s21 + $0xc4] ss:$12 sps:$4 sm:$0xff]  }
  0x3b   : > { %580 = vmatmul.mubr.bf16.gmra.mrb[4].mxu0 %v1834_v62  ;;  %676 = vmatmul.mubr.bf16.gmra.mrb[4].mxu1 %v1835_v63  ;;  %v1870_v62 = vld [vmem:[%s2143_s21 + $0xc8] ss:$12 sps:$4 sm:$0xff]   ;;  %v1871_v63 = vld [vmem:[%s2143_s21 + $0xc0] ss:$12 sps:$4 sm:$0xff]  }
  0x3c   : > { %587 = vmatprep.mubr.bf16.mxu0 %v1836_v3  ;;  %683 = vmatprep.mubr.bf16.mxu1 %v1838_v38  ;;  %v1872_v3 = vld [vmem:[%s2143_s21 + $0xe0] ss:$12 sps:$4 sm:$0xff]   ;;  %v1873_v38 = vld [vmem:[%s2143_s21 + $0xdc] ss:$12 sps:$4 sm:$0xff]  }
  0x43   : > { %588 = vmatmul.mubr.bf16.gmra.mrb[8].mxu0 %v1840_v39  ;;  %684 = vmatmul.mubr.bf16.gmra.mrb[8].mxu1 %v1841_v40  ;;  %v1875_v39 = vld [vmem:[%s2143_s21 + $0xf8] ss:$12 sps:$4 sm:$0xff]  }
  0x44   : > { %595 = vmatprep.mubr.bf16.mxu0 %v1842_v41  ;;  %691 = vmatprep.mubr.bf16.mxu1 %v1844_v42  ;;  %v1876_v40 = vld [vmem:[%s2143_s21 + $0xd8] ss:$12 sps:$4 sm:$0xff]   ;;  %v1877_v41 = vld [vmem:[%s2143_s21 + $0x110] ss:$12 sps:$4 sm:$0xff]   ;;  %v1878_v42 = vld [vmem:[%s2143_s21 + $0xf4] ss:$12 sps:$4 sm:$0xff]  }
  0x4b   : > { %596 = vmatmul.mubr.bf16.gmra.mrb[12].mxu0 %v1846_v43  ;;  %692 = vmatmul.mubr.bf16.gmra.mrb[12].mxu1 %v1847_v44  ;;  %v1880_v43 = vld [vmem:[%s2143_s21 + $0x128] ss:$12 sps:$4 sm:$0xff]   ;;  %v1881_v44 = vld [vmem:[%s2143_s21 + $0xf0] ss:$12 sps:$4 sm:$0xff]  }
  0x4c   : > { %603 = vmatprep.mubr.bf16.mxu0 %v1848_v45  ;;  %1759 = vmatprep.mubr.msk.bf16.mxu1 %vm490_vm0, %v1850_v46  ;;  %v1882_v45 = vld [vmem:[%s2143_s21 + $0x140] ss:$12 sps:$4 sm:$0xff]  }
  0x4d   : > { %v1883_v46 = vld [vmem:[%s2143_s21 + $0x10c] ss:$12 sps:$4 sm:$0xff]  }
  0x53   : > { %604 = vmatmul.mubr.bf16.gmra.mrb[16].mxu0 %v1851_v47  ;;  %1760 = vmatmul.mubr.msk.bf16.vlgmr.msra.gmra.mrb[16].mxu1 %vm490_vm0, %v1852_v48  ;;  %v1885_v47 = vld [vmem:[%s2143_s21 + $0x158] ss:$12 sps:$4 sm:$0xff]   ;;  %v1886_v48 = vld [vmem:[%s2143_s21 + $0x108] ss:$12 sps:$4 sm:$0xff]  }
  0x54   : > { %611 = vmatprep.mubr.bf16.mxu0 %v1853_v49  ;;  %1763 = vmatprep.mubr.msk.bf16.mxu1 %vm490_vm0, %v1855_v50  ;;  %v1887_v49 = vld [vmem:[%s2143_s21 + $0x170] ss:$12 sps:$4 sm:$0xff]  }
  0x5b   : > { %612 = vmatmul.mubr.bf16.gmra.mrb[20].mxu0 %v1856_v51  ;;  %1764 = vmatmul.mubr.msk.bf16.gmra.mrb[20].mxu1 %vm490_vm0, %v1857_v52 }
  0x5c   : > { %619 = vmatprep.mubr.bf16.mxu0 %v1858_v53  ;;  %1767 = vmatprep.mubr.msk.bf16.mxu1 %vm490_vm0, %v1860_v54 }
  0x63   : > { %620 = vmatmul.mubr.bf16.gmra.mrb[24].mxu0 %v1861_v55  ;;  %1768 = vmatmul.mubr.msk.bf16.gmra.mrb[24].mxu1 %vm490_vm0, %v1862_v56 }
  0x64   : > { %627 = vmatprep.mubr.bf16.mxu0 %v1863_v57  ;;  %1771 = vmatprep.mubr.msk.bf16.mxu1 %vm490_vm0, %v1865_v58 }
  0x6b   : > { %628 = vmatmul.mubr.bf16.gmra.mrb[28].mxu0 %v1866_v59  ;;  %1772 = vmatmul.mubr.msk.bf16.gmra.mrb[28].mxu1 %vm490_vm0, %v1867_v60 }
  0x6c   : > { %635 = vmatprep.mubr.bf16.mxu0 %v1868_v61  ;;  %1775 = vmatprep.mubr.msk.bf16.mxu1 %vm490_vm0, %v1870_v62 }
  0x73   : > { %636 = vmatmul.mubr.bf16.gmra.mrb[32].mxu0 %v1871_v63  ;;  %1776 = vmatmul.mubr.msk.bf16.gmra.mrb[32].mxu1 %vm490_vm0, %v1872_v3 }
  0x74   : > { %643 = vmatprep.mubr.bf16.mxu0 %v1873_v38  ;;  %1779 = vmatprep.mubr.msk.bf16.mxu1 %vm490_vm0, %v1875_v39 }
  0x7b   : > { %644 = vmatmul.mubr.bf16.gmra.mrb[36].mxu0 %v1876_v40  ;;  %1780 = vmatmul.mubr.msk.bf16.gmra.mrb[36].mxu1 %vm490_vm0, %v1877_v41 }
  0x7c   : > { %651 = vmatprep.mubr.bf16.mxu0 %v1878_v42  ;;  %1783 = vmatprep.mubr.msk.bf16.mxu1 %vm490_vm0, %v1880_v43 }
  0x83   : > { %652 = vmatmul.mubr.bf16.gmra.mrb[40].mxu0 %v1881_v44  ;;  %1784 = vmatmul.mubr.msk.bf16.gmra.mrb[40].mxu1 %vm490_vm0, %v1882_v45 }
  0x84   : > { %659 = vmatprep.mubr.bf16.mxu0 %v1883_v46  ;;  %1787 = vmatprep.mubr.msk.bf16.mxu1 %vm490_vm0, %v1885_v47 }
  0x8b   : > { %660 = vmatmul.mubr.bf16.gmra.mrb[44].mxu0 %v1886_v48  ;;  %1788 = vmatmul.mubr.msk.bf16.gmra.mrb[44].mxu1 %vm490_vm0, %v1887_v49 }
 0x106   : > { %v1641_v50 = vpop.f32.mrb[0].mxu0  ;;  %v1713_v51 = vpop.f32.mrb[0].mxu1 }
 0x107   : > { %v1642_v52 = vpop.f32.mrb[1].mxu0  ;;  %v1714_v53 = vpop.f32.mrb[1].mxu1 }
 0x108   : > { %v1643_v54 = vadd.f32 %v1642_v52, %v1641_v50  ;;  %v1644_v55 = vpop.f32.mrb[2].mxu0  ;;  %v2235_v56 = vadd.f32 %v1714_v53, %v1713_v51  ;;  %v1716_v57 = vpop.f32.mrb[2].mxu1 }
 0x109   : > { %v1645_v58 = vpop.f32.mrb[3].mxu0  ;;  %v1717_v59 = vpop.f32.mrb[3].mxu1 }
 0x10a   : > { %v1646_v60 = vadd.f32 %v1645_v58, %v1644_v55  ;;  %v2237_v61 = vadd.f32 %v1717_v59, %v1716_v57 }
 0x10e   : > { %v1647_v62 = vpop.f32.mrb[4].mxu0  ;;  %v1719_v63 = vpop.f32.mrb[4].mxu1 }
 0x10f   : > { %v1648_v3 = vpop.f32.mrb[5].mxu0  ;;  %v1720_v38 = vpop.f32.mrb[5].mxu1 }
 0x110   : > { %v1649_v39 = vadd.f32 %v1648_v3, %v1647_v62  ;;  %v1650_v40 = vpop.f32.mrb[6].mxu0  ;;  %v2239_v41 = vadd.f32 %v1720_v38, %v1719_v63  ;;  %v1722_v42 = vpop.f32.mrb[6].mxu1 }
 0x111   : > { %v1651_v43 = vpop.f32.mrb[7].mxu0  ;;  %v1723_v44 = vpop.f32.mrb[7].mxu1 }
 0x112   : > { %v1652_v45 = vadd.f32 %v1651_v43, %v1650_v40  ;;  %v2241_v46 = vadd.f32 %v1723_v44, %v1722_v42 }
 0x114   : > { %v585_v1 = vadd.f32 %v1652_v45, %v2120_v37 }
 0x116   : > { %v1653_v47 = vpop.f32.mrb[8].mxu0  ;;  %v1725_v48 = vpop.f32.mrb[8].mxu1 }
 0x117   : > { %v1654_v49 = vpop.f32.mrb[9].mxu0  ;;  %v1726_v50 = vpop.f32.mrb[9].mxu1 }
 0x118   : > { %v1655_v51 = vadd.f32 %v1654_v49, %v1653_v47  ;;  %v1656_v52 = vpop.f32.mrb[10].mxu0  ;;  %v2243_v53 = vadd.f32 %v1726_v50, %v1725_v48  ;;  %v1728_v55 = vpop.f32.mrb[10].mxu1 }
 0x119   : > { %v1657_v57 = vpop.f32.mrb[11].mxu0  ;;  %v1729_v58 = vpop.f32.mrb[11].mxu1 }
 0x11a   : > { %v1658_v59 = vadd.f32 %v1657_v57, %v1656_v52  ;;  %v2245_v62 = vadd.f32 %v1729_v58, %v1728_v55  ;;  %v582_v52 = vadd.f32 %v1649_v39, %v2120_v37  ;;  %v574_v55 = vadd.f32 %v1643_v54, %v2120_v37 }
 0x11e   : > { %v1659_v63 = vpop.f32.mrb[12].mxu0  ;;  %v1731_v3 = vpop.f32.mrb[12].mxu1 }
 0x11f   : > { %v1660_v38 = vpop.f32.mrb[13].mxu0  ;;  %v1732_v40 = vpop.f32.mrb[13].mxu1 }
 0x120   : > { %v1661_v42 = vadd.f32 %v1660_v38, %v1659_v63  ;;  %v1662_v43 = vpop.f32.mrb[14].mxu0  ;;  %v2247_v44 = vadd.f32 %v1732_v40, %v1731_v3  ;;  %v1734_v0 = vpop.f32.mrb[14].mxu1  ;;  %v577_v40 = vadd.f32 %v1646_v60, %v2120_v37  ;;  %v590_v60 = vadd.f32 %v1655_v51, %v2120_v37 }
 0x121   : > { %v1663_v47 = vpop.f32.mrb[15].mxu0  ;;  %v1735_v49 = vpop.f32.mrb[15].mxu1  ;;  %v593_v51 = vadd.f32 %v1658_v59, %v2120_v37 }
 0x122   : > { %v1664_v48 = vadd.f32 %v1663_v47, %v1662_v43  ;;  %v2249_v50 = vadd.f32 %v1735_v49, %v1734_v0 }
 0x126   : > { %v1665_v57 = vpop.f32.mrb[16].mxu0  ;;  %v1761_v58 = vpop.f32.mrb[16].mxu1 }
 0x127   : > { %v743_v63 = vadd.f32 %v1761_v58, %v582_v52  ;;  %v1666_v38 = vpop.f32.mrb[17].mxu0  ;;  %v734_v3 = vpop.f32.mrb[17].mxu1  ;;  %v598_v52 = vadd.f32 %v1661_v42, %v2120_v37  ;;  %v601_v58 = vadd.f32 %v1664_v48, %v2120_v37 }
 0x128   : > { %v1667_v2 = vadd.f32 %v1666_v38, %v1665_v57  ;;  %v735_v43 = vadd.f32 %v734_v3, %v574_v55  ;;  %v1668_v0 = vpop.f32.mrb[18].mxu0  ;;  %v1762_v47 = vpop.f32.mrb[18].mxu1 }
 0x129   : > { %v746_v49 = vadd.f32 %v1762_v47, %v585_v1  ;;  %v1669_v4 = vpop.f32.mrb[19].mxu0  ;;  %v737_v5 = vpop.f32.mrb[19].mxu1  ;;  %v940_v55 = vmul.f32 %v743_v63, %v743_v63 }
 0x12a   : > { %v1670_v39 = vadd.f32 %v1669_v4, %v1668_v0  ;;  %v738_v6 = vadd.f32 %v737_v5, %v577_v40  ;;  %v938_v7 = vmul.f32 %v735_v43, %v735_v43 }
 0x12b   : > { %v862_v54 = vpack.c.bf16 %v746_v49, %v743_v63  ;;  %v941_v38 = vmul.f32 %v746_v49, %v746_v49 }
 0x12c   : > { %v861_v8 = vpack.c.bf16 %v738_v6, %v735_v43  ;;  %v898_v9 = vadd.f32 %v738_v6, %v735_v43  ;;  %v939_v45 = vmul.f32 %v738_v6, %v738_v6 }
 0x12d   : > { %882 = vst [vmem:[%s2258_s24 + $0x8] sm:$0xff] %v862_v54 }
 0x12e   : > { %881 = vst [vmem:[%s2258_s24] sm:$0xff] %v861_v8  ;;  %v899_v1 = vadd.f32 %v898_v9, %v743_v63  ;;  %v970_v57 = vadd.f32 %v939_v45, %v938_v7  ;;  %v1671_v4 = vpop.f32.mrb[20].mxu0  ;;  %v1765_v5 = vpop.f32.mrb[20].mxu1 }
 0x12f   : > { %v759_v3 = vadd.f32 %v1765_v5, %v598_v52  ;;  %v1672_v6 = vpop.f32.mrb[21].mxu0  ;;  %v750_v40 = vpop.f32.mrb[21].mxu1 }
 0x130   : > { %v971_v42 = vadd.f32 %v970_v57, %v940_v55  ;;  %v1673_v43 = vadd.f32 %v1672_v6, %v1671_v4  ;;  %v751_v0 = vadd.f32 %v750_v40, %v590_v60  ;;  %v900_v47 = vadd.f32 %v899_v1, %v746_v49  ;;  %v1674_v54 = vpop.f32.mrb[22].mxu0  ;;  %v1766_v10 = vpop.f32.mrb[22].mxu1 }
 0x131   : > { %v762_v8 = vadd.f32 %v1766_v10, %v601_v58  ;;  %v1675_v9 = vpop.f32.mrb[23].mxu0  ;;  %v753_v7 = vpop.f32.mrb[23].mxu1  ;;  %v606_v57 = vadd.f32 %v1667_v2, %v2120_v37  ;;  %v944_v59 = vmul.f32 %v759_v3, %v759_v3 }
 0x132   : > { %v901_v63 = vadd.f32 %v900_v47, %v751_v0  ;;  %v942_v45 = vmul.f32 %v751_v0, %v751_v0  ;;  %v972_v48 = vadd.f32 %v971_v42, %v941_v38  ;;  %v1676_v52 = vadd.f32 %v1675_v9, %v1674_v54 }
 0x133   : > { %v864_v11 = vpack.c.bf16 %v762_v8, %v759_v3  ;;  %v754_v5 = vadd.f32 %v753_v7, %v593_v51  ;;  %v614_v55 = vadd.f32 %v1673_v43, %v2120_v37  ;;  %v609_v54 = vadd.f32 %v1670_v39, %v2120_v37 }
 0x134   : > { %v973_v12 = vadd.f32 %v972_v48, %v942_v45  ;;  %v617_v58 = vadd.f32 %v1676_v52, %v2120_v37  ;;  %v945_v9 = vmul.f32 %v762_v8, %v762_v8 }
 0x135   : > { %884 = vst [vmem:[%s2258_s24 + $0x18] sm:$0xff] %v864_v11  ;;  %v863_v60 = vpack.c.bf16 %v754_v5, %v751_v0  ;;  %v902_v49 = vadd.f32 %v901_v63, %v754_v5  ;;  %v943_v1 = vmul.f32 %v754_v5, %v754_v5 }
 0x136   : > { %v1677_v10 = vpop.f32.mrb[24].mxu0  ;;  %v1769_v4 = vpop.f32.mrb[24].mxu1 }
 0x137   : > { %883 = vst [vmem:[%s2258_s24 + $0x10] sm:$0xff] %v863_v60  ;;  %v903_v6 = vadd.f32 %v902_v49, %v759_v3  ;;  %v974_v38 = vadd.f32 %v973_v12, %v943_v1  ;;  %v775_v40 = vadd.f32 %v1769_v4, %v614_v55  ;;  %v1678_v42 = vpop.f32.mrb[25].mxu0  ;;  %v766_v47 = vpop.f32.mrb[25].mxu1 }
 0x138   : > { %v1679_v43 = vadd.f32 %v1678_v42, %v1677_v10  ;;  %v767_v11 = vadd.f32 %v766_v47, %v606_v57  ;;  %v1680_v0 = vpop.f32.mrb[26].mxu0  ;;  %v1770_v51 = vpop.f32.mrb[26].mxu1 }
 0x139   : > { %v975_v2 = vadd.f32 %v974_v38, %v944_v59  ;;  %v904_v7 = vadd.f32 %v903_v6, %v762_v8  ;;  %v778_v63 = vadd.f32 %v1770_v51, %v617_v58  ;;  %v1681_v45 = vpop.f32.mrb[27].mxu0  ;;  %v769_v48 = vpop.f32.mrb[27].mxu1  ;;  %v948_v4 = vmul.f32 %v775_v40, %v775_v40 }
 0x13a   : > { %v946_v52 = vmul.f32 %v767_v11, %v767_v11  ;;  %v1682_v3 = vadd.f32 %v1681_v45, %v1680_v0  ;;  %v770_v12 = vadd.f32 %v769_v48, %v609_v54  ;;  %v622_v10 = vadd.f32 %v1679_v43, %v2120_v37 }
 0x13b   : > { %v905_v5 = vadd.f32 %v904_v7, %v767_v11  ;;  %v976_v55 = vadd.f32 %v975_v2, %v945_v9  ;;  %v866_v60 = vpack.c.bf16 %v778_v63, %v775_v40  ;;  %v949_v9 = vmul.f32 %v778_v63, %v778_v63 }
 0x13c   : > { %v865_v49 = vpack.c.bf16 %v770_v12, %v767_v11  ;;  %v947_v39 = vmul.f32 %v770_v12, %v770_v12  ;;  %v625_v47 = vadd.f32 %v1682_v3, %v2120_v37 }
 0x13d   : > { %v977_v1 = vadd.f32 %v976_v55, %v946_v52  ;;  %886 = vst [vmem:[%s2258_s24 + $0x28] sm:$0xff] %v866_v60  ;;  %v906_v57 = vadd.f32 %v905_v5, %v770_v12 }
 0x13e   : > { %885 = vst [vmem:[%s2258_s24 + $0x20] sm:$0xff] %v865_v49  ;;  %v1683_v59 = vpop.f32.mrb[28].mxu0  ;;  %v1773_v8 = vpop.f32.mrb[28].mxu1 }
 0x13f   : > { %v907_v58 = vadd.f32 %v906_v57, %v775_v40  ;;  %v978_v6 = vadd.f32 %v977_v1, %v947_v39  ;;  %v1684_v38 = vpop.f32.mrb[29].mxu0  ;;  %v782_v42 = vpop.f32.mrb[29].mxu1 }
 0x140   : > { %v1685_v54 = vadd.f32 %v1684_v38, %v1683_v59  ;;  %v783_v0 = vadd.f32 %v782_v42, %v622_v10  ;;  %v1686_v51 = vpop.f32.mrb[30].mxu0  ;;  %v1774_v11 = vpop.f32.mrb[30].mxu1 }
 0x141   : > { %v979_v2 = vadd.f32 %v978_v6, %v948_v4  ;;  %v908_v7 = vadd.f32 %v907_v58, %v778_v63  ;;  %v1687_v45 = vpop.f32.mrb[31].mxu0  ;;  %v785_v43 = vpop.f32.mrb[31].mxu1 }
 0x142   : > { %v630_v48 = vadd.f32 %v1685_v54, %v2120_v37  ;;  %v950_v52 = vmul.f32 %v783_v0, %v783_v0  ;;  %v1688_v12 = vadd.f32 %v1687_v45, %v1686_v51  ;;  %v786_v40 = vadd.f32 %v785_v43, %v625_v47 }
 0x143   : > { %v909_v5 = vadd.f32 %v908_v7, %v783_v0  ;;  %v980_v55 = vadd.f32 %v979_v2, %v949_v9 }
 0x144   : > { %v791_v60 = vadd.f32 %v1773_v8, %v630_v48  ;;  %v633_v3 = vadd.f32 %v1688_v12, %v2120_v37  ;;  %v867_v49 = vpack.c.bf16 %v786_v40, %v783_v0  ;;  %v951_v39 = vmul.f32 %v786_v40, %v786_v40 }
 0x145   : > { %v981_v1 = vadd.f32 %v980_v55, %v950_v52  ;;  %v910_v57 = vadd.f32 %v909_v5, %v786_v40 }
 0x146   : > { %v952_v10 = vmul.f32 %v791_v60, %v791_v60  ;;  %v794_v59 = vadd.f32 %v1774_v11, %v633_v3  ;;  %887 = vst [vmem:[%s2258_s24 + $0x30] sm:$0xff] %v867_v49  ;;  %v1689_v63 = vpop.f32.mrb[32].mxu0  ;;  %v1777_v4 = vpop.f32.mrb[32].mxu1 }
 0x147   : > { %v911_v58 = vadd.f32 %v910_v57, %v791_v60  ;;  %v982_v6 = vadd.f32 %v981_v1, %v951_v39  ;;  %v1690_v38 = vpop.f32.mrb[33].mxu0  ;;  %v798_v42 = vpop.f32.mrb[33].mxu1 }
 0x148   : > { %v868_v47 = vpack.c.bf16 %v794_v59, %v791_v60  ;;  %v953_v54 = vmul.f32 %v794_v59, %v794_v59  ;;  %v1691_v51 = vadd.f32 %v1690_v38, %v1689_v63  ;;  %v1692_v8 = vpop.f32.mrb[34].mxu0  ;;  %v1778_v9 = vpop.f32.mrb[34].mxu1 }
 0x149   : > { %v983_v2 = vadd.f32 %v982_v6, %v952_v10  ;;  %v1693_v0 = vpop.f32.mrb[35].mxu0  ;;  %v912_v7 = vadd.f32 %v911_v58, %v794_v59  ;;  %v801_v45 = vpop.f32.mrb[35].mxu1 }
 0x14a   : > { %888 = vst [vmem:[%s2258_s24 + $0x38] sm:$0xff] %v868_v47  ;;  %v638_v11 = vadd.f32 %v1691_v51, %v2120_v37  ;;  %v1694_v43 = vadd.f32 %v1693_v0, %v1692_v8 }
 0x14b   : > { %v984_v48 = vadd.f32 %v983_v2, %v953_v54  ;;  %v678_v2 = vadd.f32 %v2239_v41, %v2120_v37 }
 0x14c   : > { %v641_v52 = vadd.f32 %v1694_v43, %v2120_v37  ;;  %v799_v12 = vadd.f32 %v798_v42, %v638_v11 }
 0x14e   : > { %v913_v40 = vadd.f32 %v912_v7, %v799_v12  ;;  %v954_v5 = vmul.f32 %v799_v12, %v799_v12  ;;  %v802_v55 = vadd.f32 %v801_v45, %v641_v52  ;;  %v1695_v60 = vpop.f32.mrb[36].mxu0  ;;  %v2281_v3 = vpop.f32.mrb[36].mxu1  ;;  %v670_v7 = vadd.f32 %v2235_v56, %v2120_v37 }
 0x14f   : > { %v1696_v49 = vpop.f32.mrb[37].mxu0  ;;  %v814_v39 = vpop.f32.mrb[37].mxu1  ;;  %v673_v45 = vadd.f32 %v2237_v61, %v2120_v37  ;;  %v681_v52 = vadd.f32 %v2241_v46, %v2120_v37 }
 0x150   : > { %v985_v1 = vadd.f32 %v984_v48, %v954_v5  ;;  %v869_v57 = vpack.c.bf16 %v802_v55, %v799_v12  ;;  %v914_v10 = vadd.f32 %v913_v40, %v802_v55  ;;  %v955_v59 = vmul.f32 %v802_v55, %v802_v55  ;;  %v1698_v63 = vpop.f32.mrb[38].mxu0  ;;  %v2283_v58 = vpop.f32.mrb[38].mxu1 }
 0x151   : > { %v1697_v6 = vadd.f32 %v1696_v49, %v1695_v60  ;;  %v1699_v38 = vpop.f32.mrb[39].mxu0  ;;  %v817_v47 = vpop.f32.mrb[39].mxu1 }
 0x152   : > { %889 = vst [vmem:[%s2258_s24 + $0x40] sm:$0xff] %v869_v57  ;;  %v986_v42 = vadd.f32 %v985_v1, %v955_v59  ;;  %v1700_v54 = vadd.f32 %v1699_v38, %v1698_v63 }
 0x153   : > { %v646_v51 = vadd.f32 %v1697_v6, %v2120_v37 }
 0x154   : > { %v649_v8 = vadd.f32 %v1700_v54, %v2120_v37 }
 0x155   : > { %v807_v0 = vadd.f32 %v1777_v4, %v646_v51 }
 0x156   : > { %v810_v11 = vadd.f32 %v1778_v9, %v649_v8  ;;  %v1701_v43 = vpop.f32.mrb[40].mxu0  ;;  %v1785_v48 = vpop.f32.mrb[40].mxu1 }
 0x157   : > { %v915_v12 = vadd.f32 %v914_v10, %v807_v0  ;;  %v956_v40 = vmul.f32 %v807_v0, %v807_v0  ;;  %v2296_v5 = vadd.f32 %v1785_v48, %v678_v2  ;;  %v1702_v55 = vpop.f32.mrb[41].mxu0  ;;  %v830_v41 = vpop.f32.mrb[41].mxu1 }
 0x158   : > { %v870_v4 = vpack.c.bf16 %v810_v11, %v807_v0  ;;  %v957_v60 = vmul.f32 %v810_v11, %v810_v11  ;;  %v1703_v49 = vadd.f32 %v1702_v55, %v1701_v43  ;;  %v831_v56 = vadd.f32 %v830_v41, %v670_v7  ;;  %v1704_v1 = vpop.f32.mrb[42].mxu0  ;;  %v1786_v57 = vpop.f32.mrb[42].mxu1 }
 0x159   : > { %v987_v61 = vadd.f32 %v986_v42, %v956_v40  ;;  %v916_v9 = vadd.f32 %v915_v12, %v810_v11  ;;  %v2298_v59 = vadd.f32 %v1786_v57, %v681_v52  ;;  %v1705_v63 = vpop.f32.mrb[43].mxu0  ;;  %v833_v46 = vpop.f32.mrb[43].mxu1  ;;  %v694_v42 = vadd.f32 %v2247_v44, %v2120_v37 }
 0x15a   : > { %890 = vst [vmem:[%s2258_s24 + $0x48] sm:$0xff] %v870_v4  ;;  %v654_v10 = vadd.f32 %v1703_v49, %v2120_v37  ;;  %v1706_v6 = vadd.f32 %v1705_v63, %v1704_v1  ;;  %v834_v38 = vadd.f32 %v833_v46, %v673_v45  ;;  %v686_v45 = vadd.f32 %v2243_v53, %v2120_v37 }
 0x15b   : > { %v988_v54 = vadd.f32 %v987_v61, %v957_v60  ;;  %v874_v51 = vpack.c.bf16 %v2298_v59, %v2296_v5  ;;  %v689_v12 = vadd.f32 %v2245_v62, %v2120_v37 }
 0x15c   : > { %v815_v8 = vadd.f32 %v814_v39, %v654_v10  ;;  %v657_v2 = vadd.f32 %v1706_v6, %v2120_v37  ;;  %v873_v0 = vpack.c.bf16 %v834_v38, %v831_v56  ;;  %v697_v39 = vadd.f32 %v2249_v50, %v2120_v37 }
 0x15d   : > { %894 = vst [vmem:[%s2258_s24 + $0x68] sm:$0xff] %v874_v51 }
 0x15e   : > { %v917_v7 = vadd.f32 %v916_v9, %v815_v8  ;;  %v958_v11 = vmul.f32 %v815_v8, %v815_v8  ;;  %v818_v43 = vadd.f32 %v817_v47, %v657_v2  ;;  %893 = vst [vmem:[%s2258_s24 + $0x60] sm:$0xff] %v873_v0  ;;  %v1707_v48 = vpop.f32.mrb[44].mxu0  ;;  %v1789_v52 = vpop.f32.mrb[44].mxu1 }
 0x15f   : > { %v855_v40 = vadd.f32 %v1789_v52, %v694_v42  ;;  %v1708_v55 = vpop.f32.mrb[45].mxu0  ;;  %v846_v44 = vpop.f32.mrb[45].mxu1  ;;  %v962_v52 = vmul.f32 %v831_v56, %v831_v56 }
 0x160   : > { %v989_v41 = vadd.f32 %v988_v54, %v958_v11  ;;  %v871_v4 = vpack.c.bf16 %v818_v43, %v815_v8  ;;  %v918_v60 = vadd.f32 %v917_v7, %v818_v43  ;;  %v959_v47 = vmul.f32 %v818_v43, %v818_v43  ;;  %v1710_v49 = vpop.f32.mrb[46].mxu0  ;;  %v1790_v1 = vpop.f32.mrb[46].mxu1 }
 0x161   : > { %v1709_v57 = vadd.f32 %v1708_v55, %v1707_v48  ;;  %v847_v53 = vadd.f32 %v846_v44, %v686_v45  ;;  %v858_v61 = vadd.f32 %v1790_v1, %v697_v39  ;;  %v1711_v9 = vpop.f32.mrb[47].mxu0  ;;  %v849_v62 = vpop.f32.mrb[47].mxu1  ;;  %v963_v39 = vmul.f32 %v834_v38, %v834_v38 }
 0x162   : > { %891 = vst [vmem:[%s2258_s24 + $0x50] sm:$0xff] %v871_v4  ;;  %v990_v63 = vadd.f32 %v989_v41, %v959_v47  ;;  %v1712_v46 = vadd.f32 %v1711_v9, %v1710_v49  ;;  %v850_v50 = vadd.f32 %v849_v62, %v689_v12  ;;  %v965_v4 = vmul.f32 %v2298_v59, %v2298_v59 }
 0x163   : > { %v662_v10 = vadd.f32 %v1709_v57, %v2120_v37  ;;  %v876_v6 = vpack.c.bf16 %v858_v61, %v855_v40  ;;  %v966_v49 = vmul.f32 %v847_v53, %v847_v53 }
 0x164   : > { %v665_v54 = vadd.f32 %v1712_v46, %v2120_v37  ;;  %v875_v51 = vpack.c.bf16 %v850_v50, %v847_v53  ;;  %v967_v9 = vmul.f32 %v850_v50, %v850_v50 }
 0x165   : > { %v823_v8 = vadd.f32 %v2281_v3, %v662_v10  ;;  %896 = vst [vmem:[%s2258_s24 + $0x78] sm:$0xff] %v876_v6  ;;  %v964_v3 = vmul.f32 %v2296_v5, %v2296_v5  ;;  %v969_v10 = vmul.f32 %v858_v61, %v858_v61 }
 0x166   : > { %v826_v2 = vadd.f32 %v2283_v58, %v665_v54  ;;  %895 = vst [vmem:[%s2258_s24 + $0x70] sm:$0xff] %v875_v51 }
 0x167   : > { %v919_v0 = vadd.f32 %v918_v60, %v823_v8  ;;  %v960_v42 = vmul.f32 %v823_v8, %v823_v8 }
 0x168   : > { %v872_v7 = vpack.c.bf16 %v826_v2, %v823_v8  ;;  %v961_v11 = vmul.f32 %v826_v2, %v826_v2 }
 0x169   : > { %v991_v43 = vadd.f32 %v990_v63, %v960_v42  ;;  %v920_v48 = vadd.f32 %v919_v0, %v826_v2 }
 0x16a   : > { %892 = vst [vmem:[%s2258_s24 + $0x58] sm:$0xff] %v872_v7 }
 0x16b   : > { %v921_v45 = vadd.f32 %v920_v48, %v831_v56  ;;  %v992_v12 = vadd.f32 %v991_v43, %v961_v11  ;;  %v897_v43 = vld [vmem:[#allocation2] sm:$0x1] }
 0x16d   : > { %v922_v55 = vadd.f32 %v921_v45, %v834_v38  ;;  %v993_v44 = vadd.f32 %v992_v12, %v962_v52  ;;  %v968_v38 = vmul.f32 %v855_v40, %v855_v40  ;;  %v937_v52 = vld [vmem:[#allocation3] sm:$0x1] }
 0x16f   : > { %v994_v41 = vadd.f32 %v993_v44, %v963_v39  ;;  %v923_v58 = vadd.f32 %v922_v55, %v2296_v5 }
 0x171   : > { %v924_v60 = vadd.f32 %v923_v58, %v2298_v59  ;;  %v995_v47 = vadd.f32 %v994_v41, %v964_v3 }
 0x173   : > { %v925_v1 = vadd.f32 %v924_v60, %v847_v53  ;;  %v996_v57 = vadd.f32 %v995_v47, %v965_v4  ;;  %v1016_v60 = vld [vmem:[%s2472_s3] sm:$0x1] (%p62_p0) }
 0x175   : > { %v926_v56 = vadd.f32 %v925_v1, %v850_v50  ;;  %v997_v62 = vadd.f32 %v996_v57, %v966_v49  ;;  %v2340_v1 = vld [vmem:[%s2473_s4] sm:$0x1] (%p62_p0) }
 0x177   : > { %v927_v63 = vadd.f32 %v926_v56, %v855_v40  ;;  %v998_v46 = vadd.f32 %v997_v62, %v967_v9 }
 0x179   : > { %v928_v6 = vadd.f32 %v927_v63, %v858_v61  ;;  %v999_v54 = vadd.f32 %v998_v46, %v968_v38 }
 0x17b   : > { %v929_v51 = vrot.slane %v928_v6, 4  ;;  %v1000_v5 = vadd.f32 %v999_v54, %v969_v10 }
 0x17d   : > { %v930_v8 = vadd.f32 %v929_v51, %v928_v6  ;;  %v1001_v2 = vrot.slane %v1000_v5, 4 }
 0x17f   : > { %v931_v0 = vrot.slane %v930_v8, 2  ;;  %v1002_v42 = vadd.f32 %v1001_v2, %v1000_v5 }
 0x181   : > { %v932_v59 = vadd.f32 %v931_v0, %v930_v8  ;;  %v1003_v7 = vrot.slane %v1002_v42, 2 }
 0x183   : > { %v933_v11 = vrot.slane %v932_v59, 1  ;;  %v1004_v53 = vadd.f32 %v1003_v7, %v1002_v42 }
 0x185   : > { %v934_v48 = vadd.f32 %v933_v11, %v932_v59  ;;  %v1005_v50 = vrot.slane %v1004_v53, 1  ;;  %64 = sbr.rel (!%p62_p0) target bundleno = 17 (0x11), region = 58 }
 0x187   : > { %v935_v45 = vadd.f32 %v934_v48, %v897_v43  ;;  %v1006_v40 = vadd.f32 %v1005_v50, %v1004_v53 }
 0x189   : > { %936 = vst [vmem:[#allocation2] sm:$0x1] %v935_v45  ;;  %v1007_v12 = vadd.f32 %v1006_v40, %v937_v52 }
 0x18b   : > { %1008 = vst [vmem:[#allocation3] sm:$0x1] %v1007_v12 }
 0x190   :  { %v1009_v61 = vld [vmem:[#allocation2] sm:$0x1] }
 0x191   :  { %v1010_v55 = vmul.f32 0.001953125, %v1009_v61 }
 0x192   :  { %v1011_v39 = vld [vmem:[#allocation3] sm:$0x1] }
 0x193   :  { %v1012_v44 = vmul.f32 0.001953125, %v1011_v39  ;;  %v1013_v3 = vmul.f32 %v1010_v55, %v1010_v55 }
 0x195   :  { %v1014_v41 = vsub.f32 %v1012_v44, %v1013_v3 }
 0x197   :  { %v1015_v58 = vmax.f32 %v1014_v41, 0.0 }
 0x199   :  { %v1017_v4 = vadd.f32 1e-05, %v1015_v58 }
 0x19b   :  { %1888 = vrsqrt.f32 %v1017_v4 }
 0x1a5   :  { %v1889_v47 = vpop.eup %1888 }
 0x1a6   :  { %v2335_v49 = vmul.f32 %v1889_v47, %v1016_v60 }
 0x1a8   :  { %v2343_v13 = vmul.f32 %v2335_v49, %v1010_v55 }
 0x1aa   :  { %v1022_v14 = vsub.f32 %v2340_v1, %v2343_v13 }
 0x1ab LB: > { %v1083_v15 = vlaneseq  ;;  %s1462_s3 = sshll.u32 %s1904_s0, 8  ;;  %s1028_s0 = sadd.s32 1, %s1904_s0   ;;  %s1904_s0 = sphi %s2347_s0, %s1028_s0  }
 0x1ac   : > { %s1030_s29 = sshra.s32 %s1462_s3, 4  ;;  %s2367_s6 = sshra.s32 %s1462_s3, 3 }
 0x1ad   : > { %v1084_v16 = vshrl.u32 %v1083_v15, 7  ;;  %s1463_s4 = sshll.u32 %s1030_s29, 3  ;;  %s1496_s7 = sshll.u32 %s2367_s6, 2 }
 0x1ae   : > { %s2353_s30 = scalar_lea.vmem [#allocation4], %s1463_s4  ;;  %s2391_s10 = scalar_lea.vmem %s2474_s5, %s1496_s7 }
 0x1af   : > { %v1085_v17 = vsub.s32 0, %v1084_v16  ;;  %v1034_v18 = vld [vmem:[%s2353_s30] sm:$0xff]  ;;  %v1035_v21 = vld [vmem:[%s2353_s30 + $0x8] sm:$0xff]  ;;  %v1036_v22 = vld [vmem:[%s2353_s30 + $0x10] sm:$0xff]  ;;  %p1025_p1 = scmp.ge.s32.totalorder %s1028_s0, 2  }
 0x1b0   : > { %v1050_v23 = vunpack.c.l.bf16 %v1034_v18  ;;  %v1051_v24 = vunpack.c.h.bf16 %v1034_v18  ;;  %v1052_v25 = vunpack.c.l.bf16 %v1035_v21  ;;  %v1053_v26 = vunpack.c.h.bf16 %v1035_v21  ;;  %v1037_v27 = vld [vmem:[%s2353_s30 + $0x18] sm:$0xff]  ;;  %v1038_v51 = vld [vmem:[%s2353_s30 + $0x20] sm:$0xff]  ;;  %v1039_v42 = vld [vmem:[%s2353_s30 + $0x28] sm:$0xff] }
 0x1b1   : > { %v2357_v19 = vrot.slane %v2335_v49, %v1085_v17  ;;  %v2362_v20 = vrot.slane %v1022_v14, %v1085_v17  ;;  %v1054_v28 = vunpack.c.l.bf16 %v1036_v22  ;;  %v1055_v29 = vunpack.c.h.bf16 %v1036_v22  ;;  %v1040_v43 = vld [vmem:[%s2353_s30 + $0x30] sm:$0xff]  ;;  %v1041_v40 = vld [vmem:[%s2353_s30 + $0x38] sm:$0xff] }
 0x1b2   : > { %v1056_v30 = vunpack.c.l.bf16 %v1037_v27  ;;  %v1057_v31 = vunpack.c.h.bf16 %v1037_v27  ;;  %v1058_v52 = vunpack.c.l.bf16 %v1038_v51  ;;  %v1059_v45 = vunpack.c.h.bf16 %v1038_v51 }
 0x1b3   : > { %v1088_v32 = vmul.f32 %v2357_v19, %v1050_v23  ;;  %v1089_v33 = vmul.f32 %v2357_v19, %v1051_v24  ;;  %v1090_v34 = vmul.f32 %v2357_v19, %v1052_v25  ;;  %v1091_v35 = vmul.f32 %v2357_v19, %v1053_v26  ;;  %v1042_v26 = vld [vmem:[%s2353_s30 + $0x40] sm:$0xff] }
 0x1b4   : > { %v1092_v36 = vmul.f32 %v2357_v19, %v1054_v28  ;;  %v1093_v37 = vmul.f32 %v2357_v19, %v1055_v29  ;;  %v1094_v57 = vmul.f32 %v2357_v19, %v1056_v30  ;;  %v1095_v56 = vmul.f32 %v2357_v19, %v1057_v31 }
 0x1b5   : > { %v1126_v9 = vadd.f32 %v2362_v20, %v1088_v32  ;;  %v1127_v62 = vadd.f32 %v2362_v20, %v1089_v33  ;;  %v1128_v38 = vadd.f32 %v2362_v20, %v1090_v34  ;;  %v1129_v63 = vadd.f32 %v2362_v20, %v1091_v35  ;;  %v1043_v35 = vld [vmem:[%s2353_s30 + $0x48] sm:$0xff] }
 0x1b6   : > { %v1130_v46 = vadd.f32 %v2362_v20, %v1092_v36  ;;  %v1131_v10 = vadd.f32 %v2362_v20, %v1093_v37  ;;  %v1132_v6 = vadd.f32 %v2362_v20, %v1094_v57  ;;  %v1133_v54 = vadd.f32 %v2362_v20, %v1095_v56 }
 0x1b7   : > { %v1158_v5 = vmax.f32 %v1126_v9, 0.0  ;;  %v1159_v8 = vmax.f32 %v1127_v62, 0.0  ;;  %v1160_v2 = vmax.f32 %v1128_v38, 0.0  ;;  %v1161_v0 = vmax.f32 %v1129_v63, 0.0  ;;  %v1044_v9 = vld [vmem:[%s2353_s30 + $0x50] sm:$0xff] }
 0x1b8   : > { %v1162_v59 = vmax.f32 %v1130_v46, 0.0  ;;  %v1163_v7 = vmax.f32 %v1131_v10, 0.0  ;;  %v1164_v11 = vmax.f32 %v1132_v6, 0.0  ;;  %v1165_v53 = vmax.f32 %v1133_v54, 0.0  ;;  %v1045_v10 = vld [vmem:[%s2353_s30 + $0x58] sm:$0xff] }
 0x1b9   : > { %v1533_v48 = vpack.c.bf16 %v1159_v8, %v1158_v5  ;;  %v1538_v50 = vpack.c.bf16 %v1161_v0, %v1160_v2  ;;  %v1060_v39 = vunpack.c.l.bf16 %v1039_v42  ;;  %v1061_v55 = vunpack.c.h.bf16 %v1039_v42 }
 0x1ba   : > { %v1543_v12 = vpack.c.bf16 %v1163_v7, %v1162_v59  ;;  %v1548_v61 = vpack.c.bf16 %v1165_v53, %v1164_v11  ;;  %v1096_v44 = vmul.f32 %v2357_v19, %v1058_v52  ;;  %v1097_v3 = vmul.f32 %v2357_v19, %v1059_v45  ;;  %v1046_v45 = vld [vmem:[%s2353_s30 + $0x60] sm:$0xff] }
 0x1bb   : > { %1534 = vst [vmem:[%s2391_s10] sm:$0xff] %v1533_v48   ;;  %1610 = vst [vmem:[%s2391_s10 + $0x8] sm:$0xff] %v1538_v50   ;;  %v1062_v41 = vunpack.c.l.bf16 %v1040_v43  ;;  %v1063_v58 = vunpack.c.h.bf16 %v1040_v43  ;;  %v1098_v4 = vmul.f32 %v2357_v19, %v1060_v39  ;;  %v1099_v60 = vmul.f32 %v2357_v19, %v1061_v55 }
 0x1bc   : > { %1611 = vst [vmem:[%s2391_s10 + $0x10] sm:$0xff] %v1543_v12   ;;  %1612 = vst [vmem:[%s2391_s10 + $0x18] sm:$0xff] %v1548_v61   ;;  %v1064_v47 = vunpack.c.l.bf16 %v1041_v40  ;;  %v1065_v15 = vunpack.c.h.bf16 %v1041_v40  ;;  %v1134_v16 = vadd.f32 %v2362_v20, %v1096_v44  ;;  %v1135_v17 = vadd.f32 %v2362_v20, %v1097_v3 }
 0x1bd   : > { %v1100_v18 = vmul.f32 %v2357_v19, %v1062_v41  ;;  %v1101_v21 = vmul.f32 %v2357_v19, %v1063_v58  ;;  %v1136_v22 = vadd.f32 %v2362_v20, %v1098_v4  ;;  %v1137_v23 = vadd.f32 %v2362_v20, %v1099_v60 }
 0x1be   : > { %v1102_v24 = vmul.f32 %v2357_v19, %v1064_v47  ;;  %v1103_v25 = vmul.f32 %v2357_v19, %v1065_v15  ;;  %v1166_v27 = vmax.f32 %v1134_v16, 0.0  ;;  %v1167_v28 = vmax.f32 %v1135_v17, 0.0  ;;  %v1047_v15 = vld [vmem:[%s2353_s30 + $0x68] sm:$0xff] }
 0x1bf   : > { %v1138_v29 = vadd.f32 %v2362_v20, %v1100_v18  ;;  %v1139_v30 = vadd.f32 %v2362_v20, %v1101_v21  ;;  %v1168_v31 = vmax.f32 %v1136_v22, 0.0  ;;  %v1169_v32 = vmax.f32 %v1137_v23, 0.0  ;;  %v1048_v22 = vld [vmem:[%s2353_s30 + $0x70] sm:$0xff] }
 0x1c0   : > { %v1140_v33 = vadd.f32 %v2362_v20, %v1102_v24  ;;  %v1141_v34 = vadd.f32 %v2362_v20, %v1103_v25  ;;  %v1553_v36 = vpack.c.bf16 %v1167_v28, %v1166_v27  ;;  %v1066_v56 = vunpack.c.l.bf16 %v1042_v26  ;;  %v1049_v27 = vld [vmem:[%s2353_s30 + $0x78] sm:$0xff] }
 0x1c1   : > { %v1170_v37 = vmax.f32 %v1138_v29, 0.0  ;;  %v1171_v57 = vmax.f32 %v1139_v30, 0.0  ;;  %v1558_v62 = vpack.c.bf16 %v1169_v32, %v1168_v31  ;;  %v1067_v46 = vunpack.c.h.bf16 %v1042_v26 }
 0x1c2   : > { %v1172_v38 = vmax.f32 %v1140_v33, 0.0  ;;  %v1173_v63 = vmax.f32 %v1141_v34, 0.0  ;;  %1613 = vst [vmem:[%s2391_s10 + $0x20] sm:$0xff] %v1553_v36   ;;  %v1104_v54 = vmul.f32 %v2357_v19, %v1066_v56  ;;  %v1068_v51 = vunpack.c.l.bf16 %v1043_v35 }
 0x1c3   : > { %v1563_v6 = vpack.c.bf16 %v1171_v57, %v1170_v37  ;;  %v1069_v5 = vunpack.c.h.bf16 %v1043_v35  ;;  %1614 = vst [vmem:[%s2391_s10 + $0x28] sm:$0xff] %v1558_v62   ;;  %v1105_v2 = vmul.f32 %v2357_v19, %v1067_v46  ;;  %v1070_v0 = vunpack.c.l.bf16 %v1044_v9 }
 0x1c4   : > { %v1568_v8 = vpack.c.bf16 %v1173_v63, %v1172_v38  ;;  %v1071_v42 = vunpack.c.h.bf16 %v1044_v9  ;;  %v1142_v59 = vadd.f32 %v2362_v20, %v1104_v54  ;;  %v1106_v7 = vmul.f32 %v2357_v19, %v1068_v51 }
 0x1c5   : > { %1615 = vst [vmem:[%s2391_s10 + $0x30] sm:$0xff] %v1563_v6   ;;  %v1107_v11 = vmul.f32 %v2357_v19, %v1069_v5  ;;  %v1072_v53 = vunpack.c.l.bf16 %v1045_v10  ;;  %v1143_v43 = vadd.f32 %v2362_v20, %v1105_v2  ;;  %v1108_v48 = vmul.f32 %v2357_v19, %v1070_v0 }
 0x1c6   : > { %1616 = vst [vmem:[%s2391_s10 + $0x38] sm:$0xff] %v1568_v8   ;;  %v1109_v50 = vmul.f32 %v2357_v19, %v1071_v42  ;;  %v1073_v52 = vunpack.c.h.bf16 %v1045_v10  ;;  %v1174_v40 = vmax.f32 %v1142_v59, 0.0  ;;  %v1144_v12 = vadd.f32 %v2362_v20, %v1106_v7 }
 0x1c7   : > { %v1145_v61 = vadd.f32 %v2362_v20, %v1107_v11  ;;  %v1110_v39 = vmul.f32 %v2357_v19, %v1072_v53  ;;  %v1175_v55 = vmax.f32 %v1143_v43, 0.0  ;;  %v1146_v44 = vadd.f32 %v2362_v20, %v1108_v48 }
 0x1c8   : > { %v1147_v3 = vadd.f32 %v2362_v20, %v1109_v50  ;;  %v1111_v41 = vmul.f32 %v2357_v19, %v1073_v52  ;;  %v1176_v58 = vmax.f32 %v1144_v12, 0.0  ;;  %v1074_v47 = vunpack.c.l.bf16 %v1046_v45 }
 0x1c9   : > { %v1177_v4 = vmax.f32 %v1145_v61, 0.0  ;;  %v1148_v60 = vadd.f32 %v2362_v20, %v1110_v39  ;;  %v1573_v16 = vpack.c.bf16 %v1175_v55, %v1174_v40  ;;  %v1178_v17 = vmax.f32 %v1146_v44, 0.0 }
 0x1ca   : > { %v1179_v18 = vmax.f32 %v1147_v3, 0.0  ;;  %v1149_v21 = vadd.f32 %v2362_v20, %v1111_v41  ;;  %v1075_v25 = vunpack.c.h.bf16 %v1046_v45  ;;  %v1112_v26 = vmul.f32 %v2357_v19, %v1074_v47 }
 0x1cb   : > { %v1578_v23 = vpack.c.bf16 %v1177_v4, %v1176_v58  ;;  %v1180_v24 = vmax.f32 %v1148_v60, 0.0  ;;  %1617 = vst [vmem:[%s2391_s10 + $0x40] sm:$0xff] %v1573_v16   ;;  %v1076_v30 = vunpack.c.l.bf16 %v1047_v15  ;;  %v1077_v31 = vunpack.c.h.bf16 %v1047_v15 }
 0x1cc   : > { %v1583_v28 = vpack.c.bf16 %v1179_v18, %v1178_v17  ;;  %v1181_v29 = vmax.f32 %v1149_v21, 0.0  ;;  %v1113_v32 = vmul.f32 %v2357_v19, %v1075_v25  ;;  %v1150_v33 = vadd.f32 %v2362_v20, %v1112_v26 }
 0x1cd   : > { %1618 = vst [vmem:[%s2391_s10 + $0x48] sm:$0xff] %v1578_v23   ;;  %v1078_v34 = vunpack.c.l.bf16 %v1048_v22  ;;  %v1079_v35 = vunpack.c.h.bf16 %v1048_v22  ;;  %v1114_v37 = vmul.f32 %v2357_v19, %v1076_v30  ;;  %v1115_v57 = vmul.f32 %v2357_v19, %v1077_v31 }
 0x1ce   : > { %1619 = vst [vmem:[%s2391_s10 + $0x50] sm:$0xff] %v1583_v28   ;;  %v1588_v36 = vpack.c.bf16 %v1181_v29, %v1180_v24  ;;  %v1080_v56 = vunpack.c.l.bf16 %v1049_v27  ;;  %v1151_v9 = vadd.f32 %v2362_v20, %v1113_v32  ;;  %v1182_v62 = vmax.f32 %v1150_v33, 0.0 }
 0x1cf   : > { %v1116_v38 = vmul.f32 %v2357_v19, %v1078_v34  ;;  %v1117_v63 = vmul.f32 %v2357_v19, %v1079_v35  ;;  %v1152_v46 = vadd.f32 %v2362_v20, %v1114_v37  ;;  %v1153_v10 = vadd.f32 %v2362_v20, %v1115_v57 }
 0x1d0   : > { %1620 = vst [vmem:[%s2391_s10 + $0x58] sm:$0xff] %v1588_v36   ;;  %v1081_v6 = vunpack.c.h.bf16 %v1049_v27  ;;  %v1118_v54 = vmul.f32 %v2357_v19, %v1080_v56  ;;  %v1183_v51 = vmax.f32 %v1151_v9, 0.0 }
 0x1d1   : > { %v1154_v5 = vadd.f32 %v2362_v20, %v1116_v38  ;;  %v1155_v8 = vadd.f32 %v2362_v20, %v1117_v63  ;;  %v1184_v2 = vmax.f32 %v1152_v46, 0.0  ;;  %v1185_v0 = vmax.f32 %v1153_v10, 0.0 }
 0x1d2   : > { %v1119_v42 = vmul.f32 %v2357_v19, %v1081_v6  ;;  %v1156_v59 = vadd.f32 %v2362_v20, %v1118_v54  ;;  %v1593_v7 = vpack.c.bf16 %v1183_v51, %v1182_v62 }
 0x1d3   : > { %v1186_v11 = vmax.f32 %v1154_v5, 0.0  ;;  %v1187_v53 = vmax.f32 %v1155_v8, 0.0  ;;  %v1598_v43 = vpack.c.bf16 %v1185_v0, %v1184_v2 }
 0x1d4   : > { %v1157_v48 = vadd.f32 %v2362_v20, %v1119_v42  ;;  %v1188_v50 = vmax.f32 %v1156_v59, 0.0  ;;  %1621 = vst [vmem:[%s2391_s10 + $0x60] sm:$0xff] %v1593_v7   ;;  %1027 = sbr.rel (!%p1025_p1) target bundleno = 427 (0x1ab), region = 69 }
 0x1d5   : > { %v1603_v52 = vpack.c.bf16 %v1187_v53, %v1186_v11  ;;  %1622 = vst [vmem:[%s2391_s10 + $0x68] sm:$0xff] %v1598_v43  }
 0x1d6   : > { %v1189_v45 = vmax.f32 %v1157_v48, 0.0 }
 0x1d7   : > { %1623 = vst [vmem:[%s2391_s10 + $0x70] sm:$0xff] %v1603_v52  }
 0x1d8   : > { %v1608_v40 = vpack.c.bf16 %v1189_v45, %v1188_v50 }
 0x1da   : > { %1624 = vst [vmem:[%s2391_s10 + $0x78] sm:$0xff] %v1608_v40  }

// kernel: _lambda_.15
= control target key start
LH: loop header
LB: loop body
LE: loop exit
PB: predicated region body
PF: predicated region fallthrough
CT: control target
= control target key end

     0   :  { %v324_v1 = vmov 0.0   ;;  %vm325_vm0 = vmmov 0   ;;  %s410_s0 = inlined_call_operand.vmem [shape: bf16[2,64,128], index: 0, kind: input, shape index: {}]   ;;  %s411_s1 = inlined_call_operand.vmem [shape: bf16[128,128], index: 1, kind: input, shape index: {}]   ;;  %s412_s2 = inlined_call_operand.vmem [shape: f32[1,128], index: 2, kind: input, shape index: {}]   ;;  %s413_s3 = inlined_call_operand.hbm [shape: f32[2,128], index: 3, kind: output, shape index: {}]  }
   0x1   :  { %v292_v0 = vld [vmem:[%s411_s1] sm:$0xff]   ;;  %269 = vmatprep.subr.bf16.mxu0 %v324_v1  ;;  %v293_v2 = vld [vmem:[%s411_s1 + $0x8] sm:$0xff]   ;;  %285 = vmatprep.mubr.msk.bf16.mxu0 %vm325_vm0, %v324_v1  ;;  %v294_v3 = vld [vmem:[%s411_s1 + $0x10] sm:$0xff]  }
   0x2   :  { %270 = vmatpush3.bf16.msra.mxu0 %v292_v0  ;;  %v222_v4 = vld [vmem:[%s410_s0] sm:$0xff]   ;;  %v253_v5 = vld [vmem:[%s410_s0 + $0x8] sm:$0xff]   ;;  %v295_v10 = vld [vmem:[%s411_s1 + $0x18] sm:$0xff]  }
   0x3   :  { %271 = vmatprep.subr.bf16.mxu0 %v324_v1  ;;  %v223_v6 = vunpack.c.l.bf16 %v222_v4  ;;  %v224_v7 = vunpack.c.h.bf16 %v222_v4  ;;  %v256_v8 = vld [vmem:[%s410_s0 + $0x20] sm:$0xff]   ;;  %v257_v9 = vld [vmem:[%s410_s0 + $0x28] sm:$0xff]   ;;  %v227_v11 = vunpack.c.l.bf16 %v253_v5 }
   0x4   :  { %v239_v12 = vunpack.c.l.bf16 %v256_v8  ;;  %v240_v13 = vunpack.c.h.bf16 %v256_v8  ;;  %v243_v14 = vunpack.c.l.bf16 %v257_v9 }
   0x6   :  { %272 = vmatpush3.bf16.msra.mxu0 %v293_v2 }
   0x7   :  { %273 = vmatprep.subr.bf16.mxu0 %v324_v1 }
   0xa   :  { %274 = vmatpush3.bf16.msra.mxu0 %v294_v3 }
   0xb   :  { %275 = vmatprep.subr.bf16.mxu0 %v324_v1 }
   0xc   :  { %8 = vsyncpa [#allocation3], 0  ;;  %v254_v15 = vld [vmem:[%s410_s0 + $0x10] sm:$0xff]   ;;  %v228_v17 = vunpack.c.h.bf16 %v253_v5  ;;  %v244_v18 = vunpack.c.h.bf16 %v257_v9  ;;  %v48_v19 = vadd.f32 %v224_v7, %v223_v6  ;;  %v61_v20 = vadd.f32 %v240_v13, %v239_v12  ;;  %v296_v21 = vld [vmem:[%s411_s1 + $0x20] sm:$0xff]   ;;  %s326_s17 = smov [#allocation2]  }
   0xd   :  { %v258_v16 = vld [vmem:[%s410_s0 + $0x30] sm:$0xff]   ;;  %v231_v22 = vunpack.c.l.bf16 %v254_v15  ;;  %v255_v26 = vld [vmem:[%s410_s0 + $0x18] sm:$0xff]   ;;  %v232_v28 = vunpack.c.h.bf16 %v254_v15  ;;  %v297_v32 = vld [vmem:[%s411_s1 + $0x28] sm:$0xff]   ;;  %vm105_vm1 = vcmask 1041409   ;;  %s204_s18 = sshll.u32 %s326_s17, 4  ;;  %s205_s18 = int_to_ptr.vmem [resolvable:$true] %s204_s18 }
   0xe   :  { %276 = vmatpush3.bf16.msra.mxu0 %v295_v10  ;;  %v247_v23 = vunpack.c.l.bf16 %v258_v16  ;;  %v49_v24 = vadd.f32 %v227_v11, %v48_v19  ;;  %v62_v25 = vadd.f32 %v243_v14, %v61_v20  ;;  %v259_v27 = vld [vmem:[%s410_s0 + $0x38] sm:$0xff]   ;;  %v248_v29 = vunpack.c.h.bf16 %v258_v16  ;;  %v298_v41 = vld [vmem:[%s411_s1 + $0x30] sm:$0xff]   ;;  %v212_v3 = vld [vmem:[%s412_s2] ss:$0 sm:$0xff]  ;;  %s300_s19 = scalar_lea.vmem %s205_s18, 32  ;;  %p305_p1 = scmp.lt.s32.totalorder %s205_s18, %s205_s18 }
   0xf   :  { %277 = vmatprep.subr.bf16.mxu0 %v324_v1  ;;  %v235_v33 = vunpack.c.l.bf16 %v255_v26  ;;  %v251_v34 = vunpack.c.l.bf16 %v259_v27  ;;  %v236_v37 = vunpack.c.h.bf16 %v255_v26  ;;  %v252_v38 = vunpack.c.h.bf16 %v259_v27  ;;  %v299_v46 = vld [vmem:[%s411_s1 + $0x38] sm:$0xff]   ;;  %p301_p0 = scmp.ne.s32.totalorder %s205_s18, %s300_s19  ;;  %p306_p2 = scmp.lt.s32.totalorder %s300_s19, %s300_s19 }
  0x10   :  { %v50_v30 = vadd.f32 %v228_v17, %v49_v24  ;;  %v63_v31 = vadd.f32 %v244_v18, %v62_v25 }
  0x11   :  { %p307_p3 = por %p306_p2, %p305_p1 }
  0x12   :  { %278 = vmatpush3.bf16.msra.mxu0 %v296_v21  ;;  %v51_v35 = vadd.f32 %v231_v22, %v50_v30  ;;  %v64_v36 = vadd.f32 %v247_v23, %v63_v31 }
  0x13   :  { %279 = vmatprep.subr.bf16.mxu0 %v324_v1  ;;  %p308_p4 = pnand %p307_p3, %p301_p0 }
  0x14   :  { %v52_v39 = vadd.f32 %v232_v28, %v51_v35  ;;  %v65_v40 = vadd.f32 %v248_v29, %v64_v36 }
  0x16   :  { %280 = vmatpush3.bf16.msra.mxu0 %v297_v32  ;;  %v53_v42 = vadd.f32 %v235_v33, %v52_v39  ;;  %v66_v43 = vadd.f32 %v251_v34, %v65_v40 }
  0x17   :  { %281 = vmatprep.subr.bf16.mxu0 %v324_v1 }
  0x18   :  { %v54_v44 = vadd.f32 %v236_v37, %v53_v42  ;;  %v67_v45 = vadd.f32 %v252_v38, %v66_v43 }
  0x1a   :  { %282 = vmatpush3.bf16.msra.mxu0 %v298_v41  ;;  %v55_v47 = vrot.slane %v54_v44, 4  ;;  %v68_v48 = vrot.slane %v67_v45, 4 }
  0x1b   :  { %283 = vmatprep.subr.bf16.mxu0 %v324_v1 }
  0x1c   :  { %v56_v49 = vadd.f32 %v55_v47, %v54_v44  ;;  %v69_v50 = vadd.f32 %v68_v48, %v67_v45 }
  0x1e   :  { %284 = vmatpush3.bf16.msra.mxu0 %v299_v46  ;;  %v57_v51 = vrot.slane %v56_v49, 2  ;;  %v70_v52 = vrot.slane %v69_v50, 2 }
  0x20   :  { %v58_v53 = vadd.f32 %v57_v51, %v56_v49  ;;  %v71_v54 = vadd.f32 %v70_v52, %v69_v50 }
  0x22   :  { %v59_v55 = vrot.slane %v58_v53, 1  ;;  %v72_v56 = vrot.slane %v71_v54, 1 }
  0x24   :  { %v60_v57 = vadd.f32 %v59_v55, %v58_v53  ;;  %v73_v58 = vadd.f32 %v72_v56, %v71_v54 }
  0x26   :  { %v74_v59 = vmul.f32 0.015625, %v60_v57  ;;  %v75_v60 = vmul.f32 0.015625, %v73_v58 }
  0x28   :  { %v76_v61 = vpack.c.bf16 %v74_v59, %v74_v59  ;;  %v77_v62 = vpack.c.bf16 %v75_v60, %v75_v60 }
  0x2a   :  { %v103_v63 = vunpack.c.l.b16 %v76_v61  ;;  %v104_v0 = vunpack.c.l.b16 %v77_v62 }
  0x2c   :  { %v106_v1 = vsel %vm105_vm1, %v104_v0, %v103_v63 }
  0x2d   :  { %v107_v2 = vpack.c.b16 %v106_v1, %v106_v1 }
  0x2f   :  { %286 = vmatmul.mubr.bf16.vlgmr.msra.gmra.mrb[0].mxu0 %v107_v2 }
 0x102   :  { %v191_v4 = vpop.f32.mrb[0].mxu0 }
 0x103   :  { %v192_v5 = vadd.f32 %v212_v3, %v191_v4  ;;  %v287_v6 = vpop.f32.mrb[1].mxu0 }
 0x104   :  { %v194_v7 = vpop.f32.mrb[2].mxu0 }
 0x105   :  { %197 = vst [vmem:[#allocation2] sm:$0x3] %v192_v5  ;;  %v288_v8 = vpop.f32.mrb[3].mxu0 }
 0x106   :  { %311 = shalt.err (!%p308_p4)
}
 0x107   :  { %s312_s2 = scalar_lea.hbm %s413_s3, 32 }
 0x108   :  { %p313_p5 = scmp.ne.s32.totalorder %s413_s3, %s312_s2  ;;  %p316_p6 = scmp.lt.u32.totalorder %s312_s2, %s413_s3 }
 0x10a   :  { %p318_p7 = pnand %p316_p6, %p313_p5 }
 0x10c   :  { %321 = shalt.err (!%p318_p7)
}
 0x10d   :  { %207 = dma.vmem_to_hbm [thread:$0]  %s205_s18, 32, %s413_s3, [#allocation3]  }
 0x10e   :  { %322 = dma.done.wait [#allocation3], 32  }
 0x10f   :  { %323 = vsyncadd [#allocation3], 4294967264 }
 0x110   :  { %211 = vsyncpa [#allocation3], 1 }

// kernel: _lambda_.14
= control target key start
LH: loop header
LB: loop body
LE: loop exit
PB: predicated region body
PF: predicated region fallthrough
CT: control target
= control target key end

     0   :  { %vm592_vm0 = vcmask 523264   ;;  %s2430_s1 = inlined_call_operand.vmem [shape: bf16[576,128], index: 1, kind: input, shape index: {}]   ;;  %s2431_s0 = inlined_call_operand.vmem [shape: bf16[128,576], index: 0, kind: input, shape index: {}]   ;;  %s2432_s4 = inlined_call_operand.vmem [shape: bf16[128,128], index: 4, kind: input, shape index: {}]   ;;  %s2433_s3 = inlined_call_operand.vmem [shape: bf16[128,128], index: 3, kind: input, shape index: {}]   ;;  %s2434_s2 = inlined_call_operand.vmem [shape: f32[1,128], index: 2, kind: input, shape index: {}]   ;;  %s2435_s5 = inlined_call_operand.vmem [shape: f32[1,128], index: 5, kind: input, shape index: {}]   ;;  %s2436_s6 = inlined_call_operand.vmem [shape: f32[1,128], index: 6, kind: input, shape index: {}]   ;;  %s2437_s7 = inlined_call_operand.vmem [shape: f32[1,128], index: 7, kind: input, shape index: {}]   ;;  %s2438_s8 = inlined_call_operand.vmem [shape: bf16[128,128], index: 8, kind: output, shape index: {}]  }
   0x1   :  { %v1859_v0 = vld [vmem:[%s2430_s1 + $0x40] sm:$0xff]   ;;  %v1861_v2 = vld [vmem:[%s2430_s1 + $0x48] sm:$0xff]   ;;  %v1863_v4 = vld [vmem:[%s2430_s1 + $0x50] sm:$0xff]  }
   0x2   :  { %v1860_v1 = vld [vmem:[%s2430_s1] sm:$0xff]   ;;  %1582 = vmatprep.subr.bf16.mxu0 %v1859_v0  ;;  %1794 = vmatprep.subr.bf16.mxu1 %v1859_v0  ;;  %v1862_v3 = vld [vmem:[%s2430_s1 + $0x8] sm:$0xff]   ;;  %v1864_v5 = vld [vmem:[%s2430_s1 + $0x10] sm:$0xff]  }
   0x3   :  { %1583 = vmatpush3.bf16.msra.mxu0 %v1860_v1  ;;  %1802 = vmatpush3.bf16.msra.mxu1 %v1860_v1  ;;  %v1865_v6 = vld [vmem:[%s2430_s1 + $0x58] sm:$0xff]   ;;  %v1867_v8 = vld [vmem:[%s2430_s1 + $0x60] sm:$0xff]   ;;  %v1869_v10 = vld [vmem:[%s2430_s1 + $0x68] sm:$0xff]  }
   0x4   :  { %1584 = vmatprep.subr.bf16.mxu0 %v1861_v2  ;;  %1795 = vmatprep.subr.bf16.mxu1 %v1861_v2  ;;  %v1866_v7 = vld [vmem:[%s2430_s1 + $0x18] sm:$0xff]   ;;  %v1868_v9 = vld [vmem:[%s2430_s1 + $0x20] sm:$0xff]   ;;  %v1870_v13 = vld [vmem:[%s2430_s1 + $0x28] sm:$0xff]  }
   0x5   :  { %v1877_v11 = vld [vmem:[%s2431_s0 + $0x4] ss:$20 sps:$4 sm:$0xff]   ;;  %v1871_v14 = vld [vmem:[%s2430_s1 + $0x70] sm:$0xff]   ;;  %v1884_v23 = vld [vmem:[%s2430_s1 + $0xc8] sm:$0xff]  }
   0x6   :  { %v1880_v12 = vld [vmem:[%s2431_s0 + $0xa4] ss:$20 sps:$4 sm:$0xff]   ;;  %649 = vmatprep.mubr.bf16.mxu0 %v1877_v11  ;;  %v1872_v15 = vld [vmem:[%s2430_s1 + $0x30] sm:$0xff]   ;;  %v1886_v24 = vld [vmem:[%s2431_s0 + $0x2c] ss:$20 sps:$4 sm:$0xff]  }
   0x7   :  { %1585 = vmatpush3.bf16.msra.mxu0 %v1862_v3  ;;  %1803 = vmatpush3.bf16.msra.mxu1 %v1862_v3  ;;  %v1873_v16 = vld [vmem:[%s2430_s1 + $0x78] sm:$0xff]   ;;  %v1881_v18 = vld [vmem:[%s2430_s1 + $0xc0] sm:$0xff]   ;;  %v1894_v26 = vld [vmem:[%s2430_s1 + $0x108] sm:$0xff]  }
   0x8   :  { %1586 = vmatprep.subr.bf16.mxu0 %v1863_v4  ;;  %1796 = vmatprep.subr.bf16.mxu1 %v1863_v4  ;;  %v1874_v17 = vld [vmem:[%s2430_s1 + $0x38] sm:$0xff]   ;;  %v1875_v19 = vld [vmem:[%s2431_s0] ss:$20 sps:$4 sm:$0xff]   ;;  %v1885_v27 = vld [vmem:[%s2430_s1 + $0x88] sm:$0xff]  }
   0x9   :  { %681 = vmatprep.mubr.bf16.mxu1 %v1880_v12  ;;  %v1883_v20 = vld [vmem:[%s2430_s1 + $0x100] sm:$0xff]   ;;  %v1892_v28 = vld [vmem:[%s2430_s1 + $0xd0] sm:$0xff]   ;;  %v1890_v29 = vld [vmem:[%s2431_s0 + $0x28] ss:$20 sps:$4 sm:$0xff]  }
   0xa   :  { %v1878_v21 = vld [vmem:[%s2431_s0 + $0xa0] ss:$20 sps:$4 sm:$0xff]   ;;  %v1891_v30 = vld [vmem:[%s2431_s0 + $0xc8] ss:$20 sps:$4 sm:$0xff]   ;;  %v1901_v38 = vld [vmem:[%s2431_s0 + $0x50] ss:$20 sps:$4 sm:$0xff]  }
   0xb   :  { %1587 = vmatpush3.bf16.msra.mxu0 %v1864_v5  ;;  %1804 = vmatpush3.bf16.msra.mxu1 %v1864_v5  ;;  %v1882_v22 = vld [vmem:[%s2430_s1 + $0x80] sm:$0xff]   ;;  %v1905_v31 = vld [vmem:[%s2430_s1 + $0x110] sm:$0xff]   ;;  %v1895_v33 = vld [vmem:[%s2430_s1 + $0xd8] sm:$0xff]  }
   0xc   :  { %1588 = vmatprep.subr.bf16.mxu0 %v1865_v6  ;;  %1797 = vmatprep.subr.bf16.mxu1 %v1865_v6  ;;  %v1888_v25 = vld [vmem:[%s2431_s0 + $0xcc] ss:$20 sps:$4 sm:$0xff]   ;;  %v1893_v32 = vld [vmem:[%s2430_s1 + $0x90] sm:$0xff]   ;;  %v1896_v36 = vld [vmem:[%s2430_s1 + $0x98] sm:$0xff]  }
   0xd   :  { %v1897_v34 = vld [vmem:[%s2431_s0 + $0x54] ss:$20 sps:$4 sm:$0xff]   ;;  %v1903_v37 = vld [vmem:[%s2430_s1 + $0xe0] sm:$0xff]   ;;  %v1916_v39 = vld [vmem:[%s2430_s1 + $0x118] sm:$0xff]  }
   0xe   :  { %v1899_v35 = vld [vmem:[%s2431_s0 + $0xf4] ss:$20 sps:$4 sm:$0xff]   ;;  %v1902_v40 = vld [vmem:[%s2431_s0 + $0xf0] ss:$20 sps:$4 sm:$0xff]   ;;  %v1912_v47 = vld [vmem:[%s2431_s0 + $0x78] ss:$20 sps:$4 sm:$0xff]  }
   0xf   :  { %1589 = vmatpush3.bf16.msra.mxu0 %v1866_v7  ;;  %1805 = vmatpush3.bf16.msra.mxu1 %v1866_v7  ;;  %v1904_v41 = vld [vmem:[%s2430_s1 + $0xa0] sm:$0xff]   ;;  %v1906_v42 = vld [vmem:[%s2430_s1 + $0xe8] sm:$0xff]   ;;  %v1908_v43 = vld [vmem:[%s2431_s0 + $0x7c] ss:$20 sps:$4 sm:$0xff]  }
  0x10   :  { %1590 = vmatprep.subr.bf16.mxu0 %v1867_v8  ;;  %1798 = vmatprep.subr.bf16.mxu1 %v1867_v8  ;;  %v1910_v44 = vld [vmem:[%s2431_s0 + $0x11c] ss:$20 sps:$4 sm:$0xff]   ;;  %v1924_v45 = vld [vmem:[%s2432_s4] sm:$0xff]   ;;  %v1907_v46 = vld [vmem:[%s2430_s1 + $0xa8] sm:$0xff]  }
  0x11   :  { %v1913_v48 = vld [vmem:[%s2431_s0 + $0x118] ss:$20 sps:$4 sm:$0xff]   ;;  %v1914_v49 = vld [vmem:[%s2430_s1 + $0xf0] sm:$0xff]   ;;  %v1919_v55 = vld [vmem:[%s2431_s0 + $0x8] ss:$20 sps:$4 sm:$0xff]  }
  0x12   :  { %v1915_v50 = vld [vmem:[%s2430_s1 + $0xb0] sm:$0xff]   ;;  %v1917_v51 = vld [vmem:[%s2430_s1 + $0xf8] sm:$0xff]   ;;  %v1921_v52 = vld [vmem:[%s2431_s0 + $0xc] ss:$20 sps:$4 sm:$0xff]  }
  0x13   :  { %1591 = vmatpush3.bf16.msra.mxu0 %v1868_v9  ;;  %1806 = vmatpush3.bf16.msra.mxu1 %v1868_v9  ;;  %v1922_v53 = vld [vmem:[%s2431_s0 + $0x10] ss:$20 sps:$4 sm:$0xff]   ;;  %v1918_v54 = vld [vmem:[%s2430_s1 + $0xb8] sm:$0xff]   ;;  %v1926_v57 = vld [vmem:[%s2431_s0 + $0x34] ss:$20 sps:$4 sm:$0xff]  }
  0x14   :  { %1592 = vmatprep.subr.bf16.mxu0 %v1869_v10  ;;  %1799 = vmatprep.subr.bf16.mxu1 %v1869_v10  ;;  %v1923_v56 = vld [vmem:[%s2431_s0 + $0x38] ss:$20 sps:$4 sm:$0xff]   ;;  %v1928_v59 = vld [vmem:[%s2431_s0 + $0x60] ss:$20 sps:$4 sm:$0xff]   ;;  %v1929_v60 = vld [vmem:[%s2431_s0 + $0x30] ss:$20 sps:$4 sm:$0xff]  }
  0x15   :  { %v1925_v58 = vld [vmem:[%s2432_s4 + $0x8] sm:$0xff]   ;;  %v1931_v61 = vld [vmem:[%s2432_s4 + $0x10] sm:$0xff]   ;;  %v1932_v63 = vld [vmem:[%s2432_s4 + $0x18] sm:$0xff]  }
  0x16   :  { %v1930_v62 = vld [vmem:[%s2431_s0 + $0x88] ss:$20 sps:$4 sm:$0xff]   ;;  %v1935_v1 = vld [vmem:[%s2431_s0 + $0xb0] ss:$20 sps:$4 sm:$0xff]   ;;  %v1936_v2 = vld [vmem:[%s2431_s0 + $0x58] ss:$20 sps:$4 sm:$0xff]  }
  0x17   :  { %1593 = vmatpush3.bf16.msra.mxu0 %v1870_v13  ;;  %1807 = vmatpush3.bf16.msra.mxu1 %v1870_v13  ;;  %v1933_v0 = vld [vmem:[%s2431_s0 + $0x5c] ss:$20 sps:$4 sm:$0xff]   ;;  %v1938_v3 = vld [vmem:[%s2432_s4 + $0x20] sm:$0xff]   ;;  %v1937_v4 = vld [vmem:[%s2431_s0 + $0xd8] ss:$20 sps:$4 sm:$0xff]  }
  0x18   :  { %1594 = vmatprep.subr.bf16.mxu0 %v1871_v14  ;;  %1800 = vmatprep.subr.bf16.mxu1 %v1871_v14  ;;  %v1939_v5 = vld [vmem:[%s2432_s4 + $0x28] sm:$0xff]   ;;  %v1940_v6 = vld [vmem:[%s2431_s0 + $0x84] ss:$20 sps:$4 sm:$0xff]   ;;  %v1942_v7 = vld [vmem:[%s2431_s0 + $0x100] ss:$20 sps:$4 sm:$0xff]  }
  0x19   :  { %v1945_v8 = vld [vmem:[%s2432_s4 + $0x30] sm:$0xff]   ;;  %v1944_v10 = vld [vmem:[%s2431_s0 + $0x128] ss:$20 sps:$4 sm:$0xff]   ;;  %v1947_v11 = vld [vmem:[%s2431_s0 + $0xac] ss:$20 sps:$4 sm:$0xff]  }
  0x1a   :  { %v1943_v9 = vld [vmem:[%s2431_s0 + $0x80] ss:$20 sps:$4 sm:$0xff]   ;;  %v1946_v12 = vld [vmem:[%s2432_s4 + $0x38] sm:$0xff]  }
  0x1b   :  { %1595 = vmatpush3.bf16.msra.mxu0 %v1872_v15  ;;  %1808 = vmatpush3.bf16.msra.mxu1 %v1872_v15  ;;  %v1949_v13 = vld [vmem:[%s2433_s3] sm:$0xff]   ;;  %v1950_v14 = vld [vmem:[%s2431_s0 + $0xa8] ss:$20 sps:$4 sm:$0xff]  }
  0x1c   :  { %1596 = vmatprep.subr.bf16.mxu0 %v1873_v16  ;;  %1801 = vmatprep.subr.bf16.mxu1 %v1873_v16  ;;  %v1951_v15 = vld [vmem:[%s2433_s3 + $0x8] sm:$0xff]  }
  0x1d   :  { %v1952_v16 = vld [vmem:[%s2431_s0 + $0xd4] ss:$20 sps:$4 sm:$0xff]  }
  0x1f   :  { %1597 = vmatpush3.bf16.msra.mxu0 %v1874_v17  ;;  %1809 = vmatpush3.bf16.msra.mxu1 %v1874_v17  ;;  %v1954_v17 = vld [vmem:[%s2433_s3 + $0x10] sm:$0xff]  }
  0x20   :  { %1646 = vmatprep.subr.bf16.mxu1 %v1881_v18  ;;  %1738 = vmatprep.subr.bf16.mxu0 %v1883_v20  ;;  %v1955_v18 = vld [vmem:[%s2431_s0 + $0xd0] ss:$20 sps:$4 sm:$0xff]  }
  0x22   :  { %650 = vmatmul.mubr.bf16.vlgmr.msra.gmra.mrb[0].mxu0 %v1875_v19  ;;  %682 = vmatmul.mubr.bf16.vlgmr.msra.gmra.mrb[0].mxu1 %v1878_v21  ;;  %v1956_v19 = vld [vmem:[%s2433_s3 + $0x18] sm:$0xff]   ;;  %v1959_v21 = vld [vmem:[%s2433_s3 + $0x20] sm:$0xff]  }
  0x23   :  { %1647 = vmatpush3.bf16.msra.mxu1 %v1882_v22  ;;  %1739 = vmatpush3.bf16.msra.mxu0 %v1883_v20  ;;  %v1957_v20 = vld [vmem:[%s2431_s0 + $0xfc] ss:$20 sps:$4 sm:$0xff]   ;;  %v1960_v22 = vld [vmem:[%s2431_s0 + $0xf8] ss:$20 sps:$4 sm:$0xff]  }
  0x24   :  { %1648 = vmatprep.subr.bf16.mxu1 %v1884_v23  ;;  %657 = vmatprep.mubr.bf16.mxu0 %v1886_v24  ;;  %v1961_v23 = vld [vmem:[%s2433_s3 + $0x28] sm:$0xff]   ;;  %v1962_v24 = vld [vmem:[%s2431_s0 + $0x124] ss:$20 sps:$4 sm:$0xff]  }
  0x25   :  { %689 = vmatprep.mubr.bf16.mxu1 %v1888_v25  ;;  %1740 = vmatprep.subr.bf16.mxu0 %v1894_v26  ;;  %v1964_v25 = vld [vmem:[%s2433_s3 + $0x30] sm:$0xff]  }
  0x27   :  { %1649 = vmatpush3.bf16.msra.mxu1 %v1885_v27  ;;  %1741 = vmatpush3.bf16.msra.mxu0 %v1894_v26  ;;  %v1965_v26 = vld [vmem:[%s2431_s0 + $0x120] ss:$20 sps:$4 sm:$0xff]   ;;  %v1966_v27 = vld [vmem:[%s2433_s3 + $0x38] sm:$0xff]  }
  0x28   :  { %1650 = vmatprep.subr.bf16.mxu1 %v1892_v28  ;;  %1742 = vmatprep.subr.bf16.mxu0 %v1905_v31  ;;  %v1969_v28 = vmov 0.0  }
  0x29   :  { %120 = vst [vmem:[#allocation2] sm:$0x1] %v1969_v28  ;;  %121 = vst [vmem:[#allocation3] sm:$0x1] %v1969_v28 }
  0x2a   :  { %658 = vmatmul.mubr.bf16.gmra.mrb[4].mxu0 %v1890_v29  ;;  %690 = vmatmul.mubr.bf16.gmra.mrb[4].mxu1 %v1891_v30 }
  0x2b   :  { %1651 = vmatpush3.bf16.msra.mxu1 %v1893_v32  ;;  %665 = vmatprep.mubr.bf16.mxu0 %v1897_v34 }
  0x2c   :  { %1652 = vmatprep.subr.bf16.mxu1 %v1895_v33  ;;  %697 = vmatprep.mubr.bf16.mxu1 %v1899_v35 }
  0x2d   :  { %1743 = vmatpush3.bf16.msra.mxu0 %v1905_v31 }
  0x2e   :  { %1744 = vmatprep.subr.bf16.mxu0 %v1916_v39 }
  0x2f   :  { %1653 = vmatpush3.bf16.msra.mxu1 %v1896_v36 }
  0x30   :  { %1654 = vmatprep.subr.bf16.mxu1 %v1903_v37 }
  0x31   :  { %1745 = vmatpush3.bf16.msra.mxu0 %v1916_v39 }
  0x32   :  { %666 = vmatmul.mubr.bf16.gmra.mrb[8].mxu0 %v1901_v38  ;;  %698 = vmatmul.mubr.bf16.gmra.mrb[8].mxu1 %v1902_v40 }
  0x33   :  { %1655 = vmatpush3.bf16.msra.mxu1 %v1904_v41  ;;  %673 = vmatprep.mubr.bf16.mxu0 %v1908_v43 }
  0x34   :  { %1656 = vmatprep.subr.bf16.mxu1 %v1906_v42  ;;  %705 = vmatprep.mubr.bf16.mxu1 %v1910_v44 }
  0x35   :  { %1762 = vmatprep.subr.bf16.mxu0 %v1924_v45 }
  0x37   :  { %1657 = vmatpush3.bf16.msra.mxu1 %v1907_v46 }
  0x38   :  { %1658 = vmatprep.subr.bf16.mxu1 %v1914_v49 }
  0x3a   :  { %674 = vmatmul.mubr.bf16.gmra.mrb[12].mxu0 %v1912_v47  ;;  %706 = vmatmul.mubr.bf16.gmra.mrb[12].mxu1 %v1913_v48 }
  0x3b   :  { %1659 = vmatpush3.bf16.msra.mxu1 %v1915_v50  ;;  %746 = vmatprep.mubr.bf16.mxu1 %v1921_v52 }
  0x3c   :  { %1660 = vmatprep.subr.bf16.mxu1 %v1917_v51  ;;  %1746 = vmatprep.mubr.msk.bf16.mxu0 %vm592_vm0, %v1922_v53 }
  0x3f   :  { %1661 = vmatpush3.bf16.msra.mxu1 %v1918_v54 }
  0x42   :  { %747 = vmatmul.mubr.bf16.vlgmr.msra.gmra.mrb[16].mxu1 %v1919_v55  ;;  %1747 = vmatmul.mubr.msk.bf16.vlgmr.msra.gmra.mrb[16].mxu0 %vm592_vm0, %v1923_v56 }
  0x43   :  { %1763 = vmatpush3.bf16.msra.mxu0 %v1924_v45  ;;  %754 = vmatprep.mubr.bf16.mxu1 %v1926_v57 }
  0x44   :  { %1764 = vmatprep.subr.bf16.mxu0 %v1925_v58  ;;  %1750 = vmatprep.mubr.msk.bf16.mxu0 %vm592_vm0, %v1928_v59 }
  0x47   :  { %1765 = vmatpush3.bf16.msra.mxu0 %v1925_v58 }
  0x48   :  { %1766 = vmatprep.subr.bf16.mxu0 %v1931_v61 }
  0x4a   :  { %755 = vmatmul.mubr.bf16.gmra.mrb[20].mxu1 %v1929_v60  ;;  %1751 = vmatmul.mubr.msk.bf16.gmra.mrb[20].mxu0 %vm592_vm0, %v1930_v62 }
  0x4b   :  { %1767 = vmatpush3.bf16.msra.mxu0 %v1931_v61  ;;  %762 = vmatprep.mubr.bf16.mxu1 %v1933_v0 }
  0x4c   :  { %1768 = vmatprep.subr.bf16.mxu0 %v1932_v63  ;;  %1754 = vmatprep.mubr.msk.bf16.mxu0 %vm592_vm0, %v1935_v1 }
  0x4f   :  { %1769 = vmatpush3.bf16.msra.mxu0 %v1932_v63 }
  0x50   :  { %1770 = vmatprep.subr.bf16.mxu0 %v1938_v3 }
  0x52   :  { %763 = vmatmul.mubr.bf16.gmra.mrb[24].mxu1 %v1936_v2  ;;  %1755 = vmatmul.mubr.msk.bf16.gmra.mrb[24].mxu0 %vm592_vm0, %v1937_v4 }
  0x53   :  { %1771 = vmatpush3.bf16.msra.mxu0 %v1938_v3  ;;  %770 = vmatprep.mubr.bf16.mxu1 %v1940_v6 }
  0x54   :  { %1772 = vmatprep.subr.bf16.mxu0 %v1939_v5  ;;  %1758 = vmatprep.mubr.msk.bf16.mxu0 %vm592_vm0, %v1942_v7 }
  0x57   :  { %1773 = vmatpush3.bf16.msra.mxu0 %v1939_v5 }
  0x58   :  { %1774 = vmatprep.subr.bf16.mxu0 %v1945_v8 }
  0x5a   :  { %771 = vmatmul.mubr.bf16.gmra.mrb[28].mxu1 %v1943_v9  ;;  %1759 = vmatmul.mubr.msk.bf16.gmra.mrb[28].mxu0 %vm592_vm0, %v1944_v10 }
  0x5b   :  { %1775 = vmatpush3.bf16.msra.mxu0 %v1945_v8  ;;  %778 = vmatprep.mubr.bf16.mxu1 %v1947_v11 }
  0x5c   :  { %1776 = vmatprep.subr.bf16.mxu0 %v1946_v12  ;;  %1778 = vmatprep.mubr.bf16.mxu0 %v1949_v13  ;;  %v2318_v13 = vld [vmem:[%s2434_s2] ss:$0 sm:$0xff] }
  0x5f   :  { %1777 = vmatpush3.bf16.msra.mxu0 %v1946_v12 }
  0x62   :  { %779 = vmatmul.mubr.bf16.gmra.mrb[32].mxu1 %v1950_v14  ;;  %1779 = vmatmul.mubr.bf16.vlgmr.msra.gmra.mrb[16].mxu0 %v1951_v15 }
  0x63   :  { %786 = vmatprep.mubr.bf16.mxu1 %v1952_v16  ;;  %1782 = vmatprep.mubr.bf16.mxu0 %v1954_v17 }
  0x6a   :  { %787 = vmatmul.mubr.bf16.gmra.mrb[36].mxu1 %v1955_v18  ;;  %1783 = vmatmul.mubr.bf16.gmra.mrb[20].mxu0 %v1956_v19 }
  0x6b   :  { %794 = vmatprep.mubr.bf16.mxu1 %v1957_v20  ;;  %1786 = vmatprep.mubr.bf16.mxu0 %v1959_v21 }
  0x72   :  { %795 = vmatmul.mubr.bf16.gmra.mrb[40].mxu1 %v1960_v22  ;;  %1787 = vmatmul.mubr.bf16.gmra.mrb[24].mxu0 %v1961_v23 }
  0x73   :  { %802 = vmatprep.mubr.bf16.mxu1 %v1962_v24  ;;  %1790 = vmatprep.mubr.bf16.mxu0 %v1964_v25 }
  0x7a   :  { %803 = vmatmul.mubr.bf16.gmra.mrb[44].mxu1 %v1965_v26  ;;  %1791 = vmatmul.mubr.bf16.gmra.mrb[28].mxu0 %v1966_v27 }
  0xf5   :  { %v1598_v29 = vpop.f32.mrb[0].mxu0  ;;  %v1622_v30 = vpop.f32.mrb[0].mxu1 }
  0xf6   :  { %v1599_v31 = vpop.f32.mrb[1].mxu0  ;;  %v1623_v32 = vpop.f32.mrb[1].mxu1 }
  0xf7   :  { %v1600_v33 = vadd.f32 %v1599_v31, %v1598_v29  ;;  %v2299_v34 = vadd.f32 %v1623_v32, %v1622_v30  ;;  %v1601_v35 = vpop.f32.mrb[2].mxu0  ;;  %v1625_v36 = vpop.f32.mrb[2].mxu1 }
  0xf8   :  { %v1602_v37 = vpop.f32.mrb[3].mxu0  ;;  %v1626_v38 = vpop.f32.mrb[3].mxu1 }
  0xf9   :  { %v1603_v39 = vadd.f32 %v1602_v37, %v1601_v35  ;;  %v2301_v40 = vadd.f32 %v1626_v38, %v1625_v36  ;;  %v652_v16 = vadd.f32 %v1600_v33, %v2318_v13 }
  0xfb   :  { %v655_v20 = vadd.f32 %v1603_v39, %v2318_v13 }
  0xfd   :  { %v1604_v41 = vpop.f32.mrb[4].mxu0  ;;  %v1628_v42 = vpop.f32.mrb[4].mxu1 }
  0xfe   :  { %v1605_v43 = vpop.f32.mrb[5].mxu0  ;;  %v1629_v44 = vpop.f32.mrb[5].mxu1 }
  0xff   :  { %v1606_v45 = vadd.f32 %v1605_v43, %v1604_v41  ;;  %v2303_v46 = vadd.f32 %v1629_v44, %v1628_v42  ;;  %v1607_v47 = vpop.f32.mrb[6].mxu0  ;;  %v1631_v48 = vpop.f32.mrb[6].mxu1 }
 0x100   :  { %v1608_v49 = vpop.f32.mrb[7].mxu0  ;;  %v1632_v50 = vpop.f32.mrb[7].mxu1 }
 0x101   :  { %v1609_v51 = vadd.f32 %v1608_v49, %v1607_v47  ;;  %v2305_v52 = vadd.f32 %v1632_v50, %v1631_v48  ;;  %v660_v26 = vadd.f32 %v1606_v45, %v2318_v13 }
 0x103   :  { %v663_v30 = vadd.f32 %v1609_v51, %v2318_v13 }
 0x105   :  { %v1610_v53 = vpop.f32.mrb[8].mxu0  ;;  %v1634_v54 = vpop.f32.mrb[8].mxu1 }
 0x106   :  { %v1611_v55 = vpop.f32.mrb[9].mxu0  ;;  %v1635_v56 = vpop.f32.mrb[9].mxu1 }
 0x107   :  { %v1612_v57 = vadd.f32 %v1611_v55, %v1610_v53  ;;  %v2307_v58 = vadd.f32 %v1635_v56, %v1634_v54  ;;  %v1613_v59 = vpop.f32.mrb[10].mxu0  ;;  %v1637_v60 = vpop.f32.mrb[10].mxu1 }
 0x108   :  { %v1614_v61 = vpop.f32.mrb[11].mxu0  ;;  %v1638_v62 = vpop.f32.mrb[11].mxu1 }
 0x109   :  { %v1615_v63 = vadd.f32 %v1614_v61, %v1613_v59  ;;  %v2309_v0 = vadd.f32 %v1638_v62, %v1637_v60  ;;  %v668_v37 = vadd.f32 %v1612_v57, %v2318_v13  ;;  %v2333_v59 = vld [vmem:[%s2435_s5] ss:$0 sm:$0xff] }
 0x10b   :  { %v671_v42 = vadd.f32 %v1615_v63, %v2318_v13 }
 0x10d   :  { %v1616_v1 = vpop.f32.mrb[12].mxu0  ;;  %v1640_v2 = vpop.f32.mrb[12].mxu1 }
 0x10e   :  { %v1617_v3 = vpop.f32.mrb[13].mxu0  ;;  %v1641_v4 = vpop.f32.mrb[13].mxu1 }
 0x10f   :  { %v1618_v5 = vadd.f32 %v1617_v3, %v1616_v1  ;;  %v2311_v6 = vadd.f32 %v1641_v4, %v1640_v2  ;;  %v1619_v7 = vpop.f32.mrb[14].mxu0  ;;  %v1643_v8 = vpop.f32.mrb[14].mxu1  ;;  %v684_v3 = vadd.f32 %v2299_v34, %v2318_v13 }
 0x110   :  { %v1620_v9 = vpop.f32.mrb[15].mxu0  ;;  %v1644_v10 = vpop.f32.mrb[15].mxu1 }
 0x111   :  { %v1621_v11 = vadd.f32 %v1620_v9, %v1619_v7  ;;  %v2313_v12 = vadd.f32 %v1644_v10, %v1643_v8  ;;  %v676_v49 = vadd.f32 %v1618_v5, %v2318_v13  ;;  %v687_v10 = vadd.f32 %v2301_v40, %v2318_v13 }
 0x113   :  { %v679_v54 = vadd.f32 %v1621_v11, %v2318_v13 }
 0x115   :  { %v1662_v14 = vpop.f32.mrb[16].mxu1 }
 0x116   :  { %v1663_v15 = vpop.f32.mrb[17].mxu1 }
 0x117   :  { %v1664_v17 = vadd.f32 %v1663_v15, %v1662_v14  ;;  %v1665_v18 = vpop.f32.mrb[18].mxu1 }
 0x118   :  { %v1666_v19 = vpop.f32.mrb[19].mxu1 }
 0x119   :  { %v1667_v21 = vadd.f32 %v1666_v19, %v1665_v18  ;;  %v749_v22 = vadd.f32 %v1664_v17, %v652_v16 }
 0x11b   :  { %v752_v23 = vadd.f32 %v1667_v21, %v655_v20 }
 0x11d   :  { %v1668_v24 = vpop.f32.mrb[20].mxu1  ;;  %v1816_v9 = vadd.f32 %v2333_v59, %v752_v23 }
 0x11e   :  { %v1669_v25 = vpop.f32.mrb[21].mxu1 }
 0x11f   :  { %v1670_v27 = vadd.f32 %v1669_v25, %v1668_v24  ;;  %v1671_v28 = vpop.f32.mrb[22].mxu1 }
 0x120   :  { %v1672_v29 = vpop.f32.mrb[23].mxu1 }
 0x121   :  { %v1673_v31 = vadd.f32 %v1672_v29, %v1671_v28  ;;  %v757_v32 = vadd.f32 %v1670_v27, %v660_v26  ;;  %v692_v26 = vadd.f32 %v2303_v46, %v2318_v13 }
 0x123   :  { %v760_v33 = vadd.f32 %v1673_v31, %v663_v30 }
 0x125   :  { %v1674_v35 = vpop.f32.mrb[24].mxu1  ;;  %v1814_v2 = vadd.f32 %v2333_v59, %v760_v33 }
 0x126   :  { %v1675_v36 = vpop.f32.mrb[25].mxu1 }
 0x127   :  { %v1676_v38 = vadd.f32 %v1675_v36, %v1674_v35  ;;  %v1677_v39 = vpop.f32.mrb[26].mxu1 }
 0x128   :  { %v1678_v41 = vpop.f32.mrb[27].mxu1 }
 0x129   :  { %v765_v43 = vadd.f32 %v1676_v38, %v668_v37  ;;  %v1679_v44 = vadd.f32 %v1678_v41, %v1677_v39  ;;  %v695_v38 = vadd.f32 %v2305_v52, %v2318_v13 }
 0x12b   :  { %v2326_v45 = vadd.f32 %v1679_v44, %v671_v42  ;;  %v1820_v30 = vadd.f32 %v2333_v59, %v765_v43 }
 0x12d   :  { %v1680_v47 = vpop.f32.mrb[28].mxu1 }
 0x12e   :  { %v1681_v48 = vpop.f32.mrb[29].mxu1 }
 0x12f   :  { %v1682_v50 = vadd.f32 %v1681_v48, %v1680_v47  ;;  %v1683_v51 = vpop.f32.mrb[30].mxu1 }
 0x130   :  { %v1684_v53 = vpop.f32.mrb[31].mxu1 }
 0x131   :  { %v773_v55 = vadd.f32 %v1682_v50, %v676_v49  ;;  %v1685_v56 = vadd.f32 %v1684_v53, %v1683_v51  ;;  %v1824_v51 = vadd.f32 %v2333_v59, %v2326_v45 }
 0x133   :  { %v776_v57 = vadd.f32 %v1685_v56, %v679_v54  ;;  %v1818_v40 = vadd.f32 %v2333_v59, %v773_v55 }
 0x135   :  { %v1686_v60 = vpop.f32.mrb[32].mxu1  ;;  %v1780_v61 = vpop.f32.mrb[16].mxu0  ;;  %v1822_v37 = vadd.f32 %v2333_v59, %v776_v57 }
 0x136   :  { %v1810_v62 = vadd.f32 %v1780_v61, %v757_v32  ;;  %v1687_v63 = vpop.f32.mrb[33].mxu1  ;;  %v1060_v1 = vpop.f32.mrb[17].mxu0 }
 0x137   :  { %v1688_v4 = vadd.f32 %v1687_v63, %v1686_v60  ;;  %v1812_v5 = vadd.f32 %v1060_v1, %v749_v22  ;;  %v1689_v7 = vpop.f32.mrb[34].mxu1  ;;  %v1781_v8 = vpop.f32.mrb[18].mxu0 }
 0x138   :  { %v1811_v11 = vadd.f32 %v1810_v62, %v2333_v59  ;;  %v1815_v14 = vadd.f32 %v1814_v2, %v1781_v8  ;;  %v1690_v15 = vpop.f32.mrb[35].mxu1  ;;  %v1063_v16 = vpop.f32.mrb[19].mxu0  ;;  %v700_v8 = vadd.f32 %v2307_v58, %v2318_v13 }
 0x139   :  { %v781_v17 = vadd.f32 %v1688_v4, %v684_v3  ;;  %v1813_v18 = vadd.f32 %v1812_v5, %v2333_v59  ;;  %v1691_v19 = vadd.f32 %v1690_v15, %v1689_v7  ;;  %v1817_v20 = vadd.f32 %v1816_v9, %v1063_v16 }
 0x13a   :  { %v2343_v34 = vpack.c.bf16 %v1815_v14, %v1811_v11  ;;  %v1182_v31 = vmul.f32 %v1811_v11, %v1811_v11  ;;  %v1183_v47 = vmul.f32 %v1815_v14, %v1815_v14 }
 0x13b   :  { %v1180_v21 = vmul.f32 %v1813_v18, %v1813_v18  ;;  %v784_v22 = vadd.f32 %v1691_v19, %v687_v10  ;;  %v2345_v24 = vpack.c.bf16 %v1817_v20, %v1813_v18  ;;  %v1156_v23 = vadd.f32 %v1817_v20, %v1813_v18 }
 0x13c   :  { %v1181_v25 = vmul.f32 %v1817_v20, %v1817_v20  ;;  %v1828_v45 = vadd.f32 %v2333_v59, %v781_v17 }
 0x13d   :  { %v1157_v27 = vadd.f32 %v1811_v11, %v1156_v23  ;;  %v1692_v28 = vpop.f32.mrb[36].mxu1  ;;  %v1784_v29 = vpop.f32.mrb[20].mxu0  ;;  %v1832_v17 = vadd.f32 %v2333_v59, %v784_v22 }
 0x13e   :  { %v1196_v32 = vadd.f32 %v1181_v25, %v1180_v21  ;;  %v1819_v33 = vadd.f32 %v1818_v40, %v1784_v29  ;;  %v1693_v35 = vpop.f32.mrb[37].mxu1  ;;  %v1076_v36 = vpop.f32.mrb[21].mxu0 }
 0x13f   :  { %v1694_v39 = vadd.f32 %v1693_v35, %v1692_v28  ;;  %v1821_v41 = vadd.f32 %v1820_v30, %v1076_v36  ;;  %v1158_v42 = vadd.f32 %v1815_v14, %v1157_v27  ;;  %v1695_v44 = vpop.f32.mrb[38].mxu1  ;;  %v1785_v46 = vpop.f32.mrb[22].mxu0  ;;  %v703_v30 = vadd.f32 %v2309_v0, %v2318_v13 }
 0x140   :  { %v1197_v48 = vadd.f32 %v1196_v32, %v1182_v31  ;;  %v1823_v49 = vadd.f32 %v1822_v37, %v1785_v46  ;;  %v1696_v50 = vpop.f32.mrb[39].mxu1  ;;  %v1079_v43 = vpop.f32.mrb[23].mxu0  ;;  %v1186_v9 = vmul.f32 %v1819_v33, %v1819_v33 }
 0x141   :  { %v789_v53 = vadd.f32 %v1694_v39, %v692_v26  ;;  %v1159_v54 = vadd.f32 %v1821_v41, %v1158_v42  ;;  %v1184_v55 = vmul.f32 %v1821_v41, %v1821_v41  ;;  %v1697_v56 = vadd.f32 %v1696_v50, %v1695_v44 }
 0x142   :  { %v1198_v57 = vadd.f32 %v1197_v48, %v1183_v47  ;;  %v2356_v60 = vpack.c.bf16 %v1823_v49, %v1819_v33  ;;  %v1825_v52 = vadd.f32 %v1824_v51, %v1079_v43  ;;  %v1187_v23 = vmul.f32 %v1823_v49, %v1823_v49 }
 0x143   :  { %v792_v61 = vadd.f32 %v1697_v56, %v695_v38  ;;  %v1826_v62 = vadd.f32 %v2333_v59, %v789_v53  ;;  %v708_v47 = vadd.f32 %v2311_v6, %v2318_v13  ;;  %v711_v6 = vadd.f32 %v2313_v12, %v2318_v13 }
 0x144   :  { %v1199_v63 = vadd.f32 %v1198_v57, %v1184_v55  ;;  %v2359_v1 = vpack.c.bf16 %v1825_v52, %v1821_v41  ;;  %v1160_v2 = vadd.f32 %v1825_v52, %v1159_v54  ;;  %v1185_v3 = vmul.f32 %v1825_v52, %v1825_v52 }
 0x145   :  { %v1698_v4 = vpop.f32.mrb[40].mxu1  ;;  %v1788_v5 = vpop.f32.mrb[24].mxu0  ;;  %v1830_v7 = vadd.f32 %v2333_v59, %v792_v61 }
 0x146   :  { %v1827_v10 = vadd.f32 %v1826_v62, %v1788_v5  ;;  %v1699_v11 = vpop.f32.mrb[41].mxu1  ;;  %v1092_v14 = vpop.f32.mrb[25].mxu0  ;;  %v1161_v15 = vadd.f32 %v1819_v33, %v1160_v2  ;;  %v1200_v16 = vadd.f32 %v1199_v63, %v1185_v3 }
 0x147   :  { %v1700_v18 = vadd.f32 %v1699_v11, %v1698_v4  ;;  %v1829_v19 = vadd.f32 %v1828_v45, %v1092_v14  ;;  %v1701_v20 = vpop.f32.mrb[42].mxu1  ;;  %v1789_v21 = vpop.f32.mrb[26].mxu0 }
 0x148   :  { %v1831_v25 = vadd.f32 %v1830_v7, %v1789_v21  ;;  %v1702_v40 = vpop.f32.mrb[43].mxu1  ;;  %v1095_v26 = vpop.f32.mrb[27].mxu0  ;;  %v1201_v27 = vadd.f32 %v1200_v16, %v1186_v9  ;;  %v1162_v29 = vadd.f32 %v1823_v49, %v1161_v15  ;;  %v1190_v0 = vmul.f32 %v1827_v10, %v1827_v10 }
 0x149   :  { %v797_v28 = vadd.f32 %v1700_v18, %v700_v8  ;;  %v1188_v58 = vmul.f32 %v1829_v19, %v1829_v19  ;;  %v1703_v32 = vadd.f32 %v1702_v40, %v1701_v20  ;;  %v1833_v33 = vadd.f32 %v1832_v17, %v1095_v26 }
 0x14a   :  { %v2368_v31 = vpack.c.bf16 %v1831_v25, %v1827_v10  ;;  %v1163_v35 = vadd.f32 %v1829_v19, %v1162_v29  ;;  %v1202_v36 = vadd.f32 %v1201_v27, %v1187_v23  ;;  %v1191_v56 = vmul.f32 %v1831_v25, %v1831_v25 }
 0x14b   :  { %v800_v37 = vadd.f32 %v1703_v32, %v703_v30  ;;  %v2370_v38 = vpack.c.bf16 %v1833_v33, %v1829_v19  ;;  %v1189_v42 = vmul.f32 %v1833_v33, %v1833_v33  ;;  %v1836_v46 = vadd.f32 %v2333_v59, %v797_v28 }
 0x14c   :  { %v1203_v39 = vadd.f32 %v1202_v36, %v1188_v58  ;;  %v1164_v41 = vadd.f32 %v1833_v33, %v1163_v35 }
 0x14d   :  { %v1704_v22 = vpop.f32.mrb[44].mxu1  ;;  %v1792_v44 = vpop.f32.mrb[28].mxu0  ;;  %v1840_v61 = vadd.f32 %v2333_v59, %v800_v37 }
 0x14e   :  { %v1705_v48 = vpop.f32.mrb[45].mxu1  ;;  %v1108_v49 = vpop.f32.mrb[29].mxu0  ;;  %v1165_v50 = vadd.f32 %v1827_v10, %v1164_v41  ;;  %v1204_v43 = vadd.f32 %v1203_v39, %v1189_v42  ;;  %v1179_v39 = vld [vmem:[#allocation3] sm:$0x1] }
 0x14f   :  { %v1706_v51 = vadd.f32 %v1705_v48, %v1704_v22  ;;  %v1837_v53 = vadd.f32 %v1836_v46, %v1108_v49  ;;  %v1707_v54 = vpop.f32.mrb[46].mxu1  ;;  %v1793_v55 = vpop.f32.mrb[30].mxu0 }
 0x150   :  { %v1708_v57 = vpop.f32.mrb[47].mxu1  ;;  %v1111_v52 = vpop.f32.mrb[31].mxu0  ;;  %v1205_v62 = vadd.f32 %v1204_v43, %v1190_v0  ;;  %v1166_v2 = vadd.f32 %v1831_v25, %v1165_v50 }
 0x151   :  { %v805_v63 = vadd.f32 %v1706_v51, %v708_v47  ;;  %v1192_v3 = vmul.f32 %v1837_v53, %v1837_v53  ;;  %v1709_v4 = vadd.f32 %v1708_v57, %v1707_v54  ;;  %v1841_v5 = vadd.f32 %v1840_v61, %v1111_v52  ;;  %v1226_v54 = vld [vmem:[%s2436_s6] sm:$0x1] }
 0x152   :  { %v1167_v7 = vadd.f32 %v1837_v53, %v1166_v2  ;;  %v1206_v8 = vadd.f32 %v1205_v62, %v1191_v56  ;;  %v1258_v51 = vlaneseq  ;;  %v1243_v52 = vunpack.c.l.bf16 %v2343_v34  ;;  %v1230_v2 = vld [vmem:[%s2437_s7] sm:$0x1] }
 0x153   :  { %v1834_v45 = vadd.f32 %v2333_v59, %v805_v63  ;;  %v808_v9 = vadd.f32 %v1709_v4, %v711_v6  ;;  %v2379_v10 = vpack.c.bf16 %v1841_v5, %v1837_v53  ;;  %v1193_v11 = vmul.f32 %v1841_v5, %v1841_v5 }
 0x154   :  { %v1207_v15 = vadd.f32 %v1206_v8, %v1192_v3  ;;  %v1168_v16 = vadd.f32 %v1841_v5, %v1167_v7  ;;  %v1259_v53 = vshrl.u32 %v1258_v51, 7  ;;  %v1244_v61 = vunpack.c.h.bf16 %v2343_v34 }
 0x155   :  { %v1835_v14 = vadd.f32 %v1834_v45, %v1792_v44  ;;  %v1838_v18 = vadd.f32 %v2333_v59, %v808_v9  ;;  %v1155_v59 = vld [vmem:[#allocation2] sm:$0x1]  ;;  %v1241_v62 = vunpack.c.l.bf16 %v2345_v24  ;;  %v1242_v63 = vunpack.c.h.bf16 %v2345_v24 }
 0x156   :  { %v1208_v21 = vadd.f32 %v1207_v15, %v1193_v11  ;;  %v1247_v3 = vunpack.c.l.bf16 %v2356_v60  ;;  %v1248_v6 = vunpack.c.h.bf16 %v2356_v60  ;;  %v1245_v45 = vunpack.c.l.bf16 %v2359_v1 }
 0x157   :  { %v1169_v19 = vadd.f32 %v1835_v14, %v1168_v16  ;;  %v1194_v20 = vmul.f32 %v1835_v14, %v1835_v14  ;;  %v1839_v23 = vadd.f32 %v1838_v18, %v1793_v55  ;;  %v1260_v55 = vsub.s32 0, %v1259_v53 }
 0x158   :  { %v1246_v7 = vunpack.c.h.bf16 %v2359_v1  ;;  %v1251_v34 = vunpack.c.l.bf16 %v2368_v31  ;;  %v1252_v8 = vunpack.c.h.bf16 %v2368_v31  ;;  %v1249_v24 = vunpack.c.l.bf16 %v2370_v38 }
 0x159   :  { %v1209_v12 = vadd.f32 %v1208_v21, %v1194_v20  ;;  %v2382_v13 = vpack.c.bf16 %v1839_v23, %v1835_v14  ;;  %v1195_v25 = vmul.f32 %v1839_v23, %v1839_v23  ;;  %v1170_v40 = vadd.f32 %v1839_v23, %v1169_v19 }
 0x15a   :  { %v1250_v9 = vunpack.c.h.bf16 %v2370_v38  ;;  %v1253_v14 = vunpack.c.l.bf16 %v2379_v10  ;;  %v1254_v16 = vunpack.c.h.bf16 %v2379_v10 }
 0x15b   :  { %v1171_v26 = vrot.slane %v1170_v40, 4  ;;  %v1210_v17 = vadd.f32 %v1209_v12, %v1195_v25  ;;  %v1255_v15 = vunpack.c.l.bf16 %v2382_v13  ;;  %v1256_v60 = vunpack.c.h.bf16 %v2382_v13 }
 0x15d   :  { %v1172_v27 = vadd.f32 %v1171_v26, %v1170_v40  ;;  %v1211_v28 = vrot.slane %v1210_v17, 4 }
 0x15f   :  { %v1173_v29 = vrot.slane %v1172_v27, 2  ;;  %v1212_v58 = vadd.f32 %v1211_v28, %v1210_v17 }
 0x161   :  { %v1174_v30 = vadd.f32 %v1173_v29, %v1172_v27  ;;  %v1213_v32 = vrot.slane %v1212_v58, 2 }
 0x163   :  { %v1175_v33 = vrot.slane %v1174_v30, 1  ;;  %v1214_v35 = vadd.f32 %v1213_v32, %v1212_v58 }
 0x165   :  { %v1176_v36 = vadd.f32 %v1175_v33, %v1174_v30  ;;  %v1215_v37 = vrot.slane %v1214_v35, 1 }
 0x167   :  { %v1177_v41 = vadd.f32 %v1176_v36, %v1155_v59  ;;  %v1216_v42 = vadd.f32 %v1215_v37, %v1214_v35 }
 0x169   :  { %1178 = vst [vmem:[#allocation2] sm:$0x1] %v1177_v41  ;;  %v1217_v22 = vadd.f32 %v1216_v42, %v1179_v39 }
 0x16b   :  { %1218 = vst [vmem:[#allocation3] sm:$0x1] %v1217_v22 }
 0x170   :  { %v1219_v44 = vld [vmem:[#allocation2] sm:$0x1] }
 0x171   :  { %v1220_v46 = vmul.f32 0.0078125, %v1219_v44 }
 0x172   :  { %v1221_v47 = vld [vmem:[#allocation3] sm:$0x1] }
 0x173   :  { %v1222_v0 = vmul.f32 0.0078125, %v1221_v47  ;;  %v1223_v48 = vmul.f32 %v1220_v46, %v1220_v46 }
 0x175   :  { %v1224_v49 = vsub.f32 %v1222_v0, %v1223_v48 }
 0x177   :  { %v1225_v50 = vmax.f32 %v1224_v49, 0.0 }
 0x179   :  { %v1227_v43 = vadd.f32 1e-05, %v1225_v50 }
 0x17b   :  { %1967 = vrsqrt.f32 %v1227_v43 }
 0x185   :  { %v1968_v56 = vpop.eup %1967 }
 0x186   :  { %v1229_v57 = vmul.f32 %v1968_v56, %v1226_v54 }
 0x188   :  { %v1231_v4 = vmul.f32 %v1229_v57, %v1220_v46  ;;  %v1261_v5 = vrot.slane %v1229_v57, %v1260_v55 }
 0x18a   :  { %v1232_v11 = vsub.f32 %v1230_v2, %v1231_v4  ;;  %v1263_v18 = vmul.f32 %v1261_v5, %v1241_v62  ;;  %v1264_v19 = vmul.f32 %v1261_v5, %v1242_v63  ;;  %v1265_v1 = vmul.f32 %v1261_v5, %v1243_v52 }
 0x18b   :  { %v1266_v20 = vmul.f32 %v1261_v5, %v1244_v61  ;;  %v1267_v21 = vmul.f32 %v1261_v5, %v1245_v45  ;;  %v1268_v23 = vmul.f32 %v1261_v5, %v1246_v7  ;;  %v1269_v31 = vmul.f32 %v1261_v5, %v1247_v3 }
 0x18c   :  { %v1270_v12 = vmul.f32 %v1261_v5, %v1248_v6  ;;  %v1271_v25 = vmul.f32 %v1261_v5, %v1249_v24  ;;  %v1272_v40 = vmul.f32 %v1261_v5, %v1250_v9  ;;  %v1273_v38 = vmul.f32 %v1261_v5, %v1251_v34 }
 0x18d   :  { %v1274_v26 = vmul.f32 %v1261_v5, %v1252_v8  ;;  %v1283_v17 = vrot.slane %v1232_v11, %v1260_v55  ;;  %v1275_v27 = vmul.f32 %v1261_v5, %v1253_v14  ;;  %v1276_v28 = vmul.f32 %v1261_v5, %v1254_v16 }
 0x18e   :  { %v1277_v29 = vmul.f32 %v1261_v5, %v1255_v15  ;;  %v1278_v58 = vmul.f32 %v1261_v5, %v1256_v60 }
 0x18f   :  { %v1285_v13 = vadd.f32 %v1283_v17, %v1263_v18  ;;  %v1286_v30 = vadd.f32 %v1283_v17, %v1264_v19  ;;  %v1287_v10 = vadd.f32 %v1283_v17, %v1265_v1  ;;  %v1288_v32 = vadd.f32 %v1283_v17, %v1266_v20 }
 0x190   :  { %v1289_v33 = vadd.f32 %v1283_v17, %v1267_v21  ;;  %v1290_v35 = vadd.f32 %v1283_v17, %v1268_v23  ;;  %v1291_v59 = vadd.f32 %v1283_v17, %v1269_v31  ;;  %v1292_v36 = vadd.f32 %v1283_v17, %v1270_v12 }
 0x191   :  { %v1293_v37 = vadd.f32 %v1283_v17, %v1271_v25  ;;  %v1294_v39 = vadd.f32 %v1283_v17, %v1272_v40  ;;  %v1295_v41 = vadd.f32 %v1283_v17, %v1273_v38  ;;  %v1296_v42 = vadd.f32 %v1283_v17, %v1274_v26 }
 0x192   :  { %v1297_v22 = vadd.f32 %v1283_v17, %v1275_v27  ;;  %v1298_v44 = vadd.f32 %v1283_v17, %v1276_v28  ;;  %v1299_v46 = vadd.f32 %v1283_v17, %v1277_v29  ;;  %v1300_v47 = vadd.f32 %v1283_v17, %v1278_v58 }
 0x193   :  { %v1301_v0 = vmax.f32 %v1285_v13, 0.0  ;;  %v1302_v48 = vmax.f32 %v1286_v30, 0.0  ;;  %v1303_v49 = vmax.f32 %v1287_v10, 0.0  ;;  %v1304_v50 = vmax.f32 %v1288_v32, 0.0 }
 0x194   :  { %v1305_v43 = vmax.f32 %v1289_v33, 0.0  ;;  %v1306_v51 = vmax.f32 %v1290_v35, 0.0  ;;  %v1307_v53 = vmax.f32 %v1291_v59, 0.0  ;;  %v1308_v54 = vmax.f32 %v1292_v36, 0.0 }
 0x195   :  { %v1309_v55 = vmax.f32 %v1293_v37, 0.0  ;;  %v1310_v56 = vmax.f32 %v1294_v39, 0.0  ;;  %v1311_v57 = vmax.f32 %v1295_v41, 0.0  ;;  %v1312_v52 = vmax.f32 %v1296_v42, 0.0 }
 0x196   :  { %v1313_v61 = vmax.f32 %v1297_v22, 0.0  ;;  %v1314_v62 = vmax.f32 %v1298_v44, 0.0  ;;  %v1315_v63 = vmax.f32 %v1299_v46, 0.0  ;;  %v1316_v2 = vmax.f32 %v1300_v47, 0.0 }
 0x197   :  { %v1538_v3 = vpack.c.bf16 %v1302_v48, %v1301_v0  ;;  %v1543_v6 = vpack.c.bf16 %v1304_v50, %v1303_v49  ;;  %v1548_v4 = vpack.c.bf16 %v1306_v51, %v1305_v43  ;;  %v1553_v5 = vpack.c.bf16 %v1308_v54, %v1307_v53 }
 0x198   :  { %v1558_v45 = vpack.c.bf16 %v1310_v56, %v1309_v55  ;;  %v1563_v7 = vpack.c.bf16 %v1312_v52, %v1311_v57  ;;  %v1568_v34 = vpack.c.bf16 %v1314_v62, %v1313_v61  ;;  %v1573_v8 = vpack.c.bf16 %v1316_v2, %v1315_v63 }
 0x199   :  { %1539 = vst [vmem:[%s2438_s8] sm:$0xff] %v1538_v3   ;;  %1575 = vst [vmem:[%s2438_s8 + $0x8] sm:$0xff] %v1543_v6  }
 0x19a   :  { %1576 = vst [vmem:[%s2438_s8 + $0x10] sm:$0xff] %v1548_v4   ;;  %1577 = vst [vmem:[%s2438_s8 + $0x18] sm:$0xff] %v1553_v5  }
 0x19b   :  { %1578 = vst [vmem:[%s2438_s8 + $0x20] sm:$0xff] %v1558_v45   ;;  %1579 = vst [vmem:[%s2438_s8 + $0x28] sm:$0xff] %v1563_v7  }
 0x19c   :  { %1580 = vst [vmem:[%s2438_s8 + $0x30] sm:$0xff] %v1568_v34   ;;  %1581 = vst [vmem:[%s2438_s8 + $0x38] sm:$0xff] %v1573_v8  }

</bundles_post_ra>
